<compile_context>
chip_gen: v7x
topology: tpu7x:2x2x1
jax: 0.10.0
libtpu: 0.0.40
codegen_flags: <defaults>
</compile_context>

<pallas_src>
import functools

import jax
import jax.numpy as jnp
from jax.experimental import pallas as pl
from jax.experimental.pallas import tpu as pltpu

CP = 128          # padded channel width for every internal activation
BN_EPS = 1e-5     # torch BatchNorm2d default


# ----------------------------- Pallas kernels ------------------------------

def _make_conv3x3_bn_relu_kernel(H, W, taps_in_kernel):
    """Fused 3x3 'same' conv (single big-K MXU matmul) + bias + training-mode
    BatchNorm + ReLU over the whole batch."""

    def kernel(x_ref, w_ref, b_ref, g_ref, bb_ref, o_ref):
        M, _ = o_ref.shape
        if taps_in_kernel:
            # x_ref: (N, H+2, W+2, CP) spatially zero-padded input.  Build the
            # (M, 9*CP) im2col matrix in VMEM from 9 shifted views; the padded
            # image is read from HBM exactly once.
            C = x_ref.shape[-1]
            taps = [x_ref[:, pl.ds(ky, H), pl.ds(kx, W), :].reshape(M, C)
                    for ky in range(3) for kx in range(3)]
            t = jnp.concatenate(taps, axis=-1)        # (M, 9*CP), lane-aligned
        else:
            t = x_ref[...]                            # pre-built (M, 9*CP)
        # One MXU matmul with K = 9*CP (bf16 inputs, f32 accumulation).
        y = jnp.dot(t.astype(jnp.bfloat16), w_ref[...],
                    preferred_element_type=jnp.float32)
        y = y + b_ref[...]
        # Training-mode BatchNorm (batch stats, biased variance) + ReLU.
        inv_m = 1.0 / M
        mean = jnp.sum(y, axis=0, keepdims=True) * inv_m
        var = jnp.sum(jnp.square(y - mean), axis=0, keepdims=True) * inv_m
        y = (y - mean) * jax.lax.rsqrt(var + BN_EPS)
        y = y * g_ref[...] + bb_ref[...]
        o_ref[...] = jnp.maximum(y, 0.0).astype(o_ref.dtype)

    return kernel


def conv3x3_bn_relu(x, w, b, gamma, beta):
    """x: (N,H,W,CP) f32 (channels zero-padded to CP).
       w: (9*CP, CP) bf16 with rows ordered (ky, kx, cin);
       b/gamma/beta: (1, CP) f32."""
    N, H, W, C = x.shape
    M = N * H * W
    xp = jnp.pad(x, ((0, 0), (1, 1), (1, 1), (0, 0)))   # spatial zero pad (XLA)
    taps_in_kernel = (W % 8 == 0)
    if taps_in_kernel:
        xin = xp
        x_spec = pl.BlockSpec((N, H + 2, W + 2, C), lambda i: (0, 0, 0, 0))
    else:
        # Tiny spatial level (W not sublane aligned): build the im2col matrix
        # in XLA glue instead (a few tens of KB at these shapes).
        xin = jnp.concatenate(
            [xp[:, ky:ky + H, kx:kx + W, :].reshape(M, C)
             for ky in range(3) for kx in range(3)], axis=-1)
        x_spec = pl.BlockSpec((M, 9 * C), lambda i: (0, 0))

    out = pl.pallas_call(
        _make_conv3x3_bn_relu_kernel(H, W, taps_in_kernel),
        out_shape=jax.ShapeDtypeStruct((M, CP), jnp.float32),
        grid=(1,),
        in_specs=[x_spec,
                  pl.BlockSpec((9 * C, CP), lambda i: (0, 0)),
                  pl.BlockSpec((1, CP), lambda i: (0, 0)),
                  pl.BlockSpec((1, CP), lambda i: (0, 0)),
                  pl.BlockSpec((1, CP), lambda i: (0, 0))],
        out_specs=pl.BlockSpec((M, CP), lambda i: (0, 0)),
        compiler_params=pltpu.CompilerParams(
            dimension_semantics=("arbitrary",),
            vmem_limit_bytes=32 * 1024 * 1024),
    )(xin, w, b, gamma, beta)
    return out.reshape(N, H, W, CP)


def _make_pointwise_kernel(apply_sigmoid):
    def kernel(x_ref, w_ref, b_ref, o_ref):
        y = jnp.dot(x_ref[...].astype(jnp.bfloat16), w_ref[...],
                    preferred_element_type=jnp.float32)
        y = y + b_ref[...]
        if apply_sigmoid:
            y = 1.0 / (1.0 + jnp.exp(-y))
        o_ref[...] = y.astype(o_ref.dtype)
    return kernel


def pointwise_matmul(x2d, w, b, apply_sigmoid=False):
    """Per-pixel matmul (1x1 conv; also the ConvTranspose2d(2,2) core).
       x2d: (M, Cin) f32, w: (Cin, K) bf16, b: (1, K) f32."""
    M, Cin = x2d.shape
    K = w.shape[1]
    return pl.pallas_call(
        _make_pointwise_kernel(apply_sigmoid),
        out_shape=jax.ShapeDtypeStruct((M, K), jnp.float32),
        grid=(1,),
        in_specs=[pl.BlockSpec((M, Cin), lambda i: (0, 0)),
                  pl.BlockSpec((Cin, K), lambda i: (0, 0)),
                  pl.BlockSpec((1, K), lambda i: (0, 0))],
        out_specs=pl.BlockSpec((M, K), lambda i: (0, 0)),
        compiler_params=pltpu.CompilerParams(
            dimension_semantics=("arbitrary",)),
    )(x2d, w, b)


# ------------------------------ Module glue --------------------------------

def double_conv_apply(x, p):
    # [Conv3x3 -> BN -> ReLU] x 2, with the SAME BN affine params used twice
    # (mirrors the shared batch_norm_layer instance in the torch module).
    y = conv3x3_bn_relu(x, p['w1'], p['b1'], p['gamma'], p['beta'])
    y = conv3x3_bn_relu(y, p['w2'], p['b2'], p['gamma'], p['beta'])
    return y


def max_pool_2x2(x):
    # MaxPool2d(2,2) as XLA glue (reshape + max) so it fuses with the next
    # conv's spatial zero-pad: one HBM read of x, one write of the pooled
    # padded tensor, no extra kernel dispatch.
    N, H, W, C = x.shape
    return jnp.max(x.reshape(N, H // 2, 2, W // 2, 2, C), axis=(2, 4))


def conv_transpose_2x2(x, wt, bt):
    # ConvTranspose2d(k=2, s=2) = per-pixel matmul to 4*CP channels (Pallas
    # MXU kernel) + spatial 2x2 interleave (XLA reshape/transpose glue).
    N, h, wd, C = x.shape
    y = pointwise_matmul(x.reshape(N * h * wd, C), wt, bt)
    y = y.reshape(N, h, wd, 2, 2, CP)
    y = jnp.transpose(y, (0, 1, 3, 2, 4, 5)).reshape(N, 2 * h, 2 * wd, CP)
    return y


def adaptive_max_pool(x, out_hw):
    # TODO(synk): general AdaptiveMaxPool2d (output != input spatial) is plain
    # JAX glue, not a Pallas kernel (it is an identity at the shapes used here).
    N, H, W, C = x.shape
    Ho, Wo = out_hw
    if (H, W) == (Ho, Wo):
        return x
    rows = []
    for i in range(Ho):
        hs, he = (i * H) // Ho, -((-(i + 1) * H) // Ho)
        cols = []
        for j in range(Wo):
            ws, we = (j * W) // Wo, -((-(j + 1) * W) // Wo)
            cols.append(jnp.max(x[:, hs:he, ws:we, :], axis=(1, 2)))
        rows.append(jnp.stack(cols, axis=1))
    return jnp.stack(rows, axis=1)


def unet_forward(x_nchw, packed, *, features_start, num_classes,
                 output_spatial_shape):
    x = jnp.transpose(x_nchw, (0, 2, 3, 1))                  # NCHW -> NHWC
    x = jnp.pad(x, ((0, 0), (0, 0), (0, 0), (0, CP - x.shape[-1])))  # 107->128
    xi = [double_conv_apply(x, packed['dc0'])]

    feats = features_start
    enc_feats = [feats]
    # contracting path
    for dp in packed['downs']:
        y = max_pool_2x2(xi[-1])
        xi.append(double_conv_apply(y, dp['dc']))
        feats *= 2
        enc_feats.append(feats)
    # expanding path
    for i, up in enumerate(packed['ups']):
        x1, x2 = xi[-1], xi[-2 - i]
        c1 = feats // 2               # real channels of x1 after transpose conv
        c2 = enc_feats[-2 - i]        # real channels of the skip connection
        x1 = conv_transpose_2x2(x1, up['wt'], up['bt'])
        dh = x2.shape[1] - x1.shape[1]
        dw = x2.shape[2] - x1.shape[2]
        x1 = jnp.pad(x1, ((0, 0), (dh // 2, dh - dh // 2),
                          (dw // 2, dw - dw // 2), (0, 0)))
        xc = jnp.concatenate([x2[..., :c2], x1[..., :c1]], axis=-1)
        xc = jnp.pad(xc, ((0, 0), (0, 0), (0, 0), (0, CP - xc.shape[-1])))
        xi[-1] = double_conv_apply(xc, up['dc'])
        feats //= 2

    # final 1x1 conv with fused sigmoid (sigmoid is monotonic, so applying it
    # before the AdaptiveMaxPool gives identical results), then pool.
    h = xi[-1]
    N, H, W, _ = h.shape
    out = pointwise_matmul(h.reshape(N * H * W, CP),
                           packed['final']['w'], packed['final']['b'],
                           apply_sigmoid=True)
    out = out.reshape(N, H, W, CP)[..., :num_classes]
    out = adaptive_max_pool(out, output_spatial_shape)
    out = jnp.transpose(out, (0, 3, 1, 2))                   # NHWC -> NCHW
    if out.shape[1] == 1:                                    # .squeeze(dim=1)
        out = jnp.squeeze(out, axis=1)
    return out


# ---------------------- parameter creation & packing ------------------------

def init_double_conv(key, cin, cout, s=0.05):
    k = jax.random.split(key, 6)
    return dict(
        w1=jax.random.normal(k[0], (3, 3, cin, cout), jnp.float32) * s,
        b1=jax.random.normal(k[1], (cout,), jnp.float32) * s,
        w2=jax.random.normal(k[2], (3, 3, cout, cout), jnp.float32) * s,
        b2=jax.random.normal(k[3], (cout,), jnp.float32) * s,
        gamma=1.0 + jax.random.normal(k[4], (cout,), jnp.float32) * s,
        beta=jax.random.normal(k[5], (cout,), jnp.float32) * s,
    )


def init_unet_params(key, in_ch, num_classes, num_layers, features_start, s=0.05):
    keys = iter(jax.random.split(key, 2 * num_layers + 2))
    params = {'dc0': init_double_conv(next(keys), in_ch, features_start)}
    feats = features_start
    downs = []
    for _ in range(num_layers - 1):
        downs.append(dict(dc=init_double_conv(next(keys), feats, feats * 2)))
        feats *= 2
    params['downs'] = downs
    ups = []
    for _ in range(num_layers - 1):
        ku = jax.random.split(next(keys), 3)
        ups.append(dict(
            wt=jax.random.normal(ku[0], (feats, feats // 2, 2, 2), jnp.float32) * s,
            bt=jax.random.normal(ku[1], (feats // 2,), jnp.float32) * s,
            dc=init_double_conv(ku[2], feats, feats // 2),
        ))
        feats //= 2
    params['ups'] = ups
    kf = jax.random.split(next(keys), 2)
    params['final_w'] = jax.random.normal(kf[0], (feats, num_classes), jnp.float32) * s
    params['final_b'] = jax.random.normal(kf[1], (num_classes,), jnp.float32) * s
    return params


def _pad_vec(v):
    return jnp.zeros((1, CP), jnp.float32).at[0, :v.shape[0]].set(v)


def pack_double_conv(p):
    def pack_w(w):                       # (3,3,ci,co) HWIO -> (9*CP, CP) bf16
        ci, co = w.shape[2], w.shape[3]
        wp = jnp.zeros((3, 3, CP, CP), jnp.float32).at[:, :, :ci, :co].set(w)
        return wp.reshape(9 * CP, CP).astype(jnp.bfloat16)
    return dict(w1=pack_w(p['w1']), b1=_pad_vec(p['b1']),
                w2=pack_w(p['w2']), b2=_pad_vec(p['b2']),
                gamma=_pad_vec(p['gamma']), beta=_pad_vec(p['beta']))


def pack_conv_transpose(wt, bt):
    # torch layout (cin, cout, 2, 2) -> (CP, 4*CP) with column order (dy,dx,cout)
    ci, co = wt.shape[0], wt.shape[1]
    wp = jnp.zeros((CP, 2, 2, CP), jnp.float32)
    wp = wp.at[:ci, :, :, :co].set(jnp.transpose(wt, (0, 2, 3, 1)))
    bp = jnp.zeros((2, 2, CP), jnp.float32).at[:, :, :co].set(
        jnp.broadcast_to(bt, (2, 2, co)))
    return wp.reshape(CP, 4 * CP).astype(jnp.bfloat16), bp.reshape(1, 4 * CP)


def pack_final_conv(w, b):
    ci, k = w.shape
    wp = jnp.zeros((CP, CP), jnp.float32).at[:ci, :k].set(w)
    return wp.astype(jnp.bfloat16), _pad_vec(b)


def pack_unet_params(raw):
    packed = dict(dc0=pack_double_conv(raw['dc0']))
    packed['downs'] = [dict(dc=pack_double_conv(d['dc'])) for d in raw['downs']]
    ups = []
    for u in raw['ups']:
        wt, bt = pack_conv_transpose(u['wt'], u['bt'])
        ups.append(dict(wt=wt, bt=bt, dc=pack_double_conv(u['dc'])))
    packed['ups'] = ups
    fw, fb = pack_final_conv(raw['final_w'], raw['final_b'])
    packed['final'] = dict(w=fw, b=fb)
    return packed


# ---------------------------------- main ------------------------------------

if __name__ == "__main__":
    key = jax.random.PRNGKey(0)
    kx, kp = jax.random.split(key)

    # Small config consistent with the module: in_ch is hard-coded to 107 in
    # UNet_2D.__init__; num_layers=3, features_start=8, num_classes=3,
    # spatial 16x16, output_spatial_shape=(16,16), transpose-conv upsampling,
    # max pooling, batch norm, Sigmoid final activation.
    N, IN_CH, H, W = 2, 107, 16, 16
    NUM_CLASSES, NUM_LAYERS, FEATS = 3, 3, 8

    x = jax.random.normal(kx, (N, IN_CH, H, W), jnp.float32)   # NCHW like torch
    raw_params = init_unet_params(kp, IN_CH, NUM_CLASSES, NUM_LAYERS, FEATS)
    packed_params = pack_unet_params(raw_params)               # pad/cast once

    fwd = jax.jit(functools.partial(unet_forward,
                                    features_start=FEATS,
                                    num_classes=NUM_CLASSES,
                                    output_spatial_shape=(H, W)))
    out = fwd(x, packed_params)
    jax.block_until_ready(out)

    assert out.shape == (N, NUM_CLASSES, H, W), out.shape
    assert bool(jnp.all(jnp.isfinite(out)))
    print("KERNEL_OK")
</pallas_src>

<mosaic_0001>
module attributes {stable_mosaic.version = 11 : i64} {
  func.func @kernel(%arg0: i32, %arg1: memref<2x18x18x128xf32, #tpu.memory_space<vmem>>, %arg2: memref<1152x128xbf16, #tpu.memory_space<vmem>>, %arg3: memref<1x128xf32, #tpu.memory_space<vmem>>, %arg4: memref<1x128xf32, #tpu.memory_space<vmem>>, %arg5: memref<1x128xf32, #tpu.memory_space<vmem>>, %arg6: memref<512x128xf32, #tpu.memory_space<vmem>>) attributes {dimension_semantics = [#tpu.dimension_semantics<arbitrary>], iteration_bounds = array<i64: 1>, scalar_prefetch = 0 : i64, scratch_operands = 0 : i64, tpu.core_type = #tpu.core_type<tc>, window_params = [{pipeline_mode = #tpu.pipeline_mode<synchronous>, transform_indices = @transform_0, window_bounds = array<i64: 2, 18, 18, 128>}, {pipeline_mode = #tpu.pipeline_mode<synchronous>, transform_indices = @transform_1, window_bounds = array<i64: 1152, 128>}, {pipeline_mode = #tpu.pipeline_mode<synchronous>, transform_indices = @transform_2, window_bounds = array<i64: 1, 128>}, {pipeline_mode = #tpu.pipeline_mode<synchronous>, transform_indices = @transform_3, window_bounds = array<i64: 1, 128>}, {pipeline_mode = #tpu.pipeline_mode<synchronous>, transform_indices = @transform_4, window_bounds = array<i64: 1, 128>}, {pipeline_mode = #tpu.pipeline_mode<synchronous>, transform_indices = @transform_5, window_bounds = array<i64: 512, 128>}]} {
    %c0 = arith.constant 0 : index
    %c0_0 = arith.constant 0 : index
    %c0_1 = arith.constant 0 : index
    %c0_2 = arith.constant 0 : index
    %0 = vector.load %arg1[%c0, %c0_0, %c0_1, %c0_2] : memref<2x18x18x128xf32, #tpu.memory_space<vmem>>, vector<2x16x16x128xf32>
    %1 = vector.shape_cast %0 : vector<2x16x16x128xf32> to vector<512x128xf32>
    %c0_3 = arith.constant 0 : index
    %c0_4 = arith.constant 0 : index
    %c1 = arith.constant 1 : index
    %c0_5 = arith.constant 0 : index
    %2 = vector.load %arg1[%c0_3, %c0_4, %c1, %c0_5] : memref<2x18x18x128xf32, #tpu.memory_space<vmem>>, vector<2x16x16x128xf32>
    %3 = vector.shape_cast %2 : vector<2x16x16x128xf32> to vector<512x128xf32>
    %c0_6 = arith.constant 0 : index
    %c0_7 = arith.constant 0 : index
    %c2 = arith.constant 2 : index
    %c0_8 = arith.constant 0 : index
    %4 = vector.load %arg1[%c0_6, %c0_7, %c2, %c0_8] : memref<2x18x18x128xf32, #tpu.memory_space<vmem>>, vector<2x16x16x128xf32>
    %5 = vector.shape_cast %4 : vector<2x16x16x128xf32> to vector<512x128xf32>
    %c0_9 = arith.constant 0 : index
    %c1_10 = arith.constant 1 : index
    %c0_11 = arith.constant 0 : index
    %c0_12 = arith.constant 0 : index
    %6 = vector.load %arg1[%c0_9, %c1_10, %c0_11, %c0_12] : memref<2x18x18x128xf32, #tpu.memory_space<vmem>>, vector<2x16x16x128xf32>
    %7 = vector.shape_cast %6 : vector<2x16x16x128xf32> to vector<512x128xf32>
    %c0_13 = arith.constant 0 : index
    %c1_14 = arith.constant 1 : index
    %c1_15 = arith.constant 1 : index
    %c0_16 = arith.constant 0 : index
    %8 = vector.load %arg1[%c0_13, %c1_14, %c1_15, %c0_16] : memref<2x18x18x128xf32, #tpu.memory_space<vmem>>, vector<2x16x16x128xf32>
    %9 = vector.shape_cast %8 : vector<2x16x16x128xf32> to vector<512x128xf32>
    %c0_17 = arith.constant 0 : index
    %c1_18 = arith.constant 1 : index
    %c2_19 = arith.constant 2 : index
    %c0_20 = arith.constant 0 : index
    %10 = vector.load %arg1[%c0_17, %c1_18, %c2_19, %c0_20] : memref<2x18x18x128xf32, #tpu.memory_space<vmem>>, vector<2x16x16x128xf32>
    %11 = vector.shape_cast %10 : vector<2x16x16x128xf32> to vector<512x128xf32>
    %c0_21 = arith.constant 0 : index
    %c2_22 = arith.constant 2 : index
    %c0_23 = arith.constant 0 : index
    %c0_24 = arith.constant 0 : index
    %12 = vector.load %arg1[%c0_21, %c2_22, %c0_23, %c0_24] : memref<2x18x18x128xf32, #tpu.memory_space<vmem>>, vector<2x16x16x128xf32>
    %13 = vector.shape_cast %12 : vector<2x16x16x128xf32> to vector<512x128xf32>
    %c0_25 = arith.constant 0 : index
    %c2_26 = arith.constant 2 : index
    %c1_27 = arith.constant 1 : index
    %c0_28 = arith.constant 0 : index
    %14 = vector.load %arg1[%c0_25, %c2_26, %c1_27, %c0_28] : memref<2x18x18x128xf32, #tpu.memory_space<vmem>>, vector<2x16x16x128xf32>
    %15 = vector.shape_cast %14 : vector<2x16x16x128xf32> to vector<512x128xf32>
    %c0_29 = arith.constant 0 : index
    %c2_30 = arith.constant 2 : index
    %c2_31 = arith.constant 2 : index
    %c0_32 = arith.constant 0 : index
    %16 = vector.load %arg1[%c0_29, %c2_30, %c2_31, %c0_32] : memref<2x18x18x128xf32, #tpu.memory_space<vmem>>, vector<2x16x16x128xf32>
    %17 = vector.shape_cast %16 : vector<2x16x16x128xf32> to vector<512x128xf32>
    %18 = tpu.concatenate %1, %3, %5, %7, %9, %11, %13, %15, %17 in 1 : vector<512x128xf32>, vector<512x128xf32>, vector<512x128xf32>, vector<512x128xf32>, vector<512x128xf32>, vector<512x128xf32>, vector<512x128xf32>, vector<512x128xf32>, vector<512x128xf32> -> vector<512x1152xf32>
    %19 = arith.truncf %18 : vector<512x1152xf32> to vector<512x1152xbf16>
    %c0_33 = arith.constant 0 : index
    %c0_34 = arith.constant 0 : index
    %20 = vector.load %arg2[%c0_33, %c0_34] : memref<1152x128xbf16, #tpu.memory_space<vmem>>, vector<1152x128xbf16>
    %cst = arith.constant dense<0.000000e+00> : vector<512x128xf32>
    %21 = tpu.matmul %19, %20, %cst {dimension_numbers = #tpu.dot_dimension_numbers<[1], [0], [0], [1], [0, 0, 1, 1], [], []>} : vector<512x1152xbf16>, vector<1152x128xbf16>, vector<512x128xf32> -> vector<512x128xf32>
    %c0_35 = arith.constant 0 : index
    %c0_36 = arith.constant 0 : index
    %22 = vector.load %arg3[%c0_35, %c0_36] : memref<1x128xf32, #tpu.memory_space<vmem>>, vector<1x128xf32>
    %23 = vector.broadcast %22 : vector<1x128xf32> to vector<512x128xf32>
    %24 = arith.addf %21, %23 : vector<512x128xf32>
    %cst_37 = arith.constant dense<0.000000e+00> : vector<128xf32>
    %25 = vector.multi_reduction <add>, %24, %cst_37 [0] : vector<512x128xf32> to vector<128xf32>
    %26 = vector.shape_cast %25 : vector<128xf32> to vector<1x128xf32>
    %cst_38 = arith.constant 0.001953125 : f32
    %27 = vector.broadcast %cst_38 : f32 to vector<1x128xf32>
    %28 = arith.mulf %26, %27 : vector<1x128xf32>
    %29 = vector.broadcast %28 : vector<1x128xf32> to vector<512x128xf32>
    %30 = arith.subf %24, %29 : vector<512x128xf32>
    %31 = arith.mulf %30, %30 : vector<512x128xf32>
    %cst_39 = arith.constant dense<0.000000e+00> : vector<128xf32>
    %32 = vector.multi_reduction <add>, %31, %cst_39 [0] : vector<512x128xf32> to vector<128xf32>
    %33 = vector.shape_cast %32 : vector<128xf32> to vector<1x128xf32>
    %cst_40 = arith.constant 0.001953125 : f32
    %34 = vector.broadcast %cst_40 : f32 to vector<1x128xf32>
    %35 = arith.mulf %33, %34 : vector<1x128xf32>
    %36 = vector.broadcast %28 : vector<1x128xf32> to vector<512x128xf32>
    %37 = arith.subf %24, %36 : vector<512x128xf32>
    %cst_41 = arith.constant 9.99999974E-6 : f32
    %38 = vector.broadcast %cst_41 : f32 to vector<1x128xf32>
    %39 = arith.addf %35, %38 : vector<1x128xf32>
    %40 = math.rsqrt %39 : vector<1x128xf32>
    %41 = vector.broadcast %40 : vector<1x128xf32> to vector<512x128xf32>
    %42 = arith.mulf %37, %41 : vector<512x128xf32>
    %c0_42 = arith.constant 0 : index
    %c0_43 = arith.constant 0 : index
    %43 = vector.load %arg4[%c0_42, %c0_43] : memref<1x128xf32, #tpu.memory_space<vmem>>, vector<1x128xf32>
    %44 = vector.broadcast %43 : vector<1x128xf32> to vector<512x128xf32>
    %45 = arith.mulf %42, %44 : vector<512x128xf32>
    %c0_44 = arith.constant 0 : index
    %c0_45 = arith.constant 0 : index
    %46 = vector.load %arg5[%c0_44, %c0_45] : memref<1x128xf32, #tpu.memory_space<vmem>>, vector<1x128xf32>
    %47 = vector.broadcast %46 : vector<1x128xf32> to vector<512x128xf32>
    %48 = arith.addf %45, %47 : vector<512x128xf32>
    %cst_46 = arith.constant 0.000000e+00 : f32
    %49 = vector.broadcast %cst_46 : f32 to vector<512x128xf32>
    %50 = arith.maximumf %48, %49 : vector<512x128xf32>
    %c0_47 = arith.constant 0 : index
    %c0_48 = arith.constant 0 : index
    %51 = vector.load %arg6[%c0_47, %c0_48] : memref<512x128xf32, #tpu.memory_space<vmem>>, vector<512x128xf32>
    tpu.vector_store %arg6[%c0_47, %c0_48], %50 {strides = array<i32>} : memref<512x128xf32, #tpu.memory_space<vmem>>, vector<512x128xf32>,
    return
  }
  func.func @transform_0(%arg0: i32) -> (i32, i32, i32, i32) {
    %c0_i32 = arith.constant 0 : i32
    %c0_i32_0 = arith.constant 0 : i32
    %c0_i32_1 = arith.constant 0 : i32
    %c0_i32_2 = arith.constant 0 : i32
    %c0_i32_3 = arith.constant 0 : i32
    return %c0_i32, %c0_i32_0, %c0_i32_1, %c0_i32_2 : i32, i32, i32, i32
  }
  func.func @transform_1(%arg0: i32) -> (i32, i32) {
    %c0_i32 = arith.constant 0 : i32
    %c0_i32_0 = arith.constant 0 : i32
    %c0_i32_1 = arith.constant 0 : i32
    return %c0_i32, %c0_i32_0 : i32, i32
  }
  func.func @transform_2(%arg0: i32) -> (i32, i32) {
    %c0_i32 = arith.constant 0 : i32
    %c0_i32_0 = arith.constant 0 : i32
    %c0_i32_1 = arith.constant 0 : i32
    return %c0_i32, %c0_i32_0 : i32, i32
  }
  func.func @transform_3(%arg0: i32) -> (i32, i32) {
    %c0_i32 = arith.constant 0 : i32
    %c0_i32_0 = arith.constant 0 : i32
    %c0_i32_1 = arith.constant 0 : i32
    return %c0_i32, %c0_i32_0 : i32, i32
  }
  func.func @transform_4(%arg0: i32) -> (i32, i32) {
    %c0_i32 = arith.constant 0 : i32
    %c0_i32_0 = arith.constant 0 : i32
    %c0_i32_1 = arith.constant 0 : i32
    return %c0_i32, %c0_i32_0 : i32, i32
  }
  func.func @transform_5(%arg0: i32) -> (i32, i32) {
    %c0_i32 = arith.constant 0 : i32
    %c0_i32_0 = arith.constant 0 : i32
    %c0_i32_1 = arith.constant 0 : i32
    return %c0_i32, %c0_i32_0 : i32, i32
  }
}

module attributes {stable_mosaic.version = 11 : i64} {
  func.func @kernel(%arg0: i32, %arg1: memref<2x10x10x128xf32, #tpu.memory_space<vmem>>, %arg2: memref<1152x128xbf16, #tpu.memory_space<vmem>>, %arg3: memref<1x128xf32, #tpu.memory_space<vmem>>, %arg4: memref<1x128xf32, #tpu.memory_space<vmem>>, %arg5: memref<1x128xf32, #tpu.memory_space<vmem>>, %arg6: memref<128x128xf32, #tpu.memory_space<vmem>>) attributes {dimension_semantics = [#tpu.dimension_semantics<arbitrary>], iteration_bounds = array<i64: 1>, scalar_prefetch = 0 : i64, scratch_operands = 0 : i64, tpu.core_type = #tpu.core_type<tc>, window_params = [{pipeline_mode = #tpu.pipeline_mode<synchronous>, transform_indices = @transform_0, window_bounds = array<i64: 2, 10, 10, 128>}, {pipeline_mode = #tpu.pipeline_mode<synchronous>, transform_indices = @transform_1, window_bounds = array<i64: 1152, 128>}, {pipeline_mode = #tpu.pipeline_mode<synchronous>, transform_indices = @transform_2, window_bounds = array<i64: 1, 128>}, {pipeline_mode = #tpu.pipeline_mode<synchronous>, transform_indices = @transform_3, window_bounds = array<i64: 1, 128>}, {pipeline_mode = #tpu.pipeline_mode<synchronous>, transform_indices = @transform_4, window_bounds = array<i64: 1, 128>}, {pipeline_mode = #tpu.pipeline_mode<synchronous>, transform_indices = @transform_5, window_bounds = array<i64: 128, 128>}]} {
    %c0 = arith.constant 0 : index
    %c0_0 = arith.constant 0 : index
    %c0_1 = arith.constant 0 : index
    %c0_2 = arith.constant 0 : index
    %0 = vector.load %arg1[%c0, %c0_0, %c0_1, %c0_2] : memref<2x10x10x128xf32, #tpu.memory_space<vmem>>, vector<2x8x8x128xf32>
    %1 = vector.shape_cast %0 : vector<2x8x8x128xf32> to vector<128x128xf32>
    %c0_3 = arith.constant 0 : index
    %c0_4 = arith.constant 0 : index
    %c1 = arith.constant 1 : index
    %c0_5 = arith.constant 0 : index
    %2 = vector.load %arg1[%c0_3, %c0_4, %c1, %c0_5] : memref<2x10x10x128xf32, #tpu.memory_space<vmem>>, vector<2x8x8x128xf32>
    %3 = vector.shape_cast %2 : vector<2x8x8x128xf32> to vector<128x128xf32>
    %c0_6 = arith.constant 0 : index
    %c0_7 = arith.constant 0 : index
    %c2 = arith.constant 2 : index
    %c0_8 = arith.constant 0 : index
    %4 = vector.load %arg1[%c0_6, %c0_7, %c2, %c0_8] : memref<2x10x10x128xf32, #tpu.memory_space<vmem>>, vector<2x8x8x128xf32>
    %5 = vector.shape_cast %4 : vector<2x8x8x128xf32> to vector<128x128xf32>
    %c0_9 = arith.constant 0 : index
    %c1_10 = arith.constant 1 : index
    %c0_11 = arith.constant 0 : index
    %c0_12 = arith.constant 0 : index
    %6 = vector.load %arg1[%c0_9, %c1_10, %c0_11, %c0_12] : memref<2x10x10x128xf32, #tpu.memory_space<vmem>>, vector<2x8x8x128xf32>
    %7 = vector.shape_cast %6 : vector<2x8x8x128xf32> to vector<128x128xf32>
    %c0_13 = arith.constant 0 : index
    %c1_14 = arith.constant 1 : index
    %c1_15 = arith.constant 1 : index
    %c0_16 = arith.constant 0 : index
    %8 = vector.load %arg1[%c0_13, %c1_14, %c1_15, %c0_16] : memref<2x10x10x128xf32, #tpu.memory_space<vmem>>, vector<2x8x8x128xf32>
    %9 = vector.shape_cast %8 : vector<2x8x8x128xf32> to vector<128x128xf32>
    %c0_17 = arith.constant 0 : index
    %c1_18 = arith.constant 1 : index
    %c2_19 = arith.constant 2 : index
    %c0_20 = arith.constant 0 : index
    %10 = vector.load %arg1[%c0_17, %c1_18, %c2_19, %c0_20] : memref<2x10x10x128xf32, #tpu.memory_space<vmem>>, vector<2x8x8x128xf32>
    %11 = vector.shape_cast %10 : vector<2x8x8x128xf32> to vector<128x128xf32>
    %c0_21 = arith.constant 0 : index
    %c2_22 = arith.constant 2 : index
    %c0_23 = arith.constant 0 : index
    %c0_24 = arith.constant 0 : index
    %12 = vector.load %arg1[%c0_21, %c2_22, %c0_23, %c0_24] : memref<2x10x10x128xf32, #tpu.memory_space<vmem>>, vector<2x8x8x128xf32>
    %13 = vector.shape_cast %12 : vector<2x8x8x128xf32> to vector<128x128xf32>
    %c0_25 = arith.constant 0 : index
    %c2_26 = arith.constant 2 : index
    %c1_27 = arith.constant 1 : index
    %c0_28 = arith.constant 0 : index
    %14 = vector.load %arg1[%c0_25, %c2_26, %c1_27, %c0_28] : memref<2x10x10x128xf32, #tpu.memory_space<vmem>>, vector<2x8x8x128xf32>
    %15 = vector.shape_cast %14 : vector<2x8x8x128xf32> to vector<128x128xf32>
    %c0_29 = arith.constant 0 : index
    %c2_30 = arith.constant 2 : index
    %c2_31 = arith.constant 2 : index
    %c0_32 = arith.constant 0 : index
    %16 = vector.load %arg1[%c0_29, %c2_30, %c2_31, %c0_32] : memref<2x10x10x128xf32, #tpu.memory_space<vmem>>, vector<2x8x8x128xf32>
    %17 = vector.shape_cast %16 : vector<2x8x8x128xf32> to vector<128x128xf32>
    %18 = tpu.concatenate %1, %3, %5, %7, %9, %11, %13, %15, %17 in 1 : vector<128x128xf32>, vector<128x128xf32>, vector<128x128xf32>, vector<128x128xf32>, vector<128x128xf32>, vector<128x128xf32>, vector<128x128xf32>, vector<128x128xf32>, vector<128x128xf32> -> vector<128x1152xf32>
    %19 = arith.truncf %18 : vector<128x1152xf32> to vector<128x1152xbf16>
    %c0_33 = arith.constant 0 : index
    %c0_34 = arith.constant 0 : index
    %20 = vector.load %arg2[%c0_33, %c0_34] : memref<1152x128xbf16, #tpu.memory_space<vmem>>, vector<1152x128xbf16>
    %cst = arith.constant dense<0.000000e+00> : vector<128x128xf32>
    %21 = tpu.matmul %19, %20, %cst {dimension_numbers = #tpu.dot_dimension_numbers<[1], [0], [0], [1], [0, 0, 1, 1], [], []>} : vector<128x1152xbf16>, vector<1152x128xbf16>, vector<128x128xf32> -> vector<128x128xf32>
    %c0_35 = arith.constant 0 : index
    %c0_36 = arith.constant 0 : index
    %22 = vector.load %arg3[%c0_35, %c0_36] : memref<1x128xf32, #tpu.memory_space<vmem>>, vector<1x128xf32>
    %23 = vector.broadcast %22 : vector<1x128xf32> to vector<128x128xf32>
    %24 = arith.addf %21, %23 : vector<128x128xf32>
    %cst_37 = arith.constant dense<0.000000e+00> : vector<128xf32>
    %25 = vector.multi_reduction <add>, %24, %cst_37 [0] : vector<128x128xf32> to vector<128xf32>
    %26 = vector.shape_cast %25 : vector<128xf32> to vector<1x128xf32>
    %cst_38 = arith.constant 7.812500e-03 : f32
    %27 = vector.broadcast %cst_38 : f32 to vector<1x128xf32>
    %28 = arith.mulf %26, %27 : vector<1x128xf32>
    %29 = vector.broadcast %28 : vector<1x128xf32> to vector<128x128xf32>
    %30 = arith.subf %24, %29 : vector<128x128xf32>
    %31 = arith.mulf %30, %30 : vector<128x128xf32>
    %cst_39 = arith.constant dense<0.000000e+00> : vector<128xf32>
    %32 = vector.multi_reduction <add>, %31, %cst_39 [0] : vector<128x128xf32> to vector<128xf32>
    %33 = vector.shape_cast %32 : vector<128xf32> to vector<1x128xf32>
    %cst_40 = arith.constant 7.812500e-03 : f32
    %34 = vector.broadcast %cst_40 : f32 to vector<1x128xf32>
    %35 = arith.mulf %33, %34 : vector<1x128xf32>
    %36 = vector.broadcast %28 : vector<1x128xf32> to vector<128x128xf32>
    %37 = arith.subf %24, %36 : vector<128x128xf32>
    %cst_41 = arith.constant 9.99999974E-6 : f32
    %38 = vector.broadcast %cst_41 : f32 to vector<1x128xf32>
    %39 = arith.addf %35, %38 : vector<1x128xf32>
    %40 = math.rsqrt %39 : vector<1x128xf32>
    %41 = vector.broadcast %40 : vector<1x128xf32> to vector<128x128xf32>
    %42 = arith.mulf %37, %41 : vector<128x128xf32>
    %c0_42 = arith.constant 0 : index
    %c0_43 = arith.constant 0 : index
    %43 = vector.load %arg4[%c0_42, %c0_43] : memref<1x128xf32, #tpu.memory_space<vmem>>, vector<1x128xf32>
    %44 = vector.broadcast %43 : vector<1x128xf32> to vector<128x128xf32>
    %45 = arith.mulf %42, %44 : vector<128x128xf32>
    %c0_44 = arith.constant 0 : index
    %c0_45 = arith.constant 0 : index
    %46 = vector.load %arg5[%c0_44, %c0_45] : memref<1x128xf32, #tpu.memory_space<vmem>>, vector<1x128xf32>
    %47 = vector.broadcast %46 : vector<1x128xf32> to vector<128x128xf32>
    %48 = arith.addf %45, %47 : vector<128x128xf32>
    %cst_46 = arith.constant 0.000000e+00 : f32
    %49 = vector.broadcast %cst_46 : f32 to vector<128x128xf32>
    %50 = arith.maximumf %48, %49 : vector<128x128xf32>
    %c0_47 = arith.constant 0 : index
    %c0_48 = arith.constant 0 : index
    %51 = vector.load %arg6[%c0_47, %c0_48] : memref<128x128xf32, #tpu.memory_space<vmem>>, vector<128x128xf32>
    tpu.vector_store %arg6[%c0_47, %c0_48], %50 {strides = array<i32>} : memref<128x128xf32, #tpu.memory_space<vmem>>, vector<128x128xf32>,
    return
  }
  func.func @transform_0(%arg0: i32) -> (i32, i32, i32, i32) {
    %c0_i32 = arith.constant 0 : i32
    %c0_i32_0 = arith.constant 0 : i32
    %c0_i32_1 = arith.constant 0 : i32
    %c0_i32_2 = arith.constant 0 : i32
    %c0_i32_3 = arith.constant 0 : i32
    return %c0_i32, %c0_i32_0, %c0_i32_1, %c0_i32_2 : i32, i32, i32, i32
  }
  func.func @transform_1(%arg0: i32) -> (i32, i32) {
    %c0_i32 = arith.constant 0 : i32
    %c0_i32_0 = arith.constant 0 : i32
    %c0_i32_1 = arith.constant 0 : i32
    return %c0_i32, %c0_i32_0 : i32, i32
  }
  func.func @transform_2(%arg0: i32) -> (i32, i32) {
    %c0_i32 = arith.constant 0 : i32
    %c0_i32_0 = arith.constant 0 : i32
    %c0_i32_1 = arith.constant 0 : i32
    return %c0_i32, %c0_i32_0 : i32, i32
  }
  func.func @transform_3(%arg0: i32) -> (i32, i32) {
    %c0_i32 = arith.constant 0 : i32
    %c0_i32_0 = arith.constant 0 : i32
    %c0_i32_1 = arith.constant 0 : i32
    return %c0_i32, %c0_i32_0 : i32, i32
  }
  func.func @transform_4(%arg0: i32) -> (i32, i32) {
    %c0_i32 = arith.constant 0 : i32
    %c0_i32_0 = arith.constant 0 : i32
    %c0_i32_1 = arith.constant 0 : i32
    return %c0_i32, %c0_i32_0 : i32, i32
  }
  func.func @transform_5(%arg0: i32) -> (i32, i32) {
    %c0_i32 = arith.constant 0 : i32
    %c0_i32_0 = arith.constant 0 : i32
    %c0_i32_1 = arith.constant 0 : i32
    return %c0_i32, %c0_i32_0 : i32, i32
  }
}

module attributes {stable_mosaic.version = 11 : i64} {
  func.func @kernel(%arg0: i32, %arg1: memref<32x128xf32, #tpu.memory_space<vmem>>, %arg2: memref<128x512xbf16, #tpu.memory_space<vmem>>, %arg3: memref<1x512xf32, #tpu.memory_space<vmem>>, %arg4: memref<32x512xf32, #tpu.memory_space<vmem>>) attributes {dimension_semantics = [#tpu.dimension_semantics<arbitrary>], iteration_bounds = array<i64: 1>, scalar_prefetch = 0 : i64, scratch_operands = 0 : i64, tpu.core_type = #tpu.core_type<tc>, window_params = [{pipeline_mode = #tpu.pipeline_mode<synchronous>, transform_indices = @transform_0, window_bounds = array<i64: 32, 128>}, {pipeline_mode = #tpu.pipeline_mode<synchronous>, transform_indices = @transform_1, window_bounds = array<i64: 128, 512>}, {pipeline_mode = #tpu.pipeline_mode<synchronous>, transform_indices = @transform_2, window_bounds = array<i64: 1, 512>}, {pipeline_mode = #tpu.pipeline_mode<synchronous>, transform_indices = @transform_3, window_bounds = array<i64: 32, 512>}]} {
    %c0 = arith.constant 0 : index
    %c0_0 = arith.constant 0 : index
    %0 = vector.load %arg1[%c0, %c0_0] : memref<32x128xf32, #tpu.memory_space<vmem>>, vector<32x128xf32>
    %1 = arith.truncf %0 : vector<32x128xf32> to vector<32x128xbf16>
    %c0_1 = arith.constant 0 : index
    %c0_2 = arith.constant 0 : index
    %2 = vector.load %arg2[%c0_1, %c0_2] : memref<128x512xbf16, #tpu.memory_space<vmem>>, vector<128x512xbf16>
    %cst = arith.constant dense<0.000000e+00> : vector<32x512xf32>
    %3 = tpu.matmul %1, %2, %cst {dimension_numbers = #tpu.dot_dimension_numbers<[1], [0], [0], [1], [0, 0, 1, 1], [], []>} : vector<32x128xbf16>, vector<128x512xbf16>, vector<32x512xf32> -> vector<32x512xf32>
    %c0_3 = arith.constant 0 : index
    %c0_4 = arith.constant 0 : index
    %4 = vector.load %arg3[%c0_3, %c0_4] : memref<1x512xf32, #tpu.memory_space<vmem>>, vector<1x512xf32>
    %5 = vector.broadcast %4 : vector<1x512xf32> to vector<32x512xf32>
    %6 = arith.addf %3, %5 : vector<32x512xf32>
    %c0_5 = arith.constant 0 : index
    %c0_6 = arith.constant 0 : index
    %7 = vector.load %arg4[%c0_5, %c0_6] : memref<32x512xf32, #tpu.memory_space<vmem>>, vector<32x512xf32>
    tpu.vector_store %arg4[%c0_5, %c0_6], %6 {strides = array<i32>} : memref<32x512xf32, #tpu.memory_space<vmem>>, vector<32x512xf32>,
    return
  }
  func.func @transform_0(%arg0: i32) -> (i32, i32) {
    %c0_i32 = arith.constant 0 : i32
    %c0_i32_0 = arith.constant 0 : i32
    %c0_i32_1 = arith.constant 0 : i32
    return %c0_i32, %c0_i32_0 : i32, i32
  }
  func.func @transform_1(%arg0: i32) -> (i32, i32) {
    %c0_i32 = arith.constant 0 : i32
    %c0_i32_0 = arith.constant 0 : i32
    %c0_i32_1 = arith.constant 0 : i32
    return %c0_i32, %c0_i32_0 : i32, i32
  }
  func.func @transform_2(%arg0: i32) -> (i32, i32) {
    %c0_i32 = arith.constant 0 : i32
    %c0_i32_0 = arith.constant 0 : i32
    %c0_i32_1 = arith.constant 0 : i32
    return %c0_i32, %c0_i32_0 : i32, i32
  }
  func.func @transform_3(%arg0: i32) -> (i32, i32) {
    %c0_i32 = arith.constant 0 : i32
    %c0_i32_0 = arith.constant 0 : i32
    %c0_i32_1 = arith.constant 0 : i32
    return %c0_i32, %c0_i32_0 : i32, i32
  }
}

module attributes {stable_mosaic.version = 11 : i64} {
  func.func @kernel(%arg0: i32, %arg1: memref<32x1152xf32, #tpu.memory_space<vmem>>, %arg2: memref<1152x128xbf16, #tpu.memory_space<vmem>>, %arg3: memref<1x128xf32, #tpu.memory_space<vmem>>, %arg4: memref<1x128xf32, #tpu.memory_space<vmem>>, %arg5: memref<1x128xf32, #tpu.memory_space<vmem>>, %arg6: memref<32x128xf32, #tpu.memory_space<vmem>>) attributes {dimension_semantics = [#tpu.dimension_semantics<arbitrary>], iteration_bounds = array<i64: 1>, scalar_prefetch = 0 : i64, scratch_operands = 0 : i64, tpu.core_type = #tpu.core_type<tc>, window_params = [{pipeline_mode = #tpu.pipeline_mode<synchronous>, transform_indices = @transform_0, window_bounds = array<i64: 32, 1152>}, {pipeline_mode = #tpu.pipeline_mode<synchronous>, transform_indices = @transform_1, window_bounds = array<i64: 1152, 128>}, {pipeline_mode = #tpu.pipeline_mode<synchronous>, transform_indices = @transform_2, window_bounds = array<i64: 1, 128>}, {pipeline_mode = #tpu.pipeline_mode<synchronous>, transform_indices = @transform_3, window_bounds = array<i64: 1, 128>}, {pipeline_mode = #tpu.pipeline_mode<synchronous>, transform_indices = @transform_4, window_bounds = array<i64: 1, 128>}, {pipeline_mode = #tpu.pipeline_mode<synchronous>, transform_indices = @transform_5, window_bounds = array<i64: 32, 128>}]} {
    %c0 = arith.constant 0 : index
    %c0_0 = arith.constant 0 : index
    %0 = vector.load %arg1[%c0, %c0_0] : memref<32x1152xf32, #tpu.memory_space<vmem>>, vector<32x1152xf32>
    %1 = arith.truncf %0 : vector<32x1152xf32> to vector<32x1152xbf16>
    %c0_1 = arith.constant 0 : index
    %c0_2 = arith.constant 0 : index
    %2 = vector.load %arg2[%c0_1, %c0_2] : memref<1152x128xbf16, #tpu.memory_space<vmem>>, vector<1152x128xbf16>
    %cst = arith.constant dense<0.000000e+00> : vector<32x128xf32>
    %3 = tpu.matmul %1, %2, %cst {dimension_numbers = #tpu.dot_dimension_numbers<[1], [0], [0], [1], [0, 0, 1, 1], [], []>} : vector<32x1152xbf16>, vector<1152x128xbf16>, vector<32x128xf32> -> vector<32x128xf32>
    %c0_3 = arith.constant 0 : index
    %c0_4 = arith.constant 0 : index
    %4 = vector.load %arg3[%c0_3, %c0_4] : memref<1x128xf32, #tpu.memory_space<vmem>>, vector<1x128xf32>
    %5 = vector.broadcast %4 : vector<1x128xf32> to vector<32x128xf32>
    %6 = arith.addf %3, %5 : vector<32x128xf32>
    %cst_5 = arith.constant dense<0.000000e+00> : vector<128xf32>
    %7 = vector.multi_reduction <add>, %6, %cst_5 [0] : vector<32x128xf32> to vector<128xf32>
    %8 = vector.shape_cast %7 : vector<128xf32> to vector<1x128xf32>
    %cst_6 = arith.constant 3.125000e-02 : f32
    %9 = vector.broadcast %cst_6 : f32 to vector<1x128xf32>
    %10 = arith.mulf %8, %9 : vector<1x128xf32>
    %11 = vector.broadcast %10 : vector<1x128xf32> to vector<32x128xf32>
    %12 = arith.subf %6, %11 : vector<32x128xf32>
    %13 = arith.mulf %12, %12 : vector<32x128xf32>
    %cst_7 = arith.constant dense<0.000000e+00> : vector<128xf32>
    %14 = vector.multi_reduction <add>, %13, %cst_7 [0] : vector<32x128xf32> to vector<128xf32>
    %15 = vector.shape_cast %14 : vector<128xf32> to vector<1x128xf32>
    %cst_8 = arith.constant 3.125000e-02 : f32
    %16 = vector.broadcast %cst_8 : f32 to vector<1x128xf32>
    %17 = arith.mulf %15, %16 : vector<1x128xf32>
    %18 = vector.broadcast %10 : vector<1x128xf32> to vector<32x128xf32>
    %19 = arith.subf %6, %18 : vector<32x128xf32>
    %cst_9 = arith.constant 9.99999974E-6 : f32
    %20 = vector.broadcast %cst_9 : f32 to vector<1x128xf32>
    %21 = arith.addf %17, %20 : vector<1x128xf32>
    %22 = math.rsqrt %21 : vector<1x128xf32>
    %23 = vector.broadcast %22 : vector<1x128xf32> to vector<32x128xf32>
    %24 = arith.mulf %19, %23 : vector<32x128xf32>
    %c0_10 = arith.constant 0 : index
    %c0_11 = arith.constant 0 : index
    %25 = vector.load %arg4[%c0_10, %c0_11] : memref<1x128xf32, #tpu.memory_space<vmem>>, vector<1x128xf32>
    %26 = vector.broadcast %25 : vector<1x128xf32> to vector<32x128xf32>
    %27 = arith.mulf %24, %26 : vector<32x128xf32>
    %c0_12 = arith.constant 0 : index
    %c0_13 = arith.constant 0 : index
    %28 = vector.load %arg5[%c0_12, %c0_13] : memref<1x128xf32, #tpu.memory_space<vmem>>, vector<1x128xf32>
    %29 = vector.broadcast %28 : vector<1x128xf32> to vector<32x128xf32>
    %30 = arith.addf %27, %29 : vector<32x128xf32>
    %cst_14 = arith.constant 0.000000e+00 : f32
    %31 = vector.broadcast %cst_14 : f32 to vector<32x128xf32>
    %32 = arith.maximumf %30, %31 : vector<32x128xf32>
    %c0_15 = arith.constant 0 : index
    %c0_16 = arith.constant 0 : index
    %33 = vector.load %arg6[%c0_15, %c0_16] : memref<32x128xf32, #tpu.memory_space<vmem>>, vector<32x128xf32>
    tpu.vector_store %arg6[%c0_15, %c0_16], %32 {strides = array<i32>} : memref<32x128xf32, #tpu.memory_space<vmem>>, vector<32x128xf32>,
    return
  }
  func.func @transform_0(%arg0: i32) -> (i32, i32) {
    %c0_i32 = arith.constant 0 : i32
    %c0_i32_0 = arith.constant 0 : i32
    %c0_i32_1 = arith.constant 0 : i32
    return %c0_i32, %c0_i32_0 : i32, i32
  }
  func.func @transform_1(%arg0: i32) -> (i32, i32) {
    %c0_i32 = arith.constant 0 : i32
    %c0_i32_0 = arith.constant 0 : i32
    %c0_i32_1 = arith.constant 0 : i32
    return %c0_i32, %c0_i32_0 : i32, i32
  }
  func.func @transform_2(%arg0: i32) -> (i32, i32) {
    %c0_i32 = arith.constant 0 : i32
    %c0_i32_0 = arith.constant 0 : i32
    %c0_i32_1 = arith.constant 0 : i32
    return %c0_i32, %c0_i32_0 : i32, i32
  }
  func.func @transform_3(%arg0: i32) -> (i32, i32) {
    %c0_i32 = arith.constant 0 : i32
    %c0_i32_0 = arith.constant 0 : i32
    %c0_i32_1 = arith.constant 0 : i32
    return %c0_i32, %c0_i32_0 : i32, i32
  }
  func.func @transform_4(%arg0: i32) -> (i32, i32) {
    %c0_i32 = arith.constant 0 : i32
    %c0_i32_0 = arith.constant 0 : i32
    %c0_i32_1 = arith.constant 0 : i32
    return %c0_i32, %c0_i32_0 : i32, i32
  }
  func.func @transform_5(%arg0: i32) -> (i32, i32) {
    %c0_i32 = arith.constant 0 : i32
    %c0_i32_0 = arith.constant 0 : i32
    %c0_i32_1 = arith.constant 0 : i32
    return %c0_i32, %c0_i32_0 : i32, i32
  }
}

module attributes {stable_mosaic.version = 11 : i64} {
  func.func @kernel(%arg0: i32, %arg1: memref<128x128xf32, #tpu.memory_space<vmem>>, %arg2: memref<128x512xbf16, #tpu.memory_space<vmem>>, %arg3: memref<1x512xf32, #tpu.memory_space<vmem>>, %arg4: memref<128x512xf32, #tpu.memory_space<vmem>>) attributes {dimension_semantics = [#tpu.dimension_semantics<arbitrary>], iteration_bounds = array<i64: 1>, scalar_prefetch = 0 : i64, scratch_operands = 0 : i64, tpu.core_type = #tpu.core_type<tc>, window_params = [{pipeline_mode = #tpu.pipeline_mode<synchronous>, transform_indices = @transform_0, window_bounds = array<i64: 128, 128>}, {pipeline_mode = #tpu.pipeline_mode<synchronous>, transform_indices = @transform_1, window_bounds = array<i64: 128, 512>}, {pipeline_mode = #tpu.pipeline_mode<synchronous>, transform_indices = @transform_2, window_bounds = array<i64: 1, 512>}, {pipeline_mode = #tpu.pipeline_mode<synchronous>, transform_indices = @transform_3, window_bounds = array<i64: 128, 512>}]} {
    %c0 = arith.constant 0 : index
    %c0_0 = arith.constant 0 : index
    %0 = vector.load %arg1[%c0, %c0_0] : memref<128x128xf32, #tpu.memory_space<vmem>>, vector<128x128xf32>
    %1 = arith.truncf %0 : vector<128x128xf32> to vector<128x128xbf16>
    %c0_1 = arith.constant 0 : index
    %c0_2 = arith.constant 0 : index
    %2 = vector.load %arg2[%c0_1, %c0_2] : memref<128x512xbf16, #tpu.memory_space<vmem>>, vector<128x512xbf16>
    %cst = arith.constant dense<0.000000e+00> : vector<128x512xf32>
    %3 = tpu.matmul %1, %2, %cst {dimension_numbers = #tpu.dot_dimension_numbers<[1], [0], [0], [1], [0, 0, 1, 1], [], []>} : vector<128x128xbf16>, vector<128x512xbf16>, vector<128x512xf32> -> vector<128x512xf32>
    %c0_3 = arith.constant 0 : index
    %c0_4 = arith.constant 0 : index
    %4 = vector.load %arg3[%c0_3, %c0_4] : memref<1x512xf32, #tpu.memory_space<vmem>>, vector<1x512xf32>
    %5 = vector.broadcast %4 : vector<1x512xf32> to vector<128x512xf32>
    %6 = arith.addf %3, %5 : vector<128x512xf32>
    %c0_5 = arith.constant 0 : index
    %c0_6 = arith.constant 0 : index
    %7 = vector.load %arg4[%c0_5, %c0_6] : memref<128x512xf32, #tpu.memory_space<vmem>>, vector<128x512xf32>
    tpu.vector_store %arg4[%c0_5, %c0_6], %6 {strides = array<i32>} : memref<128x512xf32, #tpu.memory_space<vmem>>, vector<128x512xf32>,
    return
  }
  func.func @transform_0(%arg0: i32) -> (i32, i32) {
    %c0_i32 = arith.constant 0 : i32
    %c0_i32_0 = arith.constant 0 : i32
    %c0_i32_1 = arith.constant 0 : i32
    return %c0_i32, %c0_i32_0 : i32, i32
  }
  func.func @transform_1(%arg0: i32) -> (i32, i32) {
    %c0_i32 = arith.constant 0 : i32
    %c0_i32_0 = arith.constant 0 : i32
    %c0_i32_1 = arith.constant 0 : i32
    return %c0_i32, %c0_i32_0 : i32, i32
  }
  func.func @transform_2(%arg0: i32) -> (i32, i32) {
    %c0_i32 = arith.constant 0 : i32
    %c0_i32_0 = arith.constant 0 : i32
    %c0_i32_1 = arith.constant 0 : i32
    return %c0_i32, %c0_i32_0 : i32, i32
  }
  func.func @transform_3(%arg0: i32) -> (i32, i32) {
    %c0_i32 = arith.constant 0 : i32
    %c0_i32_0 = arith.constant 0 : i32
    %c0_i32_1 = arith.constant 0 : i32
    return %c0_i32, %c0_i32_0 : i32, i32
  }
}

module attributes {stable_mosaic.version = 11 : i64} {
  func.func @kernel(%arg0: i32, %arg1: memref<512x128xf32, #tpu.memory_space<vmem>>, %arg2: memref<128x128xbf16, #tpu.memory_space<vmem>>, %arg3: memref<1x128xf32, #tpu.memory_space<vmem>>, %arg4: memref<512x128xf32, #tpu.memory_space<vmem>>) attributes {dimension_semantics = [#tpu.dimension_semantics<arbitrary>], iteration_bounds = array<i64: 1>, scalar_prefetch = 0 : i64, scratch_operands = 0 : i64, tpu.core_type = #tpu.core_type<tc>, window_params = [{pipeline_mode = #tpu.pipeline_mode<synchronous>, transform_indices = @transform_0, window_bounds = array<i64: 512, 128>}, {pipeline_mode = #tpu.pipeline_mode<synchronous>, transform_indices = @transform_1, window_bounds = array<i64: 128, 128>}, {pipeline_mode = #tpu.pipeline_mode<synchronous>, transform_indices = @transform_2, window_bounds = array<i64: 1, 128>}, {pipeline_mode = #tpu.pipeline_mode<synchronous>, transform_indices = @transform_3, window_bounds = array<i64: 512, 128>}]} {
    %c0 = arith.constant 0 : index
    %c0_0 = arith.constant 0 : index
    %0 = vector.load %arg1[%c0, %c0_0] : memref<512x128xf32, #tpu.memory_space<vmem>>, vector<512x128xf32>
    %1 = arith.truncf %0 : vector<512x128xf32> to vector<512x128xbf16>
    %c0_1 = arith.constant 0 : index
    %c0_2 = arith.constant 0 : index
    %2 = vector.load %arg2[%c0_1, %c0_2] : memref<128x128xbf16, #tpu.memory_space<vmem>>, vector<128x128xbf16>
    %cst = arith.constant dense<0.000000e+00> : vector<512x128xf32>
    %3 = tpu.matmul %1, %2, %cst {dimension_numbers = #tpu.dot_dimension_numbers<[1], [0], [0], [1], [0, 0, 1, 1], [], []>} : vector<512x128xbf16>, vector<128x128xbf16>, vector<512x128xf32> -> vector<512x128xf32>
    %c0_3 = arith.constant 0 : index
    %c0_4 = arith.constant 0 : index
    %4 = vector.load %arg3[%c0_3, %c0_4] : memref<1x128xf32, #tpu.memory_space<vmem>>, vector<1x128xf32>
    %5 = vector.broadcast %4 : vector<1x128xf32> to vector<512x128xf32>
    %6 = arith.addf %3, %5 : vector<512x128xf32>
    %cst_5 = arith.constant 0.000000e+00 : f32
    %7 = vector.broadcast %cst_5 : f32 to vector<512x128xf32>
    %8 = arith.subf %7, %6 : vector<512x128xf32>
    %9 = math.exp %8 : vector<512x128xf32>
    %cst_6 = arith.constant 1.000000e+00 : f32
    %10 = vector.broadcast %cst_6 : f32 to vector<512x128xf32>
    %11 = arith.addf %10, %9 : vector<512x128xf32>
    %cst_7 = arith.constant 1.000000e+00 : f32
    %12 = vector.broadcast %cst_7 : f32 to vector<512x128xf32>
    %13 = arith.divf %12, %11 : vector<512x128xf32>
    %c0_8 = arith.constant 0 : index
    %c0_9 = arith.constant 0 : index
    %14 = vector.load %arg4[%c0_8, %c0_9] : memref<512x128xf32, #tpu.memory_space<vmem>>, vector<512x128xf32>
    tpu.vector_store %arg4[%c0_8, %c0_9], %13 {strides = array<i32>} : memref<512x128xf32, #tpu.memory_space<vmem>>, vector<512x128xf32>,
    return
  }
  func.func @transform_0(%arg0: i32) -> (i32, i32) {
    %c0_i32 = arith.constant 0 : i32
    %c0_i32_0 = arith.constant 0 : i32
    %c0_i32_1 = arith.constant 0 : i32
    return %c0_i32, %c0_i32_0 : i32, i32
  }
  func.func @transform_1(%arg0: i32) -> (i32, i32) {
    %c0_i32 = arith.constant 0 : i32
    %c0_i32_0 = arith.constant 0 : i32
    %c0_i32_1 = arith.constant 0 : i32
    return %c0_i32, %c0_i32_0 : i32, i32
  }
  func.func @transform_2(%arg0: i32) -> (i32, i32) {
    %c0_i32 = arith.constant 0 : i32
    %c0_i32_0 = arith.constant 0 : i32
    %c0_i32_1 = arith.constant 0 : i32
    return %c0_i32, %c0_i32_0 : i32, i32
  }
  func.func @transform_3(%arg0: i32) -> (i32, i32) {
    %c0_i32 = arith.constant 0 : i32
    %c0_i32_0 = arith.constant 0 : i32
    %c0_i32_1 = arith.constant 0 : i32
    return %c0_i32, %c0_i32_0 : i32, i32
  }
}

</mosaic_0001>

<bundles_post_ra>
// kernel: unet_forward.19
= control target key start
LH: loop header
LB: loop body
LE: loop exit
PB: predicated region body
PF: predicated region fallthrough
CT: control target
= control target key end

     0   :  { %v442_v1 = vmov 0   ;;  %v55_v39 = vlaneseq  ;;  %s626_s1 = inlined_call_operand.vmem [shape: bf16[128,512], index: 1, kind: input, shape index: {}]   ;;  %s627_s0 = inlined_call_operand.vmem [shape: f32[32,128], index: 0, kind: input, shape index: {}]   ;;  %s628_s2 = inlined_call_operand.vmem [shape: f32[1,512], index: 2, kind: input, shape index: {}]   ;;  %s629_s3 = inlined_call_operand.vmem [shape: f32[32,512], index: 3, kind: output, shape index: {}]  }
   0x1   :  { %v394_v0 = vld [vmem:[%s626_s1 + $0x4] ss:$16 sps:$4 sm:$0xff]   ;;  %267 = vmatprep.mubr.bf16.mxu0 %v442_v1  ;;  %320 = vmatprep.mubr.bf16.mxu1 %v442_v1  ;;  %v396_v2 = vld [vmem:[%s626_s1 + $0xc] ss:$16 sps:$4 sm:$0xff]   ;;  %v398_v3 = vld [vmem:[%s626_s1] ss:$16 sps:$4 sm:$0xff]  }
   0x2   :  { %235 = vmatprep.subr.bf16.mxu0 %v394_v0  ;;  %v399_v4 = vld [vmem:[%s626_s1 + $0x8] ss:$16 sps:$4 sm:$0xff]   ;;  %288 = vmatprep.subr.bf16.mxu1 %v396_v2  ;;  %v400_v5 = vld [vmem:[%s626_s1 + $0x24] ss:$16 sps:$4 sm:$0xff]   ;;  %v402_v6 = vld [vmem:[%s626_s1 + $0x2c] ss:$16 sps:$4 sm:$0xff]  }
   0x3   :  { %236 = vmatpush1.bf16.msra.mxu0 %v398_v3  ;;  %289 = vmatpush1.bf16.msra.mxu1 %v399_v4  ;;  %v404_v7 = vld [vmem:[%s626_s1 + $0x20] ss:$16 sps:$4 sm:$0xff]   ;;  %v405_v8 = vld [vmem:[%s626_s1 + $0x28] ss:$16 sps:$4 sm:$0xff]   ;;  %v406_v9 = vld [vmem:[%s626_s1 + $0x44] ss:$16 sps:$4 sm:$0xff]  }
   0x4   :  { %237 = vmatprep.subr.bf16.mxu0 %v400_v5  ;;  %290 = vmatprep.subr.bf16.mxu1 %v402_v6  ;;  %v408_v10 = vld [vmem:[%s626_s1 + $0x4c] ss:$16 sps:$4 sm:$0xff]   ;;  %v410_v11 = vld [vmem:[%s626_s1 + $0x40] ss:$16 sps:$4 sm:$0xff]   ;;  %v411_v12 = vld [vmem:[%s626_s1 + $0x48] ss:$16 sps:$4 sm:$0xff]  }
   0x5   :  { %v412_v13 = vld [vmem:[%s626_s1 + $0x64] ss:$16 sps:$4 sm:$0xff]   ;;  %v414_v14 = vld [vmem:[%s626_s1 + $0x6c] ss:$16 sps:$4 sm:$0xff]   ;;  %v416_v15 = vld [vmem:[%s626_s1 + $0x60] ss:$16 sps:$4 sm:$0xff]  }
   0x6   :  { %v417_v16 = vld [vmem:[%s626_s1 + $0x68] ss:$16 sps:$4 sm:$0xff]   ;;  %v418_v17 = vld [vmem:[%s626_s1 + $0x84] ss:$16 sps:$4 sm:$0xff]   ;;  %v420_v18 = vld [vmem:[%s626_s1 + $0x8c] ss:$16 sps:$4 sm:$0xff]  }
   0x7   :  { %238 = vmatpush1.bf16.msra.mxu0 %v404_v7  ;;  %291 = vmatpush1.bf16.msra.mxu1 %v405_v8  ;;  %v422_v19 = vld [vmem:[%s626_s1 + $0x80] ss:$16 sps:$4 sm:$0xff]   ;;  %v423_v20 = vld [vmem:[%s626_s1 + $0x88] ss:$16 sps:$4 sm:$0xff]   ;;  %v424_v21 = vld [vmem:[%s626_s1 + $0xa4] ss:$16 sps:$4 sm:$0xff]  }
   0x8   :  { %239 = vmatprep.subr.bf16.mxu0 %v406_v9  ;;  %292 = vmatprep.subr.bf16.mxu1 %v408_v10  ;;  %v426_v22 = vld [vmem:[%s626_s1 + $0xac] ss:$16 sps:$4 sm:$0xff]   ;;  %v428_v23 = vld [vmem:[%s626_s1 + $0xa0] ss:$16 sps:$4 sm:$0xff]   ;;  %v429_v24 = vld [vmem:[%s626_s1 + $0xa8] ss:$16 sps:$4 sm:$0xff]  }
   0x9   :  { %v430_v25 = vld [vmem:[%s626_s1 + $0xc4] ss:$16 sps:$4 sm:$0xff]   ;;  %v432_v26 = vld [vmem:[%s626_s1 + $0xcc] ss:$16 sps:$4 sm:$0xff]   ;;  %v434_v27 = vld [vmem:[%s626_s1 + $0xc0] ss:$16 sps:$4 sm:$0xff]  }
   0xa   :  { %v435_v28 = vld [vmem:[%s626_s1 + $0xc8] ss:$16 sps:$4 sm:$0xff]   ;;  %v436_v29 = vld [vmem:[%s626_s1 + $0xe4] ss:$16 sps:$4 sm:$0xff]   ;;  %v438_v30 = vld [vmem:[%s626_s1 + $0xec] ss:$16 sps:$4 sm:$0xff]  }
   0xb   :  { %240 = vmatpush1.bf16.msra.mxu0 %v410_v11  ;;  %293 = vmatpush1.bf16.msra.mxu1 %v411_v12  ;;  %v440_v31 = vld [vmem:[%s626_s1 + $0xe0] ss:$16 sps:$4 sm:$0xff]   ;;  %v441_v32 = vld [vmem:[%s626_s1 + $0xe8] ss:$16 sps:$4 sm:$0xff]   ;;  %v56_v40 = vshrl.u32 %v55_v39, 7 }
   0xc   :  { %241 = vmatprep.subr.bf16.mxu0 %v412_v13  ;;  %294 = vmatprep.subr.bf16.mxu1 %v414_v14  ;;  %v15_v33 = vld [vmem:[%s627_s0] sm:$0xff]  ;;  %v16_v34 = vld [vmem:[%s627_s0 + $0x8] sm:$0xff]  ;;  %v17_v36 = vld [vmem:[%s627_s0 + $0x10] sm:$0xff] }
   0xd   :  { %v19_v35 = vpack.c.bf16 %v16_v34, %v15_v33  ;;  %v18_v37 = vld [vmem:[%s627_s0 + $0x18] sm:$0xff]  ;;  %v57_v41 = vsub.s32 0, %v56_v40  ;;  %v65_v42 = vsub.s32 2, %v56_v40  ;;  %v53_v43 = vld [vmem:[%s628_s2] sm:$0xf]  ;;  %v61_v44 = vsub.s32 1, %v56_v40 }
   0xe   :  { %v20_v38 = vpack.c.bf16 %v18_v37, %v17_v36  ;;  %v69_v45 = vsub.s32 3, %v56_v40 }
   0xf   :  { %242 = vmatpush1.bf16.msra.mxu0 %v416_v15  ;;  %295 = vmatpush1.bf16.msra.mxu1 %v417_v16  ;;  %v58_v46 = vrot.slane %v53_v43, %v57_v41  ;;  %v66_v47 = vrot.slane %v53_v43, %v65_v42  ;;  %v62_v48 = vrot.slane %v53_v43, %v61_v44 }
  0x10   :  { %243 = vmatprep.subr.bf16.mxu0 %v418_v17  ;;  %296 = vmatprep.subr.bf16.mxu1 %v420_v18  ;;  %v70_v49 = vrot.slane %v53_v43, %v69_v45 }
  0x13   :  { %244 = vmatpush1.bf16.msra.mxu0 %v422_v19  ;;  %297 = vmatpush1.bf16.msra.mxu1 %v423_v20 }
  0x14   :  { %245 = vmatprep.subr.bf16.mxu0 %v424_v21  ;;  %298 = vmatprep.subr.bf16.mxu1 %v426_v22 }
  0x17   :  { %246 = vmatpush1.bf16.msra.mxu0 %v428_v23  ;;  %299 = vmatpush1.bf16.msra.mxu1 %v429_v24 }
  0x18   :  { %247 = vmatprep.subr.bf16.mxu0 %v430_v25  ;;  %300 = vmatprep.subr.bf16.mxu1 %v432_v26 }
  0x1b   :  { %248 = vmatpush1.bf16.msra.mxu0 %v434_v27  ;;  %301 = vmatpush1.bf16.msra.mxu1 %v435_v28 }
  0x1c   :  { %249 = vmatprep.subr.bf16.mxu0 %v436_v29  ;;  %302 = vmatprep.subr.bf16.mxu1 %v438_v30 }
  0x1f   :  { %250 = vmatpush1.bf16.msra.mxu0 %v440_v31  ;;  %303 = vmatpush1.bf16.msra.mxu1 %v441_v32 }
  0x22   :  { %268 = vmatmul.mubr.bf16.vlgmr.msra.gmra.mrb[0].mxu0 %v19_v35  ;;  %321 = vmatmul.mubr.bf16.vlgmr.msra.gmra.mrb[0].mxu1 %v19_v35 }
  0x23   :  { %277 = vmatprep.mubr.bf16.mxu0 %v442_v1  ;;  %330 = vmatprep.mubr.bf16.mxu1 %v442_v1 }
  0x2a   :  { %278 = vmatmul.mubr.bf16.gmra.mrb[4].mxu0 %v20_v38  ;;  %331 = vmatmul.mubr.bf16.gmra.mrb[4].mxu1 %v20_v38 }
  0xf5   :  { %v269_v50 = vpop.f32.mrb[0].mxu0  ;;  %v322_v51 = vpop.f32.mrb[0].mxu1 }
  0xf6   :  { %v270_v52 = vadd.f32 %v269_v50, %v58_v46  ;;  %v323_v53 = vadd.f32 %v322_v51, %v66_v47  ;;  %v271_v54 = vpop.f32.mrb[1].mxu0  ;;  %v324_v55 = vpop.f32.mrb[1].mxu1 }
  0xf7   :  { %v272_v56 = vadd.f32 %v271_v54, %v62_v48  ;;  %v325_v57 = vadd.f32 %v324_v55, %v70_v49  ;;  %v273_v58 = vpop.f32.mrb[2].mxu0  ;;  %v326_v59 = vpop.f32.mrb[2].mxu1 }
  0xf8   :  { %341 = vst [vmem:[%s629_s3] sm:$0xff] %v270_v52  ;;  %343 = vst [vmem:[%s629_s3 + $0x10] sm:$0xff] %v323_v53  ;;  %v274_v60 = vadd.f32 %v273_v58, %v58_v46  ;;  %v327_v61 = vadd.f32 %v326_v59, %v66_v47  ;;  %v275_v62 = vpop.f32.mrb[3].mxu0  ;;  %v328_v63 = vpop.f32.mrb[3].mxu1 }
  0xf9   :  { %342 = vst [vmem:[%s629_s3 + $0x8] sm:$0xff] %v272_v56  ;;  %344 = vst [vmem:[%s629_s3 + $0x18] sm:$0xff] %v325_v57  ;;  %v276_v0 = vadd.f32 %v275_v62, %v62_v48  ;;  %v329_v1 = vadd.f32 %v328_v63, %v70_v49 }
  0xfa   :  { %345 = vst [vmem:[%s629_s3 + $0x20] sm:$0xff] %v274_v60  ;;  %347 = vst [vmem:[%s629_s3 + $0x30] sm:$0xff] %v327_v61 }
  0xfb   :  { %346 = vst [vmem:[%s629_s3 + $0x28] sm:$0xff] %v276_v0  ;;  %348 = vst [vmem:[%s629_s3 + $0x38] sm:$0xff] %v329_v1 }
  0xfd   :  { %v279_v2 = vpop.f32.mrb[4].mxu0  ;;  %v332_v3 = vpop.f32.mrb[4].mxu1 }
  0xfe   :  { %v280_v4 = vadd.f32 %v279_v2, %v58_v46  ;;  %v333_v5 = vadd.f32 %v332_v3, %v66_v47  ;;  %v281_v6 = vpop.f32.mrb[5].mxu0  ;;  %v334_v7 = vpop.f32.mrb[5].mxu1 }
  0xff   :  { %v282_v8 = vadd.f32 %v281_v6, %v62_v48  ;;  %v335_v9 = vadd.f32 %v334_v7, %v70_v49  ;;  %v283_v10 = vpop.f32.mrb[6].mxu0  ;;  %v336_v11 = vpop.f32.mrb[6].mxu1 }
 0x100   :  { %349 = vst [vmem:[%s629_s3 + $0x40] sm:$0xff] %v280_v4  ;;  %351 = vst [vmem:[%s629_s3 + $0x50] sm:$0xff] %v333_v5  ;;  %v284_v12 = vadd.f32 %v283_v10, %v58_v46  ;;  %v337_v13 = vadd.f32 %v336_v11, %v66_v47  ;;  %v285_v14 = vpop.f32.mrb[7].mxu0  ;;  %v338_v15 = vpop.f32.mrb[7].mxu1 }
 0x101   :  { %350 = vst [vmem:[%s629_s3 + $0x48] sm:$0xff] %v282_v8  ;;  %352 = vst [vmem:[%s629_s3 + $0x58] sm:$0xff] %v335_v9  ;;  %v286_v16 = vadd.f32 %v285_v14, %v62_v48  ;;  %v339_v17 = vadd.f32 %v338_v15, %v70_v49 }
 0x102   :  { %353 = vst [vmem:[%s629_s3 + $0x60] sm:$0xff] %v284_v12  ;;  %355 = vst [vmem:[%s629_s3 + $0x70] sm:$0xff] %v337_v13 }
 0x103   :  { %354 = vst [vmem:[%s629_s3 + $0x68] sm:$0xff] %v286_v16  ;;  %356 = vst [vmem:[%s629_s3 + $0x78] sm:$0xff] %v339_v17 }

// kernel: unet_forward.15
= control target key start
LH: loop header
LB: loop body
LE: loop exit
PB: predicated region body
PF: predicated region fallthrough
CT: control target
= control target key end

     0   :  { %s2846_s1 = inlined_call_operand.vmem [shape: bf16[1152,128], index: 1, kind: input, shape index: {}]   ;;  %s2847_s0 = inlined_call_operand.vmem [shape: f32[2,10,10,128], index: 0, kind: input, shape index: {}]   ;;  %s2848_s2 = inlined_call_operand.vmem [shape: f32[1,128], index: 2, kind: input, shape index: {}]   ;;  %s2849_s3 = inlined_call_operand.vmem [shape: f32[1,128], index: 3, kind: input, shape index: {}]   ;;  %s2850_s4 = inlined_call_operand.vmem [shape: f32[1,128], index: 4, kind: input, shape index: {}]   ;;  %s2851_s5 = inlined_call_operand.vmem [shape: f32[128,128], index: 5, kind: output, shape index: {}]  }
   0x1   :  { %v1974_v0 = vld [vmem:[%s2846_s1 + $0x40] sm:$0xff]   ;;  %v1978_v4 = vld [vmem:[%s2846_s1 + $0x48] sm:$0xff]   ;;  %v1982_v8 = vld [vmem:[%s2846_s1 + $0x50] sm:$0xff]  }
   0x2   :  { %v1975_v1 = vld [vmem:[%s2846_s1 + $0xc0] sm:$0xff]   ;;  %1654 = vmatprep.subr.bf16.mxu0 %v1974_v0  ;;  %v1979_v5 = vld [vmem:[%s2846_s1 + $0xc8] sm:$0xff]   ;;  %v1983_v9 = vld [vmem:[%s2846_s1 + $0xd0] sm:$0xff]  }
   0x3   :  { %v1976_v2 = vld [vmem:[%s2846_s1] sm:$0xff]   ;;  %1718 = vmatprep.subr.bf16.mxu1 %v1975_v1  ;;  %v1980_v6 = vld [vmem:[%s2846_s1 + $0x8] sm:$0xff]   ;;  %v1984_v10 = vld [vmem:[%s2846_s1 + $0x10] sm:$0xff]  }
   0x4   :  { %v1977_v3 = vld [vmem:[%s2846_s1 + $0x80] sm:$0xff]   ;;  %1655 = vmatpush3.bf16.msra.mxu0 %v1976_v2  ;;  %v1981_v7 = vld [vmem:[%s2846_s1 + $0x88] sm:$0xff]   ;;  %v1985_v11 = vld [vmem:[%s2846_s1 + $0x90] sm:$0xff]  }
   0x5   :  { %1719 = vmatpush3.bf16.msra.mxu1 %v1977_v3  ;;  %1656 = vmatprep.subr.bf16.mxu0 %v1978_v4  ;;  %v1986_v12 = vld [vmem:[%s2846_s1 + $0x58] sm:$0xff]   ;;  %v1990_v16 = vld [vmem:[%s2846_s1 + $0x60] sm:$0xff]   ;;  %v1994_v20 = vld [vmem:[%s2846_s1 + $0x68] sm:$0xff]  }
   0x6   :  { %1720 = vmatprep.subr.bf16.mxu1 %v1979_v5  ;;  %v1987_v13 = vld [vmem:[%s2846_s1 + $0xd8] sm:$0xff]   ;;  %v1991_v17 = vld [vmem:[%s2846_s1 + $0xe0] sm:$0xff]   ;;  %v1995_v21 = vld [vmem:[%s2846_s1 + $0xe8] sm:$0xff]  }
   0x7   :  { %v1988_v14 = vld [vmem:[%s2846_s1 + $0x18] sm:$0xff]   ;;  %v1992_v18 = vld [vmem:[%s2846_s1 + $0x20] sm:$0xff]   ;;  %v1996_v22 = vld [vmem:[%s2846_s1 + $0x28] sm:$0xff]  }
   0x8   :  { %1657 = vmatpush3.bf16.msra.mxu0 %v1980_v6  ;;  %v1989_v15 = vld [vmem:[%s2846_s1 + $0x98] sm:$0xff]   ;;  %v1993_v19 = vld [vmem:[%s2846_s1 + $0xa0] sm:$0xff]   ;;  %v1997_v23 = vld [vmem:[%s2846_s1 + $0xa8] sm:$0xff]  }
   0x9   :  { %1721 = vmatpush3.bf16.msra.mxu1 %v1981_v7  ;;  %1658 = vmatprep.subr.bf16.mxu0 %v1982_v8  ;;  %v1998_v24 = vld [vmem:[%s2846_s1 + $0x70] sm:$0xff]   ;;  %v2002_v28 = vld [vmem:[%s2846_s1 + $0x78] sm:$0xff]   ;;  %v37_v32 = vld [vmem:[%s2847_s0 + $0x1] sm:$0xff] }
   0xa   :  { %1722 = vmatprep.subr.bf16.mxu1 %v1983_v9  ;;  %v1999_v25 = vld [vmem:[%s2846_s1 + $0xf0] sm:$0xff]   ;;  %v2003_v29 = vld [vmem:[%s2846_s1 + $0xf8] sm:$0xff]   ;;  %v1484_v36 = vld [vmem:[%s2847_s0 + $0x20] sm:$0xff] }
   0xb   :  { %v2000_v26 = vld [vmem:[%s2846_s1 + $0x30] sm:$0xff]   ;;  %v2004_v30 = vld [vmem:[%s2846_s1 + $0x38] sm:$0xff]   ;;  %v21_v37 = vld [vmem:[%s2847_s0] sm:$0xff] }
   0xc   :  { %1659 = vmatpush3.bf16.msra.mxu0 %v1984_v10  ;;  %v2001_v27 = vld [vmem:[%s2846_s1 + $0xb0] sm:$0xff]   ;;  %v2005_v31 = vld [vmem:[%s2846_s1 + $0xb8] sm:$0xff]   ;;  %v53_v38 = vld [vmem:[%s2847_s0 + $0x2] sm:$0xff] }
   0xd   :  { %1723 = vmatpush3.bf16.msra.mxu1 %v1985_v11  ;;  %1660 = vmatprep.subr.bf16.mxu0 %v1986_v12  ;;  %v2180_v33 = vld [vmem:[%s2847_s0 + $0x11] sm:$0xff]  ;;  %v2006_v43 = vld [vmem:[%s2846_s1 + $0x140] sm:$0xff]   ;;  %v2008_v53 = vld [vmem:[%s2846_s1 + $0x148] sm:$0xff]  }
   0xe   :  { %1724 = vmatprep.subr.bf16.mxu1 %v1987_v13  ;;  %v1483_v34 = vld [vmem:[%s2847_s0 + $0x10] sm:$0xff]  ;;  %v168_v35 = vpack.c.bf16 %v2180_v33, %v37_v32  ;;  %v2007_v44 = vld [vmem:[%s2846_s1 + $0x100] sm:$0xff]   ;;  %v2009_v55 = vld [vmem:[%s2846_s1 + $0x108] sm:$0xff]  }
   0xf   :  { %v170_v39 = vpack.c.bf16 %v1484_v36, %v1483_v34  ;;  %v167_v40 = vpack.c.bf16 %v1483_v34, %v21_v37  ;;  %v2198_v41 = vld [vmem:[%s2847_s0 + $0x12] sm:$0xff]  ;;  %v2210_v45 = vld [vmem:[%s2847_s0 + $0x21] sm:$0xff] }
  0x10   :  { %1661 = vmatpush3.bf16.msra.mxu0 %v1988_v14  ;;  %854 = vmatprep.mubr.bf16.mxu0 %v168_v35  ;;  %v169_v42 = vpack.c.bf16 %v2198_v41, %v53_v38  ;;  %v2215_v46 = vld [vmem:[%s2847_s0 + $0x31] sm:$0xff]  ;;  %v1486_v49 = vld [vmem:[%s2847_s0 + $0x40] sm:$0xff]  ;;  %v2015_v14 = vld [vmem:[%s2846_s1 + $0x1c8] sm:$0xff]  }
  0x11   :  { %1725 = vmatpush3.bf16.msra.mxu1 %v1989_v15  ;;  %1662 = vmatprep.subr.bf16.mxu0 %v1990_v16  ;;  %v2219_v47 = vpack.c.bf16 %v2215_v46, %v2210_v45  ;;  %v1485_v48 = vld [vmem:[%s2847_s0 + $0x30] sm:$0xff]  ;;  %v2230_v50 = vld [vmem:[%s2847_s0 + $0x22] sm:$0xff]  ;;  %v2014_v12 = vld [vmem:[%s2846_s1 + $0x158] sm:$0xff]  }
  0x12   :  { %1726 = vmatprep.subr.bf16.mxu1 %v1991_v17  ;;  %951 = vmatprep.mubr.bf16.mxu1 %v170_v39  ;;  %v179_v51 = vpack.c.bf16 %v1486_v49, %v1485_v48  ;;  %v2235_v52 = vld [vmem:[%s2847_s0 + $0x32] sm:$0xff]  ;;  %v2241_v54 = vpack.c.bf16 %v1485_v48, %v1484_v36  ;;  %v2249_v56 = vld [vmem:[%s2847_s0 + $0x41] sm:$0xff] }
  0x13   :  { %v2254_v57 = vld [vmem:[%s2847_s0 + $0x51] sm:$0xff]  ;;  %v2258_v58 = vpack.c.bf16 %v2235_v52, %v2230_v50  ;;  %v1488_v61 = vld [vmem:[%s2847_s0 + $0x60] sm:$0xff]  ;;  %v2017_v17 = vld [vmem:[%s2846_s1 + $0x188] sm:$0xff]  }
  0x14   :  { %1663 = vmatpush3.bf16.msra.mxu0 %v1992_v18  ;;  %v2262_v59 = vpack.c.bf16 %v2254_v57, %v2249_v56  ;;  %v1487_v60 = vld [vmem:[%s2847_s0 + $0x50] sm:$0xff]  ;;  %v2277_v0 = vld [vmem:[%s2847_s0 + $0x42] sm:$0xff]  ;;  %v2016_v15 = vld [vmem:[%s2846_s1 + $0x118] sm:$0xff]  }
  0x15   :  { %1727 = vmatpush3.bf16.msra.mxu1 %v1993_v19  ;;  %1664 = vmatprep.subr.bf16.mxu0 %v1994_v20  ;;  %v188_v62 = vpack.c.bf16 %v1488_v61, %v1487_v60  ;;  %v2010_v63 = vld [vmem:[%s2846_s1 + $0x150] sm:$0xff]   ;;  %v2011_v2 = vld [vmem:[%s2846_s1 + $0x1c0] sm:$0xff]   ;;  %v2313_v9 = vpack.c.bf16 %v1487_v60, %v1486_v49  ;;  %v2022_v39 = vld [vmem:[%s2846_s1 + $0x168] sm:$0xff]  }
  0x16   :  { %1728 = vmatprep.subr.bf16.mxu1 %v1995_v21  ;;  %v2282_v1 = vld [vmem:[%s2847_s0 + $0x52] sm:$0xff]  ;;  %v2013_v4 = vld [vmem:[%s2846_s1 + $0x180] sm:$0xff]  }
  0x17   :  { %v2012_v3 = vld [vmem:[%s2846_s1 + $0x110] sm:$0xff]   ;;  %v2298_v5 = vld [vmem:[%s2847_s0 + $0x61] sm:$0xff]  ;;  %v2317_v10 = vpack.c.bf16 %v2282_v1, %v2277_v0 }
  0x18   :  { %1665 = vmatpush3.bf16.msra.mxu0 %v1996_v22  ;;  %v2303_v6 = vld [vmem:[%s2847_s0 + $0x71] sm:$0xff]  ;;  %v2311_v8 = vld [vmem:[%s2847_s0 + $0x80] sm:$0xff] }
  0x19   :  { %1729 = vmatpush3.bf16.msra.mxu1 %v1997_v23  ;;  %1666 = vmatprep.subr.bf16.mxu0 %v1998_v24  ;;  %v1489_v7 = vld [vmem:[%s2847_s0 + $0x70] sm:$0xff]  ;;  %v2321_v11 = vpack.c.bf16 %v2303_v6, %v2298_v5  ;;  %v2337_v16 = vld [vmem:[%s2847_s0 + $0x62] sm:$0xff] }
  0x1a   :  { %1730 = vmatprep.subr.bf16.mxu1 %v1999_v25  ;;  %v197_v13 = vpack.c.bf16 %v2311_v8, %v1489_v7  ;;  %v2347_v18 = vld [vmem:[%s2847_s0 + $0x72] sm:$0xff]  ;;  %v45_v19 = vld [vmem:[%s2847_s0 + $0xa1] sm:$0xff]  ;;  %v2366_v24 = vpack.c.bf16 %v1489_v7, %v1488_v61 }
  0x1b   :  { %v2355_v20 = vld [vmem:[%s2847_s0 + $0xb1] sm:$0xff]  ;;  %v1492_v22 = vld [vmem:[%s2847_s0 + $0xc0] sm:$0xff] }
  0x1c   :  { %1667 = vmatpush3.bf16.msra.mxu0 %v2000_v26  ;;  %v1491_v21 = vld [vmem:[%s2847_s0 + $0xb0] sm:$0xff]  ;;  %v2018_v23 = vld [vmem:[%s2846_s1 + $0x160] sm:$0xff]   ;;  %v2373_v26 = vpack.c.bf16 %v2347_v18, %v2337_v16 }
  0x1d   :  { %1731 = vmatpush3.bf16.msra.mxu1 %v2001_v27  ;;  %1668 = vmatprep.subr.bf16.mxu0 %v2002_v28  ;;  %v2019_v25 = vld [vmem:[%s2846_s1 + $0x1d0] sm:$0xff]   ;;  %v204_v27 = vpack.c.bf16 %v2355_v20, %v45_v19  ;;  %v2020_v28 = vld [vmem:[%s2846_s1 + $0x120] sm:$0xff]  }
  0x1e   :  { %1732 = vmatprep.subr.bf16.mxu1 %v2003_v29  ;;  %v206_v29 = vpack.c.bf16 %v1492_v22, %v1491_v21  ;;  %v61_v32 = vld [vmem:[%s2847_s0 + $0xa2] sm:$0xff]  ;;  %v2392_v34 = vld [vmem:[%s2847_s0 + $0xb2] sm:$0xff] }
  0x1f   :  { %v2397_v35 = vld [vmem:[%s2847_s0 + $0xc1] sm:$0xff]  ;;  %v2402_v36 = vld [vmem:[%s2847_s0 + $0xd1] sm:$0xff]  ;;  %v205_v48 = vpack.c.bf16 %v2392_v34, %v61_v32 }
  0x20   :  { %1669 = vmatpush3.bf16.msra.mxu0 %v2004_v30  ;;  %v2021_v30 = vld [vmem:[%s2846_s1 + $0x190] sm:$0xff]   ;;  %v1494_v38 = vld [vmem:[%s2847_s0 + $0xe0] sm:$0xff]  ;;  %v2426_v49 = vpack.c.bf16 %v2402_v36, %v2397_v35 }
  0x21   :  { %1733 = vmatpush3.bf16.msra.mxu1 %v2005_v31  ;;  %1782 = vmatprep.subr.bf16.mxu0 %v2006_v43  ;;  %v29_v31 = vld [vmem:[%s2847_s0 + $0xa0] sm:$0xff]  ;;  %v1493_v37 = vld [vmem:[%s2847_s0 + $0xd0] sm:$0xff] }
  0x22   :  { %1846 = vmatprep.subr.bf16.mxu1 %v2011_v2  ;;  %v203_v43 = vpack.c.bf16 %v1491_v21, %v29_v31  ;;  %v2439_v60 = vld [vmem:[%s2847_s0 + $0xd2] sm:$0xff]  ;;  %v2444_v61 = vld [vmem:[%s2847_s0 + $0xe1] sm:$0xff] }
  0x23   :  { %855 = vmatmul.mubr.bf16.vlgmr.msra.gmra.mrb[0].mxu0 %v167_v40  ;;  %v2023_v40 = vld [vmem:[%s2846_s1 + $0x1d8] sm:$0xff]   ;;  %v1495_v2 = vld [vmem:[%s2847_s0 + $0xf0] sm:$0xff]  ;;  %v2029_v7 = vld [vmem:[%s2846_s1 + $0x1a0] sm:$0xff]  }
  0x24   :  { %952 = vmatmul.mubr.bf16.vlgmr.msra.gmra.mrb[0].mxu1 %v169_v42  ;;  %1783 = vmatpush3.bf16.msra.mxu0 %v2007_v44  ;;  %v2024_v42 = vld [vmem:[%s2846_s1 + $0x128] sm:$0xff]   ;;  %v2025_v44 = vld [vmem:[%s2846_s1 + $0x198] sm:$0xff]   ;;  %v2035_v32 = vld [vmem:[%s2846_s1 + $0x1b0] sm:$0xff]  }
  0x25   :  { %862 = vmatprep.mubr.bf16.mxu0 %v2219_v47  ;;  %959 = vmatprep.mubr.bf16.mxu1 %v179_v51  ;;  %v215_v51 = vpack.c.bf16 %v1494_v38, %v1493_v37  ;;  %v2032_v21 = vld [vmem:[%s2846_s1 + $0x178] sm:$0xff]  }
  0x26   :  { %1784 = vmatprep.subr.bf16.mxu0 %v2008_v53  ;;  %1847 = vmatpush3.bf16.msra.mxu1 %v2013_v4  ;;  %v2026_v53 = vld [vmem:[%s2846_s1 + $0x170] sm:$0xff]   ;;  %v2034_v31 = vld [vmem:[%s2846_s1 + $0x138] sm:$0xff]  }
  0x27   :  { %1848 = vmatprep.subr.bf16.mxu1 %v2015_v14  ;;  %v2028_v4 = vld [vmem:[%s2846_s1 + $0x130] sm:$0xff]   ;;  %v2031_v14 = vld [vmem:[%s2846_s1 + $0x1a8] sm:$0xff]  }
  0x28   :  { %1785 = vmatpush3.bf16.msra.mxu0 %v2009_v55  ;;  %v2434_v55 = vld [vmem:[%s2847_s0 + $0xc2] sm:$0xff] }
  0x29   :  { %1786 = vmatprep.subr.bf16.mxu0 %v2010_v63  ;;  %v2027_v63 = vld [vmem:[%s2846_s1 + $0x1e0] sm:$0xff]  }
  0x2a   :  { %1849 = vmatpush3.bf16.msra.mxu1 %v2017_v17 }
  0x2b   :  { %863 = vmatmul.mubr.bf16.gmra.mrb[4].mxu0 %v2241_v54  ;;  %1850 = vmatprep.subr.bf16.mxu1 %v2019_v25  ;;  %v2500_v25 = vld [vmem:[%s2847_s0 + $0x101] sm:$0xff] }
  0x2c   :  { %960 = vmatmul.mubr.bf16.gmra.mrb[4].mxu1 %v2258_v58  ;;  %870 = vmatprep.mubr.bf16.mxu0 %v2262_v59 }
  0x2d   :  { %967 = vmatprep.mubr.bf16.mxu1 %v188_v62  ;;  %1787 = vmatpush3.bf16.msra.mxu0 %v2012_v3  ;;  %v2449_v62 = vld [vmem:[%s2847_s0 + $0xf1] sm:$0xff]  ;;  %v1496_v3 = vld [vmem:[%s2847_s0 + $0x100] sm:$0xff] }
  0x2e   :  { %1788 = vmatprep.subr.bf16.mxu0 %v2014_v12  ;;  %1851 = vmatpush3.bf16.msra.mxu1 %v2021_v30  ;;  %v2030_v12 = vld [vmem:[%s2846_s1 + $0x1e8] sm:$0xff]   ;;  %v2481_v17 = vpack.c.bf16 %v2449_v62, %v2444_v61  ;;  %v224_v19 = vpack.c.bf16 %v1496_v3, %v1495_v2  ;;  %v2518_v30 = vld [vmem:[%s2847_s0 + $0x120] sm:$0xff] }
  0x2f   :  { %1852 = vmatprep.subr.bf16.mxu1 %v2023_v40  ;;  %v2037_v40 = vld [vmem:[%s2846_s1 + $0x1b8] sm:$0xff]  }
  0x31   :  { %1789 = vmatpush3.bf16.msra.mxu0 %v2016_v15  ;;  %v2477_v15 = vpack.c.bf16 %v2439_v60, %v2434_v55 }
  0x32   :  { %1790 = vmatprep.subr.bf16.mxu0 %v2018_v23  ;;  %1853 = vmatpush3.bf16.msra.mxu1 %v2025_v44  ;;  %v2495_v23 = vld [vmem:[%s2847_s0 + $0xf2] sm:$0xff]  ;;  %v2038_v44 = vld [vmem:[%s2846_s1 + $0x200] sm:$0xff]  }
  0x33   :  { %871 = vmatmul.mubr.bf16.gmra.mrb[8].mxu0 %v2313_v9  ;;  %1854 = vmatprep.subr.bf16.mxu1 %v2027_v63 }
  0x34   :  { %968 = vmatmul.mubr.bf16.gmra.mrb[8].mxu1 %v2317_v10  ;;  %878 = vmatprep.mubr.bf16.mxu0 %v2321_v11 }
  0x35   :  { %975 = vmatprep.mubr.bf16.mxu1 %v197_v13  ;;  %1791 = vmatpush3.bf16.msra.mxu0 %v2020_v28  ;;  %v2470_v13 = vpack.c.bf16 %v1493_v37, %v1492_v22  ;;  %v2490_v22 = vld [vmem:[%s2847_s0 + $0xe2] sm:$0xff]  ;;  %v2033_v28 = vld [vmem:[%s2846_s1 + $0x1f0] sm:$0xff]   ;;  %v2036_v37 = vld [vmem:[%s2846_s1 + $0x1f8] sm:$0xff]  }
  0x36   :  { %1792 = vmatprep.subr.bf16.mxu0 %v2022_v39  ;;  %1855 = vmatpush3.bf16.msra.mxu1 %v2029_v7  ;;  %v2529_v39 = vpack.c.bf16 %v1495_v2, %v1494_v38 }
  0x37   :  { %1856 = vmatprep.subr.bf16.mxu1 %v2030_v12 }
  0x39   :  { %1793 = vmatpush3.bf16.msra.mxu0 %v2024_v42  ;;  %v2536_v42 = vpack.c.bf16 %v2495_v23, %v2490_v22 }
  0x3a   :  { %1794 = vmatprep.subr.bf16.mxu0 %v2026_v53  ;;  %1857 = vmatpush3.bf16.msra.mxu1 %v2031_v14  ;;  %v2562_v53 = vld [vmem:[%s2847_s0 + $0x102] sm:$0xff]  ;;  %v172_v14 = vpack.c.bf16 %v2230_v50, %v2198_v41  ;;  %v171_v41 = vpack.c.bf16 %v2210_v45, %v2180_v33  ;;  %v181_v50 = vpack.c.bf16 %v2277_v0, %v2235_v52  ;;  %v2041_v52 = vld [vmem:[%s2846_s1 + $0x218] sm:$0xff]  }
  0x3b   :  { %879 = vmatmul.mubr.bf16.gmra.mrb[12].mxu0 %v2366_v24  ;;  %1858 = vmatprep.subr.bf16.mxu1 %v2033_v28  ;;  %v180_v33 = vpack.c.bf16 %v2249_v56, %v2215_v46  ;;  %v190_v45 = vpack.c.bf16 %v2337_v16, %v2282_v1  ;;  %v2622_v46 = vld [vmem:[%s2847_s0 + $0x82] sm:$0xff]  ;;  %v207_v16 = vpack.c.bf16 %v2397_v35, %v2355_v20 }
  0x3c   :  { %976 = vmatmul.mubr.bf16.gmra.mrb[12].mxu1 %v2373_v26  ;;  %886 = vmatprep.mubr.bf16.mxu0 %v204_v27  ;;  %v2505_v27 = vld [vmem:[%s2847_s0 + $0x111] sm:$0xff]  ;;  %v2042_v56 = vld [vmem:[%s2846_s1 + $0x220] sm:$0xff]   ;;  %v199_v0 = vpack.c.bf16 %v2622_v46, %v2347_v18  ;;  %v217_v18 = vpack.c.bf16 %v2490_v22, %v2439_v60 }
  0x3d   :  { %983 = vmatprep.mubr.bf16.mxu1 %v206_v29  ;;  %1795 = vmatpush3.bf16.msra.mxu0 %v2028_v4  ;;  %v1497_v29 = vld [vmem:[%s2847_s0 + $0x110] sm:$0xff]  ;;  %v1530_v20 = vld [vmem:[%s2847_s0 + $0x122] sm:$0xff] }
  0x3e   :  { %1796 = vmatprep.subr.bf16.mxu0 %v2032_v21  ;;  %1859 = vmatpush3.bf16.msra.mxu1 %v2035_v32  ;;  %v233_v38 = vpack.c.bf16 %v2518_v30, %v1497_v29  ;;  %v2571_v4 = vld [vmem:[%s2847_s0 + $0x112] sm:$0xff]  ;;  %v2573_v7 = vpack.c.bf16 %v1497_v29, %v1496_v3  ;;  %v2039_v29 = vld [vmem:[%s2846_s1 + $0x208] sm:$0xff]  }
  0x3f   :  { %1860 = vmatprep.subr.bf16.mxu1 %v2036_v37  ;;  %v2577_v12 = vpack.c.bf16 %v2571_v4, %v2562_v53  ;;  %v2591_v3 = vld [vmem:[%s2847_s0 + $0x130] sm:$0xff]  ;;  %v235_v35 = vpack.c.bf16 %v1530_v20, %v2571_v4 }
  0x40   :  { %v236_v28 = vpack.c.bf16 %v2591_v3, %v2518_v30 }
  0x41   :  { %1797 = vmatpush3.bf16.msra.mxu0 %v2034_v31 }
  0x42   :  { %1926 = vmatprep.subr.bf16.mxu0 %v2038_v44  ;;  %1861 = vmatpush3.bf16.msra.mxu1 %v2037_v40 }
  0x43   :  { %887 = vmatmul.mubr.bf16.gmra.mrb[16].mxu0 %v203_v43  ;;  %v2540_v43 = vpack.c.bf16 %v2505_v27, %v2500_v25  ;;  %1958 = vmatprep.subr.bf16.mxu1 %v2038_v44 }
  0x44   :  { %984 = vmatmul.mubr.bf16.gmra.mrb[16].mxu1 %v205_v48  ;;  %894 = vmatprep.mubr.bf16.mxu0 %v2426_v49  ;;  %v2550_v48 = vld [vmem:[%s2847_s0 + $0x81] sm:$0xff] }
  0x45   :  { %991 = vmatprep.mubr.bf16.mxu1 %v215_v51  ;;  %v2555_v51 = vld [vmem:[%s2847_s0 + $0x90] sm:$0xff]  ;;  %v198_v63 = vpack.c.bf16 %v2550_v48, %v2303_v6  ;;  %v216_v6 = vpack.c.bf16 %v2444_v61, %v2402_v36 }
  0x46   :  { %v200_v2 = vpack.c.bf16 %v2555_v51, %v2311_v8  ;;  %v226_v8 = vpack.c.bf16 %v2562_v53, %v2495_v23 }
  0x4b   :  { %895 = vmatmul.mubr.bf16.gmra.mrb[20].mxu0 %v2470_v13 }
  0x4c   :  { %992 = vmatmul.mubr.bf16.gmra.mrb[20].mxu1 %v2477_v15  ;;  %902 = vmatprep.mubr.bf16.mxu0 %v2481_v17 }
  0x4d   :  { %999 = vmatprep.mubr.bf16.mxu1 %v224_v19  ;;  %v2584_v19 = vld [vmem:[%s2847_s0 + $0x121] sm:$0xff] }
  0x4e   :  { %v234_v21 = vpack.c.bf16 %v2584_v19, %v2505_v27 }
  0x53   :  { %903 = vmatmul.mubr.bf16.gmra.mrb[24].mxu0 %v2529_v39 }
  0x54   :  { %1000 = vmatmul.mubr.bf16.gmra.mrb[24].mxu1 %v2536_v42  ;;  %910 = vmatprep.mubr.bf16.mxu0 %v2540_v43 }
  0x55   :  { %1007 = vmatprep.mubr.bf16.mxu1 %v233_v38 }
  0x5b   :  { %911 = vmatmul.mubr.bf16.gmra.mrb[28].mxu0 %v2573_v7 }
  0x5c   :  { %1008 = vmatmul.mubr.bf16.gmra.mrb[28].mxu1 %v2577_v12  ;;  %1048 = vmatprep.mubr.bf16.mxu0 %v172_v14 }
  0x5d   :  { %1145 = vmatprep.mubr.bf16.mxu1 %v2219_v47  ;;  %v2040_v47 = vld [vmem:[%s2846_s1 + $0x210] sm:$0xff]  }
  0x63   :  { %1049 = vmatmul.mubr.bf16.vlgmr.msra.gmra.mrb[32].mxu0 %v171_v41 }
  0x64   :  { %1146 = vmatmul.mubr.bf16.vlgmr.msra.gmra.mrb[32].mxu1 %v2241_v54  ;;  %1927 = vmatpush3.bf16.msra.mxu0 %v2038_v44  ;;  %v1554_v54 = vld [vmem:[%s2847_s0 + $0x91] sm:$0xff] }
  0x65   :  { %1056 = vmatprep.mubr.bf16.mxu0 %v181_v50  ;;  %1153 = vmatprep.mubr.bf16.mxu1 %v2262_v59  ;;  %v189_v59 = vpack.c.bf16 %v2298_v5, %v2254_v57  ;;  %v201_v1 = vpack.c.bf16 %v1554_v54, %v2550_v48  ;;  %v2044_v57 = vld [vmem:[%s2846_s1 + $0x230] sm:$0xff]   ;;  %v208_v5 = vpack.c.bf16 %v2434_v55, %v2392_v34 }
  0x66   :  { %1928 = vmatprep.subr.bf16.mxu0 %v2039_v29  ;;  %1966 = vmatpush3.bf16.msra.mxu1 %v2038_v44  ;;  %v225_v34 = vpack.c.bf16 %v2500_v25, %v2449_v62  ;;  %v1578_v55 = vld [vmem:[%s2847_s0 + $0x132] sm:$0xff] }
  0x67   :  { %1959 = vmatprep.subr.bf16.mxu1 %v2039_v29  ;;  %v238_v60 = vpack.c.bf16 %v1578_v55, %v1530_v20 }
  0x68   :  { %1929 = vmatpush3.bf16.msra.mxu0 %v2039_v29 }
  0x69   :  { %1930 = vmatprep.subr.bf16.mxu0 %v2040_v47 }
  0x6a   :  { %1967 = vmatpush3.bf16.msra.mxu1 %v2039_v29 }
  0x6b   :  { %1057 = vmatmul.mubr.bf16.gmra.mrb[36].mxu0 %v180_v33  ;;  %1960 = vmatprep.subr.bf16.mxu1 %v2040_v47 }
  0x6c   :  { %1154 = vmatmul.mubr.bf16.gmra.mrb[36].mxu1 %v2313_v9  ;;  %1064 = vmatprep.mubr.bf16.mxu0 %v190_v45  ;;  %v2043_v9 = vld [vmem:[%s2846_s1 + $0x228] sm:$0xff]  }
  0x6d   :  { %1161 = vmatprep.mubr.bf16.mxu1 %v2321_v11  ;;  %1931 = vmatpush3.bf16.msra.mxu0 %v2040_v47  ;;  %v2045_v11 = vld [vmem:[%s2846_s1 + $0x238] sm:$0xff]  }
  0x6e   :  { %1932 = vmatprep.subr.bf16.mxu0 %v2041_v52  ;;  %1968 = vmatpush3.bf16.msra.mxu1 %v2040_v47 }
  0x6f   :  { %1961 = vmatprep.subr.bf16.mxu1 %v2041_v52 }
  0x71   :  { %1933 = vmatpush3.bf16.msra.mxu0 %v2041_v52 }
  0x72   :  { %1934 = vmatprep.subr.bf16.mxu0 %v2042_v56  ;;  %1969 = vmatpush3.bf16.msra.mxu1 %v2041_v52 }
  0x73   :  { %1065 = vmatmul.mubr.bf16.gmra.mrb[40].mxu0 %v189_v59  ;;  %1962 = vmatprep.subr.bf16.mxu1 %v2042_v56 }
  0x74   :  { %1162 = vmatmul.mubr.bf16.gmra.mrb[40].mxu1 %v2366_v24  ;;  %1072 = vmatprep.mubr.bf16.mxu0 %v199_v0  ;;  %v1562_v24 = vld [vmem:[%s2847_s0 + $0x131] sm:$0xff] }
  0x75   :  { %1169 = vmatprep.mubr.bf16.mxu1 %v201_v1  ;;  %1935 = vmatpush3.bf16.msra.mxu0 %v2042_v56  ;;  %v237_v36 = vpack.c.bf16 %v1562_v24, %v2584_v19 }
  0x76   :  { %1936 = vmatprep.subr.bf16.mxu0 %v2043_v9  ;;  %1970 = vmatpush3.bf16.msra.mxu1 %v2042_v56 }
  0x77   :  { %1963 = vmatprep.subr.bf16.mxu1 %v2043_v9 }
  0x79   :  { %1937 = vmatpush3.bf16.msra.mxu0 %v2043_v9 }
  0x7a   :  { %1938 = vmatprep.subr.bf16.mxu0 %v2044_v57  ;;  %1971 = vmatpush3.bf16.msra.mxu1 %v2043_v9 }
  0x7b   :  { %1073 = vmatmul.mubr.bf16.gmra.mrb[44].mxu0 %v198_v63  ;;  %1964 = vmatprep.subr.bf16.mxu1 %v2044_v57 }
  0x7c   :  { %1170 = vmatmul.mubr.bf16.gmra.mrb[44].mxu1 %v200_v2  ;;  %1080 = vmatprep.mubr.bf16.mxu0 %v208_v5 }
  0x7d   :  { %1177 = vmatprep.mubr.bf16.mxu1 %v2426_v49  ;;  %1939 = vmatpush3.bf16.msra.mxu0 %v2044_v57  ;;  %v1570_v49 = vld [vmem:[%s2847_s0 + $0x92] sm:$0xff] }
  0x7e   :  { %1940 = vmatprep.subr.bf16.mxu0 %v2045_v11  ;;  %1972 = vmatpush3.bf16.msra.mxu1 %v2044_v57 }
  0x7f   :  { %1965 = vmatprep.subr.bf16.mxu1 %v2045_v11 }
  0x81   :  { %1941 = vmatpush3.bf16.msra.mxu0 %v2045_v11 }
  0x82   :  { %1973 = vmatpush3.bf16.msra.mxu1 %v2045_v11 }
  0x83   :  { %1081 = vmatmul.mubr.bf16.gmra.mrb[48].mxu0 %v207_v16 }
  0x84   :  { %1178 = vmatmul.mubr.bf16.gmra.mrb[48].mxu1 %v2470_v13  ;;  %1088 = vmatprep.mubr.bf16.mxu0 %v217_v18 }
  0x85   :  { %1185 = vmatprep.mubr.bf16.mxu1 %v2481_v17 }
  0x8b   :  { %1089 = vmatmul.mubr.bf16.gmra.mrb[52].mxu0 %v216_v6 }
  0x8c   :  { %1186 = vmatmul.mubr.bf16.gmra.mrb[52].mxu1 %v2529_v39  ;;  %1096 = vmatprep.mubr.bf16.mxu0 %v226_v8 }
  0x8d   :  { %1193 = vmatprep.mubr.bf16.mxu1 %v2540_v43 }
  0x93   :  { %1097 = vmatmul.mubr.bf16.gmra.mrb[56].mxu0 %v225_v34 }
  0x94   :  { %1194 = vmatmul.mubr.bf16.gmra.mrb[56].mxu1 %v2573_v7  ;;  %1104 = vmatprep.mubr.bf16.mxu0 %v235_v35 }
  0x95   :  { %1201 = vmatprep.mubr.bf16.mxu1 %v237_v36 }
  0x9b   :  { %1105 = vmatmul.mubr.bf16.gmra.mrb[60].mxu0 %v234_v21 }
  0x9c   :  { %1202 = vmatmul.mubr.bf16.gmra.mrb[60].mxu1 %v236_v28  ;;  %1942 = vmatprep.mubr.bf16.mxu0 %v2258_v58  ;;  %v202_v58 = vpack.c.bf16 %v1570_v49, %v2622_v46 }
  0x9d   :  { %1950 = vmatprep.mubr.bf16.mxu1 %v2477_v15 }
  0xa3   :  { %1943 = vmatmul.mubr.bf16.vlgmr.msra.gmra.mrb[64].mxu0 %v2317_v10 }
  0xa4   :  { %1951 = vmatmul.mubr.bf16.vlgmr.msra.gmra.mrb[64].mxu1 %v2536_v42  ;;  %1946 = vmatprep.mubr.bf16.mxu0 %v2373_v26  ;;  %v2699_v26 = vld [vmem:[%s2848_s2] ss:$0 sm:$0xff] }
  0xa5   :  { %1954 = vmatprep.mubr.bf16.mxu1 %v2577_v12 }
  0xab   :  { %1947 = vmatmul.mubr.bf16.gmra.mrb[68].mxu0 %v202_v58 }
  0xac   :  { %1955 = vmatmul.mubr.bf16.gmra.mrb[68].mxu1 %v238_v60 }
  0xf6   :  { %v1670_v10 = vpop.f32.mrb[0].mxu0 }
  0xf7   :  { %v1671_v61 = vpop.f32.mrb[1].mxu0  ;;  %v1734_v62 = vpop.f32.mrb[0].mxu1 }
  0xf8   :  { %v1672_v13 = vadd.f32 %v1671_v61, %v1670_v10  ;;  %v1673_v15 = vpop.f32.mrb[2].mxu0  ;;  %v1735_v17 = vpop.f32.mrb[1].mxu1 }
  0xf9   :  { %v1674_v22 = vpop.f32.mrb[3].mxu0  ;;  %v1736_v23 = vadd.f32 %v1735_v17, %v1734_v62  ;;  %v1737_v25 = vpop.f32.mrb[2].mxu1 }
  0xfa   :  { %v857_v27 = vadd.f32 %v1672_v13, %v2699_v26  ;;  %v1675_v30 = vadd.f32 %v1674_v22, %v1673_v15  ;;  %v1738_v31 = vpop.f32.mrb[3].mxu1 }
  0xfb   :  { %v1739_v32 = vadd.f32 %v1738_v31, %v1737_v25 }
  0xfc   :  { %v860_v37 = vadd.f32 %v1675_v30, %v2699_v26  ;;  %v2703_v39 = vadd.f32 %v1736_v23, %v857_v27 }
  0xfe   :  { %v2705_v40 = vadd.f32 %v1739_v32, %v860_v37  ;;  %v1676_v42 = vpop.f32.mrb[4].mxu0 }
  0xff   :  { %v1677_v43 = vpop.f32.mrb[5].mxu0  ;;  %v1740_v44 = vpop.f32.mrb[4].mxu1 }
 0x100   :  { %v1678_v38 = vadd.f32 %v1677_v43, %v1676_v42  ;;  %v1679_v48 = vpop.f32.mrb[6].mxu0  ;;  %v1741_v51 = vpop.f32.mrb[5].mxu1 }
 0x101   :  { %v1680_v53 = vpop.f32.mrb[7].mxu0  ;;  %v1742_v63 = vadd.f32 %v1741_v51, %v1740_v44  ;;  %v1743_v2 = vpop.f32.mrb[6].mxu1 }
 0x102   :  { %v865_v4 = vadd.f32 %v1678_v38, %v2699_v26  ;;  %v1681_v7 = vadd.f32 %v1680_v53, %v1679_v48  ;;  %v1744_v12 = vpop.f32.mrb[7].mxu1 }
 0x103   :  { %v1745_v14 = vadd.f32 %v1744_v12, %v1743_v2 }
 0x104   :  { %v868_v19 = vadd.f32 %v1681_v7, %v2699_v26  ;;  %v2709_v21 = vadd.f32 %v1742_v63, %v865_v4 }
 0x106   :  { %v2711_v3 = vadd.f32 %v1745_v14, %v868_v19  ;;  %v1682_v28 = vpop.f32.mrb[8].mxu0 }
 0x107   :  { %v1683_v41 = vpop.f32.mrb[9].mxu0  ;;  %v1746_v50 = vpop.f32.mrb[8].mxu1 }
 0x108   :  { %v1684_v29 = vadd.f32 %v1683_v41, %v1682_v28  ;;  %v1685_v47 = vpop.f32.mrb[10].mxu0  ;;  %v1747_v33 = vpop.f32.mrb[9].mxu1 }
 0x109   :  { %v1686_v45 = vpop.f32.mrb[11].mxu0  ;;  %v1748_v52 = vadd.f32 %v1747_v33, %v1746_v50  ;;  %v1749_v46 = vpop.f32.mrb[10].mxu1 }
 0x10a   :  { %v873_v54 = vadd.f32 %v1684_v29, %v2699_v26  ;;  %v1687_v56 = vadd.f32 %v1686_v45, %v1685_v47  ;;  %v1750_v59 = vpop.f32.mrb[11].mxu1 }
 0x10b   :  { %v1751_v0 = vadd.f32 %v1750_v59, %v1749_v46 }
 0x10c   :  { %v876_v1 = vadd.f32 %v1687_v56, %v2699_v26  ;;  %v2715_v9 = vadd.f32 %v1748_v52, %v873_v54 }
 0x10e   :  { %v2717_v57 = vadd.f32 %v1751_v0, %v876_v1  ;;  %v1688_v5 = vpop.f32.mrb[12].mxu0 }
 0x10f   :  { %v1689_v11 = vpop.f32.mrb[13].mxu0  ;;  %v1752_v16 = vpop.f32.mrb[12].mxu1 }
 0x110   :  { %v1690_v18 = vadd.f32 %v1689_v11, %v1688_v5  ;;  %v1691_v6 = vpop.f32.mrb[14].mxu0  ;;  %v1753_v8 = vpop.f32.mrb[13].mxu1 }
 0x111   :  { %v1692_v20 = vpop.f32.mrb[15].mxu0  ;;  %v1754_v24 = vadd.f32 %v1753_v8, %v1752_v16  ;;  %v1755_v34 = vpop.f32.mrb[14].mxu1 }
 0x112   :  { %v881_v35 = vadd.f32 %v1690_v18, %v2699_v26  ;;  %v1693_v36 = vadd.f32 %v1692_v20, %v1691_v6  ;;  %v1756_v49 = vpop.f32.mrb[15].mxu1 }
 0x113   :  { %v1757_v55 = vadd.f32 %v1756_v49, %v1755_v34 }
 0x114   :  { %v884_v58 = vadd.f32 %v1693_v36, %v2699_v26  ;;  %v2721_v60 = vadd.f32 %v1754_v24, %v881_v35 }
 0x116   :  { %v2723_v10 = vadd.f32 %v1757_v55, %v884_v58  ;;  %v1694_v61 = vpop.f32.mrb[16].mxu0 }
 0x117   :  { %v1695_v62 = vpop.f32.mrb[17].mxu0  ;;  %v1758_v13 = vpop.f32.mrb[16].mxu1 }
 0x118   :  { %v1696_v15 = vadd.f32 %v1695_v62, %v1694_v61  ;;  %v1697_v17 = vpop.f32.mrb[18].mxu0  ;;  %v1759_v22 = vpop.f32.mrb[17].mxu1 }
 0x119   :  { %v1698_v23 = vpop.f32.mrb[19].mxu0  ;;  %v1760_v25 = vadd.f32 %v1759_v22, %v1758_v13  ;;  %v1761_v27 = vpop.f32.mrb[18].mxu1 }
 0x11a   :  { %v889_v30 = vadd.f32 %v1696_v15, %v2699_v26  ;;  %v1699_v31 = vadd.f32 %v1698_v23, %v1697_v17  ;;  %v1762_v32 = vpop.f32.mrb[19].mxu1 }
 0x11b   :  { %v1763_v37 = vadd.f32 %v1762_v32, %v1761_v27 }
 0x11c   :  { %v892_v42 = vadd.f32 %v1699_v31, %v2699_v26  ;;  %v2727_v43 = vadd.f32 %v1760_v25, %v889_v30 }
 0x11e   :  { %v2729_v44 = vadd.f32 %v1763_v37, %v892_v42  ;;  %v1700_v38 = vpop.f32.mrb[20].mxu0 }
 0x11f   :  { %v1701_v48 = vpop.f32.mrb[21].mxu0  ;;  %v1764_v51 = vpop.f32.mrb[20].mxu1 }
 0x120   :  { %v1702_v53 = vadd.f32 %v1701_v48, %v1700_v38  ;;  %v1703_v63 = vpop.f32.mrb[22].mxu0  ;;  %v1765_v2 = vpop.f32.mrb[21].mxu1 }
 0x121   :  { %v1704_v4 = vpop.f32.mrb[23].mxu0  ;;  %v1766_v7 = vadd.f32 %v1765_v2, %v1764_v51  ;;  %v1767_v12 = vpop.f32.mrb[22].mxu1 }
 0x122   :  { %v897_v14 = vadd.f32 %v1702_v53, %v2699_v26  ;;  %v1705_v19 = vadd.f32 %v1704_v4, %v1703_v63  ;;  %v1768_v28 = vpop.f32.mrb[23].mxu1 }
 0x123   :  { %v1769_v41 = vadd.f32 %v1768_v28, %v1767_v12 }
 0x124   :  { %v900_v50 = vadd.f32 %v1705_v19, %v2699_v26  ;;  %v2733_v29 = vadd.f32 %v1766_v7, %v897_v14 }
 0x126   :  { %v2735_v47 = vadd.f32 %v1769_v41, %v900_v50  ;;  %v1706_v33 = vpop.f32.mrb[24].mxu0 }
 0x127   :  { %v1707_v45 = vpop.f32.mrb[25].mxu0  ;;  %v1770_v52 = vpop.f32.mrb[24].mxu1 }
 0x128   :  { %v1708_v46 = vadd.f32 %v1707_v45, %v1706_v33  ;;  %v1709_v54 = vpop.f32.mrb[26].mxu0  ;;  %v1771_v56 = vpop.f32.mrb[25].mxu1 }
 0x129   :  { %v1710_v59 = vpop.f32.mrb[27].mxu0  ;;  %v1772_v0 = vadd.f32 %v1771_v56, %v1770_v52  ;;  %v1773_v1 = vpop.f32.mrb[26].mxu1 }
 0x12a   :  { %v905_v5 = vadd.f32 %v1708_v46, %v2699_v26  ;;  %v1711_v11 = vadd.f32 %v1710_v59, %v1709_v54  ;;  %v1774_v16 = vpop.f32.mrb[27].mxu1 }
 0x12b   :  { %v1775_v18 = vadd.f32 %v1774_v16, %v1773_v1 }
 0x12c   :  { %v908_v6 = vadd.f32 %v1711_v11, %v2699_v26  ;;  %v2739_v8 = vadd.f32 %v1772_v0, %v905_v5 }
 0x12e   :  { %v2741_v20 = vadd.f32 %v1775_v18, %v908_v6  ;;  %v1712_v24 = vpop.f32.mrb[28].mxu0 }
 0x12f   :  { %v1713_v34 = vpop.f32.mrb[29].mxu0  ;;  %v1776_v35 = vpop.f32.mrb[28].mxu1 }
 0x130   :  { %v1714_v36 = vadd.f32 %v1713_v34, %v1712_v24  ;;  %v1715_v49 = vpop.f32.mrb[30].mxu0  ;;  %v1777_v55 = vpop.f32.mrb[29].mxu1 }
 0x131   :  { %v1716_v58 = vpop.f32.mrb[31].mxu0  ;;  %v1778_v61 = vadd.f32 %v1777_v55, %v1776_v35  ;;  %v1779_v62 = vpop.f32.mrb[30].mxu1 }
 0x132   :  { %v913_v13 = vadd.f32 %v1714_v36, %v2699_v26  ;;  %v1717_v15 = vadd.f32 %v1716_v58, %v1715_v49  ;;  %v1780_v17 = vpop.f32.mrb[31].mxu1 }
 0x133   :  { %v1781_v22 = vadd.f32 %v1780_v17, %v1779_v62 }
 0x134   :  { %v916_v23 = vadd.f32 %v1717_v15, %v2699_v26  ;;  %v2745_v25 = vadd.f32 %v1778_v61, %v913_v13 }
 0x136   :  { %v2747_v27 = vadd.f32 %v1781_v22, %v916_v23  ;;  %v1798_v30 = vpop.f32.mrb[32].mxu0 }
 0x137   :  { %v1799_v31 = vpop.f32.mrb[33].mxu0  ;;  %v1862_v32 = vpop.f32.mrb[32].mxu1 }
 0x138   :  { %v1800_v37 = vadd.f32 %v1799_v31, %v1798_v30  ;;  %v1801_v42 = vpop.f32.mrb[34].mxu0  ;;  %v1863_v38 = vpop.f32.mrb[33].mxu1 }
 0x139   :  { %v1802_v48 = vpop.f32.mrb[35].mxu0  ;;  %v1864_v51 = vadd.f32 %v1863_v38, %v1862_v32  ;;  %v1865_v53 = vpop.f32.mrb[34].mxu1 }
 0x13a   :  { %v1051_v63 = vadd.f32 %v1800_v37, %v2703_v39  ;;  %v1803_v2 = vadd.f32 %v1802_v48, %v1801_v42  ;;  %v1866_v4 = vpop.f32.mrb[35].mxu1 }
 0x13b   :  { %v1867_v7 = vadd.f32 %v1866_v4, %v1865_v53 }
 0x13c   :  { %v1054_v26 = vadd.f32 %v1803_v2, %v2705_v40  ;;  %v2751_v12 = vadd.f32 %v1864_v51, %v1051_v63 }
 0x13e   :  { %v1804_v14 = vpop.f32.mrb[36].mxu0  ;;  %v2753_v19 = vadd.f32 %v1867_v7, %v1054_v26 }
 0x13f   :  { %v1805_v28 = vpop.f32.mrb[37].mxu0  ;;  %v1868_v41 = vpop.f32.mrb[36].mxu1 }
 0x140   :  { %v1806_v50 = vadd.f32 %v1805_v28, %v1804_v14  ;;  %v1807_v33 = vpop.f32.mrb[38].mxu0  ;;  %v1869_v45 = vpop.f32.mrb[37].mxu1 }
 0x141   :  { %v1808_v52 = vpop.f32.mrb[39].mxu0  ;;  %v1870_v46 = vadd.f32 %v1869_v45, %v1868_v41  ;;  %v1871_v54 = vpop.f32.mrb[38].mxu1 }
 0x142   :  { %v1059_v39 = vadd.f32 %v1806_v50, %v2709_v21  ;;  %v1809_v56 = vadd.f32 %v1808_v52, %v1807_v33  ;;  %v1872_v59 = vpop.f32.mrb[39].mxu1 }
 0x143   :  { %v1873_v0 = vadd.f32 %v1872_v59, %v1871_v54 }
 0x144   :  { %v1062_v40 = vadd.f32 %v1809_v56, %v2711_v3  ;;  %v2757_v1 = vadd.f32 %v1870_v46, %v1059_v39 }
 0x146   :  { %v1810_v5 = vpop.f32.mrb[40].mxu0  ;;  %v2759_v11 = vadd.f32 %v1873_v0, %v1062_v40 }
 0x147   :  { %v1811_v16 = vpop.f32.mrb[41].mxu0  ;;  %v1874_v18 = vpop.f32.mrb[40].mxu1 }
 0x148   :  { %v1812_v6 = vadd.f32 %v1811_v16, %v1810_v5  ;;  %v1813_v24 = vpop.f32.mrb[42].mxu0  ;;  %v1875_v34 = vpop.f32.mrb[41].mxu1 }
 0x149   :  { %v1814_v35 = vpop.f32.mrb[43].mxu0  ;;  %v1876_v36 = vadd.f32 %v1875_v34, %v1874_v18  ;;  %v1877_v49 = vpop.f32.mrb[42].mxu1 }
 0x14a   :  { %v1067_v21 = vadd.f32 %v1812_v6, %v2715_v9  ;;  %v1815_v55 = vadd.f32 %v1814_v35, %v1813_v24  ;;  %v1878_v58 = vpop.f32.mrb[43].mxu1 }
 0x14b   :  { %v1879_v61 = vadd.f32 %v1878_v58, %v1877_v49 }
 0x14c   :  { %v1070_v3 = vadd.f32 %v1815_v55, %v2717_v57  ;;  %v2763_v62 = vadd.f32 %v1876_v36, %v1067_v21 }
 0x14e   :  { %v1816_v13 = vpop.f32.mrb[44].mxu0  ;;  %v2765_v15 = vadd.f32 %v1879_v61, %v1070_v3 }
 0x14f   :  { %v1817_v17 = vpop.f32.mrb[45].mxu0  ;;  %v1880_v22 = vpop.f32.mrb[44].mxu1 }
 0x150   :  { %v1818_v23 = vadd.f32 %v1817_v17, %v1816_v13  ;;  %v1819_v30 = vpop.f32.mrb[46].mxu0  ;;  %v1881_v31 = vpop.f32.mrb[45].mxu1 }
 0x151   :  { %v1820_v32 = vpop.f32.mrb[47].mxu0  ;;  %v1882_v37 = vadd.f32 %v1881_v31, %v1880_v22  ;;  %v1883_v42 = vpop.f32.mrb[46].mxu1 }
 0x152   :  { %v1075_v9 = vadd.f32 %v1818_v23, %v2721_v60  ;;  %v1821_v38 = vadd.f32 %v1820_v32, %v1819_v30  ;;  %v1884_v48 = vpop.f32.mrb[47].mxu1 }
 0x153   :  { %v1885_v51 = vadd.f32 %v1884_v48, %v1883_v42 }
 0x154   :  { %v1078_v57 = vadd.f32 %v1821_v38, %v2723_v10  ;;  %v2769_v53 = vadd.f32 %v1882_v37, %v1075_v9 }
 0x156   :  { %v1822_v63 = vpop.f32.mrb[48].mxu0  ;;  %v2771_v2 = vadd.f32 %v1885_v51, %v1078_v57 }
 0x157   :  { %v1823_v4 = vpop.f32.mrb[49].mxu0  ;;  %v1886_v7 = vpop.f32.mrb[48].mxu1 }
 0x158   :  { %v1824_v26 = vadd.f32 %v1823_v4, %v1822_v63  ;;  %v1825_v14 = vpop.f32.mrb[50].mxu0  ;;  %v1887_v28 = vpop.f32.mrb[49].mxu1 }
 0x159   :  { %v1826_v41 = vpop.f32.mrb[51].mxu0  ;;  %v1888_v50 = vadd.f32 %v1887_v28, %v1886_v7  ;;  %v1889_v33 = vpop.f32.mrb[50].mxu1 }
 0x15a   :  { %v1083_v60 = vadd.f32 %v1824_v26, %v2727_v43  ;;  %v1827_v45 = vadd.f32 %v1826_v41, %v1825_v14  ;;  %v1890_v52 = vpop.f32.mrb[51].mxu1 }
 0x15b   :  { %v1891_v46 = vadd.f32 %v1890_v52, %v1889_v33 }
 0x15c   :  { %v1086_v10 = vadd.f32 %v1827_v45, %v2729_v44  ;;  %v1180_v54 = vadd.f32 %v1888_v50, %v1083_v60 }
 0x15e   :  { %v1828_v39 = vpop.f32.mrb[52].mxu0  ;;  %v2775_v56 = vadd.f32 %v1891_v46, %v1086_v10 }
 0x15f   :  { %v1829_v59 = vpop.f32.mrb[53].mxu0  ;;  %v1892_v0 = vpop.f32.mrb[52].mxu1 }
 0x160   :  { %v1830_v40 = vadd.f32 %v1829_v59, %v1828_v39  ;;  %v1831_v5 = vpop.f32.mrb[54].mxu0  ;;  %v1893_v16 = vpop.f32.mrb[53].mxu1 }
 0x161   :  { %v1832_v18 = vpop.f32.mrb[55].mxu0  ;;  %v1894_v6 = vadd.f32 %v1893_v16, %v1892_v0  ;;  %v1895_v24 = vpop.f32.mrb[54].mxu1 }
 0x162   :  { %v1091_v34 = vadd.f32 %v1830_v40, %v2733_v29  ;;  %v1833_v43 = vadd.f32 %v1832_v18, %v1831_v5  ;;  %v1896_v35 = vpop.f32.mrb[55].mxu1 }
 0x163   :  { %v1897_v36 = vadd.f32 %v1896_v35, %v1895_v24 }
 0x164   :  { %v1094_v49 = vadd.f32 %v1833_v43, %v2735_v47  ;;  %v1188_v44 = vadd.f32 %v1894_v6, %v1091_v34 }
 0x166   :  { %v1834_v21 = vpop.f32.mrb[56].mxu0  ;;  %v1191_v55 = vadd.f32 %v1897_v36, %v1094_v49 }
 0x167   :  { %v1835_v58 = vpop.f32.mrb[57].mxu0  ;;  %v1898_v61 = vpop.f32.mrb[56].mxu1 }
 0x168   :  { %v1836_v3 = vadd.f32 %v1835_v58, %v1834_v21  ;;  %v1837_v13 = vpop.f32.mrb[58].mxu0  ;;  %v1899_v17 = vpop.f32.mrb[57].mxu1 }
 0x169   :  { %v1838_v22 = vpop.f32.mrb[59].mxu0  ;;  %v1900_v23 = vadd.f32 %v1899_v17, %v1898_v61  ;;  %v1901_v30 = vpop.f32.mrb[58].mxu1 }
 0x16a   :  { %v1099_v31 = vadd.f32 %v1836_v3, %v2739_v8  ;;  %v1839_v32 = vadd.f32 %v1838_v22, %v1837_v13  ;;  %v1902_v29 = vpop.f32.mrb[59].mxu1 }
 0x16b   :  { %v1903_v37 = vadd.f32 %v1902_v29, %v1901_v30 }
 0x16c   :  { %v1102_v42 = vadd.f32 %v1839_v32, %v2741_v20  ;;  %v1196_v9 = vadd.f32 %v1900_v23, %v1099_v31 }
 0x16e   :  { %v1840_v47 = vpop.f32.mrb[60].mxu0  ;;  %v1199_v38 = vadd.f32 %v1903_v37, %v1102_v42 }
 0x16f   :  { %v1841_v48 = vpop.f32.mrb[61].mxu0  ;;  %v1904_v51 = vpop.f32.mrb[60].mxu1 }
 0x170   :  { %v1842_v57 = vadd.f32 %v1841_v48, %v1840_v47  ;;  %v1843_v63 = vpop.f32.mrb[62].mxu0  ;;  %v1905_v4 = vpop.f32.mrb[61].mxu1 }
 0x171   :  { %v1844_v7 = vpop.f32.mrb[63].mxu0  ;;  %v1906_v26 = vadd.f32 %v1905_v4, %v1904_v51  ;;  %v1907_v14 = vpop.f32.mrb[62].mxu1 }
 0x172   :  { %v1107_v28 = vadd.f32 %v1842_v57, %v2745_v25  ;;  %v1845_v41 = vadd.f32 %v1844_v7, %v1843_v63  ;;  %v1908_v8 = vpop.f32.mrb[63].mxu1 }
 0x173   :  { %v1909_v50 = vadd.f32 %v1908_v8, %v1907_v14 }
 0x174   :  { %v1110_v33 = vadd.f32 %v1845_v41, %v2747_v27  ;;  %v1204_v60 = vadd.f32 %v1906_v26, %v1107_v28 }
 0x176   :  { %v1944_v20 = vpop.f32.mrb[64].mxu0  ;;  %v1207_v45 = vadd.f32 %v1909_v50, %v1110_v33 }
 0x177   :  { %v1253_v52 = vadd.f32 %v1944_v20, %v2757_v1  ;;  %v1952_v46 = vpop.f32.mrb[64].mxu1  ;;  %v1244_v10 = vpop.f32.mrb[65].mxu0 }
 0x178   :  { %v1285_v39 = vadd.f32 %v1952_v46, %v1188_v44  ;;  %v1245_v59 = vadd.f32 %v1244_v10, %v2751_v12  ;;  %v1276_v0 = vpop.f32.mrb[65].mxu1  ;;  %v1945_v40 = vpop.f32.mrb[66].mxu0 }
 0x179   :  { %v1277_v5 = vadd.f32 %v1276_v0, %v1180_v54  ;;  %v1256_v25 = vadd.f32 %v1945_v40, %v2759_v11  ;;  %v1953_v16 = vpop.f32.mrb[66].mxu1  ;;  %v1247_v18 = vpop.f32.mrb[67].mxu0 }
 0x17a   :  { %v1288_v6 = vadd.f32 %v1953_v16, %v1191_v55  ;;  %v1248_v27 = vadd.f32 %v1247_v18, %v2753_v19  ;;  %v1279_v24 = vpop.f32.mrb[67].mxu1 }
 0x17b   :  { %v1280_v34 = vadd.f32 %v1279_v24, %v2775_v56 }
 0x17c   :  { %v1307_v43 = vadd.f32 %v1248_v27, %v1245_v59 }
 0x17e   :  { %v1308_v1 = vadd.f32 %v1307_v43, %v1253_v52  ;;  %v1948_v35 = vpop.f32.mrb[68].mxu0 }
 0x17f   :  { %v1269_v36 = vadd.f32 %v1948_v35, %v2769_v53  ;;  %v1956_v49 = vpop.f32.mrb[68].mxu1  ;;  %v1260_v12 = vpop.f32.mrb[69].mxu0 }
 0x180   :  { %v1301_v44 = vadd.f32 %v1956_v49, %v1204_v60  ;;  %v1261_v54 = vadd.f32 %v1260_v12, %v2763_v62  ;;  %v1309_v21 = vadd.f32 %v1308_v1, %v1256_v25  ;;  %v1292_v11 = vpop.f32.mrb[69].mxu1  ;;  %v1949_v58 = vpop.f32.mrb[70].mxu0 }
 0x181   :  { %v1293_v61 = vadd.f32 %v1292_v11, %v1196_v9  ;;  %v1272_v55 = vadd.f32 %v1949_v58, %v2771_v2  ;;  %v1957_v19 = vpop.f32.mrb[70].mxu1  ;;  %v1263_v3 = vpop.f32.mrb[71].mxu0 }
 0x182   :  { %v1310_v13 = vadd.f32 %v1309_v21, %v1261_v54  ;;  %v1304_v56 = vadd.f32 %v1957_v19, %v1207_v45  ;;  %v1264_v17 = vadd.f32 %v1263_v3, %v2765_v15  ;;  %v1295_v22 = vpop.f32.mrb[71].mxu1 }
 0x183   :  { %v1296_v23 = vadd.f32 %v1295_v22, %v1199_v38 }
 0x184   :  { %v1311_v53 = vadd.f32 %v1310_v13, %v1264_v17 }
 0x186   :  { %v1312_v30 = vadd.f32 %v1311_v53, %v1269_v36 }
 0x188   :  { %v1313_v31 = vadd.f32 %v1312_v30, %v1272_v55 }
 0x18a   :  { %v1314_v32 = vadd.f32 %v1313_v31, %v1277_v5 }
 0x18c   :  { %v1315_v29 = vadd.f32 %v1314_v32, %v1280_v34 }
 0x18e   :  { %v1316_v62 = vadd.f32 %v1315_v29, %v1285_v39 }
 0x190   :  { %v1317_v37 = vadd.f32 %v1316_v62, %v1288_v6 }
 0x192   :  { %v1318_v42 = vadd.f32 %v1317_v37, %v1293_v61 }
 0x194   :  { %v1319_v47 = vadd.f32 %v1318_v42, %v1296_v23 }
 0x196   :  { %v1320_v9 = vadd.f32 %v1319_v47, %v1301_v44 }
 0x198   :  { %v1321_v48 = vadd.f32 %v1320_v9, %v1304_v56 }
 0x19a   :  { %v1322_v2 = vrot.slane %v1321_v48, 4 }
 0x19c   :  { %v1323_v51 = vadd.f32 %v1322_v2, %v1321_v48 }
 0x19e   :  { %v1324_v57 = vrot.slane %v1323_v51, 2 }
 0x1a0   :  { %v1325_v63 = vadd.f32 %v1324_v57, %v1323_v51 }
 0x1a2   :  { %v1326_v4 = vrot.slane %v1325_v63, 1 }
 0x1a4   :  { %v1327_v7 = vadd.f32 %v1326_v4, %v1325_v63 }
 0x1a6   :  { %v1328_v15 = vmul.f32 0.0078125, %v1327_v7 }
 0x1a8   :  { %v1329_v26 = vsub.f32 %v1245_v59, %v1328_v15  ;;  %v1330_v38 = vsub.f32 %v1248_v27, %v1328_v15  ;;  %v1331_v14 = vsub.f32 %v1253_v52, %v1328_v15  ;;  %v1332_v28 = vsub.f32 %v1256_v25, %v1328_v15 }
 0x1a9   :  { %v1333_v41 = vsub.f32 %v1261_v54, %v1328_v15  ;;  %v1334_v8 = vsub.f32 %v1264_v17, %v1328_v15  ;;  %v1335_v50 = vsub.f32 %v1269_v36, %v1328_v15  ;;  %v1336_v33 = vsub.f32 %v1272_v55, %v1328_v15 }
 0x1aa   :  { %v1337_v60 = vsub.f32 %v1277_v5, %v1328_v15  ;;  %v1338_v20 = vsub.f32 %v1280_v34, %v1328_v15  ;;  %v1339_v45 = vsub.f32 %v1285_v39, %v1328_v15  ;;  %v1340_v46 = vsub.f32 %v1288_v6, %v1328_v15 }
 0x1ab   :  { %v1341_v10 = vsub.f32 %v1293_v61, %v1328_v15  ;;  %v1342_v0 = vsub.f32 %v1296_v23, %v1328_v15  ;;  %v1343_v40 = vsub.f32 %v1301_v44, %v1328_v15  ;;  %v1344_v16 = vsub.f32 %v1304_v56, %v1328_v15 }
 0x1ac   :  { %v1345_v18 = vmul.f32 %v1329_v26, %v1329_v26  ;;  %v1346_v24 = vmul.f32 %v1330_v38, %v1330_v38  ;;  %v1347_v43 = vmul.f32 %v1331_v14, %v1331_v14  ;;  %v1348_v59 = vmul.f32 %v1332_v28, %v1332_v28 }
 0x1ad   :  { %v1349_v52 = vmul.f32 %v1333_v41, %v1333_v41  ;;  %v1350_v35 = vmul.f32 %v1334_v8, %v1334_v8  ;;  %v1351_v36 = vmul.f32 %v1335_v50, %v1335_v50  ;;  %v1352_v5 = vmul.f32 %v1336_v33, %v1336_v33 }
 0x1ae   :  { %v1361_v1 = vadd.f32 %v1346_v24, %v1345_v18  ;;  %v1353_v39 = vmul.f32 %v1337_v60, %v1337_v60  ;;  %v1354_v54 = vmul.f32 %v1338_v20, %v1338_v20  ;;  %v1355_v44 = vmul.f32 %v1339_v45, %v1339_v45  ;;  %v1652_v18 = vld [vmem:[%s2849_s3] ss:$0 sm:$0xff] }
 0x1af   :  { %v1356_v58 = vmul.f32 %v1340_v46, %v1340_v46  ;;  %v1357_v55 = vmul.f32 %v1341_v10, %v1341_v10  ;;  %v1358_v3 = vmul.f32 %v1342_v0, %v1342_v0  ;;  %v1359_v56 = vmul.f32 %v1343_v40, %v1343_v40 }
 0x1b0   :  { %v1362_v27 = vadd.f32 %v1361_v1, %v1347_v43  ;;  %v1360_v22 = vmul.f32 %v1344_v16, %v1344_v16 }
 0x1b2   :  { %v1363_v25 = vadd.f32 %v1362_v27, %v1348_v59 }
 0x1b4   :  { %v1364_v49 = vadd.f32 %v1363_v25, %v1349_v52 }
 0x1b6   :  { %v1365_v12 = vadd.f32 %v1364_v49, %v1350_v35  ;;  %v1653_v49 = vld [vmem:[%s2850_s4] ss:$0 sm:$0xff] }
 0x1b8   :  { %v1366_v34 = vadd.f32 %v1365_v12, %v1351_v36 }
 0x1ba   :  { %v1367_v6 = vadd.f32 %v1366_v34, %v1352_v5 }
 0x1bc   :  { %v1368_v21 = vadd.f32 %v1367_v6, %v1353_v39 }
 0x1be   :  { %v1369_v11 = vadd.f32 %v1368_v21, %v1354_v54 }
 0x1c0   :  { %v1370_v61 = vadd.f32 %v1369_v11, %v1355_v44 }
 0x1c2   :  { %v1371_v19 = vadd.f32 %v1370_v61, %v1356_v58 }
 0x1c4   :  { %v1372_v13 = vadd.f32 %v1371_v19, %v1357_v55 }
 0x1c6   :  { %v1373_v17 = vadd.f32 %v1372_v13, %v1358_v3 }
 0x1c8   :  { %v1374_v23 = vadd.f32 %v1373_v17, %v1359_v56 }
 0x1ca   :  { %v1375_v53 = vadd.f32 %v1374_v23, %v1360_v22 }
 0x1cc   :  { %v1376_v30 = vrot.slane %v1375_v53, 4 }
 0x1ce   :  { %v1377_v31 = vadd.f32 %v1376_v30, %v1375_v53 }
 0x1d0   :  { %v1378_v32 = vrot.slane %v1377_v31, 2 }
 0x1d2   :  { %v1379_v29 = vadd.f32 %v1378_v32, %v1377_v31 }
 0x1d4   :  { %v1380_v62 = vrot.slane %v1379_v29, 1 }
 0x1d6   :  { %v1381_v37 = vadd.f32 %v1380_v62, %v1379_v29 }
 0x1d8   :  { %v1382_v42 = vmul.f32 0.0078125, %v1381_v37 }
 0x1da   :  { %v1383_v47 = vadd.f32 1e-05, %v1382_v42 }
 0x1dc   :  { %2046 = vrsqrt.f32 %v1383_v47 }
 0x1e6   :  { %v2047_v9 = vpop.eup %2046 }
 0x1e7   :  { %v1385_v48 = vmul.f32 %v2047_v9, %v1329_v26  ;;  %v1386_v2 = vmul.f32 %v2047_v9, %v1330_v38  ;;  %v1387_v51 = vmul.f32 %v2047_v9, %v1331_v14  ;;  %v1388_v57 = vmul.f32 %v2047_v9, %v1332_v28 }
 0x1e8   :  { %v1389_v63 = vmul.f32 %v2047_v9, %v1333_v41  ;;  %v1390_v4 = vmul.f32 %v2047_v9, %v1334_v8  ;;  %v1391_v7 = vmul.f32 %v2047_v9, %v1335_v50  ;;  %v1392_v15 = vmul.f32 %v2047_v9, %v1336_v33 }
 0x1e9   :  { %v1393_v24 = vmul.f32 %v2047_v9, %v1337_v60  ;;  %v1394_v43 = vmul.f32 %v2047_v9, %v1338_v20  ;;  %v1395_v1 = vmul.f32 %v2047_v9, %v1339_v45  ;;  %v1396_v59 = vmul.f32 %v2047_v9, %v1340_v46 }
 0x1ea   :  { %v1397_v27 = vmul.f32 %v2047_v9, %v1341_v10  ;;  %v1398_v52 = vmul.f32 %v2047_v9, %v1342_v0  ;;  %v1399_v25 = vmul.f32 %v2047_v9, %v1343_v40  ;;  %v1400_v35 = vmul.f32 %v2047_v9, %v1344_v16 }
 0x1eb   :  { %v1408_v26 = vmul.f32 %v1652_v18, %v1385_v48  ;;  %v1409_v38 = vmul.f32 %v1652_v18, %v1386_v2  ;;  %v1410_v14 = vmul.f32 %v1652_v18, %v1387_v51  ;;  %v1411_v28 = vmul.f32 %v1652_v18, %v1388_v57 }
 0x1ec   :  { %v1412_v41 = vmul.f32 %v1652_v18, %v1389_v63  ;;  %v1413_v8 = vmul.f32 %v1652_v18, %v1390_v4  ;;  %v1414_v50 = vmul.f32 %v1652_v18, %v1391_v7  ;;  %v1415_v33 = vmul.f32 %v1652_v18, %v1392_v15 }
 0x1ed   :  { %v1416_v60 = vmul.f32 %v1652_v18, %v1393_v24  ;;  %v1417_v20 = vmul.f32 %v1652_v18, %v1394_v43  ;;  %v1418_v45 = vmul.f32 %v1652_v18, %v1395_v1  ;;  %v1419_v46 = vmul.f32 %v1652_v18, %v1396_v59 }
 0x1ee   :  { %v1420_v10 = vmul.f32 %v1652_v18, %v1397_v27  ;;  %v1421_v0 = vmul.f32 %v1652_v18, %v1398_v52  ;;  %v1422_v40 = vmul.f32 %v1652_v18, %v1399_v25  ;;  %v1423_v16 = vmul.f32 %v1652_v18, %v1400_v35 }
 0x1ef   :  { %v1431_v36 = vadd.f32 %v1653_v49, %v1408_v26  ;;  %v1432_v12 = vadd.f32 %v1653_v49, %v1409_v38  ;;  %v1433_v5 = vadd.f32 %v1653_v49, %v1410_v14  ;;  %v1434_v34 = vadd.f32 %v1653_v49, %v1411_v28 }
 0x1f0   :  { %v1435_v39 = vadd.f32 %v1653_v49, %v1412_v41  ;;  %v1436_v6 = vadd.f32 %v1653_v49, %v1413_v8  ;;  %v1437_v54 = vadd.f32 %v1653_v49, %v1414_v50  ;;  %v1438_v21 = vadd.f32 %v1653_v49, %v1415_v33 }
 0x1f1   :  { %v1439_v44 = vadd.f32 %v1653_v49, %v1416_v60  ;;  %v1440_v11 = vadd.f32 %v1653_v49, %v1417_v20  ;;  %v1441_v58 = vadd.f32 %v1653_v49, %v1418_v45  ;;  %v1442_v61 = vadd.f32 %v1653_v49, %v1419_v46 }
 0x1f2   :  { %v1443_v55 = vadd.f32 %v1653_v49, %v1420_v10  ;;  %v1444_v19 = vadd.f32 %v1653_v49, %v1421_v0  ;;  %v1445_v3 = vadd.f32 %v1653_v49, %v1422_v40  ;;  %v1446_v13 = vadd.f32 %v1653_v49, %v1423_v16 }
 0x1f3   :  { %v1447_v56 = vmax.f32 %v1431_v36, 0.0  ;;  %v1448_v17 = vmax.f32 %v1432_v12, 0.0  ;;  %v1449_v22 = vmax.f32 %v1433_v5, 0.0  ;;  %v1450_v23 = vmax.f32 %v1434_v34, 0.0 }
 0x1f4   :  { %v1451_v53 = vmax.f32 %v1435_v39, 0.0  ;;  %v1452_v30 = vmax.f32 %v1436_v6, 0.0  ;;  %v1453_v31 = vmax.f32 %v1437_v54, 0.0  ;;  %v1454_v32 = vmax.f32 %v1438_v21, 0.0 }
 0x1f5   :  { %v1455_v29 = vmax.f32 %v1439_v44, 0.0  ;;  %v1456_v62 = vmax.f32 %v1440_v11, 0.0  ;;  %v1457_v37 = vmax.f32 %v1441_v58, 0.0  ;;  %v1458_v42 = vmax.f32 %v1442_v61, 0.0  ;;  %1463 = vst [vmem:[%s2851_s5] sm:$0xff] %v1447_v56  ;;  %1464 = vst [vmem:[%s2851_s5 + $0x8] sm:$0xff] %v1448_v17 }
 0x1f6   :  { %1465 = vst [vmem:[%s2851_s5 + $0x10] sm:$0xff] %v1449_v22  ;;  %1466 = vst [vmem:[%s2851_s5 + $0x18] sm:$0xff] %v1450_v23  ;;  %v1459_v47 = vmax.f32 %v1443_v55, 0.0  ;;  %v1460_v9 = vmax.f32 %v1444_v19, 0.0  ;;  %v1461_v48 = vmax.f32 %v1445_v3, 0.0  ;;  %v1462_v2 = vmax.f32 %v1446_v13, 0.0 }
 0x1f7   :  { %1467 = vst [vmem:[%s2851_s5 + $0x20] sm:$0xff] %v1451_v53  ;;  %1468 = vst [vmem:[%s2851_s5 + $0x28] sm:$0xff] %v1452_v30 }
 0x1f8   :  { %1469 = vst [vmem:[%s2851_s5 + $0x30] sm:$0xff] %v1453_v31  ;;  %1470 = vst [vmem:[%s2851_s5 + $0x38] sm:$0xff] %v1454_v32 }
 0x1f9   :  { %1471 = vst [vmem:[%s2851_s5 + $0x40] sm:$0xff] %v1455_v29  ;;  %1472 = vst [vmem:[%s2851_s5 + $0x48] sm:$0xff] %v1456_v62 }
 0x1fa   :  { %1473 = vst [vmem:[%s2851_s5 + $0x50] sm:$0xff] %v1457_v37  ;;  %1474 = vst [vmem:[%s2851_s5 + $0x58] sm:$0xff] %v1458_v42 }
 0x1fb   :  { %1475 = vst [vmem:[%s2851_s5 + $0x60] sm:$0xff] %v1459_v47  ;;  %1476 = vst [vmem:[%s2851_s5 + $0x68] sm:$0xff] %v1460_v9 }
 0x1fc   :  { %1477 = vst [vmem:[%s2851_s5 + $0x70] sm:$0xff] %v1461_v48  ;;  %1478 = vst [vmem:[%s2851_s5 + $0x78] sm:$0xff] %v1462_v2 }

// kernel: unet_forward.17
= control target key start
LH: loop header
LB: loop body
LE: loop exit
PB: predicated region body
PF: predicated region fallthrough
CT: control target
= control target key end

     0   :  { %s1637_s1 = inlined_call_operand.vmem [shape: bf16[1152,128], index: 1, kind: input, shape index: {}]   ;;  %s1638_s0 = inlined_call_operand.vmem [shape: f32[32,1152], index: 0, kind: input, shape index: {}]   ;;  %s1639_s2 = inlined_call_operand.vmem [shape: f32[1,128], index: 2, kind: input, shape index: {}]   ;;  %s1640_s3 = inlined_call_operand.vmem [shape: f32[1,128], index: 3, kind: input, shape index: {}]   ;;  %s1641_s4 = inlined_call_operand.vmem [shape: f32[1,128], index: 4, kind: input, shape index: {}]   ;;  %s1642_s5 = inlined_call_operand.vmem [shape: f32[32,128], index: 5, kind: output, shape index: {}]  }
   0x1   :  { %v1188_v0 = vld [vmem:[%s1637_s1 + $0x40] sm:$0xff]   ;;  %v1192_v4 = vld [vmem:[%s1637_s1 + $0x48] sm:$0xff]   ;;  %v1196_v8 = vld [vmem:[%s1637_s1 + $0x50] sm:$0xff]  }
   0x2   :  { %v1189_v1 = vld [vmem:[%s1637_s1] sm:$0xff]   ;;  %1046 = vmatprep.subr.bf16.mxu0 %v1188_v0  ;;  %v1193_v5 = vld [vmem:[%s1637_s1 + $0x8] sm:$0xff]   ;;  %v1197_v9 = vld [vmem:[%s1637_s1 + $0x10] sm:$0xff]  }
   0x3   :  { %v1190_v2 = vld [vmem:[%s1637_s1 + $0xc0] sm:$0xff]   ;;  %1047 = vmatpush3.bf16.msra.mxu0 %v1189_v1  ;;  %v1194_v6 = vld [vmem:[%s1637_s1 + $0xc8] sm:$0xff]   ;;  %v1198_v10 = vld [vmem:[%s1637_s1 + $0xd0] sm:$0xff]  }
   0x4   :  { %v1191_v3 = vld [vmem:[%s1637_s1 + $0x80] sm:$0xff]   ;;  %1074 = vmatprep.subr.bf16.mxu1 %v1190_v2  ;;  %1048 = vmatprep.subr.bf16.mxu0 %v1192_v4  ;;  %v1195_v7 = vld [vmem:[%s1637_s1 + $0x88] sm:$0xff]   ;;  %v1199_v11 = vld [vmem:[%s1637_s1 + $0x90] sm:$0xff]  }
   0x5   :  { %1075 = vmatpush3.bf16.msra.mxu1 %v1191_v3  ;;  %v1200_v12 = vld [vmem:[%s1637_s1 + $0x58] sm:$0xff]   ;;  %v1204_v16 = vld [vmem:[%s1637_s1 + $0x60] sm:$0xff]   ;;  %v1208_v20 = vld [vmem:[%s1637_s1 + $0x68] sm:$0xff]  }
   0x6   :  { %1076 = vmatprep.subr.bf16.mxu1 %v1194_v6  ;;  %v1201_v13 = vld [vmem:[%s1637_s1 + $0x18] sm:$0xff]   ;;  %v1205_v17 = vld [vmem:[%s1637_s1 + $0x20] sm:$0xff]   ;;  %v1209_v21 = vld [vmem:[%s1637_s1 + $0x28] sm:$0xff]  }
   0x7   :  { %1049 = vmatpush3.bf16.msra.mxu0 %v1193_v5  ;;  %v1202_v14 = vld [vmem:[%s1637_s1 + $0xd8] sm:$0xff]   ;;  %v1206_v18 = vld [vmem:[%s1637_s1 + $0xe0] sm:$0xff]   ;;  %v1210_v22 = vld [vmem:[%s1637_s1 + $0xe8] sm:$0xff]  }
   0x8   :  { %1050 = vmatprep.subr.bf16.mxu0 %v1196_v8  ;;  %v1203_v15 = vld [vmem:[%s1637_s1 + $0x98] sm:$0xff]   ;;  %v1207_v19 = vld [vmem:[%s1637_s1 + $0xa0] sm:$0xff]   ;;  %v1211_v23 = vld [vmem:[%s1637_s1 + $0xa8] sm:$0xff]  }
   0x9   :  { %1077 = vmatpush3.bf16.msra.mxu1 %v1195_v7  ;;  %v1212_v24 = vld [vmem:[%s1637_s1 + $0x70] sm:$0xff]   ;;  %v1216_v28 = vld [vmem:[%s1637_s1 + $0x78] sm:$0xff]   ;;  %v22_v31 = vld [vmem:[%s1638_s0 + $0x8] sm:$0xff] }
   0xa   :  { %1078 = vmatprep.subr.bf16.mxu1 %v1198_v10  ;;  %v1213_v25 = vld [vmem:[%s1637_s1 + $0x30] sm:$0xff]   ;;  %v1217_v29 = vld [vmem:[%s1637_s1 + $0x38] sm:$0xff]   ;;  %v21_v35 = vld [vmem:[%s1638_s0] sm:$0xff] }
   0xb   :  { %1051 = vmatpush3.bf16.msra.mxu0 %v1197_v9  ;;  %v1214_v26 = vld [vmem:[%s1637_s1 + $0xf0] sm:$0xff]   ;;  %v1218_v30 = vld [vmem:[%s1637_s1 + $0xf8] sm:$0xff]   ;;  %v30_v36 = vld [vmem:[%s1638_s0 + $0x48] sm:$0xff] }
   0xc   :  { %1052 = vmatprep.subr.bf16.mxu0 %v1200_v12  ;;  %v1215_v27 = vld [vmem:[%s1637_s1 + $0xb0] sm:$0xff]   ;;  %v1219_v34 = vld [vmem:[%s1637_s1 + $0xb8] sm:$0xff]   ;;  %v57_v37 = vpack.c.bf16 %v30_v36, %v21_v35  ;;  %v1220_v38 = vld [vmem:[%s1637_s1 + $0x140] sm:$0xff]  }
   0xd   :  { %1079 = vmatpush3.bf16.msra.mxu1 %v1199_v11  ;;  %v31_v32 = vld [vmem:[%s1638_s0 + $0x50] sm:$0xff]  ;;  %v24_v39 = vld [vmem:[%s1638_s0 + $0x18] sm:$0xff]  ;;  %v33_v40 = vld [vmem:[%s1638_s0 + $0x60] sm:$0xff] }
   0xe   :  { %1080 = vmatprep.subr.bf16.mxu1 %v1202_v14  ;;  %v58_v33 = vpack.c.bf16 %v31_v32, %v22_v31  ;;  %v60_v41 = vpack.c.bf16 %v33_v40, %v24_v39  ;;  %v1221_v42 = vld [vmem:[%s1637_s1 + $0x100] sm:$0xff]   ;;  %v23_v43 = vld [vmem:[%s1638_s0 + $0x10] sm:$0xff]  ;;  %v32_v44 = vld [vmem:[%s1638_s0 + $0x58] sm:$0xff] }
   0xf   :  { %1053 = vmatpush3.bf16.msra.mxu0 %v1201_v13  ;;  %v59_v45 = vpack.c.bf16 %v32_v44, %v23_v43  ;;  %v1222_v46 = vld [vmem:[%s1637_s1 + $0x1c0] sm:$0xff]   ;;  %v1224_v48 = vld [vmem:[%s1637_s1 + $0x148] sm:$0xff]   ;;  %v1228_v52 = vld [vmem:[%s1637_s1 + $0x150] sm:$0xff]  }
  0x10   :  { %1054 = vmatprep.subr.bf16.mxu0 %v1204_v16  ;;  %690 = vmatprep.mubr.bf16.mxu0 %v58_v33  ;;  %v1223_v47 = vld [vmem:[%s1637_s1 + $0x180] sm:$0xff]   ;;  %v1225_v49 = vld [vmem:[%s1637_s1 + $0x108] sm:$0xff]   ;;  %v1229_v53 = vld [vmem:[%s1637_s1 + $0x110] sm:$0xff]  }
  0x11   :  { %1081 = vmatpush3.bf16.msra.mxu1 %v1203_v15  ;;  %739 = vmatprep.mubr.bf16.mxu1 %v60_v41  ;;  %v1226_v50 = vld [vmem:[%s1637_s1 + $0x1c8] sm:$0xff]   ;;  %v1230_v54 = vld [vmem:[%s1637_s1 + $0x1d0] sm:$0xff]   ;;  %v1232_v56 = vld [vmem:[%s1637_s1 + $0x158] sm:$0xff]  }
  0x12   :  { %1082 = vmatprep.subr.bf16.mxu1 %v1206_v18  ;;  %v1227_v51 = vld [vmem:[%s1637_s1 + $0x188] sm:$0xff]   ;;  %v1231_v55 = vld [vmem:[%s1637_s1 + $0x190] sm:$0xff]   ;;  %v1233_v57 = vld [vmem:[%s1637_s1 + $0x118] sm:$0xff]  }
  0x13   :  { %1055 = vmatpush3.bf16.msra.mxu0 %v1205_v17  ;;  %v1234_v58 = vld [vmem:[%s1637_s1 + $0x1d8] sm:$0xff]   ;;  %v1236_v60 = vld [vmem:[%s1637_s1 + $0x160] sm:$0xff]   ;;  %v1240_v0 = vld [vmem:[%s1637_s1 + $0x168] sm:$0xff]  }
  0x14   :  { %1056 = vmatprep.subr.bf16.mxu0 %v1208_v20  ;;  %v1235_v59 = vld [vmem:[%s1637_s1 + $0x198] sm:$0xff]   ;;  %v1237_v61 = vld [vmem:[%s1637_s1 + $0x120] sm:$0xff]   ;;  %v1241_v4 = vld [vmem:[%s1637_s1 + $0x128] sm:$0xff]  }
  0x15   :  { %1083 = vmatpush3.bf16.msra.mxu1 %v1207_v19  ;;  %v1238_v62 = vld [vmem:[%s1637_s1 + $0x1e0] sm:$0xff]   ;;  %v40_v1 = vld [vmem:[%s1638_s0 + $0x98] sm:$0xff]  ;;  %v39_v5 = vld [vmem:[%s1638_s0 + $0x90] sm:$0xff] }
  0x16   :  { %1084 = vmatprep.subr.bf16.mxu1 %v1210_v22  ;;  %v1239_v63 = vld [vmem:[%s1637_s1 + $0x1a0] sm:$0xff]   ;;  %v48_v6 = vld [vmem:[%s1638_s0 + $0xd8] sm:$0xff]  ;;  %v1242_v8 = vld [vmem:[%s1637_s1 + $0x1e8] sm:$0xff]  }
  0x17   :  { %1057 = vmatpush3.bf16.msra.mxu0 %v1209_v21  ;;  %v49_v2 = vld [vmem:[%s1638_s0 + $0xe0] sm:$0xff]  ;;  %v66_v7 = vpack.c.bf16 %v48_v6, %v39_v5  ;;  %v42_v9 = vld [vmem:[%s1638_s0 + $0xa8] sm:$0xff]  ;;  %v51_v10 = vld [vmem:[%s1638_s0 + $0xf0] sm:$0xff] }
  0x18   :  { %1058 = vmatprep.subr.bf16.mxu0 %v1212_v24  ;;  %v67_v3 = vpack.c.bf16 %v49_v2, %v40_v1  ;;  %v69_v11 = vpack.c.bf16 %v51_v10, %v42_v9  ;;  %v1243_v12 = vld [vmem:[%s1637_s1 + $0x1a8] sm:$0xff]   ;;  %v41_v13 = vld [vmem:[%s1638_s0 + $0xa0] sm:$0xff]  ;;  %v1244_v16 = vld [vmem:[%s1637_s1 + $0x170] sm:$0xff]  }
  0x19   :  { %1085 = vmatpush3.bf16.msra.mxu1 %v1211_v23  ;;  %v50_v14 = vld [vmem:[%s1638_s0 + $0xe8] sm:$0xff]  ;;  %v1245_v17 = vld [vmem:[%s1637_s1 + $0x130] sm:$0xff]   ;;  %v1248_v20 = vld [vmem:[%s1637_s1 + $0x178] sm:$0xff]  }
  0x1a   :  { %1086 = vmatprep.subr.bf16.mxu1 %v1214_v26  ;;  %v68_v15 = vpack.c.bf16 %v50_v14, %v41_v13  ;;  %v1246_v18 = vld [vmem:[%s1637_s1 + $0x1f0] sm:$0xff]   ;;  %v1249_v21 = vld [vmem:[%s1637_s1 + $0x138] sm:$0xff]   ;;  %v26_v23 = vld [vmem:[%s1638_s0 + $0x28] sm:$0xff] }
  0x1b   :  { %1059 = vmatpush3.bf16.msra.mxu0 %v1213_v25  ;;  %v1247_v19 = vld [vmem:[%s1637_s1 + $0x1b0] sm:$0xff]   ;;  %v1250_v22 = vld [vmem:[%s1637_s1 + $0x1f8] sm:$0xff]   ;;  %v37_v32 = vld [vmem:[%s1638_s0 + $0x80] sm:$0xff] }
  0x1c   :  { %1060 = vmatprep.subr.bf16.mxu0 %v1216_v28  ;;  %v35_v24 = vld [vmem:[%s1638_s0 + $0x70] sm:$0xff]  ;;  %v1251_v26 = vld [vmem:[%s1637_s1 + $0x1b8] sm:$0xff]   ;;  %v34_v28 = vld [vmem:[%s1638_s0 + $0x68] sm:$0xff] }
  0x1d   :  { %1087 = vmatpush3.bf16.msra.mxu1 %v1215_v27  ;;  %v62_v25 = vpack.c.bf16 %v35_v24, %v26_v23  ;;  %v25_v27 = vld [vmem:[%s1638_s0 + $0x20] sm:$0xff]  ;;  %v28_v31 = vld [vmem:[%s1638_s0 + $0x38] sm:$0xff]  ;;  %v27_v33 = vld [vmem:[%s1638_s0 + $0x30] sm:$0xff] }
  0x1e   :  { %1088 = vmatprep.subr.bf16.mxu1 %v1218_v30  ;;  %v1252_v30 = vld [vmem:[%s1637_s1 + $0x200] sm:$0xff]   ;;  %v64_v35 = vpack.c.bf16 %v37_v32, %v28_v31  ;;  %v43_v40 = vld [vmem:[%s1638_s0 + $0xb0] sm:$0xff]  ;;  %v46_v44 = vld [vmem:[%s1638_s0 + $0xc8] sm:$0xff] }
  0x1f   :  { %1061 = vmatpush3.bf16.msra.mxu0 %v1217_v29  ;;  %v61_v29 = vpack.c.bf16 %v34_v28, %v25_v27  ;;  %v53_v39 = vld [vmem:[%s1638_s0 + $0x100] sm:$0xff]  ;;  %v1254_v43 = vld [vmem:[%s1637_s1 + $0x210] sm:$0xff]  }
  0x20   :  { %1102 = vmatprep.subr.bf16.mxu0 %v1220_v38  ;;  %v44_v38 = vld [vmem:[%s1638_s0 + $0xb8] sm:$0xff] }
  0x21   :  { %1089 = vmatpush3.bf16.msra.mxu1 %v1219_v34  ;;  %v36_v34 = vld [vmem:[%s1638_s0 + $0x78] sm:$0xff]  ;;  %v71_v41 = vpack.c.bf16 %v53_v39, %v44_v38 }
  0x22   :  { %691 = vmatmul.mubr.bf16.vlgmr.msra.gmra.mrb[0].mxu0 %v57_v37  ;;  %1130 = vmatprep.subr.bf16.mxu1 %v1222_v46  ;;  %v63_v36 = vpack.c.bf16 %v36_v34, %v27_v33  ;;  %v1253_v37 = vld [vmem:[%s1637_s1 + $0x208] sm:$0xff]  }
  0x23   :  { %1103 = vmatpush3.bf16.msra.mxu0 %v1221_v42  ;;  %698 = vmatprep.mubr.bf16.mxu0 %v67_v3  ;;  %v52_v42 = vld [vmem:[%s1638_s0 + $0xf8] sm:$0xff] }
  0x24   :  { %740 = vmatmul.mubr.bf16.vlgmr.msra.gmra.mrb[0].mxu1 %v59_v45  ;;  %1104 = vmatprep.subr.bf16.mxu0 %v1224_v48  ;;  %v55_v45 = vld [vmem:[%s1638_s0 + $0x110] sm:$0xff]  ;;  %v70_v46 = vpack.c.bf16 %v52_v42, %v43_v40  ;;  %v45_v48 = vld [vmem:[%s1638_s0 + $0xc0] sm:$0xff] }
  0x25   :  { %1131 = vmatpush3.bf16.msra.mxu1 %v1223_v47  ;;  %747 = vmatprep.mubr.bf16.mxu1 %v69_v11  ;;  %v73_v47 = vpack.c.bf16 %v55_v45, %v46_v44 }
  0x26   :  { %1132 = vmatprep.subr.bf16.mxu1 %v1226_v50  ;;  %v1255_v50 = vld [vmem:[%s1637_s1 + $0x218] sm:$0xff]  }
  0x27   :  { %1105 = vmatpush3.bf16.msra.mxu0 %v1225_v49  ;;  %v54_v49 = vld [vmem:[%s1638_s0 + $0x108] sm:$0xff] }
  0x28   :  { %1106 = vmatprep.subr.bf16.mxu0 %v1228_v52  ;;  %v29_v52 = vld [vmem:[%s1638_s0 + $0x40] sm:$0xff] }
  0x29   :  { %1133 = vmatpush3.bf16.msra.mxu1 %v1227_v51  ;;  %v72_v51 = vpack.c.bf16 %v54_v49, %v45_v48 }
  0x2a   :  { %1134 = vmatprep.subr.bf16.mxu1 %v1230_v54  ;;  %699 = vmatmul.mubr.bf16.gmra.mrb[4].mxu0 %v66_v7  ;;  %v38_v54 = vld [vmem:[%s1638_s0 + $0x88] sm:$0xff] }
  0x2b   :  { %1107 = vmatpush3.bf16.msra.mxu0 %v1229_v53  ;;  %788 = vmatprep.mubr.bf16.mxu0 %v62_v25  ;;  %v1256_v53 = vld [vmem:[%s1637_s1 + $0x220] sm:$0xff]  }
  0x2c   :  { %1108 = vmatprep.subr.bf16.mxu0 %v1232_v56  ;;  %748 = vmatmul.mubr.bf16.gmra.mrb[4].mxu1 %v68_v15  ;;  %v1257_v56 = vld [vmem:[%s1637_s1 + $0x228] sm:$0xff]  }
  0x2d   :  { %1135 = vmatpush3.bf16.msra.mxu1 %v1231_v55  ;;  %837 = vmatprep.mubr.bf16.mxu1 %v64_v35  ;;  %v65_v55 = vpack.c.bf16 %v38_v54, %v29_v52 }
  0x2e   :  { %1136 = vmatprep.subr.bf16.mxu1 %v1234_v58  ;;  %v1259_v58 = vld [vmem:[%s1637_s1 + $0x238] sm:$0xff]  }
  0x2f   :  { %1109 = vmatpush3.bf16.msra.mxu0 %v1233_v57  ;;  %v1258_v57 = vld [vmem:[%s1637_s1 + $0x230] sm:$0xff]  }
  0x30   :  { %1110 = vmatprep.subr.bf16.mxu0 %v1236_v60  ;;  %v56_v60 = vld [vmem:[%s1638_s0 + $0x118] sm:$0xff] }
  0x31   :  { %1137 = vmatpush3.bf16.msra.mxu1 %v1235_v59  ;;  %v47_v59 = vld [vmem:[%s1638_s0 + $0xd0] sm:$0xff] }
  0x32   :  { %1138 = vmatprep.subr.bf16.mxu1 %v1238_v62 }
  0x33   :  { %1111 = vmatpush3.bf16.msra.mxu0 %v1237_v61  ;;  %v74_v61 = vpack.c.bf16 %v56_v60, %v47_v59 }
  0x34   :  { %1112 = vmatprep.subr.bf16.mxu0 %v1240_v0 }
  0x35   :  { %1139 = vmatpush3.bf16.msra.mxu1 %v1239_v63  ;;  %v971_v63 = vld [vmem:[%s1639_s2] ss:$0 sm:$0xff] }
  0x36   :  { %1140 = vmatprep.subr.bf16.mxu1 %v1242_v8 }
  0x37   :  { %1113 = vmatpush3.bf16.msra.mxu0 %v1241_v4 }
  0x38   :  { %1114 = vmatprep.subr.bf16.mxu0 %v1244_v16 }
  0x39   :  { %1141 = vmatpush3.bf16.msra.mxu1 %v1243_v12 }
  0x3a   :  { %1142 = vmatprep.subr.bf16.mxu1 %v1246_v18 }
  0x3b   :  { %1115 = vmatpush3.bf16.msra.mxu0 %v1245_v17 }
  0x3c   :  { %1116 = vmatprep.subr.bf16.mxu0 %v1248_v20 }
  0x3d   :  { %1143 = vmatpush3.bf16.msra.mxu1 %v1247_v19 }
  0x3e   :  { %1144 = vmatprep.subr.bf16.mxu1 %v1250_v22 }
  0x3f   :  { %1117 = vmatpush3.bf16.msra.mxu0 %v1249_v21 }
  0x40   :  { %1168 = vmatprep.subr.bf16.mxu0 %v1252_v30 }
  0x41   :  { %1145 = vmatpush3.bf16.msra.mxu1 %v1251_v26 }
  0x42   :  { %789 = vmatmul.mubr.bf16.vlgmr.msra.gmra.mrb[8].mxu0 %v61_v29 }
  0x43   :  { %1169 = vmatpush3.bf16.msra.mxu0 %v1252_v30  ;;  %796 = vmatprep.mubr.bf16.mxu0 %v71_v41 }
  0x44   :  { %1170 = vmatprep.subr.bf16.mxu0 %v1253_v37  ;;  %838 = vmatmul.mubr.bf16.vlgmr.msra.gmra.mrb[8].mxu1 %v63_v36 }
  0x45   :  { %845 = vmatprep.mubr.bf16.mxu1 %v73_v47 }
  0x47   :  { %1171 = vmatpush3.bf16.msra.mxu0 %v1253_v37 }
  0x48   :  { %1172 = vmatprep.subr.bf16.mxu0 %v1254_v43 }
  0x4a   :  { %797 = vmatmul.mubr.bf16.gmra.mrb[12].mxu0 %v70_v46 }
  0x4b   :  { %1173 = vmatpush3.bf16.msra.mxu0 %v1254_v43  ;;  %1184 = vmatprep.mubr.bf16.mxu0 %v65_v55 }
  0x4c   :  { %1174 = vmatprep.subr.bf16.mxu0 %v1255_v50  ;;  %846 = vmatmul.mubr.bf16.gmra.mrb[12].mxu1 %v72_v51 }
  0x4f   :  { %1175 = vmatpush3.bf16.msra.mxu0 %v1255_v50 }
  0x50   :  { %1176 = vmatprep.subr.bf16.mxu0 %v1256_v53 }
  0x53   :  { %1177 = vmatpush3.bf16.msra.mxu0 %v1256_v53 }
  0x54   :  { %1178 = vmatprep.subr.bf16.mxu0 %v1257_v56 }
  0x57   :  { %1179 = vmatpush3.bf16.msra.mxu0 %v1257_v56 }
  0x58   :  { %1180 = vmatprep.subr.bf16.mxu0 %v1258_v57 }
  0x5b   :  { %1181 = vmatpush3.bf16.msra.mxu0 %v1258_v57 }
  0x5c   :  { %1182 = vmatprep.subr.bf16.mxu0 %v1259_v58 }
  0x5f   :  { %1183 = vmatpush3.bf16.msra.mxu0 %v1259_v58 }
  0x62   :  { %1185 = vmatmul.mubr.bf16.vlgmr.msra.gmra.mrb[16].mxu0 %v74_v61 }
  0xf5   :  { %v1062_v62 = vpop.f32.mrb[0].mxu0 }
  0xf6   :  { %v1063_v0 = vpop.f32.mrb[1].mxu0 }
  0xf7   :  { %v1064_v1 = vadd.f32 %v1063_v0, %v1062_v62  ;;  %v1065_v2 = vpop.f32.mrb[2].mxu0  ;;  %v1090_v3 = vpop.f32.mrb[0].mxu1 }
  0xf8   :  { %v1066_v4 = vpop.f32.mrb[3].mxu0  ;;  %v1091_v7 = vpop.f32.mrb[1].mxu1 }
  0xf9   :  { %v693_v5 = vadd.f32 %v1064_v1, %v971_v63  ;;  %v1067_v6 = vadd.f32 %v1066_v4, %v1065_v2  ;;  %v1092_v8 = vadd.f32 %v1091_v7, %v1090_v3  ;;  %v1093_v9 = vpop.f32.mrb[2].mxu1 }
  0xfa   :  { %v1094_v11 = vpop.f32.mrb[3].mxu1 }
  0xfb   :  { %v696_v10 = vadd.f32 %v1067_v6, %v971_v63  ;;  %v742_v12 = vadd.f32 %v1092_v8, %v693_v5  ;;  %v1095_v13 = vadd.f32 %v1094_v11, %v1093_v9 }
  0xfd   :  { %v745_v14 = vadd.f32 %v1095_v13, %v696_v10  ;;  %v1068_v15 = vpop.f32.mrb[4].mxu0 }
  0xfe   :  { %v1069_v16 = vpop.f32.mrb[5].mxu0 }
  0xff   :  { %v1070_v17 = vadd.f32 %v1069_v16, %v1068_v15  ;;  %v1071_v18 = vpop.f32.mrb[6].mxu0  ;;  %v1096_v21 = vpop.f32.mrb[4].mxu1 }
 0x100   :  { %v1072_v19 = vpop.f32.mrb[7].mxu0  ;;  %v1097_v23 = vpop.f32.mrb[5].mxu1 }
 0x101   :  { %v701_v20 = vadd.f32 %v1070_v17, %v971_v63  ;;  %v1073_v22 = vadd.f32 %v1072_v19, %v1071_v18  ;;  %v1098_v25 = vadd.f32 %v1097_v23, %v1096_v21  ;;  %v1099_v26 = vpop.f32.mrb[6].mxu1 }
 0x102   :  { %v1100_v27 = vpop.f32.mrb[7].mxu1 }
 0x103   :  { %v704_v24 = vadd.f32 %v1073_v22, %v971_v63  ;;  %v750_v28 = vadd.f32 %v1098_v25, %v701_v20  ;;  %v1101_v29 = vadd.f32 %v1100_v27, %v1099_v26 }
 0x105   :  { %v753_v30 = vadd.f32 %v1101_v29, %v704_v24 }
 0x115   :  { %v1118_v31 = vpop.f32.mrb[8].mxu0 }
 0x116   :  { %v1119_v32 = vpop.f32.mrb[9].mxu0 }
 0x117   :  { %v1120_v33 = vadd.f32 %v1119_v32, %v1118_v31  ;;  %v1121_v34 = vpop.f32.mrb[10].mxu0  ;;  %v1146_v35 = vpop.f32.mrb[8].mxu1 }
 0x118   :  { %v1122_v36 = vpop.f32.mrb[11].mxu0  ;;  %v1147_v39 = vpop.f32.mrb[9].mxu1 }
 0x119   :  { %v791_v37 = vadd.f32 %v1120_v33, %v742_v12  ;;  %v1123_v38 = vadd.f32 %v1122_v36, %v1121_v34  ;;  %v1148_v40 = vadd.f32 %v1147_v39, %v1146_v35  ;;  %v1149_v41 = vpop.f32.mrb[10].mxu1 }
 0x11a   :  { %v1150_v43 = vpop.f32.mrb[11].mxu1 }
 0x11b   :  { %v794_v42 = vadd.f32 %v1123_v38, %v745_v14  ;;  %v1151_v44 = vadd.f32 %v1150_v43, %v1149_v41  ;;  %v840_v45 = vadd.f32 %v1148_v40, %v791_v37  ;;  %v1044_v37 = vld [vmem:[%s1640_s3] ss:$0 sm:$0xff] }
 0x11d   :  { %v1124_v46 = vpop.f32.mrb[12].mxu0  ;;  %v843_v48 = vadd.f32 %v1151_v44, %v794_v42  ;;  %v1045_v42 = vld [vmem:[%s1641_s4] ss:$0 sm:$0xff] }
 0x11e   :  { %v1125_v47 = vpop.f32.mrb[13].mxu0 }
 0x11f   :  { %v1126_v49 = vadd.f32 %v1125_v47, %v1124_v46  ;;  %v1127_v50 = vpop.f32.mrb[14].mxu0  ;;  %v1152_v51 = vpop.f32.mrb[12].mxu1 }
 0x120   :  { %v1128_v52 = vpop.f32.mrb[15].mxu0  ;;  %v1153_v55 = vpop.f32.mrb[13].mxu1 }
 0x121   :  { %v799_v53 = vadd.f32 %v1126_v49, %v750_v28  ;;  %v1129_v54 = vadd.f32 %v1128_v52, %v1127_v50  ;;  %v1154_v56 = vadd.f32 %v1153_v55, %v1152_v51  ;;  %v1155_v57 = vpop.f32.mrb[14].mxu1 }
 0x122   :  { %v1156_v59 = vpop.f32.mrb[15].mxu1 }
 0x123   :  { %v802_v58 = vadd.f32 %v1129_v54, %v753_v30  ;;  %v1157_v60 = vadd.f32 %v1156_v59, %v1155_v57  ;;  %v848_v61 = vadd.f32 %v1154_v56, %v799_v53 }
 0x125   :  { %v851_v62 = vadd.f32 %v1157_v60, %v802_v58 }
 0x135   :  { %v1186_v63 = vpop.f32.mrb[16].mxu0 }
 0x136   :  { %v897_v0 = vadd.f32 %v1186_v63, %v848_v61  ;;  %v888_v1 = vpop.f32.mrb[17].mxu0 }
 0x137   :  { %v889_v2 = vadd.f32 %v888_v1, %v840_v45  ;;  %v1187_v3 = vpop.f32.mrb[18].mxu0 }
 0x138   :  { %v900_v4 = vadd.f32 %v1187_v3, %v851_v62  ;;  %v891_v5 = vpop.f32.mrb[19].mxu0 }
 0x139   :  { %v892_v6 = vadd.f32 %v891_v5, %v843_v48 }
 0x13b   :  { %v903_v7 = vadd.f32 %v892_v6, %v889_v2 }
 0x13d   :  { %v904_v8 = vadd.f32 %v903_v7, %v897_v0 }
 0x13f   :  { %v905_v9 = vadd.f32 %v904_v8, %v900_v4 }
 0x141   :  { %v906_v10 = vrot.slane %v905_v9, 4 }
 0x143   :  { %v907_v11 = vadd.f32 %v906_v10, %v905_v9 }
 0x145   :  { %v908_v12 = vrot.slane %v907_v11, 2 }
 0x147   :  { %v909_v13 = vadd.f32 %v908_v12, %v907_v11 }
 0x149   :  { %v910_v14 = vrot.slane %v909_v13, 1 }
 0x14b   :  { %v911_v15 = vadd.f32 %v910_v14, %v909_v13 }
 0x14d   :  { %v912_v16 = vmul.f32 0.03125, %v911_v15 }
 0x14f   :  { %v913_v17 = vsub.f32 %v889_v2, %v912_v16  ;;  %v914_v18 = vsub.f32 %v892_v6, %v912_v16  ;;  %v915_v19 = vsub.f32 %v897_v0, %v912_v16  ;;  %v916_v20 = vsub.f32 %v900_v4, %v912_v16 }
 0x151   :  { %v917_v21 = vmul.f32 %v913_v17, %v913_v17  ;;  %v918_v22 = vmul.f32 %v914_v18, %v914_v18  ;;  %v919_v23 = vmul.f32 %v915_v19, %v915_v19  ;;  %v920_v25 = vmul.f32 %v916_v20, %v916_v20 }
 0x153   :  { %v921_v24 = vadd.f32 %v918_v22, %v917_v21 }
 0x155   :  { %v922_v26 = vadd.f32 %v921_v24, %v919_v23 }
 0x157   :  { %v923_v27 = vadd.f32 %v922_v26, %v920_v25 }
 0x159   :  { %v924_v28 = vrot.slane %v923_v27, 4 }
 0x15b   :  { %v925_v29 = vadd.f32 %v924_v28, %v923_v27 }
 0x15d   :  { %v926_v30 = vrot.slane %v925_v29, 2 }
 0x15f   :  { %v927_v31 = vadd.f32 %v926_v30, %v925_v29 }
 0x161   :  { %v928_v32 = vrot.slane %v927_v31, 1 }
 0x163   :  { %v929_v33 = vadd.f32 %v928_v32, %v927_v31 }
 0x165   :  { %v930_v34 = vmul.f32 0.03125, %v929_v33 }
 0x167   :  { %v931_v35 = vadd.f32 1e-05, %v930_v34 }
 0x169   :  { %1260 = vrsqrt.f32 %v931_v35 }
 0x173   :  { %v1261_v36 = vpop.eup %1260 }
 0x174   :  { %v933_v38 = vmul.f32 %v1261_v36, %v913_v17  ;;  %v934_v39 = vmul.f32 %v1261_v36, %v914_v18  ;;  %v935_v40 = vmul.f32 %v1261_v36, %v915_v19  ;;  %v936_v41 = vmul.f32 %v1261_v36, %v916_v20 }
 0x176   :  { %v944_v43 = vmul.f32 %v1044_v37, %v933_v38  ;;  %v945_v44 = vmul.f32 %v1044_v37, %v934_v39  ;;  %v946_v45 = vmul.f32 %v1044_v37, %v935_v40  ;;  %v947_v46 = vmul.f32 %v1044_v37, %v936_v41 }
 0x178   :  { %v955_v47 = vadd.f32 %v1045_v42, %v944_v43  ;;  %v956_v48 = vadd.f32 %v1045_v42, %v945_v44  ;;  %v957_v49 = vadd.f32 %v1045_v42, %v946_v45  ;;  %v958_v50 = vadd.f32 %v1045_v42, %v947_v46 }
 0x17a   :  { %v959_v51 = vmax.f32 %v955_v47, 0.0  ;;  %v960_v52 = vmax.f32 %v956_v48, 0.0  ;;  %v961_v53 = vmax.f32 %v957_v49, 0.0  ;;  %v962_v54 = vmax.f32 %v958_v50, 0.0 }
 0x17c   :  { %963 = vst [vmem:[%s1642_s5] sm:$0xff] %v959_v51  ;;  %964 = vst [vmem:[%s1642_s5 + $0x8] sm:$0xff] %v960_v52 }
 0x17d   :  { %965 = vst [vmem:[%s1642_s5 + $0x10] sm:$0xff] %v961_v53  ;;  %966 = vst [vmem:[%s1642_s5 + $0x18] sm:$0xff] %v962_v54 }

// kernel: unet_forward.22
= control target key start
LH: loop header
LB: loop body
LE: loop exit
PB: predicated region body
PF: predicated region fallthrough
CT: control target
= control target key end

     0   :  { %v628_v1 = vmov 0   ;;  %v73_v57 = vlaneseq  ;;  %s1076_s1 = inlined_call_operand.vmem [shape: bf16[128,512], index: 1, kind: input, shape index: {}]   ;;  %s1077_s0 = inlined_call_operand.vmem [shape: f32[128,128], index: 0, kind: input, shape index: {}]   ;;  %s1078_s2 = inlined_call_operand.vmem [shape: f32[1,512], index: 2, kind: input, shape index: {}]   ;;  %s1079_s3 = inlined_call_operand.vmem [shape: f32[128,512], index: 3, kind: output, shape index: {}]  }
   0x1   :  { %v580_v0 = vld [vmem:[%s1076_s1 + $0x4] ss:$16 sps:$4 sm:$0xff]   ;;  %285 = vmatprep.mubr.bf16.mxu0 %v628_v1  ;;  %398 = vmatprep.mubr.bf16.mxu1 %v628_v1  ;;  %v582_v2 = vld [vmem:[%s1076_s1 + $0xc] ss:$16 sps:$4 sm:$0xff]   ;;  %v584_v3 = vld [vmem:[%s1076_s1] ss:$16 sps:$4 sm:$0xff]  }
   0x2   :  { %253 = vmatprep.subr.bf16.mxu0 %v580_v0  ;;  %v585_v4 = vld [vmem:[%s1076_s1 + $0x8] ss:$16 sps:$4 sm:$0xff]   ;;  %366 = vmatprep.subr.bf16.mxu1 %v582_v2  ;;  %v586_v5 = vld [vmem:[%s1076_s1 + $0x24] ss:$16 sps:$4 sm:$0xff]   ;;  %v588_v6 = vld [vmem:[%s1076_s1 + $0x2c] ss:$16 sps:$4 sm:$0xff]  }
   0x3   :  { %254 = vmatpush1.bf16.msra.mxu0 %v584_v3  ;;  %367 = vmatpush1.bf16.msra.mxu1 %v585_v4  ;;  %v590_v7 = vld [vmem:[%s1076_s1 + $0x20] ss:$16 sps:$4 sm:$0xff]   ;;  %v591_v8 = vld [vmem:[%s1076_s1 + $0x28] ss:$16 sps:$4 sm:$0xff]   ;;  %v592_v9 = vld [vmem:[%s1076_s1 + $0x44] ss:$16 sps:$4 sm:$0xff]  }
   0x4   :  { %255 = vmatprep.subr.bf16.mxu0 %v586_v5  ;;  %368 = vmatprep.subr.bf16.mxu1 %v588_v6  ;;  %v594_v10 = vld [vmem:[%s1076_s1 + $0x4c] ss:$16 sps:$4 sm:$0xff]   ;;  %v596_v11 = vld [vmem:[%s1076_s1 + $0x40] ss:$16 sps:$4 sm:$0xff]   ;;  %v597_v12 = vld [vmem:[%s1076_s1 + $0x48] ss:$16 sps:$4 sm:$0xff]  }
   0x5   :  { %v598_v13 = vld [vmem:[%s1076_s1 + $0x64] ss:$16 sps:$4 sm:$0xff]   ;;  %v600_v14 = vld [vmem:[%s1076_s1 + $0x6c] ss:$16 sps:$4 sm:$0xff]   ;;  %v602_v15 = vld [vmem:[%s1076_s1 + $0x60] ss:$16 sps:$4 sm:$0xff]  }
   0x6   :  { %v603_v16 = vld [vmem:[%s1076_s1 + $0x68] ss:$16 sps:$4 sm:$0xff]   ;;  %v604_v17 = vld [vmem:[%s1076_s1 + $0x84] ss:$16 sps:$4 sm:$0xff]   ;;  %v606_v18 = vld [vmem:[%s1076_s1 + $0x8c] ss:$16 sps:$4 sm:$0xff]  }
   0x7   :  { %256 = vmatpush1.bf16.msra.mxu0 %v590_v7  ;;  %369 = vmatpush1.bf16.msra.mxu1 %v591_v8  ;;  %v608_v19 = vld [vmem:[%s1076_s1 + $0x80] ss:$16 sps:$4 sm:$0xff]   ;;  %v609_v20 = vld [vmem:[%s1076_s1 + $0x88] ss:$16 sps:$4 sm:$0xff]   ;;  %v610_v21 = vld [vmem:[%s1076_s1 + $0xa4] ss:$16 sps:$4 sm:$0xff]  }
   0x8   :  { %257 = vmatprep.subr.bf16.mxu0 %v592_v9  ;;  %370 = vmatprep.subr.bf16.mxu1 %v594_v10  ;;  %v612_v22 = vld [vmem:[%s1076_s1 + $0xac] ss:$16 sps:$4 sm:$0xff]   ;;  %v614_v23 = vld [vmem:[%s1076_s1 + $0xa0] ss:$16 sps:$4 sm:$0xff]   ;;  %v615_v24 = vld [vmem:[%s1076_s1 + $0xa8] ss:$16 sps:$4 sm:$0xff]  }
   0x9   :  { %v616_v25 = vld [vmem:[%s1076_s1 + $0xc4] ss:$16 sps:$4 sm:$0xff]   ;;  %v618_v26 = vld [vmem:[%s1076_s1 + $0xcc] ss:$16 sps:$4 sm:$0xff]   ;;  %v620_v27 = vld [vmem:[%s1076_s1 + $0xc0] ss:$16 sps:$4 sm:$0xff]  }
   0xa   :  { %v621_v28 = vld [vmem:[%s1076_s1 + $0xc8] ss:$16 sps:$4 sm:$0xff]   ;;  %v622_v29 = vld [vmem:[%s1076_s1 + $0xe4] ss:$16 sps:$4 sm:$0xff]   ;;  %v624_v30 = vld [vmem:[%s1076_s1 + $0xec] ss:$16 sps:$4 sm:$0xff]  }
   0xb   :  { %258 = vmatpush1.bf16.msra.mxu0 %v596_v11  ;;  %371 = vmatpush1.bf16.msra.mxu1 %v597_v12  ;;  %v626_v31 = vld [vmem:[%s1076_s1 + $0xe0] ss:$16 sps:$4 sm:$0xff]   ;;  %v627_v32 = vld [vmem:[%s1076_s1 + $0xe8] ss:$16 sps:$4 sm:$0xff]   ;;  %v74_v58 = vshrl.u32 %v73_v57, 7 }
   0xc   :  { %259 = vmatprep.subr.bf16.mxu0 %v598_v13  ;;  %372 = vmatprep.subr.bf16.mxu1 %v600_v14  ;;  %v15_v33 = vld [vmem:[%s1077_s0] sm:$0xff]  ;;  %v16_v34 = vld [vmem:[%s1077_s0 + $0x8] sm:$0xff]  ;;  %v17_v36 = vld [vmem:[%s1077_s0 + $0x10] sm:$0xff] }
   0xd   :  { %v31_v35 = vpack.c.bf16 %v16_v34, %v15_v33  ;;  %v18_v37 = vld [vmem:[%s1077_s0 + $0x18] sm:$0xff]  ;;  %v19_v39 = vld [vmem:[%s1077_s0 + $0x20] sm:$0xff]  ;;  %v20_v40 = vld [vmem:[%s1077_s0 + $0x28] sm:$0xff]  ;;  %v75_v59 = vsub.s32 0, %v74_v58  ;;  %v83_v60 = vsub.s32 2, %v74_v58  ;;  %v79_v62 = vsub.s32 1, %v74_v58 }
   0xe   :  { %v32_v38 = vpack.c.bf16 %v18_v37, %v17_v36  ;;  %v33_v41 = vpack.c.bf16 %v20_v40, %v19_v39  ;;  %v21_v42 = vld [vmem:[%s1077_s0 + $0x30] sm:$0xff]  ;;  %v22_v43 = vld [vmem:[%s1077_s0 + $0x38] sm:$0xff]  ;;  %v23_v45 = vld [vmem:[%s1077_s0 + $0x40] sm:$0xff]  ;;  %v87_v63 = vsub.s32 3, %v74_v58 }
   0xf   :  { %260 = vmatpush1.bf16.msra.mxu0 %v602_v15  ;;  %373 = vmatpush1.bf16.msra.mxu1 %v603_v16  ;;  %v34_v44 = vpack.c.bf16 %v22_v43, %v21_v42  ;;  %v24_v46 = vld [vmem:[%s1077_s0 + $0x48] sm:$0xff]  ;;  %v25_v48 = vld [vmem:[%s1077_s0 + $0x50] sm:$0xff]  ;;  %v26_v49 = vld [vmem:[%s1077_s0 + $0x58] sm:$0xff] }
  0x10   :  { %261 = vmatprep.subr.bf16.mxu0 %v604_v17  ;;  %374 = vmatprep.subr.bf16.mxu1 %v606_v18  ;;  %v35_v47 = vpack.c.bf16 %v24_v46, %v23_v45  ;;  %v36_v50 = vpack.c.bf16 %v26_v49, %v25_v48  ;;  %v27_v51 = vld [vmem:[%s1077_s0 + $0x60] sm:$0xff]  ;;  %v28_v52 = vld [vmem:[%s1077_s0 + $0x68] sm:$0xff]  ;;  %v29_v54 = vld [vmem:[%s1077_s0 + $0x70] sm:$0xff] }
  0x11   :  { %v37_v53 = vpack.c.bf16 %v28_v52, %v27_v51  ;;  %v30_v55 = vld [vmem:[%s1077_s0 + $0x78] sm:$0xff]  ;;  %v71_v61 = vld [vmem:[%s1078_s2] sm:$0xf] }
  0x12   :  { %v38_v56 = vpack.c.bf16 %v30_v55, %v29_v54  ;;  %v812_v0 = vrot.slane %v71_v61, %v75_v59  ;;  %v816_v2 = vrot.slane %v71_v61, %v79_v62  ;;  %v818_v3 = vrot.slane %v71_v61, %v87_v63 }
  0x13   :  { %262 = vmatpush1.bf16.msra.mxu0 %v608_v19  ;;  %375 = vmatpush1.bf16.msra.mxu1 %v609_v20 }
  0x14   :  { %263 = vmatprep.subr.bf16.mxu0 %v610_v21  ;;  %376 = vmatprep.subr.bf16.mxu1 %v612_v22 }
  0x17   :  { %264 = vmatpush1.bf16.msra.mxu0 %v614_v23  ;;  %377 = vmatpush1.bf16.msra.mxu1 %v615_v24 }
  0x18   :  { %265 = vmatprep.subr.bf16.mxu0 %v616_v25  ;;  %378 = vmatprep.subr.bf16.mxu1 %v618_v26 }
  0x1b   :  { %266 = vmatpush1.bf16.msra.mxu0 %v620_v27  ;;  %379 = vmatpush1.bf16.msra.mxu1 %v621_v28 }
  0x1c   :  { %267 = vmatprep.subr.bf16.mxu0 %v622_v29  ;;  %380 = vmatprep.subr.bf16.mxu1 %v624_v30 }
  0x1f   :  { %268 = vmatpush1.bf16.msra.mxu0 %v626_v31  ;;  %381 = vmatpush1.bf16.msra.mxu1 %v627_v32 }
  0x22   :  { %286 = vmatmul.mubr.bf16.vlgmr.msra.gmra.mrb[0].mxu0 %v31_v35  ;;  %399 = vmatmul.mubr.bf16.vlgmr.msra.gmra.mrb[0].mxu1 %v31_v35 }
  0x23   :  { %295 = vmatprep.mubr.bf16.mxu0 %v628_v1  ;;  %408 = vmatprep.mubr.bf16.mxu1 %v628_v1 }
  0x2a   :  { %296 = vmatmul.mubr.bf16.gmra.mrb[4].mxu0 %v32_v38  ;;  %409 = vmatmul.mubr.bf16.gmra.mrb[4].mxu1 %v32_v38 }
  0x2b   :  { %305 = vmatprep.mubr.bf16.mxu0 %v628_v1  ;;  %418 = vmatprep.mubr.bf16.mxu1 %v628_v1 }
  0x32   :  { %306 = vmatmul.mubr.bf16.gmra.mrb[8].mxu0 %v33_v41  ;;  %419 = vmatmul.mubr.bf16.gmra.mrb[8].mxu1 %v33_v41 }
  0x33   :  { %315 = vmatprep.mubr.bf16.mxu0 %v628_v1  ;;  %428 = vmatprep.mubr.bf16.mxu1 %v628_v1 }
  0x3a   :  { %316 = vmatmul.mubr.bf16.gmra.mrb[12].mxu0 %v34_v44  ;;  %429 = vmatmul.mubr.bf16.gmra.mrb[12].mxu1 %v34_v44 }
  0x3b   :  { %325 = vmatprep.mubr.bf16.mxu0 %v628_v1  ;;  %438 = vmatprep.mubr.bf16.mxu1 %v628_v1 }
  0x42   :  { %326 = vmatmul.mubr.bf16.gmra.mrb[16].mxu0 %v35_v47  ;;  %439 = vmatmul.mubr.bf16.gmra.mrb[16].mxu1 %v35_v47 }
  0x43   :  { %335 = vmatprep.mubr.bf16.mxu0 %v628_v1  ;;  %448 = vmatprep.mubr.bf16.mxu1 %v628_v1 }
  0x4a   :  { %336 = vmatmul.mubr.bf16.gmra.mrb[20].mxu0 %v36_v50  ;;  %449 = vmatmul.mubr.bf16.gmra.mrb[20].mxu1 %v36_v50 }
  0x4b   :  { %345 = vmatprep.mubr.bf16.mxu0 %v628_v1  ;;  %458 = vmatprep.mubr.bf16.mxu1 %v628_v1 }
  0x52   :  { %346 = vmatmul.mubr.bf16.gmra.mrb[24].mxu0 %v37_v53  ;;  %459 = vmatmul.mubr.bf16.gmra.mrb[24].mxu1 %v37_v53 }
  0x53   :  { %355 = vmatprep.mubr.bf16.mxu0 %v628_v1  ;;  %468 = vmatprep.mubr.bf16.mxu1 %v628_v1  ;;  %v814_v1 = vrot.slane %v71_v61, %v83_v60 }
  0x5a   :  { %356 = vmatmul.mubr.bf16.gmra.mrb[28].mxu0 %v38_v56  ;;  %469 = vmatmul.mubr.bf16.gmra.mrb[28].mxu1 %v38_v56 }
  0xf5   :  { %v287_v4 = vpop.f32.mrb[0].mxu0  ;;  %v400_v5 = vpop.f32.mrb[0].mxu1 }
  0xf6   :  { %v288_v6 = vadd.f32 %v287_v4, %v812_v0  ;;  %v401_v7 = vadd.f32 %v400_v5, %v814_v1  ;;  %v289_v8 = vpop.f32.mrb[1].mxu0  ;;  %v402_v9 = vpop.f32.mrb[1].mxu1 }
  0xf7   :  { %v290_v10 = vadd.f32 %v289_v8, %v816_v2  ;;  %v403_v11 = vadd.f32 %v402_v9, %v818_v3  ;;  %v291_v12 = vpop.f32.mrb[2].mxu0  ;;  %v404_v13 = vpop.f32.mrb[2].mxu1 }
  0xf8   :  { %479 = vst [vmem:[%s1079_s3] sm:$0xff] %v288_v6  ;;  %481 = vst [vmem:[%s1079_s3 + $0x10] sm:$0xff] %v401_v7  ;;  %v292_v14 = vadd.f32 %v291_v12, %v812_v0  ;;  %v405_v15 = vadd.f32 %v404_v13, %v814_v1  ;;  %v293_v16 = vpop.f32.mrb[3].mxu0  ;;  %v406_v17 = vpop.f32.mrb[3].mxu1 }
  0xf9   :  { %480 = vst [vmem:[%s1079_s3 + $0x8] sm:$0xff] %v290_v10  ;;  %482 = vst [vmem:[%s1079_s3 + $0x18] sm:$0xff] %v403_v11  ;;  %v294_v18 = vadd.f32 %v293_v16, %v816_v2  ;;  %v407_v19 = vadd.f32 %v406_v17, %v818_v3 }
  0xfa   :  { %483 = vst [vmem:[%s1079_s3 + $0x20] sm:$0xff] %v292_v14  ;;  %485 = vst [vmem:[%s1079_s3 + $0x30] sm:$0xff] %v405_v15 }
  0xfb   :  { %484 = vst [vmem:[%s1079_s3 + $0x28] sm:$0xff] %v294_v18  ;;  %486 = vst [vmem:[%s1079_s3 + $0x38] sm:$0xff] %v407_v19 }
  0xfd   :  { %v297_v20 = vpop.f32.mrb[4].mxu0  ;;  %v410_v21 = vpop.f32.mrb[4].mxu1 }
  0xfe   :  { %v298_v22 = vadd.f32 %v297_v20, %v812_v0  ;;  %v411_v23 = vadd.f32 %v410_v21, %v814_v1  ;;  %v299_v24 = vpop.f32.mrb[5].mxu0  ;;  %v412_v25 = vpop.f32.mrb[5].mxu1 }
  0xff   :  { %v300_v26 = vadd.f32 %v299_v24, %v816_v2  ;;  %v413_v27 = vadd.f32 %v412_v25, %v818_v3  ;;  %v301_v28 = vpop.f32.mrb[6].mxu0  ;;  %v414_v29 = vpop.f32.mrb[6].mxu1 }
 0x100   :  { %487 = vst [vmem:[%s1079_s3 + $0x40] sm:$0xff] %v298_v22  ;;  %489 = vst [vmem:[%s1079_s3 + $0x50] sm:$0xff] %v411_v23  ;;  %v302_v30 = vadd.f32 %v301_v28, %v812_v0  ;;  %v415_v31 = vadd.f32 %v414_v29, %v814_v1  ;;  %v303_v32 = vpop.f32.mrb[7].mxu0  ;;  %v416_v33 = vpop.f32.mrb[7].mxu1 }
 0x101   :  { %488 = vst [vmem:[%s1079_s3 + $0x48] sm:$0xff] %v300_v26  ;;  %490 = vst [vmem:[%s1079_s3 + $0x58] sm:$0xff] %v413_v27  ;;  %v304_v34 = vadd.f32 %v303_v32, %v816_v2  ;;  %v417_v35 = vadd.f32 %v416_v33, %v818_v3 }
 0x102   :  { %491 = vst [vmem:[%s1079_s3 + $0x60] sm:$0xff] %v302_v30  ;;  %493 = vst [vmem:[%s1079_s3 + $0x70] sm:$0xff] %v415_v31 }
 0x103   :  { %492 = vst [vmem:[%s1079_s3 + $0x68] sm:$0xff] %v304_v34  ;;  %494 = vst [vmem:[%s1079_s3 + $0x78] sm:$0xff] %v417_v35 }
 0x105   :  { %v307_v36 = vpop.f32.mrb[8].mxu0  ;;  %v420_v37 = vpop.f32.mrb[8].mxu1 }
 0x106   :  { %v308_v38 = vadd.f32 %v307_v36, %v812_v0  ;;  %v421_v39 = vadd.f32 %v420_v37, %v814_v1  ;;  %v309_v40 = vpop.f32.mrb[9].mxu0  ;;  %v422_v41 = vpop.f32.mrb[9].mxu1 }
 0x107   :  { %v310_v42 = vadd.f32 %v309_v40, %v816_v2  ;;  %v423_v43 = vadd.f32 %v422_v41, %v818_v3  ;;  %v311_v44 = vpop.f32.mrb[10].mxu0  ;;  %v424_v45 = vpop.f32.mrb[10].mxu1 }
 0x108   :  { %495 = vst [vmem:[%s1079_s3 + $0x80] sm:$0xff] %v308_v38  ;;  %497 = vst [vmem:[%s1079_s3 + $0x90] sm:$0xff] %v421_v39  ;;  %v312_v46 = vadd.f32 %v311_v44, %v812_v0  ;;  %v425_v47 = vadd.f32 %v424_v45, %v814_v1  ;;  %v313_v48 = vpop.f32.mrb[11].mxu0  ;;  %v426_v49 = vpop.f32.mrb[11].mxu1 }
 0x109   :  { %496 = vst [vmem:[%s1079_s3 + $0x88] sm:$0xff] %v310_v42  ;;  %498 = vst [vmem:[%s1079_s3 + $0x98] sm:$0xff] %v423_v43  ;;  %v314_v50 = vadd.f32 %v313_v48, %v816_v2  ;;  %v427_v51 = vadd.f32 %v426_v49, %v818_v3 }
 0x10a   :  { %499 = vst [vmem:[%s1079_s3 + $0xa0] sm:$0xff] %v312_v46  ;;  %501 = vst [vmem:[%s1079_s3 + $0xb0] sm:$0xff] %v425_v47 }
 0x10b   :  { %500 = vst [vmem:[%s1079_s3 + $0xa8] sm:$0xff] %v314_v50  ;;  %502 = vst [vmem:[%s1079_s3 + $0xb8] sm:$0xff] %v427_v51 }
 0x10d   :  { %v317_v52 = vpop.f32.mrb[12].mxu0  ;;  %v430_v53 = vpop.f32.mrb[12].mxu1 }
 0x10e   :  { %v318_v54 = vadd.f32 %v317_v52, %v812_v0  ;;  %v431_v55 = vadd.f32 %v430_v53, %v814_v1  ;;  %v319_v56 = vpop.f32.mrb[13].mxu0  ;;  %v432_v57 = vpop.f32.mrb[13].mxu1 }
 0x10f   :  { %v320_v58 = vadd.f32 %v319_v56, %v816_v2  ;;  %v433_v59 = vadd.f32 %v432_v57, %v818_v3  ;;  %v321_v60 = vpop.f32.mrb[14].mxu0  ;;  %v434_v61 = vpop.f32.mrb[14].mxu1 }
 0x110   :  { %503 = vst [vmem:[%s1079_s3 + $0xc0] sm:$0xff] %v318_v54  ;;  %505 = vst [vmem:[%s1079_s3 + $0xd0] sm:$0xff] %v431_v55  ;;  %v322_v62 = vadd.f32 %v321_v60, %v812_v0  ;;  %v435_v63 = vadd.f32 %v434_v61, %v814_v1  ;;  %v323_v4 = vpop.f32.mrb[15].mxu0  ;;  %v436_v5 = vpop.f32.mrb[15].mxu1 }
 0x111   :  { %504 = vst [vmem:[%s1079_s3 + $0xc8] sm:$0xff] %v320_v58  ;;  %506 = vst [vmem:[%s1079_s3 + $0xd8] sm:$0xff] %v433_v59  ;;  %v324_v6 = vadd.f32 %v323_v4, %v816_v2  ;;  %v437_v7 = vadd.f32 %v436_v5, %v818_v3 }
 0x112   :  { %507 = vst [vmem:[%s1079_s3 + $0xe0] sm:$0xff] %v322_v62  ;;  %509 = vst [vmem:[%s1079_s3 + $0xf0] sm:$0xff] %v435_v63 }
 0x113   :  { %508 = vst [vmem:[%s1079_s3 + $0xe8] sm:$0xff] %v324_v6  ;;  %510 = vst [vmem:[%s1079_s3 + $0xf8] sm:$0xff] %v437_v7 }
 0x115   :  { %v327_v8 = vpop.f32.mrb[16].mxu0  ;;  %v440_v9 = vpop.f32.mrb[16].mxu1 }
 0x116   :  { %v328_v10 = vadd.f32 %v327_v8, %v812_v0  ;;  %v441_v11 = vadd.f32 %v440_v9, %v814_v1  ;;  %v329_v12 = vpop.f32.mrb[17].mxu0  ;;  %v442_v13 = vpop.f32.mrb[17].mxu1 }
 0x117   :  { %v330_v14 = vadd.f32 %v329_v12, %v816_v2  ;;  %v443_v15 = vadd.f32 %v442_v13, %v818_v3  ;;  %v331_v16 = vpop.f32.mrb[18].mxu0  ;;  %v444_v17 = vpop.f32.mrb[18].mxu1 }
 0x118   :  { %511 = vst [vmem:[%s1079_s3 + $0x100] sm:$0xff] %v328_v10  ;;  %513 = vst [vmem:[%s1079_s3 + $0x110] sm:$0xff] %v441_v11  ;;  %v332_v18 = vadd.f32 %v331_v16, %v812_v0  ;;  %v445_v19 = vadd.f32 %v444_v17, %v814_v1  ;;  %v333_v20 = vpop.f32.mrb[19].mxu0  ;;  %v446_v21 = vpop.f32.mrb[19].mxu1 }
 0x119   :  { %512 = vst [vmem:[%s1079_s3 + $0x108] sm:$0xff] %v330_v14  ;;  %514 = vst [vmem:[%s1079_s3 + $0x118] sm:$0xff] %v443_v15  ;;  %v334_v22 = vadd.f32 %v333_v20, %v816_v2  ;;  %v447_v23 = vadd.f32 %v446_v21, %v818_v3 }
 0x11a   :  { %515 = vst [vmem:[%s1079_s3 + $0x120] sm:$0xff] %v332_v18  ;;  %517 = vst [vmem:[%s1079_s3 + $0x130] sm:$0xff] %v445_v19 }
 0x11b   :  { %516 = vst [vmem:[%s1079_s3 + $0x128] sm:$0xff] %v334_v22  ;;  %518 = vst [vmem:[%s1079_s3 + $0x138] sm:$0xff] %v447_v23 }
 0x11d   :  { %v337_v24 = vpop.f32.mrb[20].mxu0  ;;  %v450_v25 = vpop.f32.mrb[20].mxu1 }
 0x11e   :  { %v338_v26 = vadd.f32 %v337_v24, %v812_v0  ;;  %v451_v27 = vadd.f32 %v450_v25, %v814_v1  ;;  %v339_v28 = vpop.f32.mrb[21].mxu0  ;;  %v452_v29 = vpop.f32.mrb[21].mxu1 }
 0x11f   :  { %v340_v30 = vadd.f32 %v339_v28, %v816_v2  ;;  %v453_v31 = vadd.f32 %v452_v29, %v818_v3  ;;  %v341_v32 = vpop.f32.mrb[22].mxu0  ;;  %v454_v33 = vpop.f32.mrb[22].mxu1 }
 0x120   :  { %519 = vst [vmem:[%s1079_s3 + $0x140] sm:$0xff] %v338_v26  ;;  %521 = vst [vmem:[%s1079_s3 + $0x150] sm:$0xff] %v451_v27  ;;  %v342_v34 = vadd.f32 %v341_v32, %v812_v0  ;;  %v455_v35 = vadd.f32 %v454_v33, %v814_v1  ;;  %v343_v36 = vpop.f32.mrb[23].mxu0  ;;  %v456_v37 = vpop.f32.mrb[23].mxu1 }
 0x121   :  { %520 = vst [vmem:[%s1079_s3 + $0x148] sm:$0xff] %v340_v30  ;;  %522 = vst [vmem:[%s1079_s3 + $0x158] sm:$0xff] %v453_v31  ;;  %v344_v38 = vadd.f32 %v343_v36, %v816_v2  ;;  %v457_v39 = vadd.f32 %v456_v37, %v818_v3 }
 0x122   :  { %523 = vst [vmem:[%s1079_s3 + $0x160] sm:$0xff] %v342_v34  ;;  %525 = vst [vmem:[%s1079_s3 + $0x170] sm:$0xff] %v455_v35 }
 0x123   :  { %524 = vst [vmem:[%s1079_s3 + $0x168] sm:$0xff] %v344_v38  ;;  %526 = vst [vmem:[%s1079_s3 + $0x178] sm:$0xff] %v457_v39 }
 0x125   :  { %v347_v40 = vpop.f32.mrb[24].mxu0  ;;  %v460_v41 = vpop.f32.mrb[24].mxu1 }
 0x126   :  { %v348_v42 = vadd.f32 %v347_v40, %v812_v0  ;;  %v461_v43 = vadd.f32 %v460_v41, %v814_v1  ;;  %v349_v44 = vpop.f32.mrb[25].mxu0  ;;  %v462_v45 = vpop.f32.mrb[25].mxu1 }
 0x127   :  { %v350_v46 = vadd.f32 %v349_v44, %v816_v2  ;;  %v463_v47 = vadd.f32 %v462_v45, %v818_v3  ;;  %v351_v48 = vpop.f32.mrb[26].mxu0  ;;  %v464_v49 = vpop.f32.mrb[26].mxu1 }
 0x128   :  { %527 = vst [vmem:[%s1079_s3 + $0x180] sm:$0xff] %v348_v42  ;;  %529 = vst [vmem:[%s1079_s3 + $0x190] sm:$0xff] %v461_v43  ;;  %v352_v50 = vadd.f32 %v351_v48, %v812_v0  ;;  %v465_v51 = vadd.f32 %v464_v49, %v814_v1  ;;  %v353_v52 = vpop.f32.mrb[27].mxu0  ;;  %v466_v53 = vpop.f32.mrb[27].mxu1 }
 0x129   :  { %528 = vst [vmem:[%s1079_s3 + $0x188] sm:$0xff] %v350_v46  ;;  %530 = vst [vmem:[%s1079_s3 + $0x198] sm:$0xff] %v463_v47  ;;  %v354_v54 = vadd.f32 %v353_v52, %v816_v2  ;;  %v467_v55 = vadd.f32 %v466_v53, %v818_v3 }
 0x12a   :  { %531 = vst [vmem:[%s1079_s3 + $0x1a0] sm:$0xff] %v352_v50  ;;  %533 = vst [vmem:[%s1079_s3 + $0x1b0] sm:$0xff] %v465_v51 }
 0x12b   :  { %532 = vst [vmem:[%s1079_s3 + $0x1a8] sm:$0xff] %v354_v54  ;;  %534 = vst [vmem:[%s1079_s3 + $0x1b8] sm:$0xff] %v467_v55 }
 0x12d   :  { %v357_v56 = vpop.f32.mrb[28].mxu0  ;;  %v470_v57 = vpop.f32.mrb[28].mxu1 }
 0x12e   :  { %v358_v58 = vadd.f32 %v357_v56, %v812_v0  ;;  %v471_v59 = vadd.f32 %v470_v57, %v814_v1  ;;  %v359_v60 = vpop.f32.mrb[29].mxu0  ;;  %v472_v61 = vpop.f32.mrb[29].mxu1 }
 0x12f   :  { %v360_v62 = vadd.f32 %v359_v60, %v816_v2  ;;  %v473_v63 = vadd.f32 %v472_v61, %v818_v3  ;;  %v361_v4 = vpop.f32.mrb[30].mxu0  ;;  %v474_v5 = vpop.f32.mrb[30].mxu1 }
 0x130   :  { %535 = vst [vmem:[%s1079_s3 + $0x1c0] sm:$0xff] %v358_v58  ;;  %537 = vst [vmem:[%s1079_s3 + $0x1d0] sm:$0xff] %v471_v59  ;;  %v362_v6 = vadd.f32 %v361_v4, %v812_v0  ;;  %v475_v7 = vadd.f32 %v474_v5, %v814_v1  ;;  %v363_v8 = vpop.f32.mrb[31].mxu0  ;;  %v476_v9 = vpop.f32.mrb[31].mxu1 }
 0x131   :  { %536 = vst [vmem:[%s1079_s3 + $0x1c8] sm:$0xff] %v360_v62  ;;  %538 = vst [vmem:[%s1079_s3 + $0x1d8] sm:$0xff] %v473_v63  ;;  %v364_v10 = vadd.f32 %v363_v8, %v816_v2  ;;  %v477_v11 = vadd.f32 %v476_v9, %v818_v3 }
 0x132   :  { %539 = vst [vmem:[%s1079_s3 + $0x1e0] sm:$0xff] %v362_v6  ;;  %541 = vst [vmem:[%s1079_s3 + $0x1f0] sm:$0xff] %v475_v7 }
 0x133   :  { %540 = vst [vmem:[%s1079_s3 + $0x1e8] sm:$0xff] %v364_v10  ;;  %542 = vst [vmem:[%s1079_s3 + $0x1f8] sm:$0xff] %v477_v11 }

// kernel: unet_forward.13
= control target key start
LH: loop header
LB: loop body
LE: loop exit
PB: predicated region body
PF: predicated region fallthrough
CT: control target
= control target key end

     0   :  { %v4594_v0 = vmov 0   ;;  %s8497_s1 = inlined_call_operand.vmem [shape: bf16[1152,128], index: 1, kind: input, shape index: {}]   ;;  %s8498_s0 = inlined_call_operand.vmem [shape: f32[2,18,18,128], index: 0, kind: input, shape index: {}]   ;;  %s8499_s2 = inlined_call_operand.vmem [shape: f32[1,128], index: 2, kind: input, shape index: {}]   ;;  %s8500_s3 = inlined_call_operand.vmem [shape: f32[1,128], index: 3, kind: input, shape index: {}]   ;;  %s8501_s4 = inlined_call_operand.vmem [shape: f32[1,128], index: 4, kind: input, shape index: {}]   ;;  %s8502_s5 = inlined_call_operand.vmem [shape: f32[512,128], index: 5, kind: output, shape index: {}]  }
   0x1   :  { %1470 = vmatprep.subr.bf16.mxu1 %v4594_v0  ;;  %1759 = vmatprep.subr.bf16.mxu0 %v4594_v0  ;;  %v4519_v1 = vld [vmem:[%s8497_s1] sm:$0xff]   ;;  %v4521_v3 = vld [vmem:[%s8497_s1 + $0x8] sm:$0xff]   ;;  %v4523_v5 = vld [vmem:[%s8497_s1 + $0x10] sm:$0xff]  }
   0x2   :  { %v4633_v2 = vld [vmem:[%s8497_s1 + $0x80] sm:$0xff]   ;;  %1471 = vmatpush1.bf16.msra.mxu1 %v4519_v1  ;;  %v4643_v4 = vld [vmem:[%s8497_s1 + $0x88] sm:$0xff]   ;;  %v4654_v6 = vld [vmem:[%s8497_s1 + $0x90] sm:$0xff]  }
   0x3   :  { %1760 = vmatpush1.bf16.msra.mxu0 %v4633_v2  ;;  %1472 = vmatprep.subr.bf16.mxu1 %v4594_v0  ;;  %v4525_v7 = vld [vmem:[%s8497_s1 + $0x18] sm:$0xff]   ;;  %v4527_v9 = vld [vmem:[%s8497_s1 + $0x20] sm:$0xff]   ;;  %v4529_v11 = vld [vmem:[%s8497_s1 + $0x28] sm:$0xff]  }
   0x4   :  { %1761 = vmatprep.subr.bf16.mxu0 %v4594_v0  ;;  %v4665_v8 = vld [vmem:[%s8497_s1 + $0x98] sm:$0xff]   ;;  %v4676_v10 = vld [vmem:[%s8497_s1 + $0xa0] sm:$0xff]   ;;  %v4687_v12 = vld [vmem:[%s8497_s1 + $0xa8] sm:$0xff]  }
   0x5   :  { %v4531_v13 = vld [vmem:[%s8497_s1 + $0x30] sm:$0xff]   ;;  %v4533_v15 = vld [vmem:[%s8497_s1 + $0x38] sm:$0xff]   ;;  %v4535_v17 = vld [vmem:[%s8497_s1 + $0x40] sm:$0xff]  }
   0x6   :  { %1473 = vmatpush1.bf16.msra.mxu1 %v4521_v3  ;;  %v4698_v14 = vld [vmem:[%s8497_s1 + $0xb0] sm:$0xff]   ;;  %v4709_v16 = vld [vmem:[%s8497_s1 + $0xb8] sm:$0xff]   ;;  %v4720_v18 = vld [vmem:[%s8497_s1 + $0xc0] sm:$0xff]  }
   0x7   :  { %1762 = vmatpush1.bf16.msra.mxu0 %v4643_v4  ;;  %1474 = vmatprep.subr.bf16.mxu1 %v4594_v0  ;;  %v85_v19 = vld [vmem:[%s8498_s0 + $0x1] sm:$0xff]  ;;  %v86_v20 = vld [vmem:[%s8498_s0 + $0x9] sm:$0xff]  ;;  %v3523_v21 = vld [vmem:[%s8498_s0 + $0x18] sm:$0xff] }
   0x8   :  { %1763 = vmatprep.subr.bf16.mxu0 %v4594_v0  ;;  %v600_v22 = vpack.c.bf16 %v86_v20, %v85_v19  ;;  %v3524_v23 = vld [vmem:[%s8498_s0 + $0x20] sm:$0xff]  ;;  %v4537_v24 = vld [vmem:[%s8497_s1 + $0x48] sm:$0xff]   ;;  %v4539_v27 = vld [vmem:[%s8497_s1 + $0x50] sm:$0xff]  }
   0x9   :  { %v4738_v25 = vpack.c.bf16 %v3524_v23, %v3523_v21  ;;  %v4745_v26 = vld [vmem:[%s8497_s1 + $0xc8] sm:$0xff]   ;;  %v4757_v28 = vld [vmem:[%s8497_s1 + $0xd0] sm:$0xff]   ;;  %v4541_v29 = vld [vmem:[%s8497_s1 + $0x58] sm:$0xff]  }
   0xa   :  { %1475 = vmatpush1.bf16.msra.mxu1 %v4523_v5  ;;  %1502 = vmatprep.mubr.bf16.mxu1 %v600_v22  ;;  %v4768_v30 = vld [vmem:[%s8497_s1 + $0xd8] sm:$0xff]   ;;  %v4543_v31 = vld [vmem:[%s8497_s1 + $0x60] sm:$0xff]   ;;  %v4545_v33 = vld [vmem:[%s8497_s1 + $0x68] sm:$0xff]  }
   0xb   :  { %1764 = vmatpush1.bf16.msra.mxu0 %v4654_v6  ;;  %1476 = vmatprep.subr.bf16.mxu1 %v4594_v0  ;;  %v4779_v32 = vld [vmem:[%s8497_s1 + $0xe0] sm:$0xff]   ;;  %v4790_v34 = vld [vmem:[%s8497_s1 + $0xe8] sm:$0xff]   ;;  %v4547_v35 = vld [vmem:[%s8497_s1 + $0x70] sm:$0xff]  }
   0xc   :  { %1765 = vmatprep.subr.bf16.mxu0 %v4594_v0  ;;  %1791 = vmatprep.mubr.bf16.mxu0 %v4738_v25  ;;  %v4801_v36 = vld [vmem:[%s8497_s1 + $0xf0] sm:$0xff]   ;;  %v4549_v37 = vld [vmem:[%s8497_s1 + $0x78] sm:$0xff]   ;;  %v21_v39 = vld [vmem:[%s8498_s0] sm:$0xff] }
   0xd   :  { %v4810_v38 = vld [vmem:[%s8497_s1 + $0xf8] sm:$0xff]   ;;  %v22_v40 = vld [vmem:[%s8498_s0 + $0x8] sm:$0xff]  ;;  %v3525_v46 = vld [vmem:[%s8498_s0 + $0x30] sm:$0xff] }
   0xe   :  { %1477 = vmatpush1.bf16.msra.mxu1 %v4525_v7  ;;  %v149_v41 = vld [vmem:[%s8498_s0 + $0x2] sm:$0xff]  ;;  %v150_v42 = vld [vmem:[%s8498_s0 + $0xa] sm:$0xff]  ;;  %v87_v43 = vld [vmem:[%s8498_s0 + $0x19] sm:$0xff]  ;;  %v599_v45 = vpack.c.bf16 %v22_v40, %v21_v39 }
   0xf   :  { %1766 = vmatpush1.bf16.msra.mxu0 %v4665_v8  ;;  %1478 = vmatprep.subr.bf16.mxu1 %v4594_v0  ;;  %v88_v44 = vld [vmem:[%s8498_s0 + $0x21] sm:$0xff]  ;;  %v3526_v47 = vld [vmem:[%s8498_s0 + $0x38] sm:$0xff]  ;;  %v601_v48 = vpack.c.bf16 %v150_v42, %v149_v41  ;;  %v3528_v58 = vld [vmem:[%s8498_s0 + $0x50] sm:$0xff] }
  0x10   :  { %1767 = vmatprep.subr.bf16.mxu0 %v4594_v0  ;;  %v4551_v49 = vld [vmem:[%s8497_s1 + $0x100] sm:$0xff]   ;;  %v4844_v50 = vpack.c.bf16 %v88_v44, %v87_v43  ;;  %v611_v51 = vpack.c.bf16 %v3526_v47, %v3525_v46  ;;  %v4552_v52 = vld [vmem:[%s8497_s1 + $0x108] sm:$0xff]   ;;  %v89_v55 = vld [vmem:[%s8498_s0 + $0x31] sm:$0xff] }
  0x11   :  { %v151_v53 = vld [vmem:[%s8498_s0 + $0x1a] sm:$0xff]  ;;  %v152_v54 = vld [vmem:[%s8498_s0 + $0x22] sm:$0xff]  ;;  %v4553_v61 = vld [vmem:[%s8497_s1 + $0x110] sm:$0xff]  }
  0x12   :  { %1479 = vmatpush1.bf16.msra.mxu1 %v4527_v9  ;;  %v90_v56 = vld [vmem:[%s8498_s0 + $0x39] sm:$0xff]  ;;  %v3527_v57 = vld [vmem:[%s8498_s0 + $0x48] sm:$0xff]  ;;  %v4872_v59 = vpack.c.bf16 %v152_v54, %v151_v53  ;;  %v3536_v47 = vld [vmem:[%s8498_s0 + $0xb0] sm:$0xff] }
  0x13   :  { %1768 = vmatpush1.bf16.msra.mxu0 %v4676_v10  ;;  %1480 = vmatprep.subr.bf16.mxu1 %v4594_v0  ;;  %v4874_v60 = vpack.c.bf16 %v90_v56, %v89_v55  ;;  %v620_v62 = vpack.c.bf16 %v3528_v58, %v3527_v57  ;;  %v4554_v63 = vld [vmem:[%s8497_s1 + $0x118] sm:$0xff]   ;;  %v91_v3 = vld [vmem:[%s8498_s0 + $0x49] sm:$0xff]  ;;  %v3529_v5 = vld [vmem:[%s8498_s0 + $0x60] sm:$0xff] }
  0x14   :  { %1769 = vmatprep.subr.bf16.mxu0 %v4594_v0  ;;  %v153_v1 = vld [vmem:[%s8498_s0 + $0x32] sm:$0xff]  ;;  %v3530_v7 = vld [vmem:[%s8498_s0 + $0x68] sm:$0xff]  ;;  %v3532_v22 = vld [vmem:[%s8498_s0 + $0x80] sm:$0xff] }
  0x15   :  { %v93_v19 = vld [vmem:[%s8498_s0 + $0x61] sm:$0xff]  ;;  %v94_v20 = vld [vmem:[%s8498_s0 + $0x69] sm:$0xff]  ;;  %v3531_v21 = vld [vmem:[%s8498_s0 + $0x78] sm:$0xff] }
  0x16   :  { %1481 = vmatpush1.bf16.msra.mxu1 %v4529_v11  ;;  %v4559_v39 = vld [vmem:[%s8497_s1 + $0x140] sm:$0xff]   ;;  %v3535_v46 = vld [vmem:[%s8498_s0 + $0xa8] sm:$0xff]  ;;  %v161_v53 = vld [vmem:[%s8498_s0 + $0x92] sm:$0xff] }
  0x17   :  { %1770 = vmatpush1.bf16.msra.mxu0 %v4687_v12  ;;  %1482 = vmatprep.subr.bf16.mxu1 %v4594_v0  ;;  %v159_v43 = vld [vmem:[%s8498_s0 + $0x7a] sm:$0xff]  ;;  %v160_v44 = vld [vmem:[%s8498_s0 + $0x82] sm:$0xff]  ;;  %v100_v55 = vld [vmem:[%s8498_s0 + $0xb1] sm:$0xff] }
  0x18   :  { %1771 = vmatprep.subr.bf16.mxu0 %v4594_v0  ;;  %v99_v54 = vld [vmem:[%s8498_s0 + $0xa9] sm:$0xff]  ;;  %v3537_v56 = vld [vmem:[%s8498_s0 + $0xc0] sm:$0xff] }
  0x19   :  { %v3538_v57 = vld [vmem:[%s8498_s0 + $0xc8] sm:$0xff] }
  0x1a   :  { %1483 = vmatpush1.bf16.msra.mxu1 %v4531_v13  ;;  %v4555_v13 = vld [vmem:[%s8497_s1 + $0x120] sm:$0xff]  }
  0x1b   :  { %1772 = vmatpush1.bf16.msra.mxu0 %v4698_v14  ;;  %1484 = vmatprep.subr.bf16.mxu1 %v4594_v0 }
  0x1c   :  { %1773 = vmatprep.subr.bf16.mxu0 %v4594_v0 }
  0x1e   :  { %1485 = vmatpush1.bf16.msra.mxu1 %v4533_v15  ;;  %v629_v15 = vpack.c.bf16 %v3530_v7, %v3529_v5  ;;  %v4565_v7 = vld [vmem:[%s8497_s1 + $0x170] sm:$0xff]  }
  0x1f   :  { %1774 = vmatpush1.bf16.msra.mxu0 %v4709_v16  ;;  %1486 = vmatprep.subr.bf16.mxu1 %v4594_v0 }
  0x20   :  { %1775 = vmatprep.subr.bf16.mxu0 %v4594_v0 }
  0x22   :  { %1487 = vmatpush1.bf16.msra.mxu1 %v4535_v17  ;;  %v155_v17 = vld [vmem:[%s8498_s0 + $0x4a] sm:$0xff] }
  0x23   :  { %1776 = vmatpush1.bf16.msra.mxu0 %v4720_v18  ;;  %1488 = vmatprep.subr.bf16.mxu1 %v4594_v0 }
  0x24   :  { %1777 = vmatprep.subr.bf16.mxu0 %v4594_v0 }
  0x26   :  { %1489 = vmatpush1.bf16.msra.mxu1 %v4537_v24  ;;  %v4947_v24 = vpack.c.bf16 %v94_v20, %v93_v19  ;;  %v41_v20 = vld [vmem:[%s8498_s0 + $0xf0] sm:$0xff] }
  0x27   :  { %1778 = vmatpush1.bf16.msra.mxu0 %v4745_v26  ;;  %1490 = vmatprep.subr.bf16.mxu1 %v4594_v0 }
  0x28   :  { %1779 = vmatprep.subr.bf16.mxu0 %v4594_v0 }
  0x2a   :  { %1491 = vmatpush1.bf16.msra.mxu1 %v4539_v27  ;;  %v638_v27 = vpack.c.bf16 %v3532_v22, %v3531_v21  ;;  %v42_v21 = vld [vmem:[%s8498_s0 + $0xf8] sm:$0xff]  ;;  %v107_v22 = vld [vmem:[%s8498_s0 + $0x109] sm:$0xff] }
  0x2b   :  { %1780 = vmatpush1.bf16.msra.mxu0 %v4757_v28  ;;  %1492 = vmatprep.subr.bf16.mxu1 %v4594_v0 }
  0x2c   :  { %1781 = vmatprep.subr.bf16.mxu0 %v4594_v0 }
  0x2e   :  { %1493 = vmatpush1.bf16.msra.mxu1 %v4541_v29  ;;  %v157_v29 = vld [vmem:[%s8498_s0 + $0x62] sm:$0xff] }
  0x2f   :  { %1782 = vmatpush1.bf16.msra.mxu0 %v4768_v30  ;;  %1494 = vmatprep.subr.bf16.mxu1 %v4594_v0 }
  0x30   :  { %1783 = vmatprep.subr.bf16.mxu0 %v4594_v0 }
  0x32   :  { %1495 = vmatpush1.bf16.msra.mxu1 %v4543_v31  ;;  %v158_v31 = vld [vmem:[%s8498_s0 + $0x6a] sm:$0xff] }
  0x33   :  { %1784 = vmatpush1.bf16.msra.mxu0 %v4779_v32  ;;  %1496 = vmatprep.subr.bf16.mxu1 %v4594_v0  ;;  %v4984_v40 = vpack.c.bf16 %v158_v31, %v157_v29  ;;  %v43_v29 = vld [vmem:[%s8498_s0 + $0x108] sm:$0xff]  ;;  %v44_v31 = vld [vmem:[%s8498_s0 + $0x110] sm:$0xff] }
  0x34   :  { %1785 = vmatprep.subr.bf16.mxu0 %v4594_v0 }
  0x36   :  { %1497 = vmatpush1.bf16.msra.mxu1 %v4545_v33  ;;  %v96_v33 = vld [vmem:[%s8498_s0 + $0x81] sm:$0xff] }
  0x37   :  { %1786 = vmatpush1.bf16.msra.mxu0 %v4790_v34  ;;  %1498 = vmatprep.subr.bf16.mxu1 %v4594_v0 }
  0x38   :  { %1787 = vmatprep.subr.bf16.mxu0 %v4594_v0 }
  0x3a   :  { %1499 = vmatpush1.bf16.msra.mxu1 %v4547_v35  ;;  %v3533_v35 = vld [vmem:[%s8498_s0 + $0x90] sm:$0xff] }
  0x3b   :  { %1788 = vmatpush1.bf16.msra.mxu0 %v4801_v36  ;;  %1500 = vmatprep.subr.bf16.mxu1 %v4594_v0 }
  0x3c   :  { %1789 = vmatprep.subr.bf16.mxu0 %v4594_v0 }
  0x3e   :  { %1501 = vmatpush1.bf16.msra.mxu1 %v4549_v37  ;;  %v3534_v37 = vld [vmem:[%s8498_s0 + $0x98] sm:$0xff] }
  0x3f   :  { %1790 = vmatpush1.bf16.msra.mxu0 %v4810_v38  ;;  %4102 = vmatprep.subr.bf16.mxu1 %v4594_v0  ;;  %v647_v42 = vpack.c.bf16 %v3534_v37, %v3533_v35  ;;  %v5190_v35 = vpack.c.bf16 %v44_v31, %v43_v29  ;;  %v4580_v31 = vld [vmem:[%s8497_s1 + $0x1e0] sm:$0xff]  }
  0x40   :  { %2048 = vmatprep.subr.bf16.mxu0 %v4594_v0 }
  0x41   :  { %1503 = vmatmul.mubr.bf16.vlgmr.msra.gmra.mrb[0].mxu1 %v599_v45  ;;  %v98_v45 = vld [vmem:[%s8498_s0 + $0x99] sm:$0xff] }
  0x42   :  { %1792 = vmatmul.mubr.bf16.vlgmr.msra.gmra.mrb[0].mxu0 %v601_v48  ;;  %4118 = vmatpush1.bf16.msra.mxu1 %v4633_v2  ;;  %v154_v2 = vld [vmem:[%s8498_s0 + $0x3a] sm:$0xff]  ;;  %v4561_v48 = vld [vmem:[%s8497_s1 + $0x150] sm:$0xff]  }
  0x43   :  { %2049 = vmatpush1.bf16.msra.mxu0 %v4551_v49  ;;  %1510 = vmatprep.mubr.bf16.mxu1 %v4844_v50  ;;  %v4909_v9 = vpack.c.bf16 %v154_v2, %v153_v1  ;;  %v5020_v49 = vpack.c.bf16 %v160_v44, %v159_v43  ;;  %v163_v1 = vld [vmem:[%s8498_s0 + $0xaa] sm:$0xff]  ;;  %v101_v2 = vld [vmem:[%s8498_s0 + $0xc1] sm:$0xff]  ;;  %v4574_v43 = vld [vmem:[%s8497_s1 + $0x1b8] sm:$0xff]  }
  0x44   :  { %2050 = vmatprep.subr.bf16.mxu0 %v4594_v0  ;;  %1799 = vmatprep.mubr.bf16.mxu0 %v611_v51 }
  0x45   :  { %4103 = vmatprep.subr.bf16.mxu1 %v4594_v0 }
  0x46   :  { %4119 = vmatpush1.bf16.msra.mxu1 %v4643_v4  ;;  %v92_v4 = vld [vmem:[%s8498_s0 + $0x51] sm:$0xff] }
  0x47   :  { %2051 = vmatpush1.bf16.msra.mxu0 %v4552_v52  ;;  %4104 = vmatprep.subr.bf16.mxu1 %v4594_v0  ;;  %v4911_v11 = vpack.c.bf16 %v92_v4, %v91_v3  ;;  %v656_v52 = vpack.c.bf16 %v3536_v47, %v3535_v46  ;;  %v102_v3 = vld [vmem:[%s8498_s0 + $0xc9] sm:$0xff]  ;;  %v47_v46 = vld [vmem:[%s8498_s0 + $0x138] sm:$0xff]  ;;  %v48_v47 = vld [vmem:[%s8498_s0 + $0x140] sm:$0xff] }
  0x48   :  { %2052 = vmatprep.subr.bf16.mxu0 %v4594_v0  ;;  %v5085_v5 = vpack.c.bf16 %v102_v3, %v101_v2  ;;  %v3667_v2 = vld [vmem:[%s8498_s0 + $0xda] sm:$0xff]  ;;  %v3668_v3 = vld [vmem:[%s8498_s0 + $0xe2] sm:$0xff] }
  0x49   :  { %1511 = vmatmul.mubr.bf16.gmra.mrb[4].mxu1 %v4738_v25  ;;  %v4557_v25 = vld [vmem:[%s8497_s1 + $0x130] sm:$0xff]  }
  0x4a   :  { %1800 = vmatmul.mubr.bf16.gmra.mrb[4].mxu0 %v4872_v59  ;;  %1518 = vmatprep.mubr.bf16.mxu1 %v4874_v60 }
  0x4b   :  { %2053 = vmatpush1.bf16.msra.mxu0 %v4553_v61  ;;  %1807 = vmatprep.mubr.bf16.mxu0 %v620_v62  ;;  %v5055_v61 = vpack.c.bf16 %v100_v55, %v99_v54  ;;  %v50_v54 = vld [vmem:[%s8498_s0 + $0x158] sm:$0xff]  ;;  %v115_v55 = vld [vmem:[%s8498_s0 + $0x169] sm:$0xff] }
  0x4c   :  { %2054 = vmatprep.subr.bf16.mxu0 %v4594_v0  ;;  %4120 = vmatpush1.bf16.msra.mxu1 %v4654_v6  ;;  %v4556_v6 = vld [vmem:[%s8497_s1 + $0x128] sm:$0xff]  }
  0x4d   :  { %4105 = vmatprep.subr.bf16.mxu1 %v4594_v0 }
  0x4f   :  { %2055 = vmatpush1.bf16.msra.mxu0 %v4554_v63  ;;  %v665_v63 = vpack.c.bf16 %v3538_v57, %v3537_v56  ;;  %v3665_v56 = vld [vmem:[%s8498_s0 + $0xc2] sm:$0xff]  ;;  %v3666_v57 = vld [vmem:[%s8498_s0 + $0xca] sm:$0xff] }
  0x50   :  { %2056 = vmatprep.subr.bf16.mxu0 %v4594_v0  ;;  %4121 = vmatpush1.bf16.msra.mxu1 %v4665_v8  ;;  %v156_v8 = vld [vmem:[%s8498_s0 + $0x52] sm:$0xff] }
  0x51   :  { %1519 = vmatmul.mubr.bf16.gmra.mrb[8].mxu1 %v611_v51  ;;  %4106 = vmatprep.subr.bf16.mxu1 %v4594_v0  ;;  %v4945_v23 = vpack.c.bf16 %v156_v8, %v155_v17  ;;  %v4568_v17 = vld [vmem:[%s8497_s1 + $0x188] sm:$0xff]  }
  0x52   :  { %1808 = vmatmul.mubr.bf16.gmra.mrb[8].mxu0 %v4909_v9  ;;  %1526 = vmatprep.mubr.bf16.mxu1 %v4911_v11 }
  0x53   :  { %2057 = vmatpush1.bf16.msra.mxu0 %v4555_v13  ;;  %1815 = vmatprep.mubr.bf16.mxu0 %v629_v15  ;;  %v103_v13 = vld [vmem:[%s8498_s0 + $0xd9] sm:$0xff] }
  0x54   :  { %2058 = vmatprep.subr.bf16.mxu0 %v4594_v0  ;;  %4122 = vmatpush1.bf16.msra.mxu1 %v4676_v10  ;;  %v4558_v10 = vld [vmem:[%s8497_s1 + $0x138] sm:$0xff]  }
  0x55   :  { %4107 = vmatprep.subr.bf16.mxu1 %v4594_v0 }
  0x57   :  { %2059 = vmatpush1.bf16.msra.mxu0 %v4556_v6  ;;  %v40_v6 = vld [vmem:[%s8498_s0 + $0xe0] sm:$0xff] }
  0x58   :  { %2060 = vmatprep.subr.bf16.mxu0 %v4594_v0  ;;  %4123 = vmatpush1.bf16.msra.mxu1 %v4687_v12  ;;  %v95_v12 = vld [vmem:[%s8498_s0 + $0x79] sm:$0xff] }
  0x59   :  { %1527 = vmatmul.mubr.bf16.gmra.mrb[12].mxu1 %v620_v62  ;;  %4108 = vmatprep.subr.bf16.mxu1 %v4594_v0  ;;  %v4986_v41 = vpack.c.bf16 %v96_v33, %v95_v12  ;;  %v4563_v62 = vld [vmem:[%s8497_s1 + $0x160] sm:$0xff]   ;;  %v4572_v33 = vld [vmem:[%s8497_s1 + $0x1a8] sm:$0xff]  }
  0x5a   :  { %1816 = vmatmul.mubr.bf16.gmra.mrb[12].mxu0 %v4945_v23  ;;  %1534 = vmatprep.mubr.bf16.mxu1 %v4947_v24  ;;  %v109_v12 = vld [vmem:[%s8498_s0 + $0x121] sm:$0xff] }
  0x5b   :  { %2061 = vmatpush1.bf16.msra.mxu0 %v4557_v25  ;;  %1823 = vmatprep.mubr.bf16.mxu0 %v638_v27  ;;  %v4570_v25 = vld [vmem:[%s8497_s1 + $0x198] sm:$0xff]  }
  0x5c   :  { %2062 = vmatprep.subr.bf16.mxu0 %v4594_v0  ;;  %4124 = vmatpush1.bf16.msra.mxu1 %v4698_v14  ;;  %v4560_v14 = vld [vmem:[%s8497_s1 + $0x148] sm:$0xff]  }
  0x5d   :  { %4109 = vmatprep.subr.bf16.mxu1 %v4594_v0 }
  0x5f   :  { %2063 = vmatpush1.bf16.msra.mxu0 %v4558_v10 }
  0x60   :  { %2064 = vmatprep.subr.bf16.mxu0 %v4594_v0  ;;  %4125 = vmatpush1.bf16.msra.mxu1 %v4709_v16  ;;  %v97_v16 = vld [vmem:[%s8498_s0 + $0x91] sm:$0xff] }
  0x61   :  { %1535 = vmatmul.mubr.bf16.gmra.mrb[16].mxu1 %v629_v15  ;;  %4110 = vmatprep.subr.bf16.mxu1 %v4594_v0  ;;  %v5022_v51 = vpack.c.bf16 %v98_v45, %v97_v16  ;;  %v4575_v45 = vld [vmem:[%s8497_s1 + $0x1c0] sm:$0xff]  }
  0x62   :  { %1824 = vmatmul.mubr.bf16.gmra.mrb[16].mxu0 %v4984_v40  ;;  %1542 = vmatprep.mubr.bf16.mxu1 %v4986_v41 }
  0x63   :  { %2065 = vmatpush1.bf16.msra.mxu0 %v4559_v39  ;;  %1831 = vmatprep.mubr.bf16.mxu0 %v647_v42  ;;  %v4573_v39 = vld [vmem:[%s8497_s1 + $0x1b0] sm:$0xff]  }
  0x64   :  { %2066 = vmatprep.subr.bf16.mxu0 %v4594_v0  ;;  %4126 = vmatpush1.bf16.msra.mxu1 %v4720_v18  ;;  %v4562_v18 = vld [vmem:[%s8497_s1 + $0x158] sm:$0xff]  }
  0x65   :  { %4111 = vmatprep.subr.bf16.mxu1 %v4594_v0 }
  0x67   :  { %2067 = vmatpush1.bf16.msra.mxu0 %v4560_v14  ;;  %v111_v14 = vld [vmem:[%s8498_s0 + $0x139] sm:$0xff] }
  0x68   :  { %2068 = vmatprep.subr.bf16.mxu0 %v4594_v0  ;;  %4127 = vmatpush1.bf16.msra.mxu1 %v4745_v26  ;;  %v162_v26 = vld [vmem:[%s8498_s0 + $0x9a] sm:$0xff] }
  0x69   :  { %1543 = vmatmul.mubr.bf16.gmra.mrb[20].mxu1 %v638_v27  ;;  %4112 = vmatprep.subr.bf16.mxu1 %v4594_v0  ;;  %v5053_v58 = vpack.c.bf16 %v162_v26, %v161_v53  ;;  %v5162_v27 = vpack.c.bf16 %v42_v21, %v41_v20  ;;  %v4577_v53 = vld [vmem:[%s8497_s1 + $0x1d0] sm:$0xff]   ;;  %v55_v20 = vld [vmem:[%s8498_s0 + $0x1c8] sm:$0xff] }
  0x6a   :  { %1832 = vmatmul.mubr.bf16.gmra.mrb[20].mxu0 %v5020_v49  ;;  %1550 = vmatprep.mubr.bf16.mxu1 %v5022_v51  ;;  %v49_v26 = vld [vmem:[%s8498_s0 + $0x150] sm:$0xff] }
  0x6b   :  { %2069 = vmatpush1.bf16.msra.mxu0 %v4561_v48  ;;  %1839 = vmatprep.mubr.bf16.mxu0 %v656_v52  ;;  %v113_v48 = vld [vmem:[%s8498_s0 + $0x151] sm:$0xff] }
  0x6c   :  { %2070 = vmatprep.subr.bf16.mxu0 %v4594_v0  ;;  %4128 = vmatpush1.bf16.msra.mxu1 %v4757_v28  ;;  %v4564_v28 = vld [vmem:[%s8497_s1 + $0x168] sm:$0xff]   ;;  %v56_v21 = vld [vmem:[%s8498_s0 + $0x1d0] sm:$0xff] }
  0x6d   :  { %4113 = vmatprep.subr.bf16.mxu1 %v4594_v0  ;;  %v5365_v29 = vpack.c.bf16 %v56_v21, %v55_v20  ;;  %v66_v20 = vld [vmem:[%s8498_s0 + $0x248] sm:$0xff] }
  0x6e   :  { %v3681_v21 = vld [vmem:[%s8498_s0 + $0x182] sm:$0xff] }
  0x6f   :  { %2071 = vmatpush1.bf16.msra.mxu0 %v4562_v18 }
  0x70   :  { %2072 = vmatprep.subr.bf16.mxu0 %v4594_v0  ;;  %4129 = vmatpush1.bf16.msra.mxu1 %v4768_v30  ;;  %v164_v30 = vld [vmem:[%s8498_s0 + $0xb2] sm:$0xff] }
  0x71   :  { %1551 = vmatmul.mubr.bf16.gmra.mrb[24].mxu1 %v647_v42  ;;  %4114 = vmatprep.subr.bf16.mxu1 %v4594_v0  ;;  %v5083_v4 = vpack.c.bf16 %v164_v30, %v163_v1  ;;  %v46_v42 = vld [vmem:[%s8498_s0 + $0x128] sm:$0xff]  ;;  %v52_v1 = vld [vmem:[%s8498_s0 + $0x170] sm:$0xff] }
  0x72   :  { %1840 = vmatmul.mubr.bf16.gmra.mrb[24].mxu0 %v5053_v58  ;;  %1558 = vmatprep.mubr.bf16.mxu1 %v5055_v61  ;;  %v117_v30 = vld [vmem:[%s8498_s0 + $0x1b1] sm:$0xff] }
  0x73   :  { %2073 = vmatpush1.bf16.msra.mxu0 %v4563_v62  ;;  %1847 = vmatprep.mubr.bf16.mxu0 %v665_v63 }
  0x74   :  { %2074 = vmatprep.subr.bf16.mxu0 %v4594_v0  ;;  %4130 = vmatpush1.bf16.msra.mxu1 %v4779_v32  ;;  %v4566_v32 = vld [vmem:[%s8497_s1 + $0x178] sm:$0xff]  }
  0x75   :  { %4115 = vmatprep.subr.bf16.mxu1 %v4594_v0 }
  0x77   :  { %2075 = vmatpush1.bf16.msra.mxu0 %v4564_v28  ;;  %v51_v28 = vld [vmem:[%s8498_s0 + $0x168] sm:$0xff] }
  0x78   :  { %2076 = vmatprep.subr.bf16.mxu0 %v4594_v0  ;;  %4131 = vmatpush1.bf16.msra.mxu1 %v4790_v34  ;;  %v104_v34 = vld [vmem:[%s8498_s0 + $0xe1] sm:$0xff] }
  0x79   :  { %1559 = vmatmul.mubr.bf16.gmra.mrb[28].mxu1 %v656_v52  ;;  %4116 = vmatprep.subr.bf16.mxu1 %v4594_v0  ;;  %v5108_v15 = vpack.c.bf16 %v104_v34, %v103_v13  ;;  %v5246_v52 = vpack.c.bf16 %v48_v47, %v47_v46  ;;  %v5310_v13 = vpack.c.bf16 %v3668_v3, %v3667_v2  ;;  %v53_v34 = vld [vmem:[%s8498_s0 + $0x1b0] sm:$0xff]  ;;  %v59_v46 = vld [vmem:[%s8498_s0 + $0x1f8] sm:$0xff]  ;;  %v60_v47 = vld [vmem:[%s8498_s0 + $0x200] sm:$0xff] }
  0x7a   :  { %1848 = vmatmul.mubr.bf16.gmra.mrb[28].mxu0 %v5083_v4  ;;  %1566 = vmatprep.mubr.bf16.mxu1 %v5085_v5  ;;  %v63_v3 = vld [vmem:[%s8498_s0 + $0x228] sm:$0xff] }
  0x7b   :  { %2077 = vmatpush1.bf16.msra.mxu0 %v4565_v7  ;;  %2080 = vmatprep.mubr.bf16.mxu0 %v4872_v59  ;;  %v4567_v59 = vld [vmem:[%s8497_s1 + $0x180] sm:$0xff]   ;;  %v4578_v7 = vld [vmem:[%s8497_s1 + $0x1d8] sm:$0xff]  }
  0x7c   :  { %2078 = vmatprep.subr.bf16.mxu0 %v4594_v0  ;;  %4132 = vmatpush1.bf16.msra.mxu1 %v4801_v36  ;;  %v39_v36 = vld [vmem:[%s8498_s0 + $0xd8] sm:$0xff] }
  0x7d   :  { %4117 = vmatprep.subr.bf16.mxu1 %v4594_v0  ;;  %v5134_v8 = vpack.c.bf16 %v40_v6, %v39_v36  ;;  %v119_v36 = vld [vmem:[%s8498_s0 + $0x1c9] sm:$0xff]  ;;  %v120_v6 = vld [vmem:[%s8498_s0 + $0x1d1] sm:$0xff] }
  0x7f   :  { %2079 = vmatpush1.bf16.msra.mxu0 %v4566_v32 }
  0x80   :  { %2337 = vmatprep.subr.bf16.mxu0 %v4594_v0  ;;  %4133 = vmatpush1.bf16.msra.mxu1 %v4810_v38  ;;  %v105_v38 = vld [vmem:[%s8498_s0 + $0xf1] sm:$0xff] }
  0x81   :  { %1567 = vmatmul.mubr.bf16.gmra.mrb[32].mxu1 %v665_v63  ;;  %v5281_v63 = vpack.c.bf16 %v3666_v57, %v3665_v56  ;;  %v62_v56 = vld [vmem:[%s8498_s0 + $0x218] sm:$0xff]  ;;  %v127_v57 = vld [vmem:[%s8498_s0 + $0x229] sm:$0xff] }
  0x82   :  { %2081 = vmatmul.mubr.bf16.vlgmr.msra.gmra.mrb[0].mxu0 %v4844_v50  ;;  %1574 = vmatprep.mubr.bf16.mxu1 %v5108_v15  ;;  %v106_v50 = vld [vmem:[%s8498_s0 + $0xf9] sm:$0xff] }
  0x83   :  { %2338 = vmatpush1.bf16.msra.mxu0 %v4567_v59  ;;  %2088 = vmatprep.mubr.bf16.mxu0 %v4909_v9  ;;  %v5136_v19 = vpack.c.bf16 %v106_v50, %v105_v38  ;;  %v4569_v9 = vld [vmem:[%s8497_s1 + $0x190] sm:$0xff]   ;;  %v54_v59 = vld [vmem:[%s8498_s0 + $0x1b8] sm:$0xff] }
  0x84   :  { %2339 = vmatprep.subr.bf16.mxu0 %v4594_v0  ;;  %v3670_v38 = vld [vmem:[%s8498_s0 + $0xfa] sm:$0xff]  ;;  %v743_v50 = vpack.c.bf16 %v54_v59, %v53_v34  ;;  %v130_v34 = vld [vmem:[%s8498_s0 + $0x249] sm:$0xff] }
  0x85   :  { %v3679_v59 = vld [vmem:[%s8498_s0 + $0x16a] sm:$0xff] }
  0x87   :  { %2340 = vmatpush1.bf16.msra.mxu0 %v4568_v17  ;;  %v5334_v17 = vpack.c.bf16 %v120_v6, %v119_v36  ;;  %v3680_v36 = vld [vmem:[%s8498_s0 + $0x172] sm:$0xff] }
  0x88   :  { %2341 = vmatprep.subr.bf16.mxu0 %v4594_v0 }
  0x89   :  { %1575 = vmatmul.mubr.bf16.gmra.mrb[36].mxu1 %v5134_v8 }
  0x8a   :  { %2089 = vmatmul.mubr.bf16.gmra.mrb[4].mxu0 %v4874_v60  ;;  %1582 = vmatprep.mubr.bf16.mxu1 %v5136_v19  ;;  %v108_v60 = vld [vmem:[%s8498_s0 + $0x111] sm:$0xff] }
  0x8b   :  { %2096 = vmatprep.mubr.bf16.mxu0 %v4945_v23  ;;  %2342 = vmatpush1.bf16.msra.mxu0 %v4569_v9  ;;  %v5164_v10 = vpack.c.bf16 %v108_v60, %v107_v22  ;;  %v4571_v23 = vld [vmem:[%s8497_s1 + $0x1a0] sm:$0xff]   ;;  %v122_v60 = vld [vmem:[%s8498_s0 + $0x1e9] sm:$0xff] }
  0x8c   :  { %2343 = vmatprep.subr.bf16.mxu0 %v4594_v0  ;;  %v5349_v22 = vld [vmem:[%s8497_s1 + $0x200] sm:$0xff]  }
  0x8d   :  { %4022 = vmatprep.subr.bf16.mxu1 %v5349_v22 }
  0x8f   :  { %2344 = vmatpush1.bf16.msra.mxu0 %v4570_v25  ;;  %v3671_v25 = vld [vmem:[%s8498_s0 + $0x10a] sm:$0xff] }
  0x90   :  { %2345 = vmatprep.subr.bf16.mxu0 %v4594_v0 }
  0x91   :  { %1583 = vmatmul.mubr.bf16.gmra.mrb[40].mxu1 %v5162_v27 }
  0x92   :  { %2097 = vmatmul.mubr.bf16.gmra.mrb[8].mxu0 %v4911_v11  ;;  %1590 = vmatprep.mubr.bf16.mxu1 %v5164_v10  ;;  %v110_v11 = vld [vmem:[%s8498_s0 + $0x129] sm:$0xff] }
  0x93   :  { %2104 = vmatprep.mubr.bf16.mxu0 %v4984_v40  ;;  %2346 = vmatpush1.bf16.msra.mxu0 %v4571_v23  ;;  %v5192_v37 = vpack.c.bf16 %v110_v11, %v109_v12  ;;  %v45_v40 = vld [vmem:[%s8498_s0 + $0x120] sm:$0xff]  ;;  %v3672_v23 = vld [vmem:[%s8498_s0 + $0x112] sm:$0xff] }
  0x94   :  { %2347 = vmatprep.subr.bf16.mxu0 %v4594_v0  ;;  %v5218_v44 = vpack.c.bf16 %v46_v42, %v45_v40  ;;  %v5372_v11 = vpack.c.bf16 %v3672_v23, %v3671_v25  ;;  %v123_v40 = vld [vmem:[%s8498_s0 + $0x1f9] sm:$0xff]  ;;  %v3673_v42 = vld [vmem:[%s8498_s0 + $0x122] sm:$0xff] }
  0x97   :  { %2348 = vmatpush1.bf16.msra.mxu0 %v4572_v33  ;;  %v57_v33 = vld [vmem:[%s8498_s0 + $0x1e0] sm:$0xff] }
  0x98   :  { %2349 = vmatprep.subr.bf16.mxu0 %v4594_v0 }
  0x99   :  { %1591 = vmatmul.mubr.bf16.gmra.mrb[44].mxu1 %v5190_v35 }
  0x9a   :  { %2105 = vmatmul.mubr.bf16.gmra.mrb[12].mxu0 %v4947_v24  ;;  %1598 = vmatprep.mubr.bf16.mxu1 %v5192_v37  ;;  %v112_v24 = vld [vmem:[%s8498_s0 + $0x141] sm:$0xff] }
  0x9b   :  { %2112 = vmatprep.mubr.bf16.mxu0 %v5020_v49  ;;  %2350 = vmatpush1.bf16.msra.mxu0 %v4573_v39  ;;  %v5220_v16 = vpack.c.bf16 %v112_v24, %v111_v14  ;;  %v4576_v49 = vld [vmem:[%s8497_s1 + $0x1c8] sm:$0xff]  }
  0x9c   :  { %2351 = vmatprep.subr.bf16.mxu0 %v4594_v0  ;;  %v58_v39 = vld [vmem:[%s8498_s0 + $0x1e8] sm:$0xff] }
  0x9d   :  { %v3674_v14 = vld [vmem:[%s8498_s0 + $0x12a] sm:$0xff]  ;;  %v5397_v24 = vpack.c.bf16 %v58_v39, %v57_v33  ;;  %v68_v33 = vld [vmem:[%s8498_s0 + $0x260] sm:$0xff] }
  0x9e   :  { %v3617_v39 = vld [vmem:[%s8498_s0 + $0x181] sm:$0xff] }
  0x9f   :  { %2352 = vmatpush1.bf16.msra.mxu0 %v4574_v43 }
  0xa0   :  { %2353 = vmatprep.subr.bf16.mxu0 %v4594_v0 }
  0xa1   :  { %1599 = vmatmul.mubr.bf16.gmra.mrb[48].mxu1 %v5218_v44 }
  0xa2   :  { %2113 = vmatmul.mubr.bf16.gmra.mrb[16].mxu0 %v4986_v41  ;;  %1606 = vmatprep.mubr.bf16.mxu1 %v5220_v16  ;;  %v114_v41 = vld [vmem:[%s8498_s0 + $0x159] sm:$0xff] }
  0xa3   :  { %2120 = vmatprep.mubr.bf16.mxu0 %v5053_v58  ;;  %2354 = vmatpush1.bf16.msra.mxu0 %v4575_v45  ;;  %v5248_v18 = vpack.c.bf16 %v114_v41, %v113_v48  ;;  %v5277_v58 = vpack.c.bf16 %v50_v54, %v49_v26  ;;  %v5401_v45 = vpack.c.bf16 %v3674_v14, %v3673_v42  ;;  %v4581_v48 = vld [vmem:[%s8497_s1 + $0x1e8] sm:$0xff]   ;;  %v126_v41 = vld [vmem:[%s8498_s0 + $0x219] sm:$0xff] }
  0xa4   :  { %2355 = vmatprep.subr.bf16.mxu0 %v4594_v0  ;;  %v5428_v26 = vpack.c.bf16 %v60_v47, %v59_v46  ;;  %v134_v42 = vld [vmem:[%s8498_s0 + $0x279] sm:$0xff]  ;;  %v3683_v14 = vld [vmem:[%s8498_s0 + $0x1ca] sm:$0xff] }
  0xa5   :  { %v3684_v46 = vld [vmem:[%s8498_s0 + $0x1d2] sm:$0xff] }
  0xa7   :  { %2356 = vmatpush1.bf16.msra.mxu0 %v4576_v49  ;;  %v3675_v49 = vld [vmem:[%s8498_s0 + $0x13a] sm:$0xff] }
  0xa8   :  { %2357 = vmatprep.subr.bf16.mxu0 %v4594_v0 }
  0xa9   :  { %1607 = vmatmul.mubr.bf16.gmra.mrb[52].mxu1 %v5246_v52 }
  0xaa   :  { %2121 = vmatmul.mubr.bf16.gmra.mrb[20].mxu0 %v5022_v51  ;;  %1614 = vmatprep.mubr.bf16.mxu1 %v5248_v18  ;;  %v116_v51 = vld [vmem:[%s8498_s0 + $0x171] sm:$0xff] }
  0xab   :  { %2128 = vmatprep.mubr.bf16.mxu0 %v5083_v4  ;;  %2358 = vmatpush1.bf16.msra.mxu0 %v4577_v53  ;;  %v5279_v62 = vpack.c.bf16 %v116_v51, %v115_v55  ;;  %v5305_v4 = vpack.c.bf16 %v52_v1, %v51_v28  ;;  %v3676_v53 = vld [vmem:[%s8498_s0 + $0x142] sm:$0xff]  ;;  %v61_v51 = vld [vmem:[%s8498_s0 + $0x210] sm:$0xff]  ;;  %v3678_v1 = vld [vmem:[%s8498_s0 + $0x15a] sm:$0xff] }
  0xac   :  { %2359 = vmatprep.subr.bf16.mxu0 %v4594_v0  ;;  %v5433_v55 = vpack.c.bf16 %v3676_v53, %v3675_v49  ;;  %v3677_v28 = vld [vmem:[%s8498_s0 + $0x152] sm:$0xff] }
  0xad   :  { %v5461_v2 = vpack.c.bf16 %v3678_v1, %v3677_v28  ;;  %v69_v49 = vld [vmem:[%s8498_s0 + $0x270] sm:$0xff]  ;;  %v70_v53 = vld [vmem:[%s8498_s0 + $0x278] sm:$0xff] }
  0xae   :  { %v5578_v28 = vpack.c.bf16 %v70_v53, %v69_v49 }
  0xaf   :  { %2360 = vmatpush1.bf16.msra.mxu0 %v4578_v7  ;;  %v64_v7 = vld [vmem:[%s8498_s0 + $0x230] sm:$0xff] }
  0xb0   :  { %2361 = vmatprep.subr.bf16.mxu0 %v4594_v0  ;;  %v5488_v6 = vpack.c.bf16 %v64_v7, %v63_v3  ;;  %v71_v7 = vld [vmem:[%s8498_s0 + $0x288] sm:$0xff] }
  0xb1   :  { %1615 = vmatmul.mubr.bf16.gmra.mrb[56].mxu1 %v5277_v58 }
  0xb2   :  { %2129 = vmatmul.mubr.bf16.gmra.mrb[24].mxu0 %v5055_v61  ;;  %1622 = vmatprep.mubr.bf16.mxu1 %v5279_v62  ;;  %v118_v61 = vld [vmem:[%s8498_s0 + $0x1b9] sm:$0xff] }
  0xb3   :  { %2136 = vmatprep.mubr.bf16.mxu0 %v5281_v63  ;;  %v744_v32 = vpack.c.bf16 %v118_v61, %v117_v30  ;;  %2362 = vmatpush1.bf16.msra.mxu0 %v4580_v31  ;;  %v5457_v30 = vpack.c.bf16 %v62_v56, %v61_v51  ;;  %v67_v31 = vld [vmem:[%s8498_s0 + $0x258] sm:$0xff]  ;;  %v135_v51 = vld [vmem:[%s8498_s0 + $0x289] sm:$0xff] }
  0xb4   :  { %2363 = vmatprep.subr.bf16.mxu0 %v4594_v0  ;;  %v5551_v47 = vpack.c.bf16 %v68_v33, %v67_v31  ;;  %v136_v56 = vld [vmem:[%s8498_s0 + $0x291] sm:$0xff] }
  0xb5   :  { %v5580_v1 = vpack.c.bf16 %v136_v56, %v135_v51 }
  0xb7   :  { %2364 = vmatpush1.bf16.msra.mxu0 %v4581_v48 }
  0xb8   :  { %2365 = vmatprep.subr.bf16.mxu0 %v4594_v0 }
  0xb9   :  { %1623 = vmatmul.mubr.bf16.gmra.mrb[60].mxu1 %v5305_v4 }
  0xba   :  { %2137 = vmatmul.mubr.bf16.gmra.mrb[28].mxu0 %v5085_v5  ;;  %1630 = vmatprep.mubr.bf16.mxu1 %v744_v32  ;;  %v3669_v5 = vld [vmem:[%s8498_s0 + $0xf2] sm:$0xff] }
  0xbb   :  { %2144 = vmatprep.mubr.bf16.mxu0 %v5310_v13  ;;  %v5336_v9 = vpack.c.bf16 %v3670_v38, %v3669_v5  ;;  %v4583_v32 = vld [vmem:[%s8497_s1 + $0x1f0] sm:$0xff]   ;;  %v5493_v38 = vpack.c.bf16 %v3680_v36, %v3679_v59  ;;  %v3688_v59 = vld [vmem:[%s8498_s0 + $0x202] sm:$0xff] }
  0xbc   :  { %2366 = vmatpush1.bf16.msra.mxu0 %v4583_v32  ;;  %v72_v32 = vld [vmem:[%s8498_s0 + $0x290] sm:$0xff] }
  0xbd   :  { %2367 = vmatprep.subr.bf16.mxu0 %v4594_v0  ;;  %v131_v0 = vld [vmem:[%s8498_s0 + $0x259] sm:$0xff]  ;;  %v5606_v36 = vpack.c.bf16 %v72_v32, %v71_v7  ;;  %v143_v32 = vld [vmem:[%s8498_s0 + $0x2e9] sm:$0xff] }
  0xbe   :  { %v78_v7 = vld [vmem:[%s8498_s0 + $0x2d8] sm:$0xff] }
  0xc1   :  { %1631 = vmatmul.mubr.bf16.gmra.mrb[64].mxu1 %v743_v50  ;;  %v65_v50 = vld [vmem:[%s8498_s0 + $0x240] sm:$0xff] }
  0xc2   :  { %2145 = vmatmul.mubr.bf16.gmra.mrb[32].mxu0 %v5108_v15  ;;  %1638 = vmatprep.mubr.bf16.mxu1 %v5334_v17  ;;  %v121_v15 = vld [vmem:[%s8498_s0 + $0x1e1] sm:$0xff] }
  0xc3   :  { %2152 = vmatprep.mubr.bf16.mxu0 %v5336_v9  ;;  %v5370_v12 = vpack.c.bf16 %v122_v60, %v121_v15  ;;  %v3682_v15 = vld [vmem:[%s8498_s0 + $0x18a] sm:$0xff]  ;;  %v5517_v60 = vpack.c.bf16 %v66_v20, %v65_v50 }
  0xc4   :  { %v739_v23 = vpack.c.bf16 %v3682_v15, %v3681_v21  ;;  %v139_v21 = vld [vmem:[%s8498_s0 + $0x2b9] sm:$0xff] }
  0xc5   :  { %v3689_v15 = vld [vmem:[%s8498_s0 + $0x212] sm:$0xff] }
  0xc9   :  { %1639 = vmatmul.mubr.bf16.gmra.mrb[68].mxu1 %v5365_v29 }
  0xca   :  { %2153 = vmatmul.mubr.bf16.gmra.mrb[36].mxu0 %v5136_v19  ;;  %1646 = vmatprep.mubr.bf16.mxu1 %v5370_v12  ;;  %v124_v19 = vld [vmem:[%s8498_s0 + $0x201] sm:$0xff] }
  0xcb   :  { %2160 = vmatprep.mubr.bf16.mxu0 %v5372_v11  ;;  %v5399_v43 = vpack.c.bf16 %v124_v19, %v123_v40  ;;  %v4585_v40 = vld [vmem:[%s8497_s1 + $0x1f8] sm:$0xff]   ;;  %v3618_v19 = vld [vmem:[%s8498_s0 + $0x189] sm:$0xff] }
  0xcc   :  { %2368 = vmatpush1.bf16.msra.mxu0 %v4585_v40  ;;  %v738_v48 = vpack.c.bf16 %v3618_v19, %v3617_v39  ;;  %v75_v40 = vld [vmem:[%s8498_s0 + $0x2b8] sm:$0xff]  ;;  %v76_v19 = vld [vmem:[%s8498_s0 + $0x2c0] sm:$0xff] }
  0xcd   :  { %v5664_v49 = vpack.c.bf16 %v76_v19, %v75_v40  ;;  %v80_v40 = vld [vmem:[%s8498_s0 + $0x2f0] sm:$0xff]  ;;  %v145_v19 = vld [vmem:[%s8498_s0 + $0x301] sm:$0xff] }
  0xd1   :  { %1647 = vmatmul.mubr.bf16.gmra.mrb[72].mxu1 %v5397_v24 }
  0xd2   :  { %2161 = vmatmul.mubr.bf16.gmra.mrb[40].mxu0 %v5164_v10  ;;  %1654 = vmatprep.mubr.bf16.mxu1 %v5399_v43  ;;  %v125_v10 = vld [vmem:[%s8498_s0 + $0x211] sm:$0xff] }
  0xd3   :  { %2168 = vmatprep.mubr.bf16.mxu0 %v5401_v45  ;;  %v5431_v54 = vpack.c.bf16 %v126_v41, %v125_v10  ;;  %v5555_v41 = vpack.c.bf16 %v3684_v46, %v3683_v14  ;;  %v3691_v14 = vld [vmem:[%s8498_s0 + $0x22a] sm:$0xff]  ;;  %v3692_v46 = vld [vmem:[%s8498_s0 + $0x232] sm:$0xff] }
  0xd9   :  { %1655 = vmatmul.mubr.bf16.gmra.mrb[76].mxu1 %v5428_v26 }
  0xda   :  { %2169 = vmatmul.mubr.bf16.gmra.mrb[44].mxu0 %v5192_v37  ;;  %1662 = vmatprep.mubr.bf16.mxu1 %v5431_v54  ;;  %v128_v37 = vld [vmem:[%s8498_s0 + $0x231] sm:$0xff] }
  0xdb   :  { %2176 = vmatprep.mubr.bf16.mxu0 %v5433_v55  ;;  %v5459_v61 = vpack.c.bf16 %v128_v37, %v127_v57  ;;  %v3685_v57 = vld [vmem:[%s8498_s0 + $0x1e2] sm:$0xff]  ;;  %v3686_v37 = vld [vmem:[%s8498_s0 + $0x1ea] sm:$0xff] }
  0xdc   :  { %v5582_v3 = vpack.c.bf16 %v3686_v37, %v3685_v57  ;;  %v5670_v57 = vpack.c.bf16 %v3692_v46, %v3691_v14  ;;  %v77_v37 = vld [vmem:[%s8498_s0 + $0x2d0] sm:$0xff]  ;;  %v3696_v14 = vld [vmem:[%s8498_s0 + $0x262] sm:$0xff] }
  0xe1   :  { %1663 = vmatmul.mubr.bf16.gmra.mrb[80].mxu1 %v5457_v30 }
  0xe2   :  { %2177 = vmatmul.mubr.bf16.gmra.mrb[48].mxu0 %v5220_v16  ;;  %1670 = vmatprep.mubr.bf16.mxu1 %v5459_v61  ;;  %v129_v16 = vld [vmem:[%s8498_s0 + $0x241] sm:$0xff] }
  0xe3   :  { %2184 = vmatprep.mubr.bf16.mxu0 %v5461_v2  ;;  %v5491_v5 = vpack.c.bf16 %v130_v34, %v129_v16  ;;  %v137_v16 = vld [vmem:[%s8498_s0 + $0x2a1] sm:$0xff] }
  0xe4   :  { %v3687_v34 = vld [vmem:[%s8498_s0 + $0x1fa] sm:$0xff] }
  0xe5   :  { %v5610_v20 = vpack.c.bf16 %v3688_v59, %v3687_v34  ;;  %v3694_v34 = vld [vmem:[%s8498_s0 + $0x24a] sm:$0xff] }
  0xe9   :  { %1671 = vmatmul.mubr.bf16.gmra.mrb[84].mxu1 %v5488_v6 }
  0xea   :  { %2185 = vmatmul.mubr.bf16.gmra.mrb[52].mxu0 %v5248_v18  ;;  %1678 = vmatprep.mubr.bf16.mxu1 %v5491_v5  ;;  %v132_v18 = vld [vmem:[%s8498_s0 + $0x261] sm:$0xff] }
  0xeb   :  { %2192 = vmatprep.mubr.bf16.mxu0 %v5493_v38  ;;  %v5519_v25 = vpack.c.bf16 %v132_v18, %v131_v0  ;;  %v73_v0 = vld [vmem:[%s8498_s0 + $0x2a0] sm:$0xff]  ;;  %v74_v18 = vld [vmem:[%s8498_s0 + $0x2a8] sm:$0xff] }
  0xec   :  { %v5634_v31 = vpack.c.bf16 %v74_v18, %v73_v0  ;;  %v5696_v0 = vpack.c.bf16 %v78_v7, %v77_v37 }
  0xf1   :  { %1679 = vmatmul.mubr.bf16.gmra.mrb[88].mxu1 %v5517_v60 }
  0xf2   :  { %2193 = vmatmul.mubr.bf16.gmra.mrb[56].mxu0 %v5279_v62  ;;  %1686 = vmatprep.mubr.bf16.mxu1 %v5519_v25  ;;  %v133_v62 = vld [vmem:[%s8498_s0 + $0x271] sm:$0xff] }
  0xf3   :  { %2200 = vmatprep.mubr.bf16.mxu0 %v739_v23  ;;  %v5553_v10 = vpack.c.bf16 %v134_v42, %v133_v62  ;;  %v3690_v23 = vld [vmem:[%s8498_s0 + $0x21a] sm:$0xff]  ;;  %v141_v62 = vld [vmem:[%s8498_s0 + $0x2d1] sm:$0xff] }
  0xf4   :  { %v5638_v39 = vpack.c.bf16 %v3690_v23, %v3689_v15  ;;  %v79_v23 = vld [vmem:[%s8498_s0 + $0x2e8] sm:$0xff] }
  0xf9   :  { %1687 = vmatmul.mubr.bf16.gmra.mrb[92].mxu1 %v5551_v47 }
  0xfa   :  { %2201 = vmatmul.mubr.bf16.gmra.mrb[60].mxu0 %v738_v48  ;;  %1694 = vmatprep.mubr.bf16.mxu1 %v5553_v10 }
  0xfb   :  { %2208 = vmatprep.mubr.bf16.mxu0 %v5555_v41 }
 0x101   :  { %1695 = vmatmul.mubr.bf16.gmra.mrb[96].mxu1 %v5578_v28 }
 0x102   :  { %2209 = vmatmul.mubr.bf16.gmra.mrb[64].mxu0 %v5334_v17  ;;  %1702 = vmatprep.mubr.bf16.mxu1 %v5580_v1  ;;  %v138_v17 = vld [vmem:[%s8498_s0 + $0x2a9] sm:$0xff] }
 0x103   :  { %2216 = vmatprep.mubr.bf16.mxu0 %v5582_v3  ;;  %v5608_v50 = vpack.c.bf16 %v138_v17, %v137_v16  ;;  %v3693_v17 = vld [vmem:[%s8498_s0 + $0x242] sm:$0xff] }
 0x104   :  { %v5702_v15 = vpack.c.bf16 %v3694_v34, %v3693_v17  ;;  %v82_v17 = vld [vmem:[%s8498_s0 + $0x308] sm:$0xff]  ;;  %v147_v34 = vld [vmem:[%s8498_s0 + $0x319] sm:$0xff] }
 0x109   :  { %1703 = vmatmul.mubr.bf16.gmra.mrb[100].mxu1 %v5606_v36 }
 0x10a   :  { %2217 = vmatmul.mubr.bf16.gmra.mrb[68].mxu0 %v5370_v12  ;;  %1710 = vmatprep.mubr.bf16.mxu1 %v5608_v50  ;;  %v140_v12 = vld [vmem:[%s8498_s0 + $0x2c1] sm:$0xff] }
 0x10b   :  { %2224 = vmatprep.mubr.bf16.mxu0 %v5610_v20  ;;  %v5636_v33 = vpack.c.bf16 %v140_v12, %v139_v21 }
 0x111   :  { %1711 = vmatmul.mubr.bf16.gmra.mrb[104].mxu1 %v5634_v31 }
 0x112   :  { %2225 = vmatmul.mubr.bf16.gmra.mrb[72].mxu0 %v5399_v43  ;;  %1718 = vmatprep.mubr.bf16.mxu1 %v5636_v33  ;;  %v142_v43 = vld [vmem:[%s8498_s0 + $0x2d9] sm:$0xff] }
 0x113   :  { %2232 = vmatprep.mubr.bf16.mxu0 %v5638_v39  ;;  %v5668_v51 = vpack.c.bf16 %v142_v43, %v141_v62  ;;  %v3695_v43 = vld [vmem:[%s8498_s0 + $0x25a] sm:$0xff] }
 0x114   :  { %v5656_v42 = vpop.f32.mrb[0].mxu1 }
 0x115   :  { %v1506_v48 = vpop.f32.mrb[1].mxu1 }
 0x116   :  { %v5666_v53 = vpop.f32.mrb[2].mxu1  ;;  %v5728_v48 = vpack.c.bf16 %v80_v40, %v79_v23  ;;  %v3698_v23 = vld [vmem:[%s8498_s0 + $0x27a] sm:$0xff] }
 0x117   :  { %v1509_v56 = vpop.f32.mrb[3].mxu1 }
 0x119   :  { %1719 = vmatmul.mubr.bf16.gmra.mrb[108].mxu1 %v5664_v49 }
 0x11a   :  { %2233 = vmatmul.mubr.bf16.gmra.mrb[76].mxu0 %v5431_v54  ;;  %1726 = vmatprep.mubr.bf16.mxu1 %v5668_v51  ;;  %v144_v54 = vld [vmem:[%s8498_s0 + $0x2f1] sm:$0xff] }
 0x11b   :  { %2240 = vmatprep.mubr.bf16.mxu0 %v5670_v57  ;;  %v5700_v21 = vpack.c.bf16 %v144_v54, %v143_v32  ;;  %v5734_v32 = vpack.c.bf16 %v3696_v14, %v3695_v43  ;;  %v81_v54 = vld [vmem:[%s8498_s0 + $0x300] sm:$0xff] }
 0x11c   :  { %v5688_v16 = vpop.f32.mrb[4].mxu1 }
 0x11d   :  { %v1514_v59 = vpop.f32.mrb[5].mxu1 }
 0x11e   :  { %v5698_v18 = vpop.f32.mrb[6].mxu1 }
 0x11f   :  { %v1517_v12 = vpop.f32.mrb[7].mxu1 }
 0x120   :  { %v3697_v12 = vld [vmem:[%s8498_s0 + $0x272] sm:$0xff] }
 0x121   :  { %1727 = vmatmul.mubr.bf16.gmra.mrb[112].mxu1 %v5696_v0 }
 0x122   :  { %2241 = vmatmul.mubr.bf16.gmra.mrb[80].mxu0 %v5459_v61  ;;  %1734 = vmatprep.mubr.bf16.mxu1 %v5700_v21  ;;  %v146_v61 = vld [vmem:[%s8498_s0 + $0x309] sm:$0xff] }
 0x123   :  { %2248 = vmatprep.mubr.bf16.mxu0 %v5702_v15  ;;  %v5732_v37 = vpack.c.bf16 %v146_v61, %v145_v19  ;;  %v5760_v19 = vpack.c.bf16 %v82_v17, %v81_v54  ;;  %v84_v54 = vld [vmem:[%s8498_s0 + $0x320] sm:$0xff] }
 0x124   :  { %v5720_v62 = vpop.f32.mrb[8].mxu1 }
 0x125   :  { %v1522_v46 = vpop.f32.mrb[9].mxu1 }
 0x126   :  { %v5730_v56 = vpop.f32.mrb[10].mxu1  ;;  %v5766_v46 = vpack.c.bf16 %v3698_v23, %v3697_v12 }
 0x127   :  { %v1525_v7 = vpop.f32.mrb[11].mxu1 }
 0x128   :  { %v83_v7 = vld [vmem:[%s8498_s0 + $0x318] sm:$0xff] }
 0x129   :  { %1735 = vmatmul.mubr.bf16.gmra.mrb[116].mxu1 %v5728_v48  ;;  %v5786_v12 = vpack.c.bf16 %v84_v54, %v83_v7  ;;  %v3701_v7 = vld [vmem:[%s8498_s0 + $0x2a2] sm:$0xff]  ;;  %v3702_v54 = vld [vmem:[%s8498_s0 + $0x2aa] sm:$0xff] }
 0x12a   :  { %2249 = vmatmul.mubr.bf16.gmra.mrb[84].mxu0 %v5491_v5  ;;  %1742 = vmatprep.mubr.bf16.mxu1 %v5732_v37  ;;  %v148_v5 = vld [vmem:[%s8498_s0 + $0x321] sm:$0xff] }
 0x12b   :  { %2256 = vmatprep.mubr.bf16.mxu0 %v5734_v32  ;;  %v5764_v43 = vpack.c.bf16 %v148_v5, %v147_v34  ;;  %v3699_v34 = vld [vmem:[%s8498_s0 + $0x28a] sm:$0xff] }
 0x12c   :  { %v5752_v59 = vpop.f32.mrb[12].mxu1 }
 0x12d   :  { %v1530_v40 = vpop.f32.mrb[13].mxu1 }
 0x12e   :  { %v5762_v61 = vpop.f32.mrb[14].mxu1 }
 0x12f   :  { %v1533_v14 = vpop.f32.mrb[15].mxu1 }
 0x131   :  { %1743 = vmatmul.mubr.bf16.gmra.mrb[120].mxu1 %v5760_v19 }
 0x132   :  { %2257 = vmatmul.mubr.bf16.gmra.mrb[88].mxu0 %v5519_v25  ;;  %1750 = vmatprep.mubr.bf16.mxu1 %v5764_v43  ;;  %v3700_v25 = vld [vmem:[%s8498_s0 + $0x292] sm:$0xff] }
 0x133   :  { %2264 = vmatprep.mubr.bf16.mxu0 %v5766_v46  ;;  %v5790_v14 = vpack.c.bf16 %v3700_v25, %v3699_v34 }
 0x134   :  { %v5778_v17 = vpop.f32.mrb[16].mxu1 }
 0x135   :  { %8546 = vst [vmem:[#allocation2_spill] sm:$0xff] %v5778_v17  ;;  %v1538_v5 = vpop.f32.mrb[17].mxu1 }
 0x136   :  { %v5788_v23 = vpop.f32.mrb[18].mxu1 }
 0x137   :  { %v1541_v40 = vpop.f32.mrb[19].mxu1 }
 0x138   :  { %v5806_v40 = vpack.c.bf16 %v3702_v54, %v3701_v7  ;;  %v3703_v54 = vld [vmem:[%s8498_s0 + $0x2ba] sm:$0xff] }
 0x139   :  { %1751 = vmatmul.mubr.bf16.gmra.mrb[124].mxu1 %v5786_v12 }
 0x13a   :  { %2265 = vmatmul.mubr.bf16.gmra.mrb[92].mxu0 %v5553_v10  ;;  %1855 = vmatprep.mubr.bf16.mxu1 %v5134_v8  ;;  %v4582_v8 = vld [vmem:[%s8497_s1 + $0x208] sm:$0xff]   ;;  %v4584_v10 = vld [vmem:[%s8497_s1 + $0x210] sm:$0xff]  }
 0x13b   :  { %2272 = vmatprep.mubr.bf16.mxu0 %v5790_v14 }
 0x13c   :  { %v5796_v17 = vpop.f32.mrb[20].mxu1 }
 0x13d   :  { %v1546_v34 = vpop.f32.mrb[21].mxu1 }
 0x13e   :  { %v5804_v25 = vpop.f32.mrb[22].mxu1 }
 0x13f   :  { %v1549_v5 = vpop.f32.mrb[23].mxu1 }
 0x140   :  { %v4586_v5 = vld [vmem:[%s8497_s1 + $0x218] sm:$0xff]  }
 0x141   :  { %1856 = vmatmul.mubr.bf16.vlgmr.msra.gmra.mrb[32].mxu1 %v5281_v63  ;;  %v3704_v63 = vld [vmem:[%s8498_s0 + $0x2c2] sm:$0xff] }
 0x142   :  { %2273 = vmatmul.mubr.bf16.gmra.mrb[96].mxu0 %v5580_v1  ;;  %4023 = vmatpush3.bf16.msra.mxu1 %v5349_v22  ;;  %v5829_v34 = vpack.c.bf16 %v3704_v63, %v3703_v54  ;;  %v3706_v54 = vld [vmem:[%s8498_s0 + $0x2da] sm:$0xff] }
 0x143   :  { %1863 = vmatprep.mubr.bf16.mxu1 %v5162_v27  ;;  %2280 = vmatprep.mubr.bf16.mxu0 %v5806_v40 }
 0x144   :  { %v5819_v7 = vpop.f32.mrb[24].mxu1  ;;  %4024 = vmatprep.subr.bf16.mxu1 %v4582_v8 }
 0x145   :  { %v1554_v22 = vpop.f32.mrb[25].mxu1 }
 0x146   :  { %v5827_v1 = vpop.f32.mrb[26].mxu1  ;;  %4025 = vmatpush3.bf16.msra.mxu1 %v4582_v8  ;;  %v3705_v8 = vld [vmem:[%s8498_s0 + $0x2d2] sm:$0xff] }
 0x147   :  { %v1557_v27 = vpop.f32.mrb[27].mxu1  ;;  %4026 = vmatprep.subr.bf16.mxu1 %v4584_v10 }
 0x148   :  { %v4588_v27 = vld [vmem:[%s8497_s1 + $0x228] sm:$0xff]  }
 0x149   :  { %1864 = vmatmul.mubr.bf16.gmra.mrb[36].mxu1 %v5310_v13  ;;  %v4587_v13 = vld [vmem:[%s8497_s1 + $0x220] sm:$0xff]  }
 0x14a   :  { %2281 = vmatmul.mubr.bf16.gmra.mrb[100].mxu0 %v5608_v50  ;;  %1871 = vmatprep.mubr.bf16.mxu1 %v5190_v35 }
 0x14b   :  { %2288 = vmatprep.mubr.bf16.mxu0 %v5829_v34  ;;  %4027 = vmatpush3.bf16.msra.mxu1 %v4584_v10  ;;  %v5851_v10 = vpack.c.bf16 %v3706_v54, %v3705_v8  ;;  %v3707_v8 = vld [vmem:[%s8498_s0 + $0x2ea] sm:$0xff] }
 0x14c   :  { %v5838_v22 = vpop.f32.mrb[28].mxu1  ;;  %4028 = vmatprep.subr.bf16.mxu1 %v4586_v5 }
 0x14d   :  { %v1562_v50 = vpop.f32.mrb[29].mxu1 }
 0x14e   :  { %v5849_v35 = vpop.f32.mrb[30].mxu1 }
 0x14f   :  { %v1565_v63 = vpop.f32.mrb[31].mxu1  ;;  %4029 = vmatpush3.bf16.msra.mxu1 %v4586_v5  ;;  %v3708_v5 = vld [vmem:[%s8498_s0 + $0x2f2] sm:$0xff] }
 0x150   :  { %4030 = vmatprep.subr.bf16.mxu1 %v4587_v13  ;;  %v5869_v54 = vpack.c.bf16 %v3708_v5, %v3707_v8  ;;  %v3649_v63 = vld [vmem:[%s8498_s0 + $0x331] sm:$0xff] }
 0x151   :  { %1872 = vmatmul.mubr.bf16.gmra.mrb[40].mxu1 %v5336_v9  ;;  %v4589_v9 = vld [vmem:[%s8497_s1 + $0x230] sm:$0xff]  }
 0x152   :  { %2289 = vmatmul.mubr.bf16.gmra.mrb[104].mxu0 %v5636_v33  ;;  %1879 = vmatprep.mubr.bf16.mxu1 %v5218_v44  ;;  %v3709_v44 = vld [vmem:[%s8498_s0 + $0x302] sm:$0xff]  ;;  %v3710_v33 = vld [vmem:[%s8498_s0 + $0x30a] sm:$0xff] }
 0x153   :  { %2296 = vmatprep.mubr.bf16.mxu0 %v5851_v10  ;;  %4031 = vmatpush3.bf16.msra.mxu1 %v4587_v13  ;;  %v5881_v13 = vpack.c.bf16 %v3710_v33, %v3709_v44  ;;  %v3779_v8 = vld [vmem:[%s8498_s0 + $0x31] sm:$0xff]  ;;  %v182_v44 = vld [vmem:[%s8498_s0 + $0x1ba] sm:$0xff] }
 0x154   :  { %4032 = vmatprep.subr.bf16.mxu1 %v4588_v27  ;;  %v3715_v33 = vld [vmem:[%s8498_s0 + $0x30] sm:$0xff] }
 0x157   :  { %4033 = vmatpush3.bf16.msra.mxu1 %v4588_v27  ;;  %v3650_v27 = vld [vmem:[%s8498_s0 + $0x339] sm:$0xff] }
 0x158   :  { %4034 = vmatprep.subr.bf16.mxu1 %v4589_v9 }
 0x159   :  { %1880 = vmatmul.mubr.bf16.gmra.mrb[44].mxu1 %v5372_v11  ;;  %v3712_v11 = vld [vmem:[%s8498_s0 + $0x322] sm:$0xff] }
 0x15a   :  { %2297 = vmatmul.mubr.bf16.gmra.mrb[108].mxu0 %v5668_v51  ;;  %1887 = vmatprep.mubr.bf16.mxu1 %v5246_v52  ;;  %v3711_v52 = vld [vmem:[%s8498_s0 + $0x31a] sm:$0xff] }
 0x15b   :  { %2304 = vmatprep.mubr.bf16.mxu0 %v5869_v54  ;;  %4035 = vmatpush3.bf16.msra.mxu1 %v4589_v9  ;;  %v5893_v51 = vpack.c.bf16 %v3712_v11, %v3711_v52  ;;  %v181_v9 = vld [vmem:[%s8498_s0 + $0x1b2] sm:$0xff] }
 0x15c   :  { %v3782_v52 = vld [vmem:[%s8498_s0 + $0x51] sm:$0xff]  ;;  %v745_v11 = vpack.c.bf16 %v182_v44, %v181_v9  ;;  %v3722_v9 = vld [vmem:[%s8498_s0 + $0x80] sm:$0xff] }
 0x15d   :  { %v3787_v44 = vld [vmem:[%s8498_s0 + $0x91] sm:$0xff] }
 0x161   :  { %1888 = vmatmul.mubr.bf16.gmra.mrb[48].mxu1 %v5401_v45  ;;  %v3553_v45 = vld [vmem:[%s8498_s0 + $0x180] sm:$0xff] }
 0x162   :  { %2305 = vmatmul.mubr.bf16.gmra.mrb[112].mxu0 %v5700_v21  ;;  %1895 = vmatprep.mubr.bf16.mxu1 %v5277_v58  ;;  %v4590_v58 = vld [vmem:[%s8497_s1 + $0x238] sm:$0xff]   ;;  %v3554_v21 = vld [vmem:[%s8498_s0 + $0x188] sm:$0xff] }
 0x163   :  { %2312 = vmatprep.mubr.bf16.mxu0 %v5881_v13  ;;  %4036 = vmatprep.subr.bf16.mxu1 %v4590_v58 }
 0x164   :  { %4037 = vmatpush3.bf16.msra.mxu1 %v4590_v58 }
 0x169   :  { %1896 = vmatmul.mubr.bf16.gmra.mrb[52].mxu1 %v5433_v55  ;;  %v3713_v55 = vld [vmem:[%s8498_s0 + $0x332] sm:$0xff] }
 0x16a   :  { %2313 = vmatmul.mubr.bf16.gmra.mrb[116].mxu0 %v5732_v37  ;;  %1903 = vmatprep.mubr.bf16.mxu1 %v5305_v4  ;;  %v3714_v4 = vld [vmem:[%s8498_s0 + $0x33a] sm:$0xff]  ;;  %v5914_v37 = vpack.c.bf16 %v3554_v21, %v3553_v45  ;;  %v3717_v21 = vld [vmem:[%s8498_s0 + $0x48] sm:$0xff] }
 0x16b   :  { %2320 = vmatprep.mubr.bf16.mxu0 %v5893_v51  ;;  %v883_v50 = vpack.c.bf16 %v3714_v4, %v3713_v55  ;;  %v3718_v55 = vld [vmem:[%s8498_s0 + $0x50] sm:$0xff]  ;;  %v3783_v4 = vld [vmem:[%s8498_s0 + $0x61] sm:$0xff] }
 0x171   :  { %1904 = vmatmul.mubr.bf16.gmra.mrb[56].mxu1 %v5461_v2  ;;  %v3780_v2 = vld [vmem:[%s8498_s0 + $0x39] sm:$0xff] }
 0x172   :  { %2321 = vmatmul.mubr.bf16.gmra.mrb[120].mxu0 %v5764_v43  ;;  %1911 = vmatprep.mubr.bf16.mxu1 %v5914_v37  ;;  %v882_v43 = vpack.c.bf16 %v3650_v27, %v3649_v63  ;;  %v606_v5 = vpack.c.bf16 %v3780_v2, %v3779_v8  ;;  %v614_v63 = vpack.c.bf16 %v3718_v55, %v3717_v21  ;;  %v3720_v8 = vld [vmem:[%s8498_s0 + $0x68] sm:$0xff]  ;;  %v3785_v2 = vld [vmem:[%s8498_s0 + $0x79] sm:$0xff] }
 0x173   :  { %2328 = vmatprep.mubr.bf16.mxu0 %v883_v50  ;;  %v3784_v50 = vld [vmem:[%s8498_s0 + $0x69] sm:$0xff]  ;;  %v3791_v21 = vld [vmem:[%s8498_s0 + $0xc1] sm:$0xff] }
 0x174   :  { %v624_v27 = vpack.c.bf16 %v3784_v50, %v3783_v4  ;;  %v3728_v50 = vld [vmem:[%s8498_s0 + $0xc8] sm:$0xff] }
 0x179   :  { %1912 = vmatmul.mubr.bf16.gmra.mrb[60].mxu1 %v5493_v38  ;;  %v3716_v38 = vld [vmem:[%s8498_s0 + $0x38] sm:$0xff] }
 0x17a   :  { %2329 = vmatmul.mubr.bf16.gmra.mrb[124].mxu0 %v882_v43  ;;  %1919 = vmatprep.mubr.bf16.mxu1 %v5365_v29  ;;  %v3781_v29 = vld [vmem:[%s8498_s0 + $0x49] sm:$0xff]  ;;  %v605_v58 = vpack.c.bf16 %v3716_v38, %v3715_v33 }
 0x17b   :  { %2369 = vmatprep.mubr.bf16.mxu0 %v606_v5  ;;  %v615_v45 = vpack.c.bf16 %v3782_v52, %v3781_v29  ;;  %v3724_v29 = vld [vmem:[%s8498_s0 + $0x98] sm:$0xff]  ;;  %v3789_v52 = vld [vmem:[%s8498_s0 + $0xa9] sm:$0xff] }
 0x181   :  { %1920 = vmatmul.mubr.bf16.gmra.mrb[64].mxu1 %v745_v11 }
 0x182   :  { %2370 = vmatmul.mubr.bf16.vlgmr.msra.gmra.mrb[0].mxu0 %v605_v58  ;;  %1927 = vmatprep.mubr.bf16.mxu1 %v5397_v24  ;;  %v3719_v24 = vld [vmem:[%s8498_s0 + $0x60] sm:$0xff] }
 0x183   :  { %2377 = vmatprep.mubr.bf16.mxu0 %v615_v45  ;;  %v623_v43 = vpack.c.bf16 %v3720_v8, %v3719_v24  ;;  %v3726_v45 = vld [vmem:[%s8498_s0 + $0xb0] sm:$0xff]  ;;  %v3730_v8 = vld [vmem:[%s8498_s0 + $0xe0] sm:$0xff] }
 0x189   :  { %1928 = vmatmul.mubr.bf16.gmra.mrb[68].mxu1 %v5555_v41  ;;  %v3786_v41 = vld [vmem:[%s8498_s0 + $0x81] sm:$0xff] }
 0x18a   :  { %2378 = vmatmul.mubr.bf16.gmra.mrb[4].mxu0 %v614_v63  ;;  %1935 = vmatprep.mubr.bf16.mxu1 %v5428_v26  ;;  %v633_v5 = vpack.c.bf16 %v3786_v41, %v3785_v2  ;;  %v3721_v26 = vld [vmem:[%s8498_s0 + $0x78] sm:$0xff] }
 0x18b   :  { %2385 = vmatprep.mubr.bf16.mxu0 %v624_v27  ;;  %v632_v33 = vpack.c.bf16 %v3722_v9, %v3721_v26  ;;  %v3793_v63 = vld [vmem:[%s8498_s0 + $0xd9] sm:$0xff]  ;;  %v3795_v2 = vld [vmem:[%s8498_s0 + $0xf1] sm:$0xff]  ;;  %v3797_v26 = vld [vmem:[%s8498_s0 + $0x109] sm:$0xff] }
 0x191   :  { %1936 = vmatmul.mubr.bf16.gmra.mrb[72].mxu1 %v5582_v3  ;;  %v3788_v3 = vld [vmem:[%s8498_s0 + $0x99] sm:$0xff] }
 0x192   :  { %2386 = vmatmul.mubr.bf16.gmra.mrb[8].mxu0 %v623_v43  ;;  %1943 = vmatprep.mubr.bf16.mxu1 %v5457_v30  ;;  %v642_v38 = vpack.c.bf16 %v3788_v3, %v3787_v44  ;;  %v3723_v30 = vld [vmem:[%s8498_s0 + $0x90] sm:$0xff] }
 0x193   :  { %2393 = vmatprep.mubr.bf16.mxu0 %v633_v5  ;;  %v641_v11 = vpack.c.bf16 %v3724_v29, %v3723_v30  ;;  %v3732_v5 = vld [vmem:[%s8498_s0 + $0xf8] sm:$0xff]  ;;  %v3734_v3 = vld [vmem:[%s8498_s0 + $0x110] sm:$0xff]  ;;  %v3736_v29 = vld [vmem:[%s8498_s0 + $0x128] sm:$0xff] }
 0x199   :  { %1944 = vmatmul.mubr.bf16.gmra.mrb[76].mxu1 %v5610_v20  ;;  %v3790_v20 = vld [vmem:[%s8498_s0 + $0xb1] sm:$0xff] }
 0x19a   :  { %2394 = vmatmul.mubr.bf16.gmra.mrb[12].mxu0 %v632_v33  ;;  %1951 = vmatprep.mubr.bf16.mxu1 %v5488_v6  ;;  %v651_v58 = vpack.c.bf16 %v3790_v20, %v3789_v52  ;;  %v3725_v6 = vld [vmem:[%s8498_s0 + $0xa8] sm:$0xff]  ;;  %v3801_v52 = vld [vmem:[%s8498_s0 + $0x139] sm:$0xff] }
 0x19b   :  { %2401 = vmatprep.mubr.bf16.mxu0 %v642_v38  ;;  %v650_v55 = vpack.c.bf16 %v3726_v45, %v3725_v6  ;;  %v3799_v33 = vld [vmem:[%s8498_s0 + $0x121] sm:$0xff]  ;;  %v3803_v6 = vld [vmem:[%s8498_s0 + $0x151] sm:$0xff] }
 0x1a1   :  { %1952 = vmatmul.mubr.bf16.gmra.mrb[80].mxu1 %v5638_v39  ;;  %v3792_v39 = vld [vmem:[%s8498_s0 + $0xc9] sm:$0xff] }
 0x1a2   :  { %2402 = vmatmul.mubr.bf16.gmra.mrb[16].mxu0 %v641_v11  ;;  %1959 = vmatprep.mubr.bf16.mxu1 %v5517_v60  ;;  %v660_v4 = vpack.c.bf16 %v3792_v39, %v3791_v21  ;;  %v3727_v60 = vld [vmem:[%s8498_s0 + $0xc0] sm:$0xff]  ;;  %v3740_v39 = vld [vmem:[%s8498_s0 + $0x158] sm:$0xff] }
 0x1a3   :  { %2409 = vmatprep.mubr.bf16.mxu0 %v651_v58  ;;  %v659_v27 = vpack.c.bf16 %v3728_v50, %v3727_v60  ;;  %v3738_v58 = vld [vmem:[%s8498_s0 + $0x140] sm:$0xff]  ;;  %v3742_v50 = vld [vmem:[%s8498_s0 + $0x170] sm:$0xff] }
 0x1a9   :  { %1960 = vmatmul.mubr.bf16.gmra.mrb[84].mxu1 %v5670_v57  ;;  %v3794_v57 = vld [vmem:[%s8498_s0 + $0xe1] sm:$0xff] }
 0x1aa   :  { %2410 = vmatmul.mubr.bf16.gmra.mrb[20].mxu0 %v650_v55  ;;  %1967 = vmatprep.mubr.bf16.mxu1 %v5551_v47  ;;  %v669_v24 = vpack.c.bf16 %v3794_v57, %v3793_v63  ;;  %v3729_v47 = vld [vmem:[%s8498_s0 + $0xd8] sm:$0xff]  ;;  %v3805_v55 = vld [vmem:[%s8498_s0 + $0x169] sm:$0xff]  ;;  %v3807_v63 = vld [vmem:[%s8498_s0 + $0x181] sm:$0xff] }
 0x1ab   :  { %2417 = vmatprep.mubr.bf16.mxu0 %v660_v4  ;;  %v668_v41 = vpack.c.bf16 %v3730_v8, %v3729_v47  ;;  %v3809_v47 = vld [vmem:[%s8498_s0 + $0x199] sm:$0xff] }
 0x1b1   :  { %1968 = vmatmul.mubr.bf16.gmra.mrb[88].mxu1 %v5702_v15  ;;  %v3796_v15 = vld [vmem:[%s8498_s0 + $0xf9] sm:$0xff] }
 0x1b2   :  { %2418 = vmatmul.mubr.bf16.gmra.mrb[24].mxu0 %v659_v27  ;;  %1975 = vmatprep.mubr.bf16.mxu1 %v5578_v28  ;;  %v678_v43 = vpack.c.bf16 %v3796_v15, %v3795_v2  ;;  %v3731_v28 = vld [vmem:[%s8498_s0 + $0xf0] sm:$0xff]  ;;  %v3745_v2 = vld [vmem:[%s8498_s0 + $0x198] sm:$0xff]  ;;  %v3746_v15 = vld [vmem:[%s8498_s0 + $0x1a0] sm:$0xff] }
 0x1b3   :  { %2425 = vmatprep.mubr.bf16.mxu0 %v669_v24  ;;  %v677_v9 = vpack.c.bf16 %v3732_v5, %v3731_v28  ;;  %v3586_v24 = vld [vmem:[%s8498_s0 + $0x338] sm:$0xff]  ;;  %v740_v28 = vpack.c.bf16 %v3746_v15, %v3745_v2  ;;  %v3754_v2 = vld [vmem:[%s8498_s0 + $0x230] sm:$0xff] }
 0x1b4   :  { %v3859_v15 = vld [vmem:[%s8498_s0 + $0xf2] sm:$0xff] }
 0x1b9   :  { %1976 = vmatmul.mubr.bf16.gmra.mrb[92].mxu1 %v5734_v32  ;;  %v3798_v32 = vld [vmem:[%s8498_s0 + $0x111] sm:$0xff] }
 0x1ba   :  { %2426 = vmatmul.mubr.bf16.gmra.mrb[28].mxu0 %v668_v41  ;;  %1983 = vmatprep.mubr.bf16.mxu1 %v5606_v36  ;;  %v687_v44 = vpack.c.bf16 %v3798_v32, %v3797_v26  ;;  %v3733_v36 = vld [vmem:[%s8498_s0 + $0x108] sm:$0xff]  ;;  %v3843_v41 = vld [vmem:[%s8498_s0 + $0x32] sm:$0xff]  ;;  %v3747_v32 = vld [vmem:[%s8498_s0 + $0x1e0] sm:$0xff] }
 0x1bb   :  { %2433 = vmatprep.mubr.bf16.mxu0 %v678_v43  ;;  %v686_v38 = vpack.c.bf16 %v3734_v3, %v3733_v36  ;;  %v3812_v43 = vld [vmem:[%s8498_s0 + $0x1e9] sm:$0xff] }
 0x1bc   :  { %v3748_v36 = vld [vmem:[%s8498_s0 + $0x1e8] sm:$0xff] }
 0x1bd   :  { %v3848_v3 = vld [vmem:[%s8498_s0 + $0x6a] sm:$0xff] }
 0x1c1   :  { %1984 = vmatmul.mubr.bf16.gmra.mrb[96].mxu1 %v5766_v46  ;;  %v3800_v46 = vld [vmem:[%s8498_s0 + $0x129] sm:$0xff] }
 0x1c2   :  { %2434 = vmatmul.mubr.bf16.gmra.mrb[32].mxu0 %v677_v9  ;;  %1991 = vmatprep.mubr.bf16.mxu1 %v5634_v31  ;;  %v696_v30 = vpack.c.bf16 %v3800_v46, %v3799_v33  ;;  %v3735_v31 = vld [vmem:[%s8498_s0 + $0x120] sm:$0xff]  ;;  %v3845_v9 = vld [vmem:[%s8498_s0 + $0x4a] sm:$0xff] }
 0x1c3   :  { %2441 = vmatprep.mubr.bf16.mxu0 %v687_v44  ;;  %v695_v20 = vpack.c.bf16 %v3736_v29, %v3735_v31  ;;  %v3846_v44 = vld [vmem:[%s8498_s0 + $0x52] sm:$0xff]  ;;  %v3814_v46 = vld [vmem:[%s8498_s0 + $0x201] sm:$0xff] }
 0x1c4   :  { %v3813_v33 = vld [vmem:[%s8498_s0 + $0x1f9] sm:$0xff] }
 0x1c5   :  { %v759_v29 = vpack.c.bf16 %v3814_v46, %v3813_v33  ;;  %v3862_v33 = vld [vmem:[%s8498_s0 + $0x112] sm:$0xff]  ;;  %v3756_v46 = vld [vmem:[%s8498_s0 + $0x248] sm:$0xff] }
 0x1c9   :  { %1992 = vmatmul.mubr.bf16.gmra.mrb[100].mxu1 %v5790_v14  ;;  %v3802_v14 = vld [vmem:[%s8498_s0 + $0x141] sm:$0xff] }
 0x1ca   :  { %2442 = vmatmul.mubr.bf16.gmra.mrb[36].mxu0 %v686_v38  ;;  %1999 = vmatprep.mubr.bf16.mxu1 %v5664_v49  ;;  %v705_v11 = vpack.c.bf16 %v3802_v14, %v3801_v52  ;;  %v3737_v49 = vld [vmem:[%s8498_s0 + $0x138] sm:$0xff]  ;;  %v616_v38 = vpack.c.bf16 %v3846_v44, %v3845_v9 }
 0x1cb   :  { %2449 = vmatprep.mubr.bf16.mxu0 %v696_v30  ;;  %v704_v45 = vpack.c.bf16 %v3738_v58, %v3737_v49  ;;  %v749_v30 = vpack.c.bf16 %v3748_v36, %v3747_v32  ;;  %v3749_v52 = vld [vmem:[%s8498_s0 + $0x1f8] sm:$0xff] }
 0x1cc   :  { %v3849_v14 = vld [vmem:[%s8498_s0 + $0x7a] sm:$0xff]  ;;  %v3851_v49 = vld [vmem:[%s8498_s0 + $0x92] sm:$0xff] }
 0x1cd   :  { %v3852_v58 = vld [vmem:[%s8498_s0 + $0x9a] sm:$0xff] }
 0x1d1   :  { %2000 = vmatmul.mubr.bf16.gmra.mrb[104].mxu1 %v5806_v40  ;;  %v3804_v40 = vld [vmem:[%s8498_s0 + $0x159] sm:$0xff] }
 0x1d2   :  { %2450 = vmatmul.mubr.bf16.gmra.mrb[40].mxu0 %v695_v20  ;;  %2007 = vmatprep.mubr.bf16.mxu1 %v5696_v0  ;;  %v714_v21 = vpack.c.bf16 %v3804_v40, %v3803_v6  ;;  %v3739_v0 = vld [vmem:[%s8498_s0 + $0x150] sm:$0xff]  ;;  %v3850_v20 = vld [vmem:[%s8498_s0 + $0x82] sm:$0xff]  ;;  %v3816_v40 = vld [vmem:[%s8498_s0 + $0x219] sm:$0xff] }
 0x1d3   :  { %2457 = vmatprep.mubr.bf16.mxu0 %v705_v11  ;;  %v713_v4 = vpack.c.bf16 %v3740_v39, %v3739_v0  ;;  %v3750_v11 = vld [vmem:[%s8498_s0 + $0x200] sm:$0xff]  ;;  %v3815_v6 = vld [vmem:[%s8498_s0 + $0x211] sm:$0xff]  ;;  %v643_v0 = vpack.c.bf16 %v3852_v58, %v3851_v49 }
 0x1d4   :  { %v768_v39 = vpack.c.bf16 %v3816_v40, %v3815_v6 }
 0x1d9   :  { %2008 = vmatmul.mubr.bf16.gmra.mrb[108].mxu1 %v5829_v34  ;;  %v3806_v34 = vld [vmem:[%s8498_s0 + $0x171] sm:$0xff] }
 0x1da   :  { %2458 = vmatmul.mubr.bf16.gmra.mrb[44].mxu0 %v704_v45  ;;  %2015 = vmatprep.mubr.bf16.mxu1 %v5728_v48  ;;  %v723_v60 = vpack.c.bf16 %v3806_v34, %v3805_v55  ;;  %v3741_v48 = vld [vmem:[%s8498_s0 + $0x168] sm:$0xff]  ;;  %v634_v45 = vpack.c.bf16 %v3850_v20, %v3849_v14  ;;  %v3751_v55 = vld [vmem:[%s8498_s0 + $0x210] sm:$0xff] }
 0x1db   :  { %2465 = vmatprep.mubr.bf16.mxu0 %v714_v21  ;;  %v722_v57 = vpack.c.bf16 %v3742_v50, %v3741_v48  ;;  %v758_v21 = vpack.c.bf16 %v3750_v11, %v3749_v52  ;;  %v3853_v34 = vld [vmem:[%s8498_s0 + $0xaa] sm:$0xff]  ;;  %v3855_v48 = vld [vmem:[%s8498_s0 + $0xc2] sm:$0xff] }
 0x1dc   :  { %v3856_v50 = vld [vmem:[%s8498_s0 + $0xca] sm:$0xff]  ;;  %v3822_v52 = vld [vmem:[%s8498_s0 + $0x261] sm:$0xff] }
 0x1e1   :  { %2016 = vmatmul.mubr.bf16.gmra.mrb[112].mxu1 %v5851_v10  ;;  %v3808_v10 = vld [vmem:[%s8498_s0 + $0x189] sm:$0xff] }
 0x1e2   :  { %2466 = vmatmul.mubr.bf16.gmra.mrb[48].mxu0 %v713_v4  ;;  %2023 = vmatprep.mubr.bf16.mxu1 %v5760_v19  ;;  %v732_v27 = vpack.c.bf16 %v3808_v10, %v3807_v63  ;;  %v3585_v19 = vld [vmem:[%s8498_s0 + $0x330] sm:$0xff] }
 0x1e3   :  { %2473 = vmatprep.mubr.bf16.mxu0 %v723_v60  ;;  %v6146_v8 = vpack.c.bf16 %v3586_v24, %v3585_v19  ;;  %v3854_v4 = vld [vmem:[%s8498_s0 + $0xb2] sm:$0xff]  ;;  %v3817_v63 = vld [vmem:[%s8498_s0 + $0x229] sm:$0xff]  ;;  %v661_v19 = vpack.c.bf16 %v3856_v50, %v3855_v48 }
 0x1e4   :  { %v3752_v60 = vld [vmem:[%s8498_s0 + $0x218] sm:$0xff] }
 0x1e5   :  { %v3818_v10 = vld [vmem:[%s8498_s0 + $0x231] sm:$0xff]  ;;  %v3824_v48 = vld [vmem:[%s8498_s0 + $0x279] sm:$0xff] }
 0x1e6   :  { %v777_v24 = vpack.c.bf16 %v3818_v10, %v3817_v63 }
 0x1e9   :  { %2024 = vmatmul.mubr.bf16.gmra.mrb[116].mxu1 %v5869_v54  ;;  %v3810_v54 = vld [vmem:[%s8498_s0 + $0x1a1] sm:$0xff] }
 0x1ea   :  { %2474 = vmatmul.mubr.bf16.gmra.mrb[52].mxu0 %v722_v57  ;;  %2031 = vmatprep.mubr.bf16.mxu1 %v5786_v12  ;;  %v741_v12 = vpack.c.bf16 %v3810_v54, %v3809_v47  ;;  %v652_v57 = vpack.c.bf16 %v3854_v4, %v3853_v34  ;;  %v3753_v47 = vld [vmem:[%s8498_s0 + $0x228] sm:$0xff]  ;;  %v3857_v54 = vld [vmem:[%s8498_s0 + $0xda] sm:$0xff] }
 0x1eb   :  { %2481 = vmatprep.mubr.bf16.mxu0 %v732_v27  ;;  %v767_v27 = vpack.c.bf16 %v3752_v60, %v3751_v55  ;;  %v776_v32 = vpack.c.bf16 %v3754_v2, %v3753_v47  ;;  %v3867_v55 = vld [vmem:[%s8498_s0 + $0x152] sm:$0xff]  ;;  %v3868_v34 = vld [vmem:[%s8498_s0 + $0x15a] sm:$0xff] }
 0x1ec   :  { %v3823_v60 = vld [vmem:[%s8498_s0 + $0x271] sm:$0xff] }
 0x1ed   :  { %v3759_v47 = vld [vmem:[%s8498_s0 + $0x270] sm:$0xff]  ;;  %v3760_v2 = vld [vmem:[%s8498_s0 + $0x278] sm:$0xff] }
 0x1f1   :  { %2032 = vmatmul.mubr.bf16.gmra.mrb[120].mxu1 %v5881_v13  ;;  %v3844_v13 = vld [vmem:[%s8498_s0 + $0x3a] sm:$0xff] }
 0x1f2   :  { %2482 = vmatmul.mubr.bf16.gmra.mrb[56].mxu0 %v5914_v37  ;;  %2039 = vmatprep.mubr.bf16.mxu1 %v6146_v8  ;;  %v3811_v37 = vld [vmem:[%s8498_s0 + $0x1e1] sm:$0xff]  ;;  %v607_v5 = vpack.c.bf16 %v3844_v13, %v3843_v41 }
 0x1f3   :  { %2489 = vmatprep.mubr.bf16.mxu0 %v741_v12  ;;  %v750_v26 = vpack.c.bf16 %v3812_v43, %v3811_v37  ;;  %v3858_v12 = vld [vmem:[%s8498_s0 + $0xe2] sm:$0xff]  ;;  %v3860_v41 = vld [vmem:[%s8498_s0 + $0xfa] sm:$0xff] }
 0x1f4   :  { %v3819_v37 = vld [vmem:[%s8498_s0 + $0x241] sm:$0xff]  ;;  %v3820_v43 = vld [vmem:[%s8498_s0 + $0x249] sm:$0xff]  ;;  %v679_v9 = vpack.c.bf16 %v3860_v41, %v3859_v15 }
 0x1f5   :  { %v786_v36 = vpack.c.bf16 %v3820_v43, %v3819_v37  ;;  %v3871_v15 = vld [vmem:[%s8498_s0 + $0x182] sm:$0xff]  ;;  %v3872_v41 = vld [vmem:[%s8498_s0 + $0x18a] sm:$0xff] }
 0x1f6   :  { %v3825_v43 = vld [vmem:[%s8498_s0 + $0x289] sm:$0xff] }
 0x1f9   :  { %2040 = vmatmul.mubr.bf16.gmra.mrb[124].mxu1 %v5893_v51  ;;  %v3847_v51 = vld [vmem:[%s8498_s0 + $0x62] sm:$0xff] }
 0x1fa   :  { %2490 = vmatmul.mubr.bf16.gmra.mrb[60].mxu0 %v740_v28  ;;  %4038 = vmatprep.mubr.bf16.mxu1 %v607_v5  ;;  %v625_v31 = vpack.c.bf16 %v3848_v3, %v3847_v51  ;;  %v670_v5 = vpack.c.bf16 %v3858_v12, %v3857_v54  ;;  %v3755_v51 = vld [vmem:[%s8498_s0 + $0x240] sm:$0xff]  ;;  %v3861_v3 = vld [vmem:[%s8498_s0 + $0x10a] sm:$0xff]  ;;  %v3870_v12 = vld [vmem:[%s8498_s0 + $0x172] sm:$0xff] }
 0x1fb   :  { %2497 = vmatprep.mubr.bf16.mxu0 %v750_v26  ;;  %v688_v20 = vpack.c.bf16 %v3862_v33, %v3861_v3  ;;  %v785_v49 = vpack.c.bf16 %v3756_v46, %v3755_v51  ;;  %v3869_v54 = vld [vmem:[%s8498_s0 + $0x16a] sm:$0xff]  ;;  %v3873_v46 = vld [vmem:[%s8498_s0 + $0x19a] sm:$0xff] }
 0x1fc   :  { %v3761_v33 = vld [vmem:[%s8498_s0 + $0x288] sm:$0xff] }
 0x201   :  { %4039 = vmatmul.mubr.bf16.vlgmr.msra.gmra.mrb[128].mxu1 %v616_v38  ;;  %v3863_v38 = vld [vmem:[%s8498_s0 + $0x122] sm:$0xff] }
 0x202   :  { %2498 = vmatmul.mubr.bf16.gmra.mrb[64].mxu0 %v749_v30  ;;  %4042 = vmatprep.mubr.bf16.mxu1 %v625_v31  ;;  %v3864_v30 = vld [vmem:[%s8498_s0 + $0x12a] sm:$0xff] }
 0x203   :  { %2505 = vmatprep.mubr.bf16.mxu0 %v759_v29  ;;  %v3821_v29 = vld [vmem:[%s8498_s0 + $0x259] sm:$0xff]  ;;  %v697_v58 = vpack.c.bf16 %v3864_v30, %v3863_v38  ;;  %v3874_v38 = vld [vmem:[%s8498_s0 + $0x1a2] sm:$0xff]  ;;  %v3762_v30 = vld [vmem:[%s8498_s0 + $0x290] sm:$0xff] }
 0x204   :  { %v795_v40 = vpack.c.bf16 %v3822_v52, %v3821_v29  ;;  %v3875_v29 = vld [vmem:[%s8498_s0 + $0x1e2] sm:$0xff]  ;;  %v3876_v52 = vld [vmem:[%s8498_s0 + $0x1ea] sm:$0xff] }
 0x209   :  { %4043 = vmatmul.mubr.bf16.gmra.mrb[132].mxu1 %v634_v45  ;;  %v3757_v45 = vld [vmem:[%s8498_s0 + $0x258] sm:$0xff] }
 0x20a   :  { %2506 = vmatmul.mubr.bf16.gmra.mrb[68].mxu0 %v758_v21  ;;  %4046 = vmatprep.mubr.bf16.mxu1 %v643_v0  ;;  %v3865_v21 = vld [vmem:[%s8498_s0 + $0x13a] sm:$0xff]  ;;  %v3866_v0 = vld [vmem:[%s8498_s0 + $0x142] sm:$0xff] }
 0x20b   :  { %2513 = vmatprep.mubr.bf16.mxu0 %v768_v39  ;;  %v3758_v39 = vld [vmem:[%s8498_s0 + $0x260] sm:$0xff]  ;;  %v706_v63 = vpack.c.bf16 %v3866_v0, %v3865_v21  ;;  %v751_v21 = vpack.c.bf16 %v3876_v52, %v3875_v29 }
 0x211   :  { %4047 = vmatmul.mubr.bf16.gmra.mrb[136].mxu1 %v652_v57  ;;  %v794_v57 = vpack.c.bf16 %v3758_v39, %v3757_v45  ;;  %v812_v45 = vpack.c.bf16 %v3762_v30, %v3761_v33  ;;  %v3832_v33 = vld [vmem:[%s8498_s0 + $0x2d9] sm:$0xff] }
 0x212   :  { %2514 = vmatmul.mubr.bf16.gmra.mrb[72].mxu0 %v767_v27  ;;  %4050 = vmatprep.mubr.bf16.mxu1 %v661_v19  ;;  %v715_v27 = vpack.c.bf16 %v3868_v34, %v3867_v55  ;;  %v3763_v55 = vld [vmem:[%s8498_s0 + $0x2a0] sm:$0xff] }
 0x213   :  { %2521 = vmatprep.mubr.bf16.mxu0 %v777_v24  ;;  %v804_v24 = vpack.c.bf16 %v3824_v48, %v3823_v60  ;;  %v3877_v34 = vld [vmem:[%s8498_s0 + $0x1fa] sm:$0xff]  ;;  %v3878_v60 = vld [vmem:[%s8498_s0 + $0x202] sm:$0xff] }
 0x214   :  { %v6260_v13 = vpop.f32.mrb[32].mxu1  ;;  %v3764_v48 = vld [vmem:[%s8498_s0 + $0x2a8] sm:$0xff] }
 0x215   :  { %v1859_v28 = vpop.f32.mrb[33].mxu1 }
 0x216   :  { %v6268_v26 = vpop.f32.mrb[34].mxu1  ;;  %v3826_v28 = vld [vmem:[%s8498_s0 + $0x291] sm:$0xff] }
 0x217   :  { %v1862_v44 = vpop.f32.mrb[35].mxu1  ;;  %v813_v3 = vpack.c.bf16 %v3826_v28, %v3825_v43  ;;  %v3765_v43 = vld [vmem:[%s8498_s0 + $0x2b8] sm:$0xff]  ;;  %v3881_v28 = vld [vmem:[%s8498_s0 + $0x22a] sm:$0xff] }
 0x218   :  { %v803_v44 = vpack.c.bf16 %v3760_v2, %v3759_v47  ;;  %v760_v47 = vpack.c.bf16 %v3878_v60, %v3877_v34  ;;  %v3833_v34 = vld [vmem:[%s8498_s0 + $0x2e9] sm:$0xff]  ;;  %v3834_v60 = vld [vmem:[%s8498_s0 + $0x2f1] sm:$0xff] }
 0x219   :  { %4051 = vmatmul.mubr.bf16.gmra.mrb[140].mxu1 %v670_v5 }
 0x21a   :  { %2522 = vmatmul.mubr.bf16.gmra.mrb[76].mxu0 %v776_v32  ;;  %4054 = vmatprep.mubr.bf16.mxu1 %v679_v9  ;;  %v724_v32 = vpack.c.bf16 %v3870_v12, %v3869_v54  ;;  %v821_v12 = vpack.c.bf16 %v3764_v48, %v3763_v55 }
 0x21b   :  { %2529 = vmatprep.mubr.bf16.mxu0 %v786_v36  ;;  %v733_v36 = vpack.c.bf16 %v3872_v41, %v3871_v15 }
 0x21c   :  { %v6288_v31 = vpop.f32.mrb[36].mxu1 }
 0x21d   :  { %v1867_v14 = vpop.f32.mrb[37].mxu1 }
 0x21e   :  { %v6296_v11 = vpop.f32.mrb[38].mxu1 }
 0x21f   :  { %v1870_v6 = vpop.f32.mrb[39].mxu1 }
 0x220   :  { %v742_v6 = vpack.c.bf16 %v3874_v38, %v3873_v46 }
 0x221   :  { %4055 = vmatmul.mubr.bf16.gmra.mrb[144].mxu1 %v688_v20  ;;  %v3827_v20 = vld [vmem:[%s8498_s0 + $0x2a1] sm:$0xff] }
 0x222   :  { %2530 = vmatmul.mubr.bf16.gmra.mrb[80].mxu0 %v785_v49  ;;  %4058 = vmatprep.mubr.bf16.mxu1 %v697_v58  ;;  %v3828_v49 = vld [vmem:[%s8498_s0 + $0x2a9] sm:$0xff] }
 0x223   :  { %2537 = vmatprep.mubr.bf16.mxu0 %v795_v40  ;;  %v822_v39 = vpack.c.bf16 %v3828_v49, %v3827_v20 }
 0x224   :  { %v6316_v4 = vpop.f32.mrb[40].mxu1 }
 0x225   :  { %v1875_v50 = vpop.f32.mrb[41].mxu1 }
 0x226   :  { %v6324_v10 = vpop.f32.mrb[42].mxu1  ;;  %v3879_v50 = vld [vmem:[%s8498_s0 + $0x212] sm:$0xff] }
 0x227   :  { %v1878_v19 = vpop.f32.mrb[43].mxu1 }
 0x228   :  { %v3830_v19 = vld [vmem:[%s8498_s0 + $0x2c1] sm:$0xff] }
 0x229   :  { %4059 = vmatmul.mubr.bf16.gmra.mrb[148].mxu1 %v706_v63  ;;  %v3880_v63 = vld [vmem:[%s8498_s0 + $0x21a] sm:$0xff] }
 0x22a   :  { %2538 = vmatmul.mubr.bf16.gmra.mrb[84].mxu0 %v794_v57  ;;  %4062 = vmatprep.mubr.bf16.mxu1 %v715_v27  ;;  %v3829_v27 = vld [vmem:[%s8498_s0 + $0x2b9] sm:$0xff]  ;;  %v769_v2 = vpack.c.bf16 %v3880_v63, %v3879_v50 }
 0x22b   :  { %2545 = vmatprep.mubr.bf16.mxu0 %v804_v24  ;;  %v831_v41 = vpack.c.bf16 %v3830_v19, %v3829_v27 }
 0x22c   :  { %v6344_v37 = vpop.f32.mrb[44].mxu1 }
 0x22d   :  { %v1883_v5 = vpop.f32.mrb[45].mxu1 }
 0x22e   :  { %v6352_v9 = vpop.f32.mrb[46].mxu1  ;;  %v3882_v5 = vld [vmem:[%s8498_s0 + $0x232] sm:$0xff] }
 0x22f   :  { %v1886_v51 = vpop.f32.mrb[47].mxu1  ;;  %v778_v38 = vpack.c.bf16 %v3882_v5, %v3881_v28  ;;  %v3891_v28 = vld [vmem:[%s8498_s0 + $0x2a2] sm:$0xff]  ;;  %v3892_v5 = vld [vmem:[%s8498_s0 + $0x2aa] sm:$0xff] }
 0x231   :  { %4063 = vmatmul.mubr.bf16.gmra.mrb[152].mxu1 %v724_v32  ;;  %v3766_v32 = vld [vmem:[%s8498_s0 + $0x2c0] sm:$0xff] }
 0x232   :  { %2546 = vmatmul.mubr.bf16.gmra.mrb[88].mxu0 %v803_v44  ;;  %4066 = vmatprep.mubr.bf16.mxu1 %v733_v36  ;;  %v3883_v44 = vld [vmem:[%s8498_s0 + $0x242] sm:$0xff]  ;;  %v3884_v36 = vld [vmem:[%s8498_s0 + $0x24a] sm:$0xff]  ;;  %v830_v29 = vpack.c.bf16 %v3766_v32, %v3765_v43 }
 0x233   :  { %2553 = vmatprep.mubr.bf16.mxu0 %v813_v3  ;;  %v3831_v3 = vld [vmem:[%s8498_s0 + $0x2d1] sm:$0xff]  ;;  %v787_v52 = vpack.c.bf16 %v3884_v36, %v3883_v44  ;;  %v3835_v36 = vld [vmem:[%s8498_s0 + $0x301] sm:$0xff] }
 0x234   :  { %v6372_v14 = vpop.f32.mrb[48].mxu1  ;;  %v840_v49 = vpack.c.bf16 %v3832_v33, %v3831_v3  ;;  %v3770_v43 = vld [vmem:[%s8498_s0 + $0x2f0] sm:$0xff] }
 0x235   :  { %v1891_v58 = vpop.f32.mrb[49].mxu1  ;;  %v3836_v3 = vld [vmem:[%s8498_s0 + $0x309] sm:$0xff] }
 0x236   :  { %v6380_v40 = vpop.f32.mrb[50].mxu1  ;;  %v3767_v58 = vld [vmem:[%s8498_s0 + $0x2d0] sm:$0xff] }
 0x237   :  { %v1894_v0 = vpop.f32.mrb[51].mxu1 }
 0x238   :  { %v3887_v0 = vld [vmem:[%s8498_s0 + $0x272] sm:$0xff] }
 0x239   :  { %4067 = vmatmul.mubr.bf16.gmra.mrb[156].mxu1 %v742_v6  ;;  %v3885_v6 = vld [vmem:[%s8498_s0 + $0x25a] sm:$0xff] }
 0x23a   :  { %2554 = vmatmul.mubr.bf16.gmra.mrb[92].mxu0 %v812_v45  ;;  %4070 = vmatprep.mubr.bf16.mxu1 %v751_v21  ;;  %v3886_v45 = vld [vmem:[%s8498_s0 + $0x262] sm:$0xff]  ;;  %v3768_v21 = vld [vmem:[%s8498_s0 + $0x2d8] sm:$0xff] }
 0x23b   :  { %2561 = vmatprep.mubr.bf16.mxu0 %v822_v39  ;;  %v3888_v39 = vld [vmem:[%s8498_s0 + $0x27a] sm:$0xff]  ;;  %v796_v50 = vpack.c.bf16 %v3886_v45, %v3885_v6  ;;  %v839_v27 = vpack.c.bf16 %v3768_v21, %v3767_v58  ;;  %v823_v58 = vpack.c.bf16 %v3892_v5, %v3891_v28  ;;  %v858_v21 = vpack.c.bf16 %v3836_v3, %v3835_v36 }
 0x23c   :  { %v6400_v57 = vpop.f32.mrb[52].mxu1  ;;  %v805_v19 = vpack.c.bf16 %v3888_v39, %v3887_v0 }
 0x23d   :  { %v1899_v24 = vpop.f32.mrb[53].mxu1 }
 0x23e   :  { %v6408_v54 = vpop.f32.mrb[54].mxu1 }
 0x23f   :  { %v1902_v15 = vpop.f32.mrb[55].mxu1 }
 0x240   :  { %v3889_v15 = vld [vmem:[%s8498_s0 + $0x28a] sm:$0xff] }
 0x241   :  { %4071 = vmatmul.mubr.bf16.gmra.mrb[160].mxu1 %v760_v47  ;;  %v849_v47 = vpack.c.bf16 %v3834_v60, %v3833_v34  ;;  %v3893_v34 = vld [vmem:[%s8498_s0 + $0x2ba] sm:$0xff]  ;;  %v3894_v60 = vld [vmem:[%s8498_s0 + $0x2c2] sm:$0xff] }
 0x242   :  { %2562 = vmatmul.mubr.bf16.gmra.mrb[96].mxu0 %v821_v12  ;;  %4074 = vmatprep.mubr.bf16.mxu1 %v769_v2  ;;  %v6469_v12 = vld [vmem:[%s8499_s2] ss:$0 sm:$0xff]  ;;  %v3769_v2 = vld [vmem:[%s8498_s0 + $0x2e8] sm:$0xff] }
 0x243   :  { %2569 = vmatprep.mubr.bf16.mxu0 %v831_v41  ;;  %v3890_v41 = vld [vmem:[%s8498_s0 + $0x292] sm:$0xff]  ;;  %v1505_v32 = vadd.f32 %v6469_v12, %v5656_v42  ;;  %v1516_v28 = vadd.f32 %v6469_v12, %v5698_v18 }
 0x244   :  { %v6428_v51 = vpop.f32.mrb[56].mxu1  ;;  %v3773_v18 = vld [vmem:[%s8498_s0 + $0x318] sm:$0xff] }
 0x245   :  { %v1907_v46 = vpop.f32.mrb[57].mxu1 }
 0x246   :  { %v6436_v30 = vpop.f32.mrb[58].mxu1 }
 0x247   :  { %v1910_v20 = vpop.f32.mrb[59].mxu1 }
 0x249   :  { %4075 = vmatmul.mubr.bf16.gmra.mrb[164].mxu1 %v778_v38  ;;  %v814_v38 = vpack.c.bf16 %v3890_v41, %v3889_v15 }
 0x24a   :  { %2570 = vmatmul.mubr.bf16.gmra.mrb[100].mxu0 %v830_v29  ;;  %4078 = vmatprep.mubr.bf16.mxu1 %v787_v52  ;;  %v1508_v29 = vadd.f32 %v6469_v12, %v5666_v53  ;;  %v3771_v53 = vld [vmem:[%s8498_s0 + $0x300] sm:$0xff] }
 0x24b   :  { %2577 = vmatprep.mubr.bf16.mxu0 %v840_v49  ;;  %v848_v49 = vpack.c.bf16 %v3770_v43, %v3769_v2  ;;  %v3838_v2 = vld [vmem:[%s8498_s0 + $0x321] sm:$0xff]  ;;  %v832_v43 = vpack.c.bf16 %v3894_v60, %v3893_v34  ;;  %v3839_v34 = vld [vmem:[%s8498_s0 + $0x331] sm:$0xff]  ;;  %v3840_v60 = vld [vmem:[%s8498_s0 + $0x339] sm:$0xff] }
 0x24c   :  { %v6456_v55 = vpop.f32.mrb[60].mxu1 }
 0x24d   :  { %v1915_v48 = vpop.f32.mrb[61].mxu1 }
 0x24e   :  { %v6464_v63 = vpop.f32.mrb[62].mxu1  ;;  %v3772_v48 = vld [vmem:[%s8498_s0 + $0x308] sm:$0xff] }
 0x24f   :  { %v1918_v24 = vpop.f32.mrb[63].mxu1  ;;  %v857_v36 = vpack.c.bf16 %v3772_v48, %v3771_v53 }
 0x251   :  { %4079 = vmatmul.mubr.bf16.gmra.mrb[168].mxu1 %v796_v50  ;;  %v3895_v50 = vld [vmem:[%s8498_s0 + $0x2d2] sm:$0xff] }
 0x252   :  { %2578 = vmatmul.mubr.bf16.gmra.mrb[104].mxu0 %v839_v27  ;;  %4082 = vmatprep.mubr.bf16.mxu1 %v805_v19  ;;  %v3896_v27 = vld [vmem:[%s8498_s0 + $0x2da] sm:$0xff]  ;;  %v1513_v19 = vadd.f32 %v6469_v12, %v5688_v16 }
 0x253   :  { %2585 = vmatprep.mubr.bf16.mxu0 %v849_v47  ;;  %v3837_v47 = vld [vmem:[%s8498_s0 + $0x319] sm:$0xff]  ;;  %v841_v3 = vpack.c.bf16 %v3896_v27, %v3895_v50 }
 0x254   :  { %v6491_v44 = vpop.f32.mrb[64].mxu1 }
 0x255   :  { %v2371_v33 = vpop.f32.mrb[0].mxu0  ;;  %v1923_v46 = vpop.f32.mrb[65].mxu1 }
 0x256   :  { %v6501_v52 = vadd.f32 %v2371_v33, %v1505_v32  ;;  %v2373_v20 = vpop.f32.mrb[1].mxu0  ;;  %v6503_v42 = vpop.f32.mrb[66].mxu1 }
 0x257   :  { %v2374_v6 = vpop.f32.mrb[2].mxu0  ;;  %v1926_v45 = vpop.f32.mrb[67].mxu1 }
 0x258   :  { %v6505_v0 = vadd.f32 %v2374_v6, %v1508_v29  ;;  %v2376_v39 = vpop.f32.mrb[3].mxu0  ;;  %v3774_v6 = vld [vmem:[%s8498_s0 + $0x320] sm:$0xff] }
 0x259   :  { %4083 = vmatmul.mubr.bf16.gmra.mrb[172].mxu1 %v814_v38  ;;  %v867_v38 = vpack.c.bf16 %v3838_v2, %v3837_v47  ;;  %v3899_v45 = vld [vmem:[%s8498_s0 + $0x302] sm:$0xff]  ;;  %v1521_v39 = vadd.f32 %v6469_v12, %v5720_v62 }
 0x25a   :  { %2586 = vmatmul.mubr.bf16.gmra.mrb[108].mxu0 %v848_v49  ;;  %4086 = vmatprep.mubr.bf16.mxu1 %v823_v58  ;;  %v3897_v49 = vld [vmem:[%s8498_s0 + $0x2ea] sm:$0xff]  ;;  %v3898_v58 = vld [vmem:[%s8498_s0 + $0x2f2] sm:$0xff] }
 0x25b   :  { %2593 = vmatprep.mubr.bf16.mxu0 %v858_v21  ;;  %v3900_v21 = vld [vmem:[%s8498_s0 + $0x30a] sm:$0xff]  ;;  %v850_v27 = vpack.c.bf16 %v3898_v58, %v3897_v49 }
 0x25c   :  { %v6527_v24 = vpop.f32.mrb[68].mxu1  ;;  %v3841_v49 = vld [vmem:[%s8498_s0 + $0x349] sm:$0xff]  ;;  %v3842_v58 = vld [vmem:[%s8498_s0 + $0x351] sm:$0xff] }
 0x25d   :  { %v2379_v15 = vpop.f32.mrb[4].mxu0  ;;  %v1931_v41 = vpop.f32.mrb[69].mxu1 }
 0x25e   :  { %v6537_v5 = vadd.f32 %v2379_v15, %v1513_v19  ;;  %v2381_v32 = vpop.f32.mrb[5].mxu0  ;;  %v6539_v16 = vpop.f32.mrb[70].mxu1  ;;  %v1524_v19 = vadd.f32 %v6469_v12, %v5730_v56  ;;  %v866_v15 = vpack.c.bf16 %v3774_v6, %v3773_v18  ;;  %v859_v41 = vpack.c.bf16 %v3900_v21, %v3899_v45  ;;  %v3901_v56 = vld [vmem:[%s8498_s0 + $0x31a] sm:$0xff] }
 0x25f   :  { %v2382_v33 = vpop.f32.mrb[6].mxu0  ;;  %v1934_v46 = vpop.f32.mrb[71].mxu1  ;;  %v876_v32 = vpack.c.bf16 %v3840_v60, %v3839_v34 }
 0x260   :  { %v6541_v29 = vadd.f32 %v2382_v33, %v1516_v28  ;;  %v2384_v20 = vpop.f32.mrb[7].mxu0  ;;  %v3902_v33 = vld [vmem:[%s8498_s0 + $0x322] sm:$0xff]  ;;  %v3903_v46 = vld [vmem:[%s8498_s0 + $0x332] sm:$0xff] }
 0x261   :  { %4087 = vmatmul.mubr.bf16.gmra.mrb[176].mxu1 %v832_v43  ;;  %v1529_v20 = vadd.f32 %v6469_v12, %v5752_v59  ;;  %v868_v21 = vpack.c.bf16 %v3902_v33, %v3901_v56 }
 0x262   :  { %2594 = vmatmul.mubr.bf16.gmra.mrb[112].mxu0 %v857_v36  ;;  %4090 = vmatprep.mubr.bf16.mxu1 %v841_v3 }
 0x263   :  { %2601 = vmatprep.mubr.bf16.mxu0 %v867_v38  ;;  %v3904_v38 = vld [vmem:[%s8498_s0 + $0x33a] sm:$0xff] }
 0x264   :  { %v6563_v53 = vpop.f32.mrb[72].mxu1 }
 0x265   :  { %v2387_v48 = vpop.f32.mrb[8].mxu0  ;;  %v1939_v50 = vpop.f32.mrb[73].mxu1 }
 0x266   :  { %v6573_v47 = vadd.f32 %v2387_v48, %v1521_v39  ;;  %v2389_v2 = vpop.f32.mrb[9].mxu0  ;;  %v6575_v62 = vpop.f32.mrb[74].mxu1  ;;  %v1532_v39 = vadd.f32 %v6469_v12, %v5762_v61  ;;  %v877_v48 = vpack.c.bf16 %v3904_v38, %v3903_v46  ;;  %v3905_v61 = vld [vmem:[%s8498_s0 + $0x34a] sm:$0xff]  ;;  %v1540_v38 = vadd.f32 %v6469_v12, %v5788_v23 }
 0x267   :  { %v2390_v43 = vpop.f32.mrb[10].mxu0  ;;  %v1942_v28 = vpop.f32.mrb[75].mxu1 }
 0x268   :  { %v6577_v36 = vadd.f32 %v2390_v43, %v1524_v19  ;;  %v2392_v3 = vpop.f32.mrb[11].mxu0  ;;  %v885_v19 = vpack.c.bf16 %v3842_v58, %v3841_v49  ;;  %v3777_v43 = vld [vmem:[%s8498_s0 + $0x348] sm:$0xff]  ;;  %v3778_v28 = vld [vmem:[%s8498_s0 + $0x350] sm:$0xff] }
 0x269   :  { %4091 = vmatmul.mubr.bf16.gmra.mrb[180].mxu1 %v850_v27 }
 0x26a   :  { %2602 = vmatmul.mubr.bf16.gmra.mrb[116].mxu0 %v866_v15  ;;  %4094 = vmatprep.mubr.bf16.mxu1 %v859_v41  ;;  %v3906_v41 = vld [vmem:[%s8498_s0 + $0x352] sm:$0xff] }
 0x26b   :  { %2609 = vmatprep.mubr.bf16.mxu0 %v876_v32  ;;  %v8547_v32 = vld [vmem:[#allocation2_spill] sm:$0xff]  ;;  %v886_v46 = vpack.c.bf16 %v3906_v41, %v3905_v61 }
 0x26c   :  { %v6593_v18 = vpop.f32.mrb[76].mxu1 }
 0x26d   :  { %v2395_v6 = vpop.f32.mrb[12].mxu0  ;;  %v1947_v45 = vpop.f32.mrb[77].mxu1 }
 0x26e   :  { %v6603_v34 = vadd.f32 %v2395_v6, %v1529_v20  ;;  %v2397_v60 = vpop.f32.mrb[13].mxu0  ;;  %v6605_v59 = vpop.f32.mrb[78].mxu1  ;;  %v884_v6 = vpack.c.bf16 %v3778_v28, %v3777_v43 }
 0x26f   :  { %v2398_v50 = vpop.f32.mrb[14].mxu0  ;;  %v1950_v27 = vpop.f32.mrb[79].mxu1 }
 0x270   :  { %v6607_v2 = vadd.f32 %v2398_v50, %v1532_v39  ;;  %v2400_v15 = vpop.f32.mrb[15].mxu0 }
 0x271   :  { %4095 = vmatmul.mubr.bf16.gmra.mrb[184].mxu1 %v868_v21 }
 0x272   :  { %2610 = vmatmul.mubr.bf16.gmra.mrb[120].mxu0 %v6146_v8  ;;  %4098 = vmatprep.mubr.bf16.mxu1 %v877_v48  ;;  %v1537_v8 = vadd.f32 %v6469_v12, %v8547_v32  ;;  %v1545_v48 = vadd.f32 %v6469_v12, %v5796_v17  ;;  %v1553_v17 = vadd.f32 %v6469_v12, %v5819_v7 }
 0x273   :  { %2617 = vmatprep.mubr.bf16.mxu0 %v885_v19  ;;  %v1548_v19 = vadd.f32 %v6469_v12, %v5804_v25  ;;  %v1556_v25 = vadd.f32 %v6469_v12, %v5827_v1  ;;  %v1561_v7 = vadd.f32 %v6469_v12, %v5838_v22  ;;  %v1564_v1 = vadd.f32 %v6469_v12, %v5849_v35 }
 0x274   :  { %v6624_v3 = vpop.f32.mrb[80].mxu1  ;;  %v4166_v22 = vadd.f32 %v6469_v12, %v6260_v13  ;;  %v4168_v35 = vadd.f32 %v6469_v12, %v6268_v26  ;;  %v4170_v13 = vadd.f32 %v6469_v12, %v6288_v31  ;;  %v4172_v26 = vadd.f32 %v6469_v12, %v6296_v11 }
 0x275   :  { %v2403_v56 = vpop.f32.mrb[16].mxu0  ;;  %v1955_v33 = vpop.f32.mrb[81].mxu1  ;;  %v4174_v31 = vadd.f32 %v6469_v12, %v6316_v4  ;;  %v4176_v11 = vadd.f32 %v6469_v12, %v6324_v10  ;;  %v4178_v4 = vadd.f32 %v6469_v12, %v6344_v37  ;;  %v4180_v10 = vadd.f32 %v6469_v12, %v6352_v9 }
 0x276   :  { %v6628_v20 = vadd.f32 %v2403_v56, %v1537_v8  ;;  %v2405_v49 = vpop.f32.mrb[17].mxu0  ;;  %v6630_v58 = vpop.f32.mrb[82].mxu1  ;;  %v4182_v37 = vadd.f32 %v6469_v12, %v6372_v14  ;;  %v4184_v9 = vadd.f32 %v6469_v12, %v6380_v40  ;;  %v4186_v14 = vadd.f32 %v6469_v12, %v6400_v57 }
 0x277   :  { %v2406_v45 = vpop.f32.mrb[18].mxu0  ;;  %v1958_v21 = vpop.f32.mrb[83].mxu1  ;;  %v4188_v40 = vadd.f32 %v6469_v12, %v6408_v54  ;;  %v4190_v57 = vadd.f32 %v6469_v12, %v6428_v51  ;;  %v4192_v54 = vadd.f32 %v6469_v12, %v6436_v30  ;;  %v4194_v51 = vadd.f32 %v6469_v12, %v6456_v55 }
 0x278   :  { %v6632_v39 = vadd.f32 %v2406_v45, %v1540_v38  ;;  %v2408_v60 = vpop.f32.mrb[19].mxu0  ;;  %v4196_v30 = vadd.f32 %v6469_v12, %v6464_v63  ;;  %v4198_v55 = vadd.f32 %v6469_v12, %v6491_v44  ;;  %v4200_v63 = vadd.f32 %v6469_v12, %v6503_v42 }
 0x279   :  { %4099 = vmatmul.mubr.bf16.gmra.mrb[188].mxu1 %v886_v46 }
 0x27a   :  { %2618 = vmatmul.mubr.bf16.gmra.mrb[124].mxu0 %v884_v6 }
 0x27c   :  { %v6636_v50 = vpop.f32.mrb[84].mxu1 }
 0x27d   :  { %v2411_v27 = vpop.f32.mrb[20].mxu0  ;;  %v1963_v23 = vpop.f32.mrb[85].mxu1 }
 0x27e   :  { %v6640_v15 = vadd.f32 %v2411_v27, %v1545_v48  ;;  %v2413_v61 = vpop.f32.mrb[21].mxu0  ;;  %v6642_v41 = vpop.f32.mrb[86].mxu1 }
 0x27f   :  { %v2414_v43 = vpop.f32.mrb[22].mxu0  ;;  %v1966_v28 = vpop.f32.mrb[87].mxu1 }
 0x280   :  { %v6644_v32 = vadd.f32 %v2414_v43, %v1548_v19  ;;  %v2416_v8 = vpop.f32.mrb[23].mxu0 }
 0x284   :  { %v6648_v56 = vpop.f32.mrb[88].mxu1 }
 0x285   :  { %v2419_v33 = vpop.f32.mrb[24].mxu0  ;;  %v1971_v46 = vpop.f32.mrb[89].mxu1 }
 0x286   :  { %v6652_v38 = vadd.f32 %v2419_v33, %v1553_v17  ;;  %v2421_v49 = vpop.f32.mrb[25].mxu0  ;;  %v6654_v6 = vpop.f32.mrb[90].mxu1 }
 0x287   :  { %v2422_v45 = vpop.f32.mrb[26].mxu0  ;;  %v1974_v21 = vpop.f32.mrb[91].mxu1 }
 0x288   :  { %v6656_v60 = vadd.f32 %v2422_v45, %v1556_v25  ;;  %v2424_v48 = vpop.f32.mrb[27].mxu0 }
 0x28c   :  { %v6660_v27 = vpop.f32.mrb[92].mxu1 }
 0x28d   :  { %v2427_v23 = vpop.f32.mrb[28].mxu0  ;;  %v1979_v19 = vpop.f32.mrb[93].mxu1 }
 0x28e   :  { %v6664_v61 = vadd.f32 %v2427_v23, %v1561_v7  ;;  %v2429_v43 = vpop.f32.mrb[29].mxu0  ;;  %v6666_v28 = vpop.f32.mrb[94].mxu1 }
 0x28f   :  { %v2430_v8 = vpop.f32.mrb[30].mxu0  ;;  %v1982_v17 = vpop.f32.mrb[95].mxu1 }
 0x290   :  { %v6668_v33 = vadd.f32 %v2430_v8, %v1564_v1  ;;  %v2432_v46 = vpop.f32.mrb[31].mxu0 }
 0x294   :  { %v6672_v25 = vpop.f32.mrb[96].mxu1 }
 0x295   :  { %v2435_v49 = vpop.f32.mrb[32].mxu0  ;;  %v1987_v45 = vpop.f32.mrb[97].mxu1 }
 0x296   :  { %v6676_v21 = vadd.f32 %v4166_v22, %v2435_v49  ;;  %v2437_v48 = vpop.f32.mrb[33].mxu0  ;;  %v6678_v7 = vpop.f32.mrb[98].mxu1 }
 0x297   :  { %8548 = vst [vmem:[#allocation2_spill] sm:$0xff] %v6678_v7  ;;  %v2438_v23 = vpop.f32.mrb[34].mxu0  ;;  %v1990_v19 = vpop.f32.mrb[99].mxu1 }
 0x298   :  { %v6680_v1 = vadd.f32 %v4168_v35, %v2438_v23  ;;  %v2440_v43 = vpop.f32.mrb[35].mxu0 }
 0x29c   :  { %v6684_v8 = vpop.f32.mrb[100].mxu1 }
 0x29d   :  { %8549 = vst [vmem:[#allocation3_spill] sm:$0xff] %v6684_v8  ;;  %v2443_v17 = vpop.f32.mrb[36].mxu0  ;;  %v1995_v46 = vpop.f32.mrb[101].mxu1 }
 0x29e   :  { %v6688_v22 = vadd.f32 %v4170_v13, %v2443_v17  ;;  %v2445_v49 = vpop.f32.mrb[37].mxu0  ;;  %v6690_v45 = vpop.f32.mrb[102].mxu1 }
 0x29f   :  { %8550 = vst [vmem:[#allocation4_spill] sm:$0xff] %v6690_v45  ;;  %v2446_v48 = vpop.f32.mrb[38].mxu0  ;;  %v1998_v19 = vpop.f32.mrb[103].mxu1 }
 0x2a0   :  { %v6692_v35 = vadd.f32 %v4172_v26, %v2446_v48  ;;  %v2448_v23 = vpop.f32.mrb[39].mxu0 }
 0x2a4   :  { %v6696_v43 = vpop.f32.mrb[104].mxu1 }
 0x2a5   :  { %8551 = vst [vmem:[#allocation5_spill] sm:$0xff] %v6696_v43  ;;  %v2451_v8 = vpop.f32.mrb[40].mxu0  ;;  %v2003_v46 = vpop.f32.mrb[105].mxu1 }
 0x2a6   :  { %v6700_v13 = vadd.f32 %v4174_v31, %v2451_v8  ;;  %v2453_v17 = vpop.f32.mrb[41].mxu0  ;;  %v6702_v49 = vpop.f32.mrb[106].mxu1 }
 0x2a7   :  { %8552 = vst [vmem:[#allocation6_spill] sm:$0xff] %v6702_v49  ;;  %v2454_v45 = vpop.f32.mrb[42].mxu0  ;;  %v2006_v19 = vpop.f32.mrb[107].mxu1 }
 0x2a8   :  { %v6704_v26 = vadd.f32 %v4176_v11, %v2454_v45  ;;  %v2456_v48 = vpop.f32.mrb[43].mxu0 }
 0x2ac   :  { %v6708_v23 = vpop.f32.mrb[108].mxu1 }
 0x2ad   :  { %8553 = vst [vmem:[#allocation7_spill] sm:$0xff] %v6708_v23  ;;  %v2459_v43 = vpop.f32.mrb[44].mxu0  ;;  %v2011_v46 = vpop.f32.mrb[109].mxu1 }
 0x2ae   :  { %v6712_v8 = vadd.f32 %v4178_v4, %v2459_v43  ;;  %v2461_v31 = vpop.f32.mrb[45].mxu0  ;;  %v6714_v17 = vpop.f32.mrb[110].mxu1 }
 0x2af   :  { %8554 = vst [vmem:[#allocation8_spill] sm:$0xff] %v6714_v17  ;;  %v2462_v49 = vpop.f32.mrb[46].mxu0  ;;  %v2014_v19 = vpop.f32.mrb[111].mxu1 }
 0x2b0   :  { %v6716_v45 = vadd.f32 %v4180_v10, %v2462_v49  ;;  %v2464_v11 = vpop.f32.mrb[47].mxu0 }
 0x2b4   :  { %v6720_v48 = vpop.f32.mrb[112].mxu1 }
 0x2b5   :  { %8555 = vst [vmem:[#allocation9_spill] sm:$0xff] %v6720_v48  ;;  %v2467_v23 = vpop.f32.mrb[48].mxu0  ;;  %v2019_v46 = vpop.f32.mrb[113].mxu1 }
 0x2b6   :  { %v6724_v43 = vadd.f32 %v4182_v37, %v2467_v23  ;;  %v2469_v4 = vpop.f32.mrb[49].mxu0  ;;  %v6726_v31 = vpop.f32.mrb[114].mxu1 }
 0x2b7   :  { %8556 = vst [vmem:[#allocation10_spill] sm:$0xff] %v6726_v31  ;;  %v2470_v17 = vpop.f32.mrb[50].mxu0  ;;  %v2022_v19 = vpop.f32.mrb[115].mxu1 }
 0x2b8   :  { %v6728_v49 = vadd.f32 %v4184_v9, %v2470_v17  ;;  %v2472_v10 = vpop.f32.mrb[51].mxu0 }
 0x2bc   :  { %v6732_v11 = vpop.f32.mrb[116].mxu1 }
 0x2bd   :  { %8557 = vst [vmem:[#allocation11_spill] sm:$0xff] %v6732_v11  ;;  %v2475_v48 = vpop.f32.mrb[52].mxu0  ;;  %v2027_v46 = vpop.f32.mrb[117].mxu1 }
 0x2be   :  { %v6736_v23 = vadd.f32 %v4186_v14, %v2475_v48  ;;  %v2477_v37 = vpop.f32.mrb[53].mxu0  ;;  %v6738_v4 = vpop.f32.mrb[118].mxu1 }
 0x2bf   :  { %8558 = vst [vmem:[#allocation12_spill] sm:$0xff] %v6738_v4  ;;  %v2478_v31 = vpop.f32.mrb[54].mxu0  ;;  %v2030_v19 = vpop.f32.mrb[119].mxu1 }
 0x2c0   :  { %v6740_v17 = vadd.f32 %v4188_v40, %v2478_v31  ;;  %v2480_v9 = vpop.f32.mrb[55].mxu0 }
 0x2c4   :  { %v6744_v10 = vpop.f32.mrb[120].mxu1 }
 0x2c5   :  { %8559 = vst [vmem:[#allocation13_spill] sm:$0xff] %v6744_v10  ;;  %v2483_v11 = vpop.f32.mrb[56].mxu0  ;;  %v2035_v46 = vpop.f32.mrb[121].mxu1 }
 0x2c6   :  { %v6748_v48 = vadd.f32 %v4190_v57, %v2483_v11  ;;  %v2485_v14 = vpop.f32.mrb[57].mxu0  ;;  %v6750_v37 = vpop.f32.mrb[122].mxu1 }
 0x2c7   :  { %8560 = vst [vmem:[#allocation14_spill] sm:$0xff] %v6750_v37  ;;  %v2486_v4 = vpop.f32.mrb[58].mxu0  ;;  %v2038_v19 = vpop.f32.mrb[123].mxu1 }
 0x2c8   :  { %v6752_v31 = vadd.f32 %v4192_v54, %v2486_v4  ;;  %v2488_v40 = vpop.f32.mrb[59].mxu0 }
 0x2cc   :  { %v6756_v9 = vpop.f32.mrb[124].mxu1 }
 0x2cd   :  { %8561 = vst [vmem:[#allocation15_spill] sm:$0xff] %v6756_v9  ;;  %v2491_v10 = vpop.f32.mrb[60].mxu0  ;;  %v2043_v46 = vpop.f32.mrb[125].mxu1 }
 0x2ce   :  { %v6760_v11 = vadd.f32 %v4194_v51, %v2491_v10  ;;  %v2493_v57 = vpop.f32.mrb[61].mxu0  ;;  %v6762_v14 = vpop.f32.mrb[126].mxu1 }
 0x2cf   :  { %v2494_v37 = vpop.f32.mrb[62].mxu0  ;;  %v2046_v19 = vpop.f32.mrb[127].mxu1 }
 0x2d0   :  { %v6764_v4 = vadd.f32 %v4196_v30, %v2494_v37  ;;  %v2496_v54 = vpop.f32.mrb[63].mxu0 }
 0x2d4   :  { %v4040_v40 = vpop.f32.mrb[128].mxu1 }
 0x2d5   :  { %v2499_v9 = vpop.f32.mrb[64].mxu0  ;;  %v6769_v46 = vadd.f32 %v6537_v5, %v4040_v40  ;;  %v2660_v7 = vpop.f32.mrb[129].mxu1 }
 0x2d6   :  { %v6773_v10 = vadd.f32 %v4198_v55, %v2499_v9  ;;  %v2501_v51 = vpop.f32.mrb[65].mxu0  ;;  %v6776_v57 = vadd.f32 %v6501_v52, %v2660_v7  ;;  %v4041_v37 = vpop.f32.mrb[130].mxu1  ;;  %v4202_v9 = vadd.f32 %v6469_v12, %v6527_v24 }
 0x2d7   :  { %8562 = vst [vmem:[#allocation16_spill] sm:$0xff] %v6769_v46  ;;  %v2502_v30 = vpop.f32.mrb[66].mxu0  ;;  %v6779_v19 = vadd.f32 %v6541_v29, %v4041_v37  ;;  %v2663_v44 = vpop.f32.mrb[131].mxu1 }
 0x2d8   :  { %v6781_v54 = vadd.f32 %v4200_v63, %v2502_v30  ;;  %v2504_v5 = vpop.f32.mrb[67].mxu0  ;;  %v6784_v40 = vadd.f32 %v6505_v0, %v2663_v44  ;;  %v4204_v63 = vadd.f32 %v6469_v12, %v6539_v16 }
 0x2da   :  { %8563 = vst [vmem:[#allocation17_spill] sm:$0xff] %v6784_v40  ;;  %v2915_v42 = vadd.f32 %v6784_v40, %v6776_v57 }
 0x2dc   :  { %v2916_v52 = vadd.f32 %v2915_v42, %v6769_v46  ;;  %v4044_v7 = vpop.f32.mrb[132].mxu1 }
 0x2dd   :  { %v2507_v55 = vpop.f32.mrb[68].mxu0  ;;  %v6792_v29 = vadd.f32 %v6603_v34, %v4044_v7  ;;  %v2676_v51 = vpop.f32.mrb[133].mxu1 }
 0x2de   :  { %v6796_v37 = vadd.f32 %v4202_v9, %v2507_v55  ;;  %v2509_v0 = vpop.f32.mrb[69].mxu0  ;;  %v6799_v30 = vadd.f32 %v6573_v47, %v2676_v51  ;;  %v2917_v44 = vadd.f32 %v2916_v52, %v6779_v19  ;;  %v4045_v24 = vpop.f32.mrb[134].mxu1  ;;  %v4206_v47 = vadd.f32 %v6469_v12, %v6563_v53 }
 0x2df   :  { %v2510_v5 = vpop.f32.mrb[70].mxu0  ;;  %v6803_v42 = vadd.f32 %v6607_v2, %v4045_v24  ;;  %v2679_v46 = vpop.f32.mrb[135].mxu1 }
 0x2e0   :  { %v2918_v34 = vadd.f32 %v2917_v44, %v6799_v30  ;;  %v6806_v7 = vadd.f32 %v4204_v63, %v2510_v5  ;;  %v2512_v40 = vpop.f32.mrb[71].mxu0  ;;  %v6809_v16 = vadd.f32 %v6577_v36, %v2679_v46  ;;  %v4208_v63 = vadd.f32 %v6469_v12, %v6575_v62 }
 0x2e2   :  { %v2919_v9 = vadd.f32 %v2918_v34, %v6809_v16 }
 0x2e4   :  { %v2920_v52 = vadd.f32 %v2919_v9, %v6792_v29  ;;  %v4048_v55 = vpop.f32.mrb[136].mxu1 }
 0x2e5   :  { %v2515_v51 = vpop.f32.mrb[72].mxu0  ;;  %v6816_v2 = vadd.f32 %v6640_v15, %v4048_v55  ;;  %v2692_v0 = vpop.f32.mrb[137].mxu1 }
 0x2e6   :  { %v6820_v40 = vadd.f32 %v4206_v47, %v2515_v51  ;;  %v2517_v36 = vpop.f32.mrb[73].mxu0  ;;  %v6823_v46 = vadd.f32 %v6628_v20, %v2692_v0  ;;  %v2921_v44 = vadd.f32 %v2920_v52, %v6803_v42  ;;  %v4049_v53 = vpop.f32.mrb[138].mxu1  ;;  %v4210_v20 = vadd.f32 %v6469_v12, %v6593_v18 }
 0x2e7   :  { %v2518_v24 = vpop.f32.mrb[74].mxu0  ;;  %v6827_v5 = vadd.f32 %v6644_v32, %v4049_v53  ;;  %v2695_v34 = vpop.f32.mrb[139].mxu1 }
 0x2e8   :  { %v2922_v15 = vadd.f32 %v2921_v44, %v6823_v46  ;;  %v6830_v9 = vadd.f32 %v4208_v63, %v2518_v24  ;;  %v2520_v55 = vpop.f32.mrb[75].mxu0  ;;  %v6833_v62 = vadd.f32 %v6632_v39, %v2695_v34  ;;  %v4212_v63 = vadd.f32 %v6469_v12, %v6605_v59 }
 0x2ea   :  { %v2923_v47 = vadd.f32 %v2922_v15, %v6833_v62 }
 0x2ec   :  { %v2924_v52 = vadd.f32 %v2923_v47, %v6816_v2  ;;  %v4052_v51 = vpop.f32.mrb[140].mxu1 }
 0x2ed   :  { %v2523_v0 = vpop.f32.mrb[76].mxu0  ;;  %v6840_v32 = vadd.f32 %v6664_v61, %v4052_v51  ;;  %v2708_v36 = vpop.f32.mrb[141].mxu1 }
 0x2ee   :  { %v6844_v44 = vadd.f32 %v4210_v20, %v2523_v0  ;;  %v2525_v39 = vpop.f32.mrb[77].mxu0  ;;  %v6847_v53 = vadd.f32 %v6652_v38, %v2708_v36  ;;  %v2925_v24 = vadd.f32 %v2924_v52, %v6827_v5  ;;  %v4053_v18 = vpop.f32.mrb[142].mxu1  ;;  %v4214_v38 = vadd.f32 %v6469_v12, %v6624_v3 }
 0x2ef   :  { %v2526_v34 = vpop.f32.mrb[78].mxu0  ;;  %v6851_v15 = vadd.f32 %v6668_v33, %v4053_v18  ;;  %v2711_v55 = vpop.f32.mrb[143].mxu1 }
 0x2f0   :  { %v2926_v61 = vadd.f32 %v2925_v24, %v6847_v53  ;;  %v6854_v47 = vadd.f32 %v4212_v63, %v2526_v34  ;;  %v2528_v51 = vpop.f32.mrb[79].mxu0  ;;  %v6857_v59 = vadd.f32 %v6656_v60, %v2711_v55  ;;  %v4216_v63 = vadd.f32 %v6469_v12, %v6630_v58 }
 0x2f2   :  { %v2927_v20 = vadd.f32 %v2926_v61, %v6857_v59 }
 0x2f4   :  { %v2928_v52 = vadd.f32 %v2927_v20, %v6840_v32  ;;  %v4056_v0 = vpop.f32.mrb[144].mxu1 }
 0x2f5   :  { %v2531_v36 = vpop.f32.mrb[80].mxu0  ;;  %v6864_v33 = vadd.f32 %v6688_v22, %v4056_v0  ;;  %v2724_v39 = vpop.f32.mrb[145].mxu1 }
 0x2f6   :  { %v6868_v24 = vadd.f32 %v4214_v38, %v2531_v36  ;;  %v2533_v60 = vpop.f32.mrb[81].mxu0  ;;  %v6871_v18 = vadd.f32 %v6676_v21, %v2724_v39  ;;  %v2929_v34 = vadd.f32 %v2928_v52, %v6851_v15  ;;  %v4057_v3 = vpop.f32.mrb[146].mxu1  ;;  %v4218_v21 = vadd.f32 %v6469_v12, %v6636_v50 }
 0x2f7   :  { %v2534_v55 = vpop.f32.mrb[82].mxu0  ;;  %v6875_v61 = vadd.f32 %v6692_v35, %v4057_v3  ;;  %v2727_v51 = vpop.f32.mrb[147].mxu1 }
 0x2f8   :  { %v2930_v22 = vadd.f32 %v2929_v34, %v6871_v18  ;;  %v6878_v20 = vadd.f32 %v4216_v63, %v2534_v55  ;;  %v2536_v0 = vpop.f32.mrb[83].mxu0  ;;  %v6881_v58 = vadd.f32 %v6680_v1, %v2727_v51  ;;  %v4220_v63 = vadd.f32 %v6469_v12, %v6642_v41 }
 0x2fa   :  { %v2931_v38 = vadd.f32 %v2930_v22, %v6881_v58 }
 0x2fc   :  { %v2932_v52 = vadd.f32 %v2931_v38, %v6864_v33  ;;  %v4060_v36 = vpop.f32.mrb[148].mxu1 }
 0x2fd   :  { %v2539_v39 = vpop.f32.mrb[84].mxu0  ;;  %v6888_v35 = vadd.f32 %v6712_v8, %v4060_v36  ;;  %v2740_v60 = vpop.f32.mrb[149].mxu1 }
 0x2fe   :  { %v6892_v34 = vadd.f32 %v4218_v21, %v2539_v39  ;;  %v2541_v1 = vpop.f32.mrb[85].mxu0  ;;  %v6895_v3 = vadd.f32 %v6700_v13, %v2740_v60  ;;  %v2933_v55 = vadd.f32 %v2932_v52, %v6875_v61  ;;  %v4061_v50 = vpop.f32.mrb[150].mxu1  ;;  %v4222_v13 = vadd.f32 %v6469_v12, %v6648_v56 }
 0x2ff   :  { %8564 = vst [vmem:[#allocation18_spill] sm:$0xff] %v6888_v35  ;;  %v2542_v51 = vpop.f32.mrb[86].mxu0  ;;  %v6899_v22 = vadd.f32 %v6716_v45, %v4061_v50  ;;  %v2743_v0 = vpop.f32.mrb[151].mxu1 }
 0x300   :  { %v2934_v8 = vadd.f32 %v2933_v55, %v6895_v3  ;;  %v6902_v38 = vadd.f32 %v4220_v63, %v2542_v51  ;;  %v2544_v36 = vpop.f32.mrb[87].mxu0  ;;  %v6905_v41 = vadd.f32 %v6704_v26, %v2743_v0  ;;  %v4224_v63 = vadd.f32 %v6469_v12, %v6654_v6 }
 0x301   :  { %8565 = vst [vmem:[#allocation19_spill] sm:$0xff] %v6899_v22 }
 0x302   :  { %v2935_v21 = vadd.f32 %v2934_v8, %v6905_v41 }
 0x304   :  { %v2936_v52 = vadd.f32 %v2935_v21, %v6888_v35  ;;  %v4064_v39 = vpop.f32.mrb[152].mxu1 }
 0x305   :  { %v2547_v60 = vpop.f32.mrb[88].mxu0  ;;  %v6912_v45 = vadd.f32 %v6736_v23, %v4064_v39  ;;  %v2756_v1 = vpop.f32.mrb[153].mxu1 }
 0x306   :  { %v6916_v55 = vadd.f32 %v4222_v13, %v2547_v60  ;;  %v2549_v26 = vpop.f32.mrb[89].mxu0  ;;  %v6919_v50 = vadd.f32 %v6724_v43, %v2756_v1  ;;  %v2937_v51 = vadd.f32 %v2936_v52, %v6899_v22  ;;  %v4065_v56 = vpop.f32.mrb[154].mxu1  ;;  %v4226_v43 = vadd.f32 %v6469_v12, %v6660_v27 }
 0x307   :  { %8566 = vst [vmem:[#allocation20_spill] sm:$0xff] %v6912_v45  ;;  %v2550_v0 = vpop.f32.mrb[90].mxu0  ;;  %v6923_v8 = vadd.f32 %v6740_v17, %v4065_v56  ;;  %v2759_v36 = vpop.f32.mrb[155].mxu1 }
 0x308   :  { %8567 = vst [vmem:[#allocation21_spill] sm:$0xff] %v6919_v50  ;;  %v2938_v23 = vadd.f32 %v2937_v51, %v6919_v50  ;;  %v6926_v21 = vadd.f32 %v4224_v63, %v2550_v0  ;;  %v2552_v39 = vpop.f32.mrb[91].mxu0  ;;  %v6929_v6 = vadd.f32 %v6728_v49, %v2759_v36  ;;  %v4228_v63 = vadd.f32 %v6469_v12, %v6666_v28 }
 0x309   :  { %8568 = vst [vmem:[#allocation22_spill] sm:$0xff] %v6923_v8 }
 0x30a   :  { %8569 = vst [vmem:[#allocation23_spill] sm:$0xff] %v6929_v6  ;;  %v2939_v13 = vadd.f32 %v2938_v23, %v6929_v6 }
 0x30c   :  { %v2940_v52 = vadd.f32 %v2939_v13, %v6912_v45  ;;  %v4068_v60 = vpop.f32.mrb[156].mxu1 }
 0x30d   :  { %v2555_v1 = vpop.f32.mrb[92].mxu0  ;;  %v6936_v17 = vadd.f32 %v6760_v11, %v4068_v60  ;;  %v2772_v26 = vpop.f32.mrb[157].mxu1 }
 0x30e   :  { %v6940_v51 = vadd.f32 %v4226_v43, %v2555_v1  ;;  %v2557_v49 = vpop.f32.mrb[93].mxu0  ;;  %v6943_v56 = vadd.f32 %v6748_v48, %v2772_v26  ;;  %v2941_v0 = vadd.f32 %v2940_v52, %v6923_v8  ;;  %v4069_v27 = vpop.f32.mrb[158].mxu1  ;;  %v4230_v48 = vadd.f32 %v6469_v12, %v6672_v25  ;;  %v8600_v8 = vld [vmem:[#allocation15_spill] sm:$0xff] }
 0x30f   :  { %8570 = vst [vmem:[#allocation24_spill] sm:$0xff] %v6936_v17  ;;  %v2558_v36 = vpop.f32.mrb[94].mxu0  ;;  %v6947_v23 = vadd.f32 %v6764_v4, %v4069_v27  ;;  %v2775_v39 = vpop.f32.mrb[159].mxu1 }
 0x310   :  { %8571 = vst [vmem:[#allocation25_spill] sm:$0xff] %v6943_v56  ;;  %v2942_v11 = vadd.f32 %v2941_v0, %v6943_v56  ;;  %v6950_v13 = vadd.f32 %v4228_v63, %v2558_v36  ;;  %v2560_v60 = vpop.f32.mrb[95].mxu0  ;;  %v6953_v28 = vadd.f32 %v6752_v31, %v2775_v39  ;;  %v8575_v0 = vld [vmem:[#allocation2_spill] sm:$0xff] }
 0x311   :  { %8572 = vst [vmem:[#allocation26_spill] sm:$0xff] %v6947_v23  ;;  %v4232_v63 = vadd.f32 %v6469_v12, %v8575_v0 }
 0x312   :  { %8573 = vst [vmem:[#allocation27_spill] sm:$0xff] %v6953_v28  ;;  %v2943_v43 = vadd.f32 %v2942_v11, %v6953_v28 }
 0x314   :  { %v2944_v52 = vadd.f32 %v2943_v43, %v6936_v17  ;;  %v4072_v1 = vpop.f32.mrb[160].mxu1 }
 0x315   :  { %v2563_v26 = vpop.f32.mrb[96].mxu0  ;;  %v6960_v4 = vadd.f32 %v6796_v37, %v4072_v1  ;;  %v2788_v49 = vpop.f32.mrb[161].mxu1 }
 0x316   :  { %v6964_v27 = vadd.f32 %v4230_v48, %v2563_v26  ;;  %v2565_v31 = vpop.f32.mrb[97].mxu0  ;;  %v6967_v36 = vadd.f32 %v6773_v10, %v2788_v49  ;;  %v2945_v39 = vadd.f32 %v2944_v52, %v6947_v23  ;;  %v4073_v25 = vpop.f32.mrb[162].mxu1  ;;  %v8579_v10 = vld [vmem:[#allocation3_spill] sm:$0xff] }
 0x317   :  { %8574 = vst [vmem:[#allocation28_spill] sm:$0xff] %v6960_v4  ;;  %v2566_v11 = vpop.f32.mrb[98].mxu0  ;;  %v6971_v60 = vadd.f32 %v6806_v7, %v4073_v25  ;;  %v2791_v43 = vpop.f32.mrb[163].mxu1  ;;  %v4234_v49 = vadd.f32 %v6469_v12, %v8579_v10 }
 0x318   :  { %8576 = vst [vmem:[#allocation2_spill] sm:$0xff] %v6967_v36  ;;  %v2946_v37 = vadd.f32 %v2945_v39, %v6967_v36  ;;  %v6974_v1 = vadd.f32 %v4232_v63, %v2566_v11  ;;  %v2568_v17 = vpop.f32.mrb[99].mxu0  ;;  %v6977_v48 = vadd.f32 %v6781_v54, %v2791_v43  ;;  %v8581_v39 = vld [vmem:[#allocation4_spill] sm:$0xff] }
 0x319   :  { %8577 = vst [vmem:[#allocation29_spill] sm:$0xff] %v6971_v60  ;;  %v4236_v63 = vadd.f32 %v6469_v12, %v8581_v39 }
 0x31a   :  { %8578 = vst [vmem:[#allocation30_spill] sm:$0xff] %v6977_v48  ;;  %v2947_v26 = vadd.f32 %v2946_v37, %v6977_v48 }
 0x31c   :  { %v2948_v52 = vadd.f32 %v2947_v26, %v6960_v4  ;;  %v4076_v0 = vpop.f32.mrb[164].mxu1 }
 0x31d   :  { %v2571_v31 = vpop.f32.mrb[100].mxu0  ;;  %v6984_v7 = vadd.f32 %v6844_v44, %v4076_v0  ;;  %v2804_v25 = vpop.f32.mrb[165].mxu1 }
 0x31e   :  { %v4235_v17 = vadd.f32 %v4234_v49, %v2571_v31  ;;  %v2573_v11 = vpop.f32.mrb[101].mxu0  ;;  %v6989_v54 = vadd.f32 %v6820_v40, %v2804_v25  ;;  %v2949_v43 = vadd.f32 %v2948_v52, %v6971_v60  ;;  %v4077_v37 = vpop.f32.mrb[166].mxu1  ;;  %v8585_v31 = vld [vmem:[#allocation5_spill] sm:$0xff]  ;;  %v8599_v60 = vld [vmem:[#allocation14_spill] sm:$0xff] }
 0x31f   :  { %8580 = vst [vmem:[#allocation3_spill] sm:$0xff] %v6984_v7  ;;  %v2574_v10 = vpop.f32.mrb[102].mxu0  ;;  %v6993_v26 = vadd.f32 %v6854_v47, %v4077_v37  ;;  %v2807_v4 = vpop.f32.mrb[167].mxu1  ;;  %v4238_v40 = vadd.f32 %v6469_v12, %v8585_v31  ;;  %v8587_v37 = vld [vmem:[#allocation6_spill] sm:$0xff] }
 0x320   :  { %8582 = vst [vmem:[#allocation4_spill] sm:$0xff] %v6989_v54  ;;  %v2950_v44 = vadd.f32 %v2949_v43, %v6989_v54  ;;  %v4237_v0 = vadd.f32 %v4236_v63, %v2574_v10  ;;  %v2576_v48 = vpop.f32.mrb[103].mxu0  ;;  %v6997_v36 = vadd.f32 %v6830_v9, %v2807_v4  ;;  %v4240_v63 = vadd.f32 %v6469_v12, %v8587_v37 }
 0x321   :  { %8583 = vst [vmem:[#allocation31_spill] sm:$0xff] %v6993_v26 }
 0x322   :  { %8584 = vst [vmem:[#allocation32_spill] sm:$0xff] %v6997_v36  ;;  %v2951_v49 = vadd.f32 %v2950_v44, %v6997_v36 }
 0x324   :  { %v2952_v52 = vadd.f32 %v2951_v49, %v6984_v7  ;;  %v4080_v25 = vpop.f32.mrb[168].mxu1 }
 0x325   :  { %v2579_v39 = vpop.f32.mrb[104].mxu0  ;;  %v7004_v47 = vadd.f32 %v6892_v34, %v4080_v25  ;;  %v2820_v11 = vpop.f32.mrb[169].mxu1 }
 0x326   :  { %v7008_v48 = vadd.f32 %v4238_v40, %v2579_v39  ;;  %v2581_v9 = vpop.f32.mrb[105].mxu0  ;;  %v7011_v4 = vadd.f32 %v6868_v24, %v2820_v11  ;;  %v2953_v43 = vadd.f32 %v2952_v52, %v6993_v26  ;;  %v4081_v10 = vpop.f32.mrb[170].mxu1  ;;  %v8591_v24 = vld [vmem:[#allocation7_spill] sm:$0xff] }
 0x327   :  { %8586 = vst [vmem:[#allocation5_spill] sm:$0xff] %v7004_v47  ;;  %v2582_v44 = vpop.f32.mrb[106].mxu0  ;;  %v7015_v49 = vadd.f32 %v6902_v38, %v4081_v10  ;;  %v2823_v31 = vpop.f32.mrb[171].mxu1  ;;  %v4242_v11 = vadd.f32 %v6469_v12, %v8591_v24 }
 0x328   :  { %8588 = vst [vmem:[#allocation6_spill] sm:$0xff] %v7011_v4  ;;  %v2954_v34 = vadd.f32 %v2953_v43, %v7011_v4  ;;  %v7018_v25 = vadd.f32 %v4240_v63, %v2582_v44  ;;  %v2584_v7 = vpop.f32.mrb[107].mxu0  ;;  %v7021_v40 = vadd.f32 %v6878_v20, %v2823_v31  ;;  %v8592_v43 = vld [vmem:[#allocation8_spill] sm:$0xff] }
 0x329   :  { %8589 = vst [vmem:[#allocation33_spill] sm:$0xff] %v7015_v49  ;;  %v4244_v63 = vadd.f32 %v6469_v12, %v8592_v43 }
 0x32a   :  { %8590 = vst [vmem:[#allocation34_spill] sm:$0xff] %v7021_v40  ;;  %v2955_v39 = vadd.f32 %v2954_v34, %v7021_v40 }
 0x32c   :  { %v2956_v52 = vadd.f32 %v2955_v39, %v7004_v47  ;;  %v4084_v37 = vpop.f32.mrb[172].mxu1 }
 0x32d   :  { %v2587_v9 = vpop.f32.mrb[108].mxu0  ;;  %v7028_v38 = vadd.f32 %v6940_v51, %v4084_v37  ;;  %v2836_v10 = vpop.f32.mrb[173].mxu1 }
 0x32e   :  { %v4243_v7 = vadd.f32 %v4242_v11, %v2587_v9  ;;  %v2589_v44 = vpop.f32.mrb[109].mxu0  ;;  %v7033_v20 = vadd.f32 %v6916_v55, %v2836_v10  ;;  %v2957_v31 = vadd.f32 %v2956_v52, %v7015_v49  ;;  %v4085_v34 = vpop.f32.mrb[174].mxu1  ;;  %v8594_v9 = vld [vmem:[#allocation9_spill] sm:$0xff] }
 0x32f   :  { %v2590_v24 = vpop.f32.mrb[110].mxu0  ;;  %v7037_v39 = vadd.f32 %v6950_v13, %v4085_v34  ;;  %v2839_v47 = vpop.f32.mrb[175].mxu1  ;;  %v4246_v55 = vadd.f32 %v6469_v12, %v8594_v9  ;;  %v8595_v34 = vld [vmem:[#allocation10_spill] sm:$0xff] }
 0x330   :  { %8593 = vst [vmem:[#allocation7_spill] sm:$0xff] %v7033_v20  ;;  %v2958_v51 = vadd.f32 %v2957_v31, %v7033_v20  ;;  %v4245_v37 = vadd.f32 %v4244_v63, %v2590_v24  ;;  %v2592_v40 = vpop.f32.mrb[111].mxu0  ;;  %v7041_v4 = vadd.f32 %v6926_v21, %v2839_v47  ;;  %v4248_v31 = vadd.f32 %v6469_v12, %v8595_v34 }
 0x332   :  { %v2959_v11 = vadd.f32 %v2958_v51, %v7041_v4 }
 0x334   :  { %v2960_v52 = vadd.f32 %v2959_v11, %v7028_v38  ;;  %v4088_v10 = vpop.f32.mrb[176].mxu1 }
 0x335   :  { %v2595_v43 = vpop.f32.mrb[112].mxu0  ;;  %v7047_v44 = vadd.f32 %v4235_v17, %v4088_v10  ;;  %v2852_v13 = vpop.f32.mrb[177].mxu1 }
 0x336   :  { %v4247_v63 = vadd.f32 %v4246_v55, %v2595_v43  ;;  %v2597_v40 = vpop.f32.mrb[113].mxu0  ;;  %v7052_v21 = vadd.f32 %v6964_v27, %v2852_v13  ;;  %v2961_v47 = vadd.f32 %v2960_v52, %v7037_v39  ;;  %v4089_v24 = vpop.f32.mrb[178].mxu1  ;;  %v4593_v27 = vld [vmem:[%s8499_s2] ss:$0 sm:$0xff]  ;;  %v8596_v55 = vld [vmem:[#allocation11_spill] sm:$0xff] }
 0x337   :  { %v2598_v51 = vpop.f32.mrb[114].mxu0  ;;  %v7055_v9 = vadd.f32 %v4237_v0, %v4089_v24  ;;  %v2855_v11 = vpop.f32.mrb[179].mxu1  ;;  %v4250_v52 = vadd.f32 %v4593_v27, %v8596_v55  ;;  %v4256_v23 = vadd.f32 %v4593_v27, %v8599_v60  ;;  %v4258_v45 = vadd.f32 %v4593_v27, %v8600_v8 }
 0x338   :  { %v2962_v20 = vadd.f32 %v2961_v47, %v7052_v21  ;;  %v4249_v17 = vadd.f32 %v4248_v31, %v2598_v51  ;;  %v2600_v10 = vpop.f32.mrb[115].mxu0  ;;  %v7059_v49 = vadd.f32 %v6974_v1, %v2855_v11  ;;  %v8597_v31 = vld [vmem:[#allocation12_spill] sm:$0xff] }
 0x339   :  { %v4252_v47 = vadd.f32 %v4593_v27, %v8597_v31  ;;  %v8598_v31 = vld [vmem:[#allocation13_spill] sm:$0xff] }
 0x33a   :  { %v2963_v12 = vadd.f32 %v2962_v20, %v7059_v49 }
 0x33c   :  { %v2964_v43 = vadd.f32 %v2963_v12, %v7047_v44  ;;  %v4092_v0 = vpop.f32.mrb[180].mxu1 }
 0x33d   :  { %v2603_v13 = vpop.f32.mrb[116].mxu0  ;;  %v7067_v34 = vadd.f32 %v4243_v7, %v4092_v0  ;;  %v2868_v40 = vpop.f32.mrb[181].mxu1 }
 0x33e   :  { %v4251_v24 = vadd.f32 %v4250_v52, %v2603_v13  ;;  %v2605_v1 = vpop.f32.mrb[117].mxu0  ;;  %v7071_v51 = vadd.f32 %v7008_v48, %v2868_v40  ;;  %v2965_v20 = vadd.f32 %v2964_v43, %v7055_v9  ;;  %v4093_v11 = vpop.f32.mrb[182].mxu1  ;;  %v4254_v52 = vadd.f32 %v4593_v27, %v8598_v31 }
 0x33f   :  { %v2606_v10 = vpop.f32.mrb[118].mxu0  ;;  %v7074_v26 = vadd.f32 %v4245_v37, %v4093_v11  ;;  %v2871_v55 = vpop.f32.mrb[183].mxu1 }
 0x340   :  { %v2966_v12 = vadd.f32 %v2965_v20, %v7071_v51  ;;  %v4253_v36 = vadd.f32 %v4252_v47, %v2606_v10  ;;  %v2608_v7 = vpop.f32.mrb[119].mxu0  ;;  %v2872_v0 = vadd.f32 %v7018_v25, %v2871_v55 }
 0x342   :  { %v2967_v54 = vadd.f32 %v2966_v12, %v2872_v0 }
 0x344   :  { %v2968_v13 = vadd.f32 %v2967_v54, %v7067_v34  ;;  %v4096_v48 = vpop.f32.mrb[184].mxu1 }
 0x345   :  { %v2611_v40 = vpop.f32.mrb[120].mxu0  ;;  %v2893_v1 = vadd.f32 %v4251_v24, %v4096_v48  ;;  %v2884_v43 = vpop.f32.mrb[185].mxu1 }
 0x346   :  { %v4255_v37 = vadd.f32 %v4254_v52, %v2611_v40  ;;  %v2613_v11 = vpop.f32.mrb[121].mxu0  ;;  %v2885_v28 = vadd.f32 %v4247_v63, %v2884_v43  ;;  %v2969_v20 = vadd.f32 %v2968_v13, %v7074_v26  ;;  %v4097_v47 = vpop.f32.mrb[186].mxu1  ;;  %v4260_v52 = vadd.f32 %v4593_v27, %v6762_v14 }
 0x347   :  { %v2614_v10 = vpop.f32.mrb[122].mxu0  ;;  %v2896_v7 = vadd.f32 %v4253_v36, %v4097_v47  ;;  %v2887_v25 = vpop.f32.mrb[187].mxu1 }
 0x348   :  { %v2970_v55 = vadd.f32 %v2969_v20, %v2885_v28  ;;  %v4257_v12 = vadd.f32 %v4256_v23, %v2614_v10  ;;  %v2616_v31 = vpop.f32.mrb[123].mxu0  ;;  %v2888_v56 = vadd.f32 %v4249_v17, %v2887_v25 }
 0x34a   :  { %v2971_v54 = vadd.f32 %v2970_v55, %v2888_v56 }
 0x34c   :  { %v2972_v24 = vadd.f32 %v2971_v54, %v2893_v1  ;;  %v4100_v48 = vpop.f32.mrb[188].mxu1 }
 0x34d   :  { %v2619_v6 = vpop.f32.mrb[124].mxu0  ;;  %v2900_v60 = vpop.f32.mrb[189].mxu1 }
 0x34e   :  { %v4259_v63 = vadd.f32 %v4258_v45, %v2619_v6  ;;  %v2621_v40 = vpop.f32.mrb[125].mxu0  ;;  %v2901_v13 = vadd.f32 %v4255_v37, %v2900_v60  ;;  %v2973_v43 = vadd.f32 %v2972_v24, %v2896_v7  ;;  %v4101_v11 = vpop.f32.mrb[190].mxu1  ;;  %v8607_v60 = vld [vmem:[#allocation16_spill] sm:$0xff] }
 0x34f   :  { %v2622_v36 = vpop.f32.mrb[126].mxu0  ;;  %v2903_v47 = vpop.f32.mrb[191].mxu1 }
 0x350   :  { %v2909_v20 = vadd.f32 %v4259_v63, %v4100_v48  ;;  %v2974_v23 = vadd.f32 %v2973_v43, %v2901_v13  ;;  %v4261_v10 = vadd.f32 %v4260_v52, %v2622_v36  ;;  %v2624_v17 = vpop.f32.mrb[127].mxu0  ;;  %v2904_v25 = vadd.f32 %v4257_v12, %v2903_v47 }
 0x352   :  { %v2912_v55 = vadd.f32 %v4261_v10, %v4101_v11  ;;  %v2975_v8 = vadd.f32 %v2974_v23, %v2904_v25 }
 0x354   :  { %v2976_v31 = vadd.f32 %v2975_v8, %v2909_v20 }
 0x356   :  { %v2977_v54 = vadd.f32 %v2976_v31, %v2912_v55 }
 0x358   :  { %v2978_v50 = vrot.slane %v2977_v54, 4 }
 0x35a   :  { %v2979_v22 = vadd.f32 %v2978_v50, %v2977_v54 }
 0x35c   :  { %v2980_v35 = vrot.slane %v2979_v22, 2 }
 0x35e   :  { %v2981_v14 = vadd.f32 %v2980_v35, %v2979_v22 }
 0x360   :  { %v2982_v45 = vrot.slane %v2981_v14, 1 }
 0x362   :  { %v2983_v6 = vadd.f32 %v2982_v45, %v2981_v14 }
 0x364   :  { %v7084_v27 = vmul.f32 0.001953125, %v2983_v6 }
 0x366   :  { %v7088_v37 = vsub.f32 %v7041_v4, %v7084_v27  ;;  %v7092_v24 = vsub.f32 %v7028_v38, %v7084_v27  ;;  %v7096_v12 = vsub.f32 %v7037_v39, %v7084_v27  ;;  %v7100_v50 = vsub.f32 %v7052_v21, %v7084_v27 }
 0x367   :  { %v7104_v35 = vsub.f32 %v7059_v49, %v7084_v27  ;;  %v7108_v22 = vsub.f32 %v7047_v44, %v7084_v27  ;;  %v7112_v4 = vsub.f32 %v7055_v9, %v7084_v27  ;;  %v7116_v38 = vsub.f32 %v7071_v51, %v7084_v27 }
 0x368   :  { %v7119_v39 = vsub.f32 %v2872_v0, %v7084_v27  ;;  %v7123_v21 = vsub.f32 %v7067_v34, %v7084_v27  ;;  %v7127_v49 = vsub.f32 %v7074_v26, %v7084_v27  ;;  %v7130_v44 = vsub.f32 %v2885_v28, %v7084_v27 }
 0x369   :  { %v7133_v9 = vsub.f32 %v2888_v56, %v7084_v27  ;;  %v7136_v51 = vsub.f32 %v2893_v1, %v7084_v27  ;;  %v7139_v0 = vsub.f32 %v2896_v7, %v7084_v27  ;;  %v7142_v48 = vsub.f32 %v2901_v13, %v7084_v27  ;;  %v8606_v1 = vld [vmem:[#allocation17_spill] sm:$0xff] }
 0x36a   :  { %v7145_v34 = vsub.f32 %v2904_v25, %v7084_v27  ;;  %v7148_v26 = vsub.f32 %v2909_v20, %v7084_v27  ;;  %v7151_v28 = vsub.f32 %v2912_v55, %v7084_v27  ;;  %v7155_v56 = vsub.f32 %v6776_v57, %v7084_v27 }
 0x36b   :  { %8601 = vst [vmem:[#allocation8_spill] sm:$0xff] %v7133_v9  ;;  %8602 = vst [vmem:[#allocation9_spill] sm:$0xff] %v7136_v51  ;;  %v7159_v7 = vsub.f32 %v8606_v1, %v7084_v27  ;;  %v7163_v52 = vsub.f32 %v8607_v60, %v7084_v27  ;;  %v7171_v13 = vsub.f32 %v6779_v19, %v7084_v27 }
 0x36c   :  { %8603 = vst [vmem:[#allocation10_spill] sm:$0xff] %v7139_v0  ;;  %8604 = vst [vmem:[#allocation11_spill] sm:$0xff] %v7142_v48  ;;  %v3049_v63 = vmul.f32 %v7155_v56, %v7155_v56  ;;  %v7175_v57 = vsub.f32 %v6799_v30, %v7084_v27  ;;  %v7181_v36 = vsub.f32 %v6809_v16, %v7084_v27 }
 0x36d   :  { %8605 = vst [vmem:[#allocation12_spill] sm:$0xff] %v7145_v34  ;;  %v3050_v40 = vmul.f32 %v7159_v7, %v7159_v7  ;;  %v3051_v43 = vmul.f32 %v7163_v52, %v7163_v52  ;;  %v3052_v47 = vmul.f32 %v7171_v13, %v7171_v13  ;;  %v7187_v19 = vsub.f32 %v6792_v29, %v7084_v27 }
 0x36e   :  { %v3053_v30 = vmul.f32 %v7175_v57, %v7175_v57  ;;  %v7193_v10 = vsub.f32 %v6803_v42, %v7084_v27  ;;  %v3054_v16 = vmul.f32 %v7181_v36, %v7181_v36  ;;  %v7199_v25 = vsub.f32 %v6823_v46, %v7084_v27 }
 0x36f   :  { %v3113_v11 = vadd.f32 %v3050_v40, %v3049_v63  ;;  %v3055_v29 = vmul.f32 %v7187_v19, %v7187_v19  ;;  %v7205_v8 = vsub.f32 %v6833_v62, %v7084_v27  ;;  %v7211_v54 = vsub.f32 %v6816_v2, %v7084_v27 }
 0x370   :  { %v3056_v42 = vmul.f32 %v7193_v10, %v7193_v10  ;;  %v3057_v46 = vmul.f32 %v7199_v25, %v7199_v25  ;;  %v7217_v45 = vsub.f32 %v6827_v5, %v7084_v27  ;;  %v7223_v1 = vsub.f32 %v6847_v53, %v7084_v27 }
 0x371   :  { %v3114_v20 = vadd.f32 %v3113_v11, %v3051_v43  ;;  %v3058_v62 = vmul.f32 %v7205_v8, %v7205_v8  ;;  %v3059_v2 = vmul.f32 %v7211_v54, %v7211_v54  ;;  %v7229_v63 = vsub.f32 %v6857_v59, %v7084_v27 }
 0x372   :  { %v3060_v5 = vmul.f32 %v7217_v45, %v7217_v45  ;;  %v7235_v43 = vsub.f32 %v6840_v32, %v7084_v27  ;;  %v3061_v53 = vmul.f32 %v7223_v1, %v7223_v1 }
 0x373   :  { %v3115_v23 = vadd.f32 %v3114_v20, %v3052_v47  ;;  %v7241_v47 = vsub.f32 %v6851_v15, %v7084_v27  ;;  %v3062_v59 = vmul.f32 %v7229_v63, %v7229_v63 }
 0x374   :  { %v3063_v32 = vmul.f32 %v7235_v43, %v7235_v43 }
 0x375   :  { %v3116_v17 = vadd.f32 %v3115_v23, %v3053_v30  ;;  %v7247_v30 = vsub.f32 %v6871_v18, %v7084_v27  ;;  %v3064_v15 = vmul.f32 %v7241_v47, %v7241_v47 }
 0x377   :  { %v3117_v55 = vadd.f32 %v3116_v17, %v3054_v16  ;;  %v7253_v16 = vsub.f32 %v6881_v58, %v7084_v27  ;;  %v3065_v18 = vmul.f32 %v7247_v30, %v7247_v30 }
 0x379   :  { %v3118_v31 = vadd.f32 %v3117_v55, %v3055_v29  ;;  %v7259_v29 = vsub.f32 %v6864_v33, %v7084_v27  ;;  %v3066_v58 = vmul.f32 %v7253_v16, %v7253_v16 }
 0x37b   :  { %v3119_v14 = vadd.f32 %v3118_v31, %v3056_v42  ;;  %v7265_v42 = vsub.f32 %v6875_v61, %v7084_v27  ;;  %v3067_v33 = vmul.f32 %v7259_v29, %v7259_v29 }
 0x37d   :  { %v3120_v6 = vadd.f32 %v3119_v14, %v3057_v46  ;;  %v7271_v46 = vsub.f32 %v6895_v3, %v7084_v27  ;;  %v3068_v61 = vmul.f32 %v7265_v42, %v7265_v42 }
 0x37f   :  { %v3121_v60 = vadd.f32 %v3120_v6, %v3058_v62  ;;  %v7277_v62 = vsub.f32 %v6905_v41, %v7084_v27  ;;  %v3069_v3 = vmul.f32 %v7271_v46, %v7271_v46 }
 0x381   :  { %v3122_v40 = vadd.f32 %v3121_v60, %v3059_v2  ;;  %v8608_v2 = vld [vmem:[#allocation18_spill] sm:$0xff]  ;;  %v3070_v41 = vmul.f32 %v7277_v62, %v7277_v62 }
 0x382   :  { %v7283_v60 = vsub.f32 %v8608_v2, %v7084_v27 }
 0x383   :  { %v3123_v11 = vadd.f32 %v3122_v40, %v3060_v5  ;;  %v8609_v40 = vld [vmem:[#allocation19_spill] sm:$0xff] }
 0x385   :  { %v3124_v20 = vadd.f32 %v3123_v11, %v3061_v53  ;;  %v7289_v53 = vsub.f32 %v8609_v40, %v7084_v27 }
 0x387   :  { %v3125_v23 = vadd.f32 %v3124_v20, %v3062_v59  ;;  %v8610_v59 = vld [vmem:[#allocation21_spill] sm:$0xff] }
 0x388   :  { %v7295_v20 = vsub.f32 %v8610_v59, %v7084_v27  ;;  %v8616_v59 = vld [vmem:[#allocation27_spill] sm:$0xff] }
 0x389   :  { %v3126_v17 = vadd.f32 %v3125_v23, %v3063_v32  ;;  %v3071_v32 = vmul.f32 %v7283_v60, %v7283_v60 }
 0x38b   :  { %v3127_v55 = vadd.f32 %v3126_v17, %v3064_v15  ;;  %v8611_v15 = vld [vmem:[#allocation23_spill] sm:$0xff] }
 0x38c   :  { %v7301_v17 = vsub.f32 %v8611_v15, %v7084_v27 }
 0x38d   :  { %v3128_v31 = vadd.f32 %v3127_v55, %v3065_v18  ;;  %v3072_v18 = vmul.f32 %v7289_v53, %v7289_v53 }
 0x38e   :  { %v3074_v2 = vmul.f32 %v7301_v17, %v7301_v17 }
 0x38f   :  { %v3129_v14 = vadd.f32 %v3128_v31, %v3066_v58  ;;  %v8612_v58 = vld [vmem:[#allocation20_spill] sm:$0xff] }
 0x390   :  { %v7307_v31 = vsub.f32 %v8612_v58, %v7084_v27 }
 0x391   :  { %v3130_v6 = vadd.f32 %v3129_v14, %v3067_v33  ;;  %v3073_v33 = vmul.f32 %v7295_v20, %v7295_v20 }
 0x393   :  { %v3131_v5 = vadd.f32 %v3130_v6, %v3068_v61  ;;  %v8613_v61 = vld [vmem:[#allocation22_spill] sm:$0xff] }
 0x394   :  { %v7313_v6 = vsub.f32 %v8613_v61, %v7084_v27 }
 0x395   :  { %v3132_v11 = vadd.f32 %v3131_v5, %v3069_v3  ;;  %v8614_v5 = vld [vmem:[#allocation25_spill] sm:$0xff] }
 0x396   :  { %v7319_v40 = vsub.f32 %v8614_v5, %v7084_v27  ;;  %v8622_v5 = vld [vmem:[#allocation2_spill] sm:$0xff] }
 0x397   :  { %v3133_v23 = vadd.f32 %v3132_v11, %v3070_v41  ;;  %v3075_v41 = vmul.f32 %v7307_v31, %v7307_v31 }
 0x398   :  { %8615 = vst [vmem:[#allocation13_spill] sm:$0xff] %v7319_v40  ;;  %v3077_v58 = vmul.f32 %v7319_v40, %v7319_v40 }
 0x399   :  { %v3134_v55 = vadd.f32 %v3133_v23, %v3071_v32  ;;  %v7325_v32 = vsub.f32 %v8616_v59, %v7084_v27  ;;  %v3076_v23 = vmul.f32 %v7313_v6, %v7313_v6  ;;  %v7343_v59 = vsub.f32 %v8622_v5, %v7084_v27  ;;  %v8628_v5 = vld [vmem:[#allocation29_spill] sm:$0xff] }
 0x39b   :  { %v3135_v14 = vadd.f32 %v3134_v55, %v3072_v18  ;;  %8617 = vst [vmem:[#allocation14_spill] sm:$0xff] %v7325_v32  ;;  %v8618_v18 = vld [vmem:[#allocation24_spill] sm:$0xff]  ;;  %8623 = vst [vmem:[#allocation16_spill] sm:$0xff] %v7343_v59 }
 0x39c   :  { %v7331_v55 = vsub.f32 %v8618_v18, %v7084_v27  ;;  %v8624_v18 = vld [vmem:[#allocation30_spill] sm:$0xff] }
 0x39d   :  { %v3136_v3 = vadd.f32 %v3135_v14, %v3073_v33  ;;  %v8620_v14 = vld [vmem:[#allocation26_spill] sm:$0xff]  ;;  %v7349_v40 = vsub.f32 %v8624_v18, %v7084_v27  ;;  %v8630_v18 = vld [vmem:[#allocation4_spill] sm:$0xff] }
 0x39e   :  { %8619 = vst [vmem:[#allocation15_spill] sm:$0xff] %v7331_v55  ;;  %v7337_v61 = vsub.f32 %v8620_v14, %v7084_v27  ;;  %v8626_v14 = vld [vmem:[#allocation28_spill] sm:$0xff] }
 0x39f   :  { %v3137_v11 = vadd.f32 %v3136_v3, %v3074_v2  ;;  %v3078_v2 = vmul.f32 %v7325_v32, %v7325_v32  ;;  %8625 = vst [vmem:[#allocation18_spill] sm:$0xff] %v7349_v40  ;;  %v7355_v32 = vsub.f32 %v8626_v14, %v7084_v27  ;;  %v8632_v14 = vld [vmem:[#allocation32_spill] sm:$0xff] }
 0x3a0   :  { %8621 = vst [vmem:[#allocation17_spill] sm:$0xff] %v7337_v61 }
 0x3a1   :  { %v3138_v15 = vadd.f32 %v3137_v11, %v3075_v41  ;;  %v3079_v41 = vmul.f32 %v7331_v55, %v7331_v55  ;;  %8627 = vst [vmem:[#allocation19_spill] sm:$0xff] %v7355_v32  ;;  %v7361_v55 = vsub.f32 %v8628_v5, %v7084_v27  ;;  %v8634_v5 = vld [vmem:[#allocation3_spill] sm:$0xff] }
 0x3a3   :  { %v3139_v33 = vadd.f32 %v3138_v15, %v3076_v23  ;;  %v3080_v23 = vmul.f32 %v7337_v61, %v7337_v61  ;;  %8629 = vst [vmem:[#allocation21_spill] sm:$0xff] %v7361_v55  ;;  %v7367_v61 = vsub.f32 %v8630_v18, %v7084_v27  ;;  %v8636_v18 = vld [vmem:[#allocation31_spill] sm:$0xff] }
 0x3a5   :  { %v3140_v3 = vadd.f32 %v3139_v33, %v3077_v58  ;;  %v3081_v58 = vmul.f32 %v7343_v59, %v7343_v59  ;;  %8631 = vst [vmem:[#allocation23_spill] sm:$0xff] %v7367_v61  ;;  %v7373_v59 = vsub.f32 %v8632_v14, %v7084_v27  ;;  %v8638_v14 = vld [vmem:[#allocation6_spill] sm:$0xff] }
 0x3a7   :  { %v3141_v11 = vadd.f32 %v3140_v3, %v3078_v2  ;;  %v3082_v2 = vmul.f32 %v7349_v40, %v7349_v40  ;;  %8633 = vst [vmem:[#allocation20_spill] sm:$0xff] %v7373_v59  ;;  %v7379_v40 = vsub.f32 %v8634_v5, %v7084_v27  ;;  %v8639_v5 = vld [vmem:[#allocation34_spill] sm:$0xff] }
 0x3a9   :  { %v3142_v15 = vadd.f32 %v3141_v11, %v3079_v41  ;;  %v3083_v41 = vmul.f32 %v7355_v32, %v7355_v32  ;;  %8635 = vst [vmem:[#allocation22_spill] sm:$0xff] %v7379_v40  ;;  %v7385_v32 = vsub.f32 %v8636_v18, %v7084_v27  ;;  %v8641_v18 = vld [vmem:[#allocation5_spill] sm:$0xff] }
 0x3ab   :  { %v3143_v33 = vadd.f32 %v3142_v15, %v3080_v23  ;;  %v3084_v23 = vmul.f32 %v7361_v55, %v7361_v55  ;;  %8637 = vst [vmem:[#allocation25_spill] sm:$0xff] %v7385_v32  ;;  %v7391_v55 = vsub.f32 %v8638_v14, %v7084_v27  ;;  %v8642_v14 = vld [vmem:[#allocation33_spill] sm:$0xff] }
 0x3ad   :  { %v3144_v3 = vadd.f32 %v3143_v33, %v3081_v58  ;;  %v3085_v58 = vmul.f32 %v7367_v61, %v7367_v61  ;;  %v7397_v61 = vsub.f32 %v8639_v5, %v7084_v27  ;;  %v8643_v5 = vld [vmem:[#allocation7_spill] sm:$0xff] }
 0x3af   :  { %v3145_v11 = vadd.f32 %v3144_v3, %v3082_v2  ;;  %v3086_v2 = vmul.f32 %v7373_v59, %v7373_v59  ;;  %8640 = vst [vmem:[#allocation27_spill] sm:$0xff] %v7397_v61  ;;  %v7403_v59 = vsub.f32 %v8641_v18, %v7084_v27 }
 0x3b1   :  { %v3146_v15 = vadd.f32 %v3145_v11, %v3083_v41  ;;  %v3087_v41 = vmul.f32 %v7379_v40, %v7379_v40  ;;  %v7409_v40 = vsub.f32 %v8642_v14, %v7084_v27 }
 0x3b3   :  { %v3147_v33 = vadd.f32 %v3146_v15, %v3084_v23  ;;  %v3088_v23 = vmul.f32 %v7385_v32, %v7385_v32  ;;  %v7415_v32 = vsub.f32 %v8643_v5, %v7084_v27  ;;  %v3092_v18 = vmul.f32 %v7409_v40, %v7409_v40 }
 0x3b4   :  { %v3095_v27 = vmul.f32 %v7092_v24, %v7092_v24  ;;  %v3096_v5 = vmul.f32 %v7096_v12, %v7096_v12 }
 0x3b5   :  { %v3148_v3 = vadd.f32 %v3147_v33, %v3085_v58  ;;  %v3089_v58 = vmul.f32 %v7391_v55, %v7391_v55 }
 0x3b7   :  { %v3149_v11 = vadd.f32 %v3148_v3, %v3086_v2  ;;  %v3090_v2 = vmul.f32 %v7397_v61, %v7397_v61  ;;  %v3094_v61 = vmul.f32 %v7088_v37, %v7088_v37 }
 0x3b9   :  { %v3150_v15 = vadd.f32 %v3149_v11, %v3087_v41  ;;  %v3091_v41 = vmul.f32 %v7403_v59, %v7403_v59 }
 0x3bb   :  { %v3151_v33 = vadd.f32 %v3150_v15, %v3088_v23  ;;  %v3093_v15 = vmul.f32 %v7415_v32, %v7415_v32 }
 0x3bd   :  { %v3152_v3 = vadd.f32 %v3151_v33, %v3089_v58 }
 0x3bf   :  { %v3153_v11 = vadd.f32 %v3152_v3, %v3090_v2  ;;  %v3097_v3 = vmul.f32 %v7100_v50, %v7100_v50 }
 0x3c1   :  { %v3154_v23 = vadd.f32 %v3153_v11, %v3091_v41  ;;  %v3098_v11 = vmul.f32 %v7104_v35, %v7104_v35 }
 0x3c3   :  { %v3155_v14 = vadd.f32 %v3154_v23, %v3092_v18  ;;  %v3099_v23 = vmul.f32 %v7108_v22, %v7108_v22 }
 0x3c5   :  { %v3156_v58 = vadd.f32 %v3155_v14, %v3093_v15  ;;  %v3100_v14 = vmul.f32 %v7112_v4, %v7112_v4 }
 0x3c7   :  { %v3157_v33 = vadd.f32 %v3156_v58, %v3094_v61  ;;  %v3101_v58 = vmul.f32 %v7116_v38, %v7116_v38 }
 0x3c9   :  { %v3158_v2 = vadd.f32 %v3157_v33, %v3095_v27  ;;  %v3102_v33 = vmul.f32 %v7119_v39, %v7119_v39 }
 0x3cb   :  { %v3159_v41 = vadd.f32 %v3158_v2, %v3096_v5  ;;  %v3103_v2 = vmul.f32 %v7123_v21, %v7123_v21 }
 0x3cd   :  { %v3160_v18 = vadd.f32 %v3159_v41, %v3097_v3  ;;  %v3104_v41 = vmul.f32 %v7127_v49, %v7127_v49 }
 0x3cf   :  { %v3161_v15 = vadd.f32 %v3160_v18, %v3098_v11  ;;  %v3105_v18 = vmul.f32 %v7130_v44, %v7130_v44 }
 0x3d1   :  { %v3162_v61 = vadd.f32 %v3161_v15, %v3099_v23  ;;  %v3106_v15 = vmul.f32 %v7133_v9, %v7133_v9 }
 0x3d3   :  { %v3163_v27 = vadd.f32 %v3162_v61, %v3100_v14  ;;  %v3107_v61 = vmul.f32 %v7136_v51, %v7136_v51 }
 0x3d5   :  { %v3164_v5 = vadd.f32 %v3163_v27, %v3101_v58  ;;  %v3108_v27 = vmul.f32 %v7139_v0, %v7139_v0 }
 0x3d7   :  { %v3165_v3 = vadd.f32 %v3164_v5, %v3102_v33  ;;  %v3109_v5 = vmul.f32 %v7142_v48, %v7142_v48 }
 0x3d9   :  { %v3166_v11 = vadd.f32 %v3165_v3, %v3103_v2  ;;  %v3110_v3 = vmul.f32 %v7145_v34, %v7145_v34 }
 0x3db   :  { %v3167_v23 = vadd.f32 %v3166_v11, %v3104_v41  ;;  %v3111_v11 = vmul.f32 %v7148_v26, %v7148_v26 }
 0x3dd   :  { %v3168_v14 = vadd.f32 %v3167_v23, %v3105_v18  ;;  %v3112_v23 = vmul.f32 %v7151_v28, %v7151_v28 }
 0x3df   :  { %v3169_v58 = vadd.f32 %v3168_v14, %v3106_v15 }
 0x3e1   :  { %v3170_v33 = vadd.f32 %v3169_v58, %v3107_v61 }
 0x3e3   :  { %v3171_v2 = vadd.f32 %v3170_v33, %v3108_v27 }
 0x3e5   :  { %v3172_v41 = vadd.f32 %v3171_v2, %v3109_v5 }
 0x3e7   :  { %v3173_v18 = vadd.f32 %v3172_v41, %v3110_v3  ;;  %v8645_v3 = vld [vmem:[#allocation14_spill] sm:$0xff]  ;;  %v8646_v41 = vld [vmem:[#allocation15_spill] sm:$0xff] }
 0x3e9   :  { %v3174_v15 = vadd.f32 %v3173_v18, %v3111_v11  ;;  %v8647_v11 = vld [vmem:[#allocation17_spill] sm:$0xff]  ;;  %v8648_v18 = vld [vmem:[#allocation16_spill] sm:$0xff] }
 0x3eb   :  { %v3175_v14 = vadd.f32 %v3174_v15, %v3112_v23  ;;  %v8649_v23 = vld [vmem:[#allocation18_spill] sm:$0xff] }
 0x3ed   :  { %v3176_v51 = vrot.slane %v3175_v14, 4 }
 0x3ef   :  { %v3177_v0 = vadd.f32 %v3176_v51, %v3175_v14  ;;  %v8650_v14 = vld [vmem:[#allocation19_spill] sm:$0xff] }
 0x3f1   :  { %v3178_v61 = vrot.slane %v3177_v0, 2 }
 0x3f3   :  { %v3179_v58 = vadd.f32 %v3178_v61, %v3177_v0 }
 0x3f5   :  { %v3180_v9 = vrot.slane %v3179_v58, 1 }
 0x3f7   :  { %v3181_v48 = vadd.f32 %v3180_v9, %v3179_v58  ;;  %v8651_v58 = vld [vmem:[#allocation21_spill] sm:$0xff] }
 0x3f9   :  { %v3182_v27 = vmul.f32 0.001953125, %v3181_v48 }
 0x3fb   :  { %v3183_v33 = vadd.f32 1e-05, %v3182_v27 }
 0x3fd   :  { %4591 = vrsqrt.f32 %v3183_v33  ;;  %v8653_v33 = vld [vmem:[#allocation23_spill] sm:$0xff] }
 0x407   :  { %v7461_v34 = vpop.eup %4591 }
 0x408   :  { %v7465_v5 = vmul.f32 %v7461_v34, %v7155_v56  ;;  %v7469_v2 = vmul.f32 %v7461_v34, %v7159_v7  ;;  %v7473_v51 = vmul.f32 %v7461_v34, %v7163_v52  ;;  %v7477_v9 = vmul.f32 %v7461_v34, %v7171_v13 }
 0x409   :  { %v7481_v0 = vmul.f32 %v7461_v34, %v7175_v57  ;;  %v7485_v48 = vmul.f32 %v7461_v34, %v7181_v36  ;;  %v7489_v56 = vmul.f32 %v7461_v34, %v7187_v19  ;;  %v7493_v7 = vmul.f32 %v7461_v34, %v7193_v10 }
 0x40a   :  { %v7497_v52 = vmul.f32 %v7461_v34, %v7199_v25  ;;  %v7501_v13 = vmul.f32 %v7461_v34, %v7205_v8  ;;  %v7505_v57 = vmul.f32 %v7461_v34, %v7211_v54  ;;  %v7509_v36 = vmul.f32 %v7461_v34, %v7217_v45 }
 0x40b   :  { %v7513_v19 = vmul.f32 %v7461_v34, %v7223_v1  ;;  %v7517_v10 = vmul.f32 %v7461_v34, %v7229_v63  ;;  %v7521_v25 = vmul.f32 %v7461_v34, %v7235_v43  ;;  %v7525_v8 = vmul.f32 %v7461_v34, %v7241_v47 }
 0x40c   :  { %v7529_v54 = vmul.f32 %v7461_v34, %v7247_v30  ;;  %v7533_v45 = vmul.f32 %v7461_v34, %v7253_v16  ;;  %v7537_v1 = vmul.f32 %v7461_v34, %v7259_v29  ;;  %v7541_v63 = vmul.f32 %v7461_v34, %v7265_v42 }
 0x40d   :  { %v7545_v43 = vmul.f32 %v7461_v34, %v7271_v46  ;;  %v7549_v47 = vmul.f32 %v7461_v34, %v7277_v62  ;;  %v7553_v30 = vmul.f32 %v7461_v34, %v7283_v60  ;;  %v7557_v16 = vmul.f32 %v7461_v34, %v7289_v53  ;;  %v8644_v60 = vld [vmem:[#allocation13_spill] sm:$0xff] }
 0x40e   :  { %v7561_v29 = vmul.f32 %v7461_v34, %v7295_v20  ;;  %v7565_v42 = vmul.f32 %v7461_v34, %v7301_v17  ;;  %v7569_v46 = vmul.f32 %v7461_v34, %v7307_v31  ;;  %v7573_v62 = vmul.f32 %v7461_v34, %v7313_v6 }
 0x40f   :  { %v7577_v53 = vmul.f32 %v7461_v34, %v8644_v60  ;;  %v7581_v20 = vmul.f32 %v7461_v34, %v8645_v3  ;;  %v7585_v17 = vmul.f32 %v7461_v34, %v8646_v41  ;;  %v7589_v31 = vmul.f32 %v7461_v34, %v8647_v11  ;;  %v8654_v3 = vld [vmem:[#allocation20_spill] sm:$0xff]  ;;  %v8655_v11 = vld [vmem:[#allocation22_spill] sm:$0xff] }
 0x410   :  { %v7593_v6 = vmul.f32 %v7461_v34, %v8648_v18  ;;  %v7597_v15 = vmul.f32 %v7461_v34, %v8649_v23  ;;  %v7601_v61 = vmul.f32 %v7461_v34, %v8650_v14  ;;  %v7605_v27 = vmul.f32 %v7461_v34, %v8651_v58  ;;  %v8656_v23 = vld [vmem:[#allocation25_spill] sm:$0xff] }
 0x411   :  { %v7609_v60 = vmul.f32 %v7461_v34, %v8653_v33  ;;  %v7613_v41 = vmul.f32 %v7461_v34, %v8654_v3  ;;  %v7617_v18 = vmul.f32 %v7461_v34, %v8655_v11  ;;  %v7621_v14 = vmul.f32 %v7461_v34, %v8656_v23 }
 0x412   :  { %8652 = vst [vmem:[#allocation24_spill] sm:$0xff] %v7605_v27  ;;  %v7625_v58 = vmul.f32 %v7461_v34, %v7391_v55  ;;  %v8657_v27 = vld [vmem:[#allocation27_spill] sm:$0xff]  ;;  %v7633_v3 = vmul.f32 %v7461_v34, %v7403_v59  ;;  %v7637_v11 = vmul.f32 %v7461_v34, %v7409_v40  ;;  %v7641_v23 = vmul.f32 %v7461_v34, %v7415_v32 }
 0x413   :  { %v7629_v33 = vmul.f32 %v7461_v34, %v8657_v27  ;;  %v7645_v55 = vmul.f32 %v7461_v34, %v7088_v37  ;;  %v7649_v27 = vmul.f32 %v7461_v34, %v7092_v24  ;;  %v7653_v59 = vmul.f32 %v7461_v34, %v7096_v12 }
 0x414   :  { %v7657_v40 = vmul.f32 %v7461_v34, %v7100_v50  ;;  %v7661_v32 = vmul.f32 %v7461_v34, %v7104_v35  ;;  %v7665_v37 = vmul.f32 %v7461_v34, %v7108_v22  ;;  %v7669_v24 = vmul.f32 %v7461_v34, %v7112_v4  ;;  %v7690_v4 = vld [vmem:[%s8500_s3] ss:$0 sm:$0xff] }
 0x415   :  { %v7673_v12 = vmul.f32 %v7461_v34, %v7116_v38  ;;  %v7677_v50 = vmul.f32 %v7461_v34, %v7119_v39  ;;  %v7681_v35 = vmul.f32 %v7461_v34, %v7123_v21  ;;  %v7685_v22 = vmul.f32 %v7461_v34, %v7127_v49 }
 0x416   :  { %8658 = vst [vmem:[#allocation26_spill] sm:$0xff] %v7665_v37  ;;  %8659 = vst [vmem:[#allocation2_spill] sm:$0xff] %v7669_v24  ;;  %v7694_v38 = vmul.f32 %v7461_v34, %v7130_v44  ;;  %v8668_v37 = vld [vmem:[#allocation12_spill] sm:$0xff] }
 0x417   :  { %8660 = vst [vmem:[#allocation30_spill] sm:$0xff] %v7673_v12  ;;  %8661 = vst [vmem:[#allocation28_spill] sm:$0xff] %v7677_v50  ;;  %v8664_v12 = vld [vmem:[#allocation8_spill] sm:$0xff]  ;;  %v8665_v50 = vld [vmem:[#allocation9_spill] sm:$0xff]  ;;  %v7714_v44 = vmul.f32 %v7461_v34, %v8668_v37  ;;  %v7734_v37 = vmul.f32 %v7690_v4, %v7473_v51  ;;  %v7758_v51 = vmul.f32 %v7690_v4, %v7497_v52 }
 0x418   :  { %8662 = vst [vmem:[#allocation29_spill] sm:$0xff] %v7681_v35  ;;  %8663 = vst [vmem:[#allocation4_spill] sm:$0xff] %v7685_v22  ;;  %v7698_v39 = vmul.f32 %v7461_v34, %v8664_v12  ;;  %v7702_v21 = vmul.f32 %v7461_v34, %v8665_v50  ;;  %v8666_v35 = vld [vmem:[#allocation10_spill] sm:$0xff]  ;;  %v8667_v22 = vld [vmem:[#allocation11_spill] sm:$0xff]  ;;  %v7718_v12 = vmul.f32 %v7461_v34, %v7148_v26 }
 0x419   :  { %v7706_v49 = vmul.f32 %v7461_v34, %v8666_v35  ;;  %v7710_v24 = vmul.f32 %v7461_v34, %v8667_v22  ;;  %v7722_v50 = vmul.f32 %v7461_v34, %v7151_v28  ;;  %v7726_v35 = vmul.f32 %v7690_v4, %v7465_v5 }
 0x41a   :  { %v7730_v22 = vmul.f32 %v7690_v4, %v7469_v2  ;;  %v7738_v26 = vmul.f32 %v7690_v4, %v7477_v9  ;;  %v7742_v34 = vmul.f32 %v7690_v4, %v7481_v0  ;;  %v7746_v28 = vmul.f32 %v7690_v4, %v7485_v48 }
 0x41b   :  { %v7750_v5 = vmul.f32 %v7690_v4, %v7489_v56  ;;  %v7754_v2 = vmul.f32 %v7690_v4, %v7493_v7  ;;  %v7762_v9 = vmul.f32 %v7690_v4, %v7501_v13  ;;  %v7766_v0 = vmul.f32 %v7690_v4, %v7505_v57 }
 0x41c   :  { %v7770_v48 = vmul.f32 %v7690_v4, %v7509_v36  ;;  %v7774_v56 = vmul.f32 %v7690_v4, %v7513_v19  ;;  %v7778_v7 = vmul.f32 %v7690_v4, %v7517_v10  ;;  %v7782_v52 = vmul.f32 %v7690_v4, %v7521_v25 }
 0x41d   :  { %v7786_v13 = vmul.f32 %v7690_v4, %v7525_v8  ;;  %v7790_v57 = vmul.f32 %v7690_v4, %v7529_v54  ;;  %v7794_v36 = vmul.f32 %v7690_v4, %v7533_v45  ;;  %v7798_v19 = vmul.f32 %v7690_v4, %v7537_v1 }
 0x41e   :  { %v7802_v10 = vmul.f32 %v7690_v4, %v7541_v63  ;;  %v7806_v25 = vmul.f32 %v7690_v4, %v7545_v43  ;;  %v7810_v8 = vmul.f32 %v7690_v4, %v7549_v47  ;;  %v7814_v54 = vmul.f32 %v7690_v4, %v7553_v30 }
 0x41f   :  { %v7818_v45 = vmul.f32 %v7690_v4, %v7557_v16  ;;  %v7822_v1 = vmul.f32 %v7690_v4, %v7561_v29  ;;  %v7826_v63 = vmul.f32 %v7690_v4, %v7565_v42  ;;  %v7830_v43 = vmul.f32 %v7690_v4, %v7569_v46 }
 0x420   :  { %v7834_v47 = vmul.f32 %v7690_v4, %v7573_v62  ;;  %v7838_v30 = vmul.f32 %v7690_v4, %v7577_v53  ;;  %v7842_v16 = vmul.f32 %v7690_v4, %v7581_v20  ;;  %v7846_v29 = vmul.f32 %v7690_v4, %v7585_v17  ;;  %v8669_v20 = vld [vmem:[#allocation24_spill] sm:$0xff] }
 0x421   :  { %v7850_v42 = vmul.f32 %v7690_v4, %v7589_v31  ;;  %v7854_v46 = vmul.f32 %v7690_v4, %v7593_v6  ;;  %v7858_v62 = vmul.f32 %v7690_v4, %v7597_v15  ;;  %v7862_v53 = vmul.f32 %v7690_v4, %v7601_v61 }
 0x422   :  { %v7866_v17 = vmul.f32 %v7690_v4, %v8669_v20  ;;  %v7870_v31 = vmul.f32 %v7690_v4, %v7609_v60  ;;  %v7874_v6 = vmul.f32 %v7690_v4, %v7613_v41  ;;  %v7878_v15 = vmul.f32 %v7690_v4, %v7617_v18 }
 0x423   :  { %v7882_v61 = vmul.f32 %v7690_v4, %v7621_v14  ;;  %v7886_v20 = vmul.f32 %v7690_v4, %v7625_v58  ;;  %v7890_v60 = vmul.f32 %v7690_v4, %v7629_v33  ;;  %v7894_v41 = vmul.f32 %v7690_v4, %v7633_v3 }
 0x424   :  { %v7898_v18 = vmul.f32 %v7690_v4, %v7637_v11  ;;  %v7902_v14 = vmul.f32 %v7690_v4, %v7641_v23  ;;  %v7906_v58 = vmul.f32 %v7690_v4, %v7645_v55  ;;  %v7910_v33 = vmul.f32 %v7690_v4, %v7649_v27 }
 0x425   :  { %v7914_v3 = vmul.f32 %v7690_v4, %v7653_v59  ;;  %v7918_v11 = vmul.f32 %v7690_v4, %v7657_v40  ;;  %v7922_v23 = vmul.f32 %v7690_v4, %v7661_v32 }
 0x426   :  { %8670 = vst [vmem:[#allocation32_spill] sm:$0xff] %v7902_v14  ;;  %8671 = vst [vmem:[#allocation3_spill] sm:$0xff] %v7906_v58  ;;  %v8676_v14 = vld [vmem:[#allocation26_spill] sm:$0xff] }
 0x427   :  { %8672 = vst [vmem:[#allocation31_spill] sm:$0xff] %v7910_v33  ;;  %8673 = vst [vmem:[#allocation6_spill] sm:$0xff] %v7914_v3  ;;  %v7926_v55 = vmul.f32 %v7690_v4, %v8676_v14  ;;  %v8677_v58 = vld [vmem:[#allocation2_spill] sm:$0xff]  ;;  %v8679_v3 = vld [vmem:[#allocation28_spill] sm:$0xff] }
 0x428   :  { %8674 = vst [vmem:[#allocation34_spill] sm:$0xff] %v7918_v11  ;;  %8675 = vst [vmem:[#allocation5_spill] sm:$0xff] %v7922_v23  ;;  %v7930_v27 = vmul.f32 %v7690_v4, %v8677_v58  ;;  %v8678_v33 = vld [vmem:[#allocation30_spill] sm:$0xff]  ;;  %v7938_v40 = vmul.f32 %v7690_v4, %v8679_v3  ;;  %v8680_v11 = vld [vmem:[#allocation29_spill] sm:$0xff]  ;;  %v7959_v3 = vmul.f32 %v7690_v4, %v7698_v39 }
 0x429   :  { %v7934_v59 = vmul.f32 %v7690_v4, %v8678_v33  ;;  %v7942_v32 = vmul.f32 %v7690_v4, %v8680_v11  ;;  %v8681_v23 = vld [vmem:[#allocation4_spill] sm:$0xff]  ;;  %v7951_v58 = vld [vmem:[%s8501_s4] ss:$0 sm:$0xff]  ;;  %v7955_v33 = vmul.f32 %v7690_v4, %v7694_v38  ;;  %v7963_v11 = vmul.f32 %v7690_v4, %v7702_v21 }
 0x42a   :  { %v7946_v14 = vmul.f32 %v7690_v4, %v8681_v23  ;;  %v7967_v23 = vmul.f32 %v7690_v4, %v7706_v49  ;;  %v7975_v38 = vmul.f32 %v7690_v4, %v7714_v44  ;;  %v7979_v39 = vmul.f32 %v7690_v4, %v7718_v12 }
 0x42b   :  { %v7983_v21 = vmul.f32 %v7690_v4, %v7722_v50  ;;  %v7987_v49 = vadd.f32 %v7951_v58, %v7726_v35  ;;  %v7995_v44 = vadd.f32 %v7951_v58, %v7734_v37  ;;  %v7999_v12 = vadd.f32 %v7951_v58, %v7738_v26 }
 0x42c   :  { %8682 = vst [vmem:[#allocation33_spill] sm:$0xff] %v7946_v14  ;;  %v7971_v14 = vmul.f32 %v7690_v4, %v7710_v24  ;;  %v7991_v24 = vadd.f32 %v7951_v58, %v7730_v22  ;;  %v8003_v4 = vadd.f32 %v7951_v58, %v7742_v34  ;;  %v8007_v50 = vadd.f32 %v7951_v58, %v7746_v28 }
 0x42d   :  { %v8011_v35 = vadd.f32 %v7951_v58, %v7750_v5  ;;  %v8015_v22 = vadd.f32 %v7951_v58, %v7754_v2  ;;  %v8019_v37 = vadd.f32 %v7951_v58, %v7758_v51  ;;  %v8023_v26 = vadd.f32 %v7951_v58, %v7762_v9 }
 0x42e   :  { %v8027_v34 = vadd.f32 %v7951_v58, %v7766_v0  ;;  %v8031_v28 = vadd.f32 %v7951_v58, %v7770_v48  ;;  %v8035_v5 = vadd.f32 %v7951_v58, %v7774_v56  ;;  %v8039_v2 = vadd.f32 %v7951_v58, %v7778_v7 }
 0x42f   :  { %v8043_v51 = vadd.f32 %v7951_v58, %v7782_v52  ;;  %v8047_v9 = vadd.f32 %v7951_v58, %v7786_v13  ;;  %v8051_v0 = vadd.f32 %v7951_v58, %v7790_v57  ;;  %v8055_v48 = vadd.f32 %v7951_v58, %v7794_v36 }
 0x430   :  { %v8059_v56 = vadd.f32 %v7951_v58, %v7798_v19  ;;  %v8063_v7 = vadd.f32 %v7951_v58, %v7802_v10  ;;  %v8067_v52 = vadd.f32 %v7951_v58, %v7806_v25  ;;  %v8071_v13 = vadd.f32 %v7951_v58, %v7810_v8 }
 0x431   :  { %v8075_v57 = vadd.f32 %v7951_v58, %v7814_v54  ;;  %v8079_v36 = vadd.f32 %v7951_v58, %v7818_v45  ;;  %v8083_v19 = vadd.f32 %v7951_v58, %v7822_v1  ;;  %v8087_v10 = vadd.f32 %v7951_v58, %v7826_v63 }
 0x432   :  { %v8091_v25 = vadd.f32 %v7951_v58, %v7830_v43  ;;  %v8095_v8 = vadd.f32 %v7951_v58, %v7834_v47  ;;  %v8099_v54 = vadd.f32 %v7951_v58, %v7838_v30  ;;  %v8103_v45 = vadd.f32 %v7951_v58, %v7842_v16 }
 0x433   :  { %v8107_v1 = vadd.f32 %v7951_v58, %v7846_v29  ;;  %v8111_v63 = vadd.f32 %v7951_v58, %v7850_v42  ;;  %v8115_v43 = vadd.f32 %v7951_v58, %v7854_v46  ;;  %v8119_v47 = vadd.f32 %v7951_v58, %v7858_v62 }
 0x434   :  { %v8123_v30 = vadd.f32 %v7951_v58, %v7862_v53  ;;  %v8127_v16 = vadd.f32 %v7951_v58, %v7866_v17  ;;  %v8131_v29 = vadd.f32 %v7951_v58, %v7870_v31  ;;  %v8135_v42 = vadd.f32 %v7951_v58, %v7874_v6 }
 0x435   :  { %v8139_v46 = vadd.f32 %v7951_v58, %v7878_v15  ;;  %v8143_v62 = vadd.f32 %v7951_v58, %v7882_v61  ;;  %v8147_v53 = vadd.f32 %v7951_v58, %v7886_v20  ;;  %v8151_v17 = vadd.f32 %v7951_v58, %v7890_v60  ;;  %v8688_v15 = vld [vmem:[#allocation32_spill] sm:$0xff] }
 0x436   :  { %v8155_v31 = vadd.f32 %v7951_v58, %v7894_v41  ;;  %v8159_v6 = vadd.f32 %v7951_v58, %v7898_v18  ;;  %v8163_v61 = vadd.f32 %v7951_v58, %v8688_v15 }
 0x437   :  { %8683 = vst [vmem:[#allocation7_spill] sm:$0xff] %v8143_v62  ;;  %8684 = vst [vmem:[#allocation13_spill] sm:$0xff] %v8147_v53  ;;  %v8689_v62 = vld [vmem:[#allocation3_spill] sm:$0xff] }
 0x438   :  { %8685 = vst [vmem:[#allocation14_spill] sm:$0xff] %v8151_v17  ;;  %8686 = vst [vmem:[#allocation15_spill] sm:$0xff] %v8155_v31  ;;  %v8167_v20 = vadd.f32 %v7951_v58, %v8689_v62  ;;  %v8690_v53 = vld [vmem:[#allocation31_spill] sm:$0xff]  ;;  %v8691_v17 = vld [vmem:[#allocation6_spill] sm:$0xff]  ;;  %v8187_v62 = vadd.f32 %v7951_v58, %v7926_v55 }
 0x439   :  { %8687 = vst [vmem:[#allocation17_spill] sm:$0xff] %v8159_v6  ;;  %v8171_v60 = vadd.f32 %v7951_v58, %v8690_v53  ;;  %v8175_v41 = vadd.f32 %v7951_v58, %v8691_v17  ;;  %v8692_v31 = vld [vmem:[#allocation34_spill] sm:$0xff]  ;;  %v8693_v6 = vld [vmem:[#allocation5_spill] sm:$0xff]  ;;  %v8191_v53 = vadd.f32 %v7951_v58, %v7930_v27  ;;  %v8195_v17 = vadd.f32 %v7951_v58, %v7934_v59 }
 0x43a   :  { %v8179_v18 = vadd.f32 %v7951_v58, %v8692_v31  ;;  %v8183_v15 = vadd.f32 %v7951_v58, %v8693_v6  ;;  %v8199_v31 = vadd.f32 %v7951_v58, %v7938_v40  ;;  %v8203_v6 = vadd.f32 %v7951_v58, %v7942_v32 }
 0x43b   :  { %v8211_v27 = vadd.f32 %v7951_v58, %v7955_v33  ;;  %v8215_v59 = vadd.f32 %v7951_v58, %v7959_v3  ;;  %v8219_v40 = vadd.f32 %v7951_v58, %v7963_v11  ;;  %v8223_v32 = vadd.f32 %v7951_v58, %v7967_v23 }
 0x43c   :  { %8694 = vst [vmem:[#allocation16_spill] sm:$0xff] %v8183_v15  ;;  %v8695_v15 = vld [vmem:[#allocation33_spill] sm:$0xff]  ;;  %v8231_v33 = vadd.f32 %v7951_v58, %v7975_v38  ;;  %v8235_v3 = vadd.f32 %v7951_v58, %v7979_v39  ;;  %v8239_v11 = vadd.f32 %v7951_v58, %v7983_v21  ;;  %v3392_v23 = vmax.f32 %v7991_v24, 0.0 }
 0x43d   :  { %v8207_v55 = vadd.f32 %v7951_v58, %v8695_v15  ;;  %8696 = vst [vmem:[#allocation18_spill] sm:$0xff] %v8219_v40  ;;  %8697 = vst [vmem:[#allocation19_spill] sm:$0xff] %v8223_v32  ;;  %v8227_v15 = vadd.f32 %v7951_v58, %v7971_v14  ;;  %v3391_v40 = vmax.f32 %v7987_v49, 0.0  ;;  %v3393_v32 = vmax.f32 %v7995_v44, 0.0 }
 0x43e   :  { %8699 = vst [vmem:[#allocation23_spill] sm:$0xff] %v8231_v33  ;;  %8700 = vst [vmem:[#allocation20_spill] sm:$0xff] %v8235_v3  ;;  %v3394_v14 = vmax.f32 %v7999_v12, 0.0  ;;  %v3396_v38 = vmax.f32 %v8007_v50, 0.0  ;;  %v3397_v33 = vmax.f32 %v8011_v35, 0.0  ;;  %v3398_v39 = vmax.f32 %v8015_v22, 0.0 }
 0x43f   :  { %8698 = vst [vmem:[#allocation21_spill] sm:$0xff] %v8227_v15  ;;  %v3395_v15 = vmax.f32 %v8003_v4, 0.0  ;;  %v3399_v3 = vmax.f32 %v8019_v37, 0.0  ;;  %v3400_v58 = vmax.f32 %v8023_v26, 0.0  ;;  %v3401_v21 = vmax.f32 %v8027_v34, 0.0  ;;  %3455 = vst [vmem:[%s8502_s5] sm:$0xff] %v3391_v40 }
 0x440   :  { %v3402_v49 = vmax.f32 %v8031_v28, 0.0  ;;  %3456 = vst [vmem:[%s8502_s5 + $0x8] sm:$0xff] %v3392_v23  ;;  %3457 = vst [vmem:[%s8502_s5 + $0x10] sm:$0xff] %v3393_v32  ;;  %v3403_v24 = vmax.f32 %v8035_v5, 0.0  ;;  %v3404_v44 = vmax.f32 %v8039_v2, 0.0  ;;  %v3405_v12 = vmax.f32 %v8043_v51, 0.0 }
 0x441   :  { %3458 = vst [vmem:[%s8502_s5 + $0x18] sm:$0xff] %v3394_v14  ;;  %v3406_v4 = vmax.f32 %v8047_v9, 0.0  ;;  %3459 = vst [vmem:[%s8502_s5 + $0x20] sm:$0xff] %v3395_v15  ;;  %v3407_v50 = vmax.f32 %v8051_v0, 0.0  ;;  %v3408_v35 = vmax.f32 %v8055_v48, 0.0  ;;  %v3409_v22 = vmax.f32 %v8059_v56, 0.0 }
 0x442   :  { %3460 = vst [vmem:[%s8502_s5 + $0x28] sm:$0xff] %v3396_v38  ;;  %3461 = vst [vmem:[%s8502_s5 + $0x30] sm:$0xff] %v3397_v33  ;;  %v3410_v37 = vmax.f32 %v8063_v7, 0.0  ;;  %v3411_v26 = vmax.f32 %v8067_v52, 0.0  ;;  %v3412_v34 = vmax.f32 %v8071_v13, 0.0  ;;  %v3413_v28 = vmax.f32 %v8075_v57, 0.0 }
 0x443   :  { %3462 = vst [vmem:[%s8502_s5 + $0x38] sm:$0xff] %v3398_v39  ;;  %3463 = vst [vmem:[%s8502_s5 + $0x40] sm:$0xff] %v3399_v3  ;;  %v3414_v5 = vmax.f32 %v8079_v36, 0.0  ;;  %v3415_v2 = vmax.f32 %v8083_v19, 0.0  ;;  %v3416_v51 = vmax.f32 %v8087_v10, 0.0  ;;  %v3417_v9 = vmax.f32 %v8091_v25, 0.0 }
 0x444   :  { %3464 = vst [vmem:[%s8502_s5 + $0x48] sm:$0xff] %v3400_v58  ;;  %3465 = vst [vmem:[%s8502_s5 + $0x50] sm:$0xff] %v3401_v21  ;;  %v3418_v0 = vmax.f32 %v8095_v8, 0.0  ;;  %v3419_v48 = vmax.f32 %v8099_v54, 0.0  ;;  %v3420_v56 = vmax.f32 %v8103_v45, 0.0  ;;  %v3421_v7 = vmax.f32 %v8107_v1, 0.0 }
 0x445   :  { %3466 = vst [vmem:[%s8502_s5 + $0x58] sm:$0xff] %v3402_v49  ;;  %3467 = vst [vmem:[%s8502_s5 + $0x60] sm:$0xff] %v3403_v24  ;;  %v3422_v52 = vmax.f32 %v8111_v63, 0.0  ;;  %v3423_v13 = vmax.f32 %v8115_v43, 0.0  ;;  %v3424_v57 = vmax.f32 %v8119_v47, 0.0  ;;  %v3425_v36 = vmax.f32 %v8123_v30, 0.0 }
 0x446   :  { %3468 = vst [vmem:[%s8502_s5 + $0x68] sm:$0xff] %v3404_v44  ;;  %3469 = vst [vmem:[%s8502_s5 + $0x70] sm:$0xff] %v3405_v12  ;;  %v3426_v19 = vmax.f32 %v8127_v16, 0.0  ;;  %v3427_v10 = vmax.f32 %v8131_v29, 0.0  ;;  %v3428_v25 = vmax.f32 %v8135_v42, 0.0  ;;  %v3429_v8 = vmax.f32 %v8139_v46, 0.0 }
 0x447   :  { %3470 = vst [vmem:[%s8502_s5 + $0x78] sm:$0xff] %v3406_v4  ;;  %3471 = vst [vmem:[%s8502_s5 + $0x80] sm:$0xff] %v3407_v50  ;;  %v8701_v54 = vld [vmem:[#allocation7_spill] sm:$0xff]  ;;  %v8702_v1 = vld [vmem:[#allocation13_spill] sm:$0xff]  ;;  %v3435_v46 = vmax.f32 %v8163_v61, 0.0  ;;  %v3436_v40 = vmax.f32 %v8167_v20, 0.0 }
 0x448   :  { %3472 = vst [vmem:[%s8502_s5 + $0x88] sm:$0xff] %v3408_v35  ;;  %3473 = vst [vmem:[%s8502_s5 + $0x90] sm:$0xff] %v3409_v22  ;;  %v3430_v45 = vmax.f32 %v8701_v54, 0.0  ;;  %v3431_v63 = vmax.f32 %v8702_v1, 0.0  ;;  %v8703_v43 = vld [vmem:[#allocation14_spill] sm:$0xff]  ;;  %v8704_v30 = vld [vmem:[#allocation15_spill] sm:$0xff] }
 0x449   :  { %3474 = vst [vmem:[%s8502_s5 + $0x98] sm:$0xff] %v3410_v37  ;;  %3475 = vst [vmem:[%s8502_s5 + $0xa0] sm:$0xff] %v3411_v26  ;;  %v3432_v47 = vmax.f32 %v8703_v43, 0.0  ;;  %v3433_v16 = vmax.f32 %v8704_v30, 0.0  ;;  %v8705_v29 = vld [vmem:[#allocation17_spill] sm:$0xff]  ;;  %v3437_v32 = vmax.f32 %v8171_v60, 0.0 }
 0x44a   :  { %3476 = vst [vmem:[%s8502_s5 + $0xa8] sm:$0xff] %v3412_v34  ;;  %3477 = vst [vmem:[%s8502_s5 + $0xb0] sm:$0xff] %v3413_v28  ;;  %v3434_v42 = vmax.f32 %v8705_v29, 0.0  ;;  %v3438_v15 = vmax.f32 %v8175_v41, 0.0  ;;  %v3439_v61 = vmax.f32 %v8179_v18, 0.0  ;;  %v8706_v20 = vld [vmem:[#allocation16_spill] sm:$0xff] }
 0x44b   :  { %3478 = vst [vmem:[%s8502_s5 + $0xb8] sm:$0xff] %v3414_v5  ;;  %3479 = vst [vmem:[%s8502_s5 + $0xc0] sm:$0xff] %v3415_v2  ;;  %v3440_v60 = vmax.f32 %v8706_v20, 0.0  ;;  %v3441_v41 = vmax.f32 %v8187_v62, 0.0  ;;  %v3442_v33 = vmax.f32 %v8191_v53, 0.0  ;;  %v3443_v18 = vmax.f32 %v8195_v17, 0.0 }
 0x44c   :  { %3480 = vst [vmem:[%s8502_s5 + $0xc8] sm:$0xff] %v3416_v51  ;;  %3481 = vst [vmem:[%s8502_s5 + $0xd0] sm:$0xff] %v3417_v9  ;;  %v3444_v62 = vmax.f32 %v8199_v31, 0.0  ;;  %v3445_v53 = vmax.f32 %v8203_v6, 0.0  ;;  %v3446_v3 = vmax.f32 %v8207_v55, 0.0  ;;  %v3447_v17 = vmax.f32 %v8211_v27, 0.0 }
 0x44d   :  { %3482 = vst [vmem:[%s8502_s5 + $0xd8] sm:$0xff] %v3418_v0  ;;  %3483 = vst [vmem:[%s8502_s5 + $0xe0] sm:$0xff] %v3419_v48  ;;  %v3448_v31 = vmax.f32 %v8215_v59, 0.0  ;;  %v8707_v6 = vld [vmem:[#allocation18_spill] sm:$0xff]  ;;  %v8708_v23 = vld [vmem:[#allocation19_spill] sm:$0xff]  ;;  %v3454_v49 = vmax.f32 %v8239_v11, 0.0 }
 0x44e   :  { %3484 = vst [vmem:[%s8502_s5 + $0xe8] sm:$0xff] %v3420_v56  ;;  %3485 = vst [vmem:[%s8502_s5 + $0xf0] sm:$0xff] %v3421_v7  ;;  %v3449_v55 = vmax.f32 %v8707_v6, 0.0  ;;  %v3450_v14 = vmax.f32 %v8708_v23, 0.0  ;;  %v8709_v27 = vld [vmem:[#allocation21_spill] sm:$0xff]  ;;  %v8710_v38 = vld [vmem:[#allocation23_spill] sm:$0xff] }
 0x44f   :  { %3486 = vst [vmem:[%s8502_s5 + $0xf8] sm:$0xff] %v3422_v52  ;;  %3487 = vst [vmem:[%s8502_s5 + $0x100] sm:$0xff] %v3423_v13  ;;  %v3451_v59 = vmax.f32 %v8709_v27, 0.0  ;;  %v3452_v39 = vmax.f32 %v8710_v38, 0.0  ;;  %v8711_v58 = vld [vmem:[#allocation20_spill] sm:$0xff] }
 0x450   :  { %3488 = vst [vmem:[%s8502_s5 + $0x108] sm:$0xff] %v3424_v57  ;;  %3489 = vst [vmem:[%s8502_s5 + $0x110] sm:$0xff] %v3425_v36  ;;  %v3453_v21 = vmax.f32 %v8711_v58, 0.0 }
 0x451   :  { %3490 = vst [vmem:[%s8502_s5 + $0x118] sm:$0xff] %v3426_v19  ;;  %3491 = vst [vmem:[%s8502_s5 + $0x120] sm:$0xff] %v3427_v10 }
 0x452   :  { %3492 = vst [vmem:[%s8502_s5 + $0x128] sm:$0xff] %v3428_v25  ;;  %3493 = vst [vmem:[%s8502_s5 + $0x130] sm:$0xff] %v3429_v8 }
 0x453   :  { %3494 = vst [vmem:[%s8502_s5 + $0x138] sm:$0xff] %v3430_v45  ;;  %3495 = vst [vmem:[%s8502_s5 + $0x140] sm:$0xff] %v3431_v63 }
 0x454   :  { %3496 = vst [vmem:[%s8502_s5 + $0x148] sm:$0xff] %v3432_v47  ;;  %3497 = vst [vmem:[%s8502_s5 + $0x150] sm:$0xff] %v3433_v16 }
 0x455   :  { %3498 = vst [vmem:[%s8502_s5 + $0x158] sm:$0xff] %v3434_v42  ;;  %3499 = vst [vmem:[%s8502_s5 + $0x160] sm:$0xff] %v3435_v46 }
 0x456   :  { %3500 = vst [vmem:[%s8502_s5 + $0x168] sm:$0xff] %v3436_v40  ;;  %3501 = vst [vmem:[%s8502_s5 + $0x170] sm:$0xff] %v3437_v32 }
 0x457   :  { %3502 = vst [vmem:[%s8502_s5 + $0x178] sm:$0xff] %v3438_v15  ;;  %3503 = vst [vmem:[%s8502_s5 + $0x180] sm:$0xff] %v3439_v61 }
 0x458   :  { %3504 = vst [vmem:[%s8502_s5 + $0x188] sm:$0xff] %v3440_v60  ;;  %3505 = vst [vmem:[%s8502_s5 + $0x190] sm:$0xff] %v3441_v41 }
 0x459   :  { %3506 = vst [vmem:[%s8502_s5 + $0x198] sm:$0xff] %v3442_v33  ;;  %3507 = vst [vmem:[%s8502_s5 + $0x1a0] sm:$0xff] %v3443_v18 }
 0x45a   :  { %3508 = vst [vmem:[%s8502_s5 + $0x1a8] sm:$0xff] %v3444_v62  ;;  %3509 = vst [vmem:[%s8502_s5 + $0x1b0] sm:$0xff] %v3445_v53 }
 0x45b   :  { %3510 = vst [vmem:[%s8502_s5 + $0x1b8] sm:$0xff] %v3446_v3  ;;  %3511 = vst [vmem:[%s8502_s5 + $0x1c0] sm:$0xff] %v3447_v17 }
 0x45c   :  { %3512 = vst [vmem:[%s8502_s5 + $0x1c8] sm:$0xff] %v3448_v31  ;;  %3513 = vst [vmem:[%s8502_s5 + $0x1d0] sm:$0xff] %v3449_v55 }
 0x45d   :  { %3514 = vst [vmem:[%s8502_s5 + $0x1d8] sm:$0xff] %v3450_v14  ;;  %3515 = vst [vmem:[%s8502_s5 + $0x1e0] sm:$0xff] %v3451_v59 }
 0x45e   :  { %3516 = vst [vmem:[%s8502_s5 + $0x1e8] sm:$0xff] %v3452_v39  ;;  %3517 = vst [vmem:[%s8502_s5 + $0x1f0] sm:$0xff] %v3453_v21 }
 0x45f   :  { %3518 = vst [vmem:[%s8502_s5 + $0x1f8] sm:$0xff] %v3454_v49 }

// kernel: unet_forward.25
= control target key start
LH: loop header
LB: loop body
LE: loop exit
PB: predicated region body
PF: predicated region fallthrough
CT: control target
= control target key end

     0   :  { %s1942_s1 = inlined_call_operand.vmem [shape: bf16[128,128], index: 1, kind: input, shape index: {}]   ;;  %s1943_s0 = inlined_call_operand.vmem [shape: f32[512,128], index: 0, kind: input, shape index: {}]   ;;  %s1944_s2 = inlined_call_operand.vmem [shape: f32[1,128], index: 2, kind: input, shape index: {}]   ;;  %s1945_s3 = inlined_call_operand.vmem [shape: f32[512,128], index: 3, kind: output, shape index: {}]  }
   0x1   :  { %v1068_v0 = vld [vmem:[%s1942_s1] sm:$0xff]   ;;  %v1069_v1 = vld [vmem:[%s1942_s1 + $0x8] sm:$0xff]   ;;  %v1070_v2 = vld [vmem:[%s1942_s1 + $0x10] sm:$0xff]  }
   0x2   :  { %972 = vmatprep.subr.bf16.mxu0 %v1068_v0  ;;  %1052 = vmatprep.subr.bf16.mxu1 %v1068_v0  ;;  %v1071_v3 = vld [vmem:[%s1942_s1 + $0x18] sm:$0xff]   ;;  %v15_v4 = vld [vmem:[%s1943_s0] sm:$0xff]  ;;  %v16_v5 = vld [vmem:[%s1943_s0 + $0x8] sm:$0xff] }
   0x3   :  { %973 = vmatpush3.bf16.msra.mxu0 %v1068_v0  ;;  %1060 = vmatpush3.bf16.msra.mxu1 %v1068_v0  ;;  %v47_v6 = vld [vmem:[%s1943_s0 + $0x100] sm:$0xff]  ;;  %v79_v7 = vpack.c.bf16 %v16_v5, %v15_v4  ;;  %v48_v8 = vld [vmem:[%s1943_s0 + $0x108] sm:$0xff]  ;;  %v1074_v12 = vld [vmem:[%s1942_s1 + $0x30] sm:$0xff]  }
   0x4   :  { %974 = vmatprep.subr.bf16.mxu0 %v1069_v1  ;;  %1053 = vmatprep.subr.bf16.mxu1 %v1069_v1  ;;  %v95_v9 = vpack.c.bf16 %v48_v8, %v47_v6  ;;  %v1072_v10 = vld [vmem:[%s1942_s1 + $0x20] sm:$0xff]   ;;  %v1073_v11 = vld [vmem:[%s1942_s1 + $0x28] sm:$0xff]   ;;  %v1075_v13 = vld [vmem:[%s1942_s1 + $0x38] sm:$0xff]  }
   0x5   :  { %988 = vmatprep.mubr.bf16.mxu0 %v79_v7  ;;  %v17_v14 = vld [vmem:[%s1943_s0 + $0x10] sm:$0xff]  ;;  %v18_v15 = vld [vmem:[%s1943_s0 + $0x18] sm:$0xff]  ;;  %v19_v18 = vld [vmem:[%s1943_s0 + $0x20] sm:$0xff] }
   0x6   :  { %1020 = vmatprep.mubr.bf16.mxu1 %v95_v9  ;;  %v49_v16 = vld [vmem:[%s1943_s0 + $0x110] sm:$0xff]  ;;  %v50_v17 = vld [vmem:[%s1943_s0 + $0x118] sm:$0xff]  ;;  %v20_v19 = vld [vmem:[%s1943_s0 + $0x28] sm:$0xff]  ;;  %v80_v22 = vpack.c.bf16 %v18_v15, %v17_v14 }
   0x7   :  { %975 = vmatpush3.bf16.msra.mxu0 %v1069_v1  ;;  %1061 = vmatpush3.bf16.msra.mxu1 %v1069_v1  ;;  %v51_v20 = vld [vmem:[%s1943_s0 + $0x120] sm:$0xff]  ;;  %v52_v21 = vld [vmem:[%s1943_s0 + $0x128] sm:$0xff]  ;;  %v96_v23 = vpack.c.bf16 %v50_v17, %v49_v16  ;;  %v81_v24 = vpack.c.bf16 %v20_v19, %v19_v18  ;;  %v21_v26 = vld [vmem:[%s1943_s0 + $0x30] sm:$0xff] }
   0x8   :  { %976 = vmatprep.subr.bf16.mxu0 %v1070_v2  ;;  %1054 = vmatprep.subr.bf16.mxu1 %v1070_v2  ;;  %v97_v25 = vpack.c.bf16 %v52_v21, %v51_v20  ;;  %v22_v27 = vld [vmem:[%s1943_s0 + $0x38] sm:$0xff]  ;;  %v53_v28 = vld [vmem:[%s1943_s0 + $0x130] sm:$0xff]  ;;  %v23_v30 = vld [vmem:[%s1943_s0 + $0x40] sm:$0xff] }
   0x9   :  { %v54_v29 = vld [vmem:[%s1943_s0 + $0x138] sm:$0xff]  ;;  %v24_v31 = vld [vmem:[%s1943_s0 + $0x48] sm:$0xff]  ;;  %v55_v32 = vld [vmem:[%s1943_s0 + $0x140] sm:$0xff]  ;;  %v82_v34 = vpack.c.bf16 %v22_v27, %v21_v26 }
   0xa   :  { %v56_v33 = vld [vmem:[%s1943_s0 + $0x148] sm:$0xff]  ;;  %v98_v35 = vpack.c.bf16 %v54_v29, %v53_v28  ;;  %v83_v36 = vpack.c.bf16 %v24_v31, %v23_v30  ;;  %v25_v38 = vld [vmem:[%s1943_s0 + $0x50] sm:$0xff]  ;;  %v26_v39 = vld [vmem:[%s1943_s0 + $0x58] sm:$0xff] }
   0xb   :  { %977 = vmatpush3.bf16.msra.mxu0 %v1070_v2  ;;  %1062 = vmatpush3.bf16.msra.mxu1 %v1070_v2  ;;  %v99_v37 = vpack.c.bf16 %v56_v33, %v55_v32  ;;  %v57_v40 = vld [vmem:[%s1943_s0 + $0x150] sm:$0xff]  ;;  %v58_v41 = vld [vmem:[%s1943_s0 + $0x158] sm:$0xff]  ;;  %v27_v42 = vld [vmem:[%s1943_s0 + $0x60] sm:$0xff]  ;;  %v84_v46 = vpack.c.bf16 %v26_v39, %v25_v38 }
   0xc   :  { %978 = vmatprep.subr.bf16.mxu0 %v1071_v3  ;;  %1055 = vmatprep.subr.bf16.mxu1 %v1071_v3  ;;  %v28_v43 = vld [vmem:[%s1943_s0 + $0x68] sm:$0xff]  ;;  %v59_v44 = vld [vmem:[%s1943_s0 + $0x160] sm:$0xff]  ;;  %v100_v47 = vpack.c.bf16 %v58_v41, %v57_v40  ;;  %v29_v50 = vld [vmem:[%s1943_s0 + $0x70] sm:$0xff] }
   0xd   :  { %v60_v45 = vld [vmem:[%s1943_s0 + $0x168] sm:$0xff]  ;;  %v85_v48 = vpack.c.bf16 %v28_v43, %v27_v42  ;;  %v30_v51 = vld [vmem:[%s1943_s0 + $0x78] sm:$0xff]  ;;  %v61_v52 = vld [vmem:[%s1943_s0 + $0x170] sm:$0xff] }
   0xe   :  { %v101_v49 = vpack.c.bf16 %v60_v45, %v59_v44  ;;  %v62_v53 = vld [vmem:[%s1943_s0 + $0x178] sm:$0xff]  ;;  %v31_v54 = vld [vmem:[%s1943_s0 + $0x80] sm:$0xff]  ;;  %v32_v55 = vld [vmem:[%s1943_s0 + $0x88] sm:$0xff]  ;;  %v86_v58 = vpack.c.bf16 %v30_v51, %v29_v50 }
   0xf   :  { %979 = vmatpush3.bf16.msra.mxu0 %v1071_v3  ;;  %1063 = vmatpush3.bf16.msra.mxu1 %v1071_v3  ;;  %v63_v56 = vld [vmem:[%s1943_s0 + $0x180] sm:$0xff]  ;;  %v64_v57 = vld [vmem:[%s1943_s0 + $0x188] sm:$0xff]  ;;  %v102_v59 = vpack.c.bf16 %v62_v53, %v61_v52  ;;  %v87_v60 = vpack.c.bf16 %v32_v55, %v31_v54  ;;  %v33_v62 = vld [vmem:[%s1943_s0 + $0x90] sm:$0xff] }
  0x10   :  { %980 = vmatprep.subr.bf16.mxu0 %v1072_v10  ;;  %1056 = vmatprep.subr.bf16.mxu1 %v1072_v10  ;;  %v103_v61 = vpack.c.bf16 %v64_v57, %v63_v56  ;;  %v34_v63 = vld [vmem:[%s1943_s0 + $0x98] sm:$0xff]  ;;  %v65_v0 = vld [vmem:[%s1943_s0 + $0x190] sm:$0xff]  ;;  %v35_v2 = vld [vmem:[%s1943_s0 + $0xa0] sm:$0xff] }
  0x11   :  { %v66_v1 = vld [vmem:[%s1943_s0 + $0x198] sm:$0xff]  ;;  %v36_v3 = vld [vmem:[%s1943_s0 + $0xa8] sm:$0xff]  ;;  %v67_v4 = vld [vmem:[%s1943_s0 + $0x1a0] sm:$0xff]  ;;  %v88_v6 = vpack.c.bf16 %v34_v63, %v33_v62 }
  0x12   :  { %v68_v5 = vld [vmem:[%s1943_s0 + $0x1a8] sm:$0xff]  ;;  %v104_v7 = vpack.c.bf16 %v66_v1, %v65_v0  ;;  %v89_v8 = vpack.c.bf16 %v36_v3, %v35_v2  ;;  %v39_v14 = vld [vmem:[%s1943_s0 + $0xc0] sm:$0xff] }
  0x13   :  { %981 = vmatpush3.bf16.msra.mxu0 %v1072_v10  ;;  %1064 = vmatpush3.bf16.msra.mxu1 %v1072_v10  ;;  %v105_v9 = vpack.c.bf16 %v68_v5, %v67_v4  ;;  %v37_v10 = vld [vmem:[%s1943_s0 + $0xb0] sm:$0xff]  ;;  %v40_v15 = vld [vmem:[%s1943_s0 + $0xc8] sm:$0xff]  ;;  %v71_v16 = vld [vmem:[%s1943_s0 + $0x1c0] sm:$0xff] }
  0x14   :  { %982 = vmatprep.subr.bf16.mxu0 %v1073_v11  ;;  %1057 = vmatprep.subr.bf16.mxu1 %v1073_v11  ;;  %v72_v17 = vld [vmem:[%s1943_s0 + $0x1c8] sm:$0xff]  ;;  %v91_v20 = vpack.c.bf16 %v40_v15, %v39_v14  ;;  %v43_v26 = vld [vmem:[%s1943_s0 + $0xe0] sm:$0xff] }
  0x15   :  { %v107_v21 = vpack.c.bf16 %v72_v17, %v71_v16  ;;  %v44_v27 = vld [vmem:[%s1943_s0 + $0xe8] sm:$0xff]  ;;  %v75_v28 = vld [vmem:[%s1943_s0 + $0x1e0] sm:$0xff] }
  0x16   :  { %v76_v29 = vld [vmem:[%s1943_s0 + $0x1e8] sm:$0xff]  ;;  %v93_v32 = vpack.c.bf16 %v44_v27, %v43_v26  ;;  %v1572_v40 = vld [vmem:[%s1944_s2] ss:$0 sm:$0xff] }
  0x17   :  { %983 = vmatpush3.bf16.msra.mxu0 %v1073_v11  ;;  %1065 = vmatpush3.bf16.msra.mxu1 %v1073_v11  ;;  %v38_v11 = vld [vmem:[%s1943_s0 + $0xb8] sm:$0xff]  ;;  %v109_v33 = vpack.c.bf16 %v76_v29, %v75_v28 }
  0x18   :  { %984 = vmatprep.subr.bf16.mxu0 %v1074_v12  ;;  %1058 = vmatprep.subr.bf16.mxu1 %v1074_v12  ;;  %v90_v18 = vpack.c.bf16 %v38_v11, %v37_v10 }
  0x1b   :  { %985 = vmatpush3.bf16.msra.mxu0 %v1074_v12  ;;  %1066 = vmatpush3.bf16.msra.mxu1 %v1074_v12  ;;  %v69_v12 = vld [vmem:[%s1943_s0 + $0x1b0] sm:$0xff] }
  0x1c   :  { %986 = vmatprep.subr.bf16.mxu0 %v1075_v13  ;;  %1059 = vmatprep.subr.bf16.mxu1 %v1075_v13 }
  0x1f   :  { %987 = vmatpush3.bf16.msra.mxu0 %v1075_v13  ;;  %1067 = vmatpush3.bf16.msra.mxu1 %v1075_v13  ;;  %v70_v13 = vld [vmem:[%s1943_s0 + $0x1b8] sm:$0xff] }
  0x20   :  { %v106_v19 = vpack.c.bf16 %v70_v13, %v69_v12 }
  0x22   :  { %989 = vmatmul.mubr.bf16.vlgmr.msra.gmra.mrb[0].mxu0 %v80_v22  ;;  %1021 = vmatmul.mubr.bf16.vlgmr.msra.gmra.mrb[0].mxu1 %v96_v23  ;;  %v41_v22 = vld [vmem:[%s1943_s0 + $0xd0] sm:$0xff]  ;;  %v42_v23 = vld [vmem:[%s1943_s0 + $0xd8] sm:$0xff] }
  0x23   :  { %992 = vmatprep.mubr.bf16.mxu0 %v81_v24  ;;  %1024 = vmatprep.mubr.bf16.mxu1 %v97_v25  ;;  %v73_v24 = vld [vmem:[%s1943_s0 + $0x1d0] sm:$0xff]  ;;  %v74_v25 = vld [vmem:[%s1943_s0 + $0x1d8] sm:$0xff]  ;;  %v92_v30 = vpack.c.bf16 %v42_v23, %v41_v22 }
  0x24   :  { %v108_v31 = vpack.c.bf16 %v74_v25, %v73_v24 }
  0x2a   :  { %993 = vmatmul.mubr.bf16.gmra.mrb[4].mxu0 %v82_v34  ;;  %1025 = vmatmul.mubr.bf16.gmra.mrb[4].mxu1 %v98_v35  ;;  %v45_v34 = vld [vmem:[%s1943_s0 + $0xf0] sm:$0xff]  ;;  %v46_v35 = vld [vmem:[%s1943_s0 + $0xf8] sm:$0xff] }
  0x2b   :  { %996 = vmatprep.mubr.bf16.mxu0 %v83_v36  ;;  %1028 = vmatprep.mubr.bf16.mxu1 %v99_v37  ;;  %v77_v36 = vld [vmem:[%s1943_s0 + $0x1f0] sm:$0xff]  ;;  %v78_v37 = vld [vmem:[%s1943_s0 + $0x1f8] sm:$0xff]  ;;  %v94_v38 = vpack.c.bf16 %v46_v35, %v45_v34 }
  0x2c   :  { %v110_v39 = vpack.c.bf16 %v78_v37, %v77_v36 }
  0x32   :  { %997 = vmatmul.mubr.bf16.gmra.mrb[8].mxu0 %v84_v46  ;;  %1029 = vmatmul.mubr.bf16.gmra.mrb[8].mxu1 %v100_v47 }
  0x33   :  { %1000 = vmatprep.mubr.bf16.mxu0 %v85_v48  ;;  %1032 = vmatprep.mubr.bf16.mxu1 %v101_v49 }
  0x3a   :  { %1001 = vmatmul.mubr.bf16.gmra.mrb[12].mxu0 %v86_v58  ;;  %1033 = vmatmul.mubr.bf16.gmra.mrb[12].mxu1 %v102_v59 }
  0x3b   :  { %1004 = vmatprep.mubr.bf16.mxu0 %v87_v60  ;;  %1036 = vmatprep.mubr.bf16.mxu1 %v103_v61 }
  0x42   :  { %1005 = vmatmul.mubr.bf16.gmra.mrb[16].mxu0 %v88_v6  ;;  %1037 = vmatmul.mubr.bf16.gmra.mrb[16].mxu1 %v104_v7 }
  0x43   :  { %1008 = vmatprep.mubr.bf16.mxu0 %v89_v8  ;;  %1040 = vmatprep.mubr.bf16.mxu1 %v105_v9 }
  0x4a   :  { %1009 = vmatmul.mubr.bf16.gmra.mrb[20].mxu0 %v90_v18  ;;  %1041 = vmatmul.mubr.bf16.gmra.mrb[20].mxu1 %v106_v19 }
  0x4b   :  { %1012 = vmatprep.mubr.bf16.mxu0 %v91_v20  ;;  %1044 = vmatprep.mubr.bf16.mxu1 %v107_v21 }
  0x52   :  { %1013 = vmatmul.mubr.bf16.gmra.mrb[24].mxu0 %v92_v30  ;;  %1045 = vmatmul.mubr.bf16.gmra.mrb[24].mxu1 %v108_v31 }
  0x53   :  { %1016 = vmatprep.mubr.bf16.mxu0 %v93_v32  ;;  %1048 = vmatprep.mubr.bf16.mxu1 %v109_v33 }
  0x5a   :  { %1017 = vmatmul.mubr.bf16.gmra.mrb[28].mxu0 %v94_v38  ;;  %1049 = vmatmul.mubr.bf16.gmra.mrb[28].mxu1 %v110_v39 }
  0xf5   :  { %v990_v41 = vpop.f32.mrb[0].mxu0  ;;  %v1022_v42 = vpop.f32.mrb[0].mxu1 }
  0xf6   :  { %v225_v43 = vadd.f32 %v990_v41, %v1572_v40  ;;  %v353_v44 = vadd.f32 %v1022_v42, %v1572_v40  ;;  %v216_v45 = vpop.f32.mrb[1].mxu0  ;;  %v344_v46 = vpop.f32.mrb[1].mxu1 }
  0xf7   :  { %v217_v47 = vadd.f32 %v1572_v40, %v216_v45  ;;  %v345_v48 = vadd.f32 %v1572_v40, %v344_v46  ;;  %v991_v49 = vpop.f32.mrb[2].mxu0  ;;  %v1023_v50 = vpop.f32.mrb[2].mxu1 }
  0xf8   :  { %v473_v51 = vsub.f32 0.0, %v225_v43  ;;  %v505_v52 = vsub.f32 0.0, %v353_v44  ;;  %v228_v53 = vadd.f32 %v991_v49, %v1572_v40  ;;  %v356_v54 = vadd.f32 %v1023_v50, %v1572_v40  ;;  %v219_v55 = vpop.f32.mrb[3].mxu0  ;;  %v347_v56 = vpop.f32.mrb[3].mxu1 }
  0xf9   :  { %v471_v57 = vsub.f32 0.0, %v217_v47  ;;  %v503_v58 = vsub.f32 0.0, %v345_v48  ;;  %v220_v59 = vadd.f32 %v1572_v40, %v219_v55  ;;  %v348_v60 = vadd.f32 %v1572_v40, %v347_v56 }
  0xfa   :  { %v539_v61 = vmul.f32 1.442695, %v473_v51  ;;  %v603_v62 = vmul.f32 1.442695, %v505_v52  ;;  %v474_v63 = vsub.f32 0.0, %v228_v53  ;;  %v506_v0 = vsub.f32 0.0, %v356_v54 }
  0xfb   :  { %v535_v1 = vmul.f32 1.442695, %v471_v57  ;;  %v599_v2 = vmul.f32 1.442695, %v503_v58  ;;  %v472_v3 = vsub.f32 0.0, %v220_v59  ;;  %v504_v4 = vsub.f32 0.0, %v348_v60 }
  0xfc   :  { %1076 = vpow2.f32 %v539_v61  ;;  %v541_v5 = vmul.f32 1.442695, %v474_v63  ;;  %v605_v6 = vmul.f32 1.442695, %v506_v0 }
  0xfd   :  { %1078 = vpow2.f32 %v603_v62  ;;  %v994_v7 = vpop.f32.mrb[4].mxu0  ;;  %v1026_v8 = vpop.f32.mrb[4].mxu1  ;;  %v537_v9 = vmul.f32 1.442695, %v472_v3  ;;  %v601_v14 = vmul.f32 1.442695, %v504_v4 }
  0xfe   :  { %1080 = vpow2.f32 %v535_v1  ;;  %v241_v10 = vadd.f32 %v994_v7, %v1572_v40  ;;  %v369_v11 = vadd.f32 %v1026_v8, %v1572_v40  ;;  %v232_v12 = vpop.f32.mrb[5].mxu0  ;;  %v360_v13 = vpop.f32.mrb[5].mxu1 }
  0xff   :  { %1082 = vpow2.f32 %v599_v2  ;;  %v233_v15 = vadd.f32 %v1572_v40, %v232_v12  ;;  %v361_v16 = vadd.f32 %v1572_v40, %v360_v13  ;;  %v995_v17 = vpop.f32.mrb[6].mxu0  ;;  %v1027_v18 = vpop.f32.mrb[6].mxu1 }
 0x100   :  { %1084 = vpow2.f32 %v541_v5  ;;  %v477_v19 = vsub.f32 0.0, %v241_v10  ;;  %v509_v20 = vsub.f32 0.0, %v369_v11  ;;  %v244_v21 = vadd.f32 %v995_v17, %v1572_v40  ;;  %v235_v22 = vpop.f32.mrb[7].mxu0  ;;  %v363_v23 = vpop.f32.mrb[7].mxu1 }
 0x101   :  { %1086 = vpow2.f32 %v605_v6  ;;  %v475_v24 = vsub.f32 0.0, %v233_v15  ;;  %v507_v25 = vsub.f32 0.0, %v361_v16  ;;  %v372_v35 = vadd.f32 %v1027_v18, %v1572_v40 }
 0x102   :  { %1088 = vpow2.f32 %v537_v9  ;;  %v547_v26 = vmul.f32 1.442695, %v477_v19  ;;  %v611_v27 = vmul.f32 1.442695, %v509_v20  ;;  %v478_v28 = vsub.f32 0.0, %v244_v21 }
 0x103   :  { %1090 = vpow2.f32 %v601_v14  ;;  %v543_v29 = vmul.f32 1.442695, %v475_v24  ;;  %v607_v30 = vmul.f32 1.442695, %v507_v25  ;;  %v236_v45 = vadd.f32 %v1572_v40, %v235_v22 }
 0x104   :  { %1092 = vpow2.f32 %v547_v26  ;;  %v549_v31 = vmul.f32 1.442695, %v478_v28  ;;  %v510_v52 = vsub.f32 0.0, %v372_v35  ;;  %v364_v55 = vadd.f32 %v1572_v40, %v363_v23 }
 0x105   :  { %1094 = vpow2.f32 %v611_v27  ;;  %v998_v32 = vpop.f32.mrb[8].mxu0  ;;  %v1030_v33 = vpop.f32.mrb[8].mxu1  ;;  %v476_v58 = vsub.f32 0.0, %v236_v45 }
 0x106   :  { %v1077_v34 = vpop.eup %1076  ;;  %1096 = vpow2.f32 %v543_v29  ;;  %v248_v36 = vpop.f32.mrb[9].mxu0  ;;  %v257_v61 = vadd.f32 %v998_v32, %v1572_v40  ;;  %v613_v2 = vmul.f32 1.442695, %v510_v52  ;;  %v385_v3 = vadd.f32 %v1030_v33, %v1572_v40 }
 0x107   :  { %v376_v37 = vpop.f32.mrb[9].mxu1  ;;  %v1079_v38 = vpop.eup %1078  ;;  %v665_v39 = vadd.f32 1.0, %v1077_v34  ;;  %1098 = vpow2.f32 %v607_v30  ;;  %v508_v8 = vsub.f32 0.0, %v364_v55  ;;  %v249_v9 = vadd.f32 %v1572_v40, %v248_v36 }
 0x108   :  { %v999_v41 = vpop.f32.mrb[10].mxu0  ;;  %v1031_v42 = vpop.f32.mrb[10].mxu1  ;;  %v697_v44 = vadd.f32 1.0, %v1079_v38  ;;  %1100 = vpow2.f32 %v549_v31  ;;  %v545_v14 = vmul.f32 1.442695, %v476_v58  ;;  %v377_v15 = vadd.f32 %v1572_v40, %v376_v37 }
 0x109   :  { %v1081_v43 = vpop.eup %1080  ;;  %v251_v46 = vpop.f32.mrb[11].mxu0  ;;  %1102 = vrcp.f32 %v665_v39  ;;  %v481_v20 = vsub.f32 0.0, %v257_v61  ;;  %v260_v21 = vadd.f32 %v999_v41, %v1572_v40  ;;  %v513_v24 = vsub.f32 0.0, %v385_v3 }
 0x10a   :  { %v1083_v47 = vpop.eup %1082  ;;  %v663_v48 = vadd.f32 1.0, %v1081_v43  ;;  %v379_v49 = vpop.f32.mrb[11].mxu1  ;;  %1104 = vrcp.f32 %v697_v44  ;;  %v388_v25 = vadd.f32 %v1031_v42, %v1572_v40  ;;  %v479_v28 = vsub.f32 0.0, %v249_v9 }
 0x10b   :  { %v1085_v50 = vpop.eup %1084  ;;  %v695_v51 = vadd.f32 1.0, %v1083_v47  ;;  %v252_v29 = vadd.f32 %v1572_v40, %v251_v46  ;;  %v609_v31 = vmul.f32 1.442695, %v508_v8  ;;  %v511_v32 = vsub.f32 0.0, %v377_v15 }
 0x10c   :  { %v1087_v53 = vpop.eup %1086  ;;  %1106 = vrcp.f32 %v663_v48  ;;  %v666_v54 = vadd.f32 1.0, %v1085_v50  ;;  %v380_v33 = vadd.f32 %v1572_v40, %v379_v49  ;;  %v555_v35 = vmul.f32 1.442695, %v481_v20 }
 0x10d   :  { %v1089_v56 = vpop.eup %1088  ;;  %1108 = vrcp.f32 %v695_v51  ;;  %v698_v57 = vadd.f32 1.0, %v1087_v53  ;;  %v1002_v62 = vpop.f32.mrb[12].mxu0  ;;  %v482_v36 = vsub.f32 0.0, %v260_v21  ;;  %v619_v42 = vmul.f32 1.442695, %v513_v24 }
 0x10e   :  { %v1091_v59 = vpop.eup %1090  ;;  %1110 = vrcp.f32 %v666_v54  ;;  %v664_v60 = vadd.f32 1.0, %v1089_v56  ;;  %v1034_v63 = vpop.f32.mrb[12].mxu1  ;;  %v273_v37 = vadd.f32 %v1002_v62, %v1572_v40  ;;  %v514_v43 = vsub.f32 0.0, %v388_v25 }
 0x10f   :  { %v1093_v0 = vpop.eup %1092  ;;  %1112 = vrcp.f32 %v698_v57  ;;  %v696_v1 = vadd.f32 1.0, %v1091_v59  ;;  %v1592_v4 = vpop.f32.mrb[13].mxu0  ;;  %v401_v44 = vadd.f32 %v1034_v63, %v1572_v40  ;;  %v551_v48 = vmul.f32 1.442695, %v479_v28 }
 0x110   :  { %v1594_v5 = vpop.f32.mrb[13].mxu1  ;;  %v1095_v6 = vpop.eup %1094  ;;  %1114 = vrcp.f32 %v664_v60  ;;  %v669_v7 = vadd.f32 1.0, %v1093_v0  ;;  %v480_v49 = vsub.f32 0.0, %v252_v29  ;;  %v615_v52 = vmul.f32 1.442695, %v511_v32 }
 0x111   :  { %v1597_v10 = vpop.f32.mrb[14].mxu0  ;;  %v1599_v11 = vpop.f32.mrb[14].mxu1  ;;  %1116 = vrcp.f32 %v696_v1  ;;  %v701_v13 = vadd.f32 1.0, %v1095_v6  ;;  %v512_v53 = vsub.f32 0.0, %v380_v33  ;;  %v557_v56 = vmul.f32 1.442695, %v482_v36 }
 0x112   :  { %v1097_v12 = vpop.eup %1096  ;;  %v1602_v16 = vpop.f32.mrb[15].mxu0  ;;  %1118 = vrcp.f32 %v669_v7  ;;  %v485_v57 = vsub.f32 0.0, %v273_v37  ;;  %v621_v61 = vmul.f32 1.442695, %v514_v43  ;;  %v517_v62 = vsub.f32 0.0, %v401_v44 }
 0x113   :  { %v1604_v17 = vpop.f32.mrb[15].mxu1  ;;  %v1099_v18 = vpop.eup %1098  ;;  %v667_v19 = vadd.f32 1.0, %v1097_v12  ;;  %1120 = vrcp.f32 %v701_v13  ;;  %v553_v0 = vmul.f32 1.442695, %v480_v49  ;;  %v393_v28 = vadd.f32 %v1572_v40, %v1594_v5 }
 0x114   :  { %v1101_v22 = vpop.eup %1100  ;;  %v699_v23 = vadd.f32 1.0, %v1099_v18  ;;  %v563_v6 = vmul.f32 1.442695, %v485_v57  ;;  %v627_v9 = vmul.f32 1.442695, %v517_v62  ;;  %v276_v33 = vadd.f32 %v1597_v10, %v1572_v40 }
 0x115   :  { %v1103_v26 = vpop.eup %1102  ;;  %1122 = vrcp.f32 %v667_v19  ;;  %v670_v27 = vadd.f32 1.0, %v1101_v22  ;;  %v1617_v38 = vpop.f32.mrb[16].mxu0  ;;  %v404_v10 = vadd.f32 %v1599_v11, %v1572_v40  ;;  %v396_v11 = vadd.f32 %v1572_v40, %v1604_v17 }
 0x116   :  { %v1105_v30 = vpop.eup %1104  ;;  %857 = vst [vmem:[%s1945_s3 + $0x10] sm:$0xff] %v1103_v26  ;;  %1124 = vrcp.f32 %v699_v23  ;;  %v1619_v39 = vpop.f32.mrb[16].mxu1  ;;  %v265_v23 = vadd.f32 %v1572_v40, %v1592_v4 }
 0x117   :  { %v1107_v34 = vpop.eup %1106  ;;  %889 = vst [vmem:[%s1945_s3 + $0x110] sm:$0xff] %v1105_v30  ;;  %1126 = vrcp.f32 %v670_v27  ;;  %v1625_v45 = vpop.f32.mrb[17].mxu0 }
 0x118   :  { %v1109_v41 = vpop.eup %1108  ;;  %855 = vst [vmem:[%s1945_s3] sm:$0xff] %v1107_v34  ;;  %1128 = vpow2.f32 %v613_v2  ;;  %v1627_v46 = vpop.f32.mrb[17].mxu1  ;;  %v617_v2 = vmul.f32 1.442695, %v512_v53  ;;  %v281_v17 = vadd.f32 %v1572_v40, %v1625_v45 }
 0x119   :  { %v1111_v47 = vpop.eup %1110  ;;  %887 = vst [vmem:[%s1945_s3 + $0x100] sm:$0xff] %v1109_v41  ;;  %1130 = vpow2.f32 %v545_v14  ;;  %v1632_v50 = vpop.f32.mrb[18].mxu0 }
 0x11a   :  { %v1113_v51 = vpop.eup %1112  ;;  %858 = vst [vmem:[%s1945_s3 + $0x18] sm:$0xff] %v1111_v47  ;;  %1132 = vpow2.f32 %v609_v31  ;;  %v1637_v54 = vpop.f32.mrb[18].mxu1  ;;  %v292_v45 = vadd.f32 %v1632_v50, %v1572_v40 }
 0x11b   :  { %v1115_v55 = vpop.eup %1114  ;;  %890 = vst [vmem:[%s1945_s3 + $0x118] sm:$0xff] %v1113_v51  ;;  %1134 = vpow2.f32 %v555_v35  ;;  %v1642_v58 = vpop.f32.mrb[19].mxu0  ;;  %v483_v35 = vsub.f32 0.0, %v265_v23 }
 0x11c   :  { %v1644_v59 = vpop.f32.mrb[19].mxu1  ;;  %v1117_v60 = vpop.eup %1116  ;;  %856 = vst [vmem:[%s1945_s3 + $0x8] sm:$0xff] %v1115_v55  ;;  %1136 = vpow2.f32 %v619_v42  ;;  %v515_v42 = vsub.f32 0.0, %v393_v28  ;;  %v486_v55 = vsub.f32 0.0, %v276_v33 }
 0x11d   :  { %v1119_v63 = vpop.eup %1118  ;;  %888 = vst [vmem:[%s1945_s3 + $0x108] sm:$0xff] %v1117_v60  ;;  %1138 = vpow2.f32 %v551_v48  ;;  %v1658_v7 = vpop.f32.mrb[20].mxu0 }
 0x11e   :  { %v1121_v1 = vpop.eup %1120  ;;  %861 = vst [vmem:[%s1945_s3 + $0x30] sm:$0xff] %v1119_v63  ;;  %1140 = vpow2.f32 %v615_v52  ;;  %v1663_v12 = vpop.f32.mrb[20].mxu1  ;;  %v559_v63 = vmul.f32 1.442695, %v483_v35 }
 0x11f   :  { %v1123_v3 = vpop.eup %1122  ;;  %893 = vst [vmem:[%s1945_s3 + $0x130] sm:$0xff] %v1121_v1  ;;  %1142 = vpow2.f32 %v557_v56  ;;  %v1668_v14 = vpop.f32.mrb[21].mxu0  ;;  %v268_v56 = vadd.f32 %v1572_v40, %v1602_v16 }
 0x120   :  { %v1125_v8 = vpop.eup %1124  ;;  %859 = vst [vmem:[%s1945_s3 + $0x20] sm:$0xff] %v1123_v3  ;;  %1144 = vpow2.f32 %v621_v61  ;;  %v1670_v15 = vpop.f32.mrb[21].mxu1  ;;  %v289_v3 = vadd.f32 %v1617_v38, %v1572_v40  ;;  %v409_v38 = vadd.f32 %v1572_v40, %v1627_v46 }
 0x121   :  { %v1127_v13 = vpop.eup %1126  ;;  %891 = vst [vmem:[%s1945_s3 + $0x120] sm:$0xff] %v1125_v8  ;;  %1146 = vpow2.f32 %v553_v0  ;;  %v1675_v19 = vpop.f32.mrb[22].mxu0  ;;  %v518_v8 = vsub.f32 0.0, %v404_v10 }
 0x122   :  { %v1129_v18 = vpop.eup %1128  ;;  %862 = vst [vmem:[%s1945_s3 + $0x38] sm:$0xff] %v1127_v13  ;;  %1148 = vpow2.f32 %v617_v2  ;;  %v1677_v20 = vpop.f32.mrb[22].mxu1  ;;  %v623_v2 = vmul.f32 1.442695, %v515_v42  ;;  %v487_v42 = vsub.f32 0.0, %v281_v17 }
 0x123   :  { %v1131_v21 = vpop.eup %1130  ;;  %v702_v22 = vadd.f32 1.0, %v1129_v18  ;;  %1150 = vpow2.f32 %v563_v6  ;;  %v1681_v24 = vpop.f32.mrb[23].mxu0  ;;  %v629_v33 = vmul.f32 1.442695, %v518_v8 }
 0x124   :  { %v1683_v25 = vpop.f32.mrb[23].mxu1  ;;  %v1133_v26 = vpop.eup %1132  ;;  %v668_v27 = vadd.f32 1.0, %v1131_v21  ;;  %1152 = vpow2.f32 %v627_v9  ;;  %v417_v9 = vadd.f32 %v1619_v39, %v1572_v40  ;;  %v484_v21 = vsub.f32 0.0, %v268_v56 }
 0x125   :  { %v1135_v29 = vpop.eup %1134  ;;  %1154 = vrcp.f32 %v702_v22  ;;  %v700_v30 = vadd.f32 1.0, %v1133_v26  ;;  %v1689_v36 = vpop.f32.mrb[24].mxu0  ;;  %v516_v26 = vsub.f32 0.0, %v396_v11  ;;  %v565_v39 = vmul.f32 1.442695, %v486_v55 }
 0x126   :  { %v1137_v31 = vpop.eup %1136  ;;  %1156 = vrcp.f32 %v668_v27  ;;  %v673_v32 = vadd.f32 1.0, %v1135_v29  ;;  %v1691_v37 = vpop.f32.mrb[24].mxu1 }
 0x127   :  { %v1139_v4 = vpop.eup %1138  ;;  %1158 = vrcp.f32 %v700_v30  ;;  %v705_v34 = vadd.f32 1.0, %v1137_v31  ;;  %v1693_v43 = vpop.f32.mrb[25].mxu0  ;;  %v489_v30 = vsub.f32 0.0, %v289_v3 }
 0x128   :  { %v1141_v41 = vpop.eup %1140  ;;  %1160 = vrcp.f32 %v673_v32  ;;  %v671_v5 = vadd.f32 1.0, %v1139_v4  ;;  %v1695_v44 = vpop.f32.mrb[25].mxu1  ;;  %v521_v4 = vsub.f32 0.0, %v417_v9 }
 0x129   :  { %v1143_v47 = vpop.eup %1142  ;;  %1162 = vrcp.f32 %v705_v34  ;;  %v703_v48 = vadd.f32 1.0, %v1141_v41  ;;  %v1699_v49 = vpop.f32.mrb[26].mxu0  ;;  %v420_v34 = vadd.f32 %v1637_v54, %v1572_v40  ;;  %v625_v54 = vmul.f32 1.442695, %v516_v26 }
 0x12a   :  { %v1701_v51 = vpop.f32.mrb[26].mxu1  ;;  %v1145_v52 = vpop.eup %1144  ;;  %1164 = vrcp.f32 %v671_v5  ;;  %v674_v53 = vadd.f32 1.0, %v1143_v47  ;;  %v561_v5 = vmul.f32 1.442695, %v484_v21  ;;  %v284_v47 = vadd.f32 %v1572_v40, %v1642_v58 }
 0x12b   :  { %v1705_v57 = vpop.f32.mrb[27].mxu0  ;;  %v1707_v60 = vpop.f32.mrb[27].mxu1  ;;  %1166 = vrcp.f32 %v703_v48  ;;  %v706_v62 = vadd.f32 1.0, %v1145_v52  ;;  %v519_v52 = vsub.f32 0.0, %v409_v38  ;;  %v571_v56 = vmul.f32 1.442695, %v489_v30 }
 0x12c   :  { %v1147_v61 = vpop.eup %1146  ;;  %1168 = vrcp.f32 %v674_v53  ;;  %v490_v58 = vsub.f32 0.0, %v292_v45 }
 0x12d   :  { %v1149_v0 = vpop.eup %1148  ;;  %v672_v1 = vadd.f32 1.0, %v1147_v61  ;;  %1170 = vrcp.f32 %v706_v62  ;;  %v1719_v27 = vpop.f32.mrb[28].mxu0  ;;  %v635_v62 = vmul.f32 1.442695, %v521_v4  ;;  %v631_v3 = vmul.f32 1.442695, %v519_v52 }
 0x12e   :  { %v1151_v6 = vpop.eup %1150  ;;  %v704_v16 = vadd.f32 1.0, %v1149_v0  ;;  %v1721_v28 = vpop.f32.mrb[28].mxu1  ;;  %v567_v0 = vmul.f32 1.442695, %v487_v42  ;;  %v305_v4 = vadd.f32 %v1658_v7, %v1572_v40  ;;  %v425_v52 = vadd.f32 %v1572_v40, %v1670_v15 }
 0x12f   :  { %v1153_v13 = vpop.eup %1152  ;;  %1172 = vrcp.f32 %v672_v1  ;;  %v677_v18 = vadd.f32 1.0, %v1151_v6  ;;  %v1728_v31 = vpop.f32.mrb[29].mxu0  ;;  %v488_v1 = vsub.f32 0.0, %v284_v47  ;;  %v297_v47 = vadd.f32 %v1572_v40, %v1668_v14 }
 0x130   :  { %v1155_v22 = vpop.eup %1154  ;;  %1174 = vrcp.f32 %v704_v16  ;;  %v709_v23 = vadd.f32 1.0, %v1153_v13  ;;  %v1730_v32 = vpop.f32.mrb[29].mxu1  ;;  %v573_v16 = vmul.f32 1.442695, %v490_v58  ;;  %v493_v58 = vsub.f32 0.0, %v305_v4 }
 0x131   :  { %v1157_v29 = vpop.eup %1156  ;;  %894 = vst [vmem:[%s1945_s3 + $0x138] sm:$0xff] %v1155_v22  ;;  %1176 = vrcp.f32 %v677_v18  ;;  %v1737_v35 = vpop.f32.mrb[30].mxu0  ;;  %v569_v18 = vmul.f32 1.442695, %v488_v1  ;;  %v412_v22 = vadd.f32 %v1572_v40, %v1644_v59  ;;  %v433_v59 = vadd.f32 %v1663_v12, %v1572_v40 }
 0x132   :  { %v1159_v46 = vpop.eup %1158  ;;  %860 = vst [vmem:[%s1945_s3 + $0x28] sm:$0xff] %v1157_v29  ;;  %1178 = vrcp.f32 %v709_v23  ;;  %v1739_v41 = vpop.f32.mrb[30].mxu1  ;;  %v436_v1 = vadd.f32 %v1677_v20, %v1572_v40  ;;  %v321_v20 = vadd.f32 %v1689_v36, %v1572_v40  ;;  %v313_v36 = vadd.f32 %v1572_v40, %v1693_v43 }
 0x133   :  { %v1161_v50 = vpop.eup %1160  ;;  %892 = vst [vmem:[%s1945_s3 + $0x128] sm:$0xff] %v1159_v46  ;;  %1180 = vpow2.f32 %v559_v63  ;;  %v1746_v48 = vpop.f32.mrb[31].mxu0  ;;  %v522_v63 = vsub.f32 0.0, %v420_v34 }
 0x134   :  { %v1163_v10 = vpop.eup %1162  ;;  %865 = vst [vmem:[%s1945_s3 + $0x50] sm:$0xff] %v1161_v50  ;;  %1182 = vpow2.f32 %v623_v2  ;;  %v1751_v53 = vpop.f32.mrb[31].mxu1 }
 0x135   :  { %v1165_v55 = vpop.eup %1164  ;;  %897 = vst [vmem:[%s1945_s3 + $0x150] sm:$0xff] %v1163_v10  ;;  %1184 = vpow2.f32 %v565_v39  ;;  %v637_v9 = vmul.f32 1.442695, %v522_v63  ;;  %v308_v63 = vadd.f32 %v1675_v19, %v1572_v40  ;;  %v428_v19 = vadd.f32 %v1572_v40, %v1683_v25 }
 0x136   :  { %v1167_v61 = vpop.eup %1166  ;;  %863 = vst [vmem:[%s1945_s3 + $0x40] sm:$0xff] %v1165_v55  ;;  %1186 = vpow2.f32 %v629_v33  ;;  %v520_v33 = vsub.f32 0.0, %v412_v22  ;;  %v526_v22 = vsub.f32 0.0, %v436_v1 }
 0x137   :  { %v1169_v11 = vpop.eup %1168  ;;  %895 = vst [vmem:[%s1945_s3 + $0x140] sm:$0xff] %v1167_v61  ;;  %1188 = vpow2.f32 %v561_v5 }
 0x138   :  { %v1171_v2 = vpop.eup %1170  ;;  %866 = vst [vmem:[%s1945_s3 + $0x58] sm:$0xff] %v1169_v11  ;;  %1190 = vpow2.f32 %v625_v54  ;;  %v645_v4 = vmul.f32 1.442695, %v526_v22 }
 0x139   :  { %v1173_v6 = vpop.eup %1172  ;;  %898 = vst [vmem:[%s1945_s3 + $0x158] sm:$0xff] %v1171_v2  ;;  %1192 = vpow2.f32 %v571_v56  ;;  %v633_v56 = vmul.f32 1.442695, %v520_v33  ;;  %v497_v33 = vsub.f32 0.0, %v321_v20 }
 0x13a   :  { %v1175_v8 = vpop.eup %1174  ;;  %864 = vst [vmem:[%s1945_s3 + $0x48] sm:$0xff] %v1173_v6  ;;  %1194 = vpow2.f32 %v635_v62  ;;  %v525_v62 = vsub.f32 0.0, %v433_v59  ;;  %v300_v6 = vadd.f32 %v1572_v40, %v1681_v24  ;;  %v495_v59 = vsub.f32 0.0, %v313_v36 }
 0x13b   :  { %v1177_v13 = vpop.eup %1176  ;;  %896 = vst [vmem:[%s1945_s3 + $0x148] sm:$0xff] %v1175_v8  ;;  %1196 = vpow2.f32 %v567_v0  ;;  %v491_v0 = vsub.f32 0.0, %v297_v47 }
 0x13c   :  { %v1179_v21 = vpop.eup %1178  ;;  %869 = vst [vmem:[%s1945_s3 + $0x70] sm:$0xff] %v1177_v13  ;;  %1198 = vpow2.f32 %v631_v3  ;;  %v523_v3 = vsub.f32 0.0, %v425_v52  ;;  %v643_v24 = vmul.f32 1.442695, %v525_v62 }
 0x13d   :  { %v1181_v17 = vpop.eup %1180  ;;  %901 = vst [vmem:[%s1945_s3 + $0x170] sm:$0xff] %v1179_v21  ;;  %1200 = vpow2.f32 %v573_v16  ;;  %v494_v21 = vsub.f32 0.0, %v308_v63  ;;  %v575_v25 = vmul.f32 1.442695, %v491_v0  ;;  %v324_v63 = vadd.f32 %v1699_v49, %v1572_v40 }
 0x13e   :  { %v1183_v23 = vpop.eup %1182  ;;  %v675_v26 = vadd.f32 1.0, %v1181_v17  ;;  %1202 = vpow2.f32 %v637_v9  ;;  %v579_v9 = vmul.f32 1.442695, %v493_v58  ;;  %v452_v0 = vadd.f32 %v1701_v51, %v1572_v40 }
 0x13f   :  { %v1185_v38 = vpop.eup %1184  ;;  %v707_v29 = vadd.f32 1.0, %v1183_v23  ;;  %1204 = vpow2.f32 %v569_v18  ;;  %v449_v23 = vadd.f32 %v1691_v37, %v1572_v40  ;;  %v441_v37 = vadd.f32 %v1572_v40, %v1695_v44 }
 0x140   :  { %v1187_v39 = vpop.eup %1186  ;;  %1206 = vrcp.f32 %v675_v26  ;;  %v678_v30 = vadd.f32 1.0, %v1185_v38  ;;  %v492_v38 = vsub.f32 0.0, %v300_v6  ;;  %v530_v49 = vsub.f32 0.0, %v452_v0 }
 0x141   :  { %v1189_v45 = vpop.eup %1188  ;;  %1208 = vrcp.f32 %v707_v29  ;;  %v710_v46 = vadd.f32 1.0, %v1187_v39  ;;  %v639_v39 = vmul.f32 1.442695, %v523_v3  ;;  %v527_v47 = vsub.f32 0.0, %v441_v37 }
 0x142   :  { %v1191_v34 = vpop.eup %1190  ;;  %1210 = vrcp.f32 %v678_v30  ;;  %v676_v50 = vadd.f32 1.0, %v1189_v45  ;;  %v524_v30 = vsub.f32 0.0, %v428_v19  ;;  %v577_v44 = vmul.f32 1.442695, %v492_v38 }
 0x143   :  { %v1193_v5 = vpop.eup %1192  ;;  %1212 = vrcp.f32 %v710_v46  ;;  %v708_v42 = vadd.f32 1.0, %v1191_v34  ;;  %v581_v46 = vmul.f32 1.442695, %v494_v21  ;;  %v529_v34 = vsub.f32 0.0, %v449_v23 }
 0x144   :  { %v1195_v10 = vpop.eup %1194  ;;  %1214 = vrcp.f32 %v676_v50  ;;  %v681_v54 = vadd.f32 1.0, %v1193_v5  ;;  %v316_v51 = vadd.f32 %v1572_v40, %v1705_v57  ;;  %v653_v36 = vmul.f32 1.442695, %v530_v49 }
 0x145   :  { %v1197_v55 = vpop.eup %1196  ;;  %1216 = vrcp.f32 %v708_v42  ;;  %v713_v7 = vadd.f32 1.0, %v1195_v10  ;;  %v641_v42 = vmul.f32 1.442695, %v524_v30  ;;  %v465_v57 = vadd.f32 %v1721_v28, %v1572_v40 }
 0x146   :  { %v1199_v61 = vpop.eup %1198  ;;  %1218 = vrcp.f32 %v681_v54  ;;  %v679_v12 = vadd.f32 1.0, %v1197_v55  ;;  %v587_v54 = vmul.f32 1.442695, %v497_v33  ;;  %v651_v55 = vmul.f32 1.442695, %v529_v34 }
 0x147   :  { %v1201_v11 = vpop.eup %1200  ;;  %1220 = vrcp.f32 %v713_v7  ;;  %v711_v14 = vadd.f32 1.0, %v1199_v61  ;;  %v647_v61 = vmul.f32 1.442695, %v527_v47  ;;  %v496_v30 = vsub.f32 0.0, %v316_v51 }
 0x148   :  { %v1203_v15 = vpop.eup %1202  ;;  %1222 = vrcp.f32 %v679_v12  ;;  %v682_v2 = vadd.f32 1.0, %v1201_v11 }
 0x149   :  { %v1205_v16 = vpop.eup %1204  ;;  %1224 = vrcp.f32 %v711_v14  ;;  %v714_v8 = vadd.f32 1.0, %v1203_v15 }
 0x14a   :  { %v1207_v13 = vpop.eup %1206  ;;  %1226 = vrcp.f32 %v682_v2  ;;  %v680_v18 = vadd.f32 1.0, %v1205_v16 }
 0x14b   :  { %v1209_v17 = vpop.eup %1208  ;;  %867 = vst [vmem:[%s1945_s3 + $0x60] sm:$0xff] %v1207_v13  ;;  %1228 = vrcp.f32 %v714_v8  ;;  %v498_v8 = vsub.f32 0.0, %v324_v63 }
 0x14c   :  { %v1211_v26 = vpop.eup %1210  ;;  %899 = vst [vmem:[%s1945_s3 + $0x160] sm:$0xff] %v1209_v17  ;;  %1230 = vrcp.f32 %v680_v18  ;;  %v444_v17 = vadd.f32 %v1572_v40, %v1707_v60  ;;  %v329_v60 = vadd.f32 %v1572_v40, %v1728_v31 }
 0x14d   :  { %v1213_v29 = vpop.eup %1212  ;;  %870 = vst [vmem:[%s1945_s3 + $0x78] sm:$0xff] %v1211_v26  ;;  %1232 = vpow2.f32 %v633_v56  ;;  %v583_v56 = vmul.f32 1.442695, %v495_v59  ;;  %v589_v23 = vmul.f32 1.442695, %v498_v8  ;;  %v337_v26 = vadd.f32 %v1719_v27, %v1572_v40 }
 0x14e   :  { %v1215_v45 = vpop.eup %1214  ;;  %902 = vst [vmem:[%s1945_s3 + $0x178] sm:$0xff] %v1213_v29  ;;  %1234 = vpow2.f32 %v579_v9  ;;  %v1332_v27 = vld [vmem:[%s1944_s2] ss:$0 sm:$0xff]  ;;  %v533_v40 = vsub.f32 0.0, %v465_v57 }
 0x14f   :  { %v1217_v43 = vpop.eup %1216  ;;  %868 = vst [vmem:[%s1945_s3 + $0x68] sm:$0xff] %v1215_v45  ;;  %1236 = vpow2.f32 %v643_v24  ;;  %v457_v33 = vadd.f32 %v1332_v27, %v1730_v32  ;;  %v340_v34 = vadd.f32 %v1332_v27, %v1737_v35  ;;  %v468_v31 = vadd.f32 %v1332_v27, %v1739_v41 }
 0x150   :  { %v1219_v50 = vpop.eup %1218  ;;  %900 = vst [vmem:[%s1945_s3 + $0x168] sm:$0xff] %v1217_v43  ;;  %1238 = vpow2.f32 %v575_v25  ;;  %v499_v32 = vsub.f32 0.0, %v329_v60  ;;  %v460_v41 = vadd.f32 %v1332_v27, %v1751_v53 }
 0x151   :  { %v1221_v5 = vpop.eup %1220  ;;  %873 = vst [vmem:[%s1945_s3 + $0x90] sm:$0xff] %v1219_v50  ;;  %1240 = vpow2.f32 %v639_v39 }
 0x152   :  { %v1223_v10 = vpop.eup %1222  ;;  %905 = vst [vmem:[%s1945_s3 + $0x190] sm:$0xff] %v1221_v5  ;;  %1242 = vpow2.f32 %v581_v46  ;;  %v528_v46 = vsub.f32 0.0, %v444_v17  ;;  %v585_v5 = vmul.f32 1.442695, %v496_v30  ;;  %v591_v53 = vmul.f32 1.442695, %v499_v32 }
 0x153   :  { %v1225_v52 = vpop.eup %1224  ;;  %871 = vst [vmem:[%s1945_s3 + $0x80] sm:$0xff] %v1223_v10  ;;  %1244 = vpow2.f32 %v645_v4  ;;  %v501_v4 = vsub.f32 0.0, %v337_v26  ;;  %v531_v10 = vsub.f32 0.0, %v457_v33  ;;  %v532_v63 = vsub.f32 0.0, %v460_v41 }
 0x154   :  { %v1227_v7 = vpop.eup %1226  ;;  %903 = vst [vmem:[%s1945_s3 + $0x180] sm:$0xff] %v1225_v52  ;;  %1246 = vpow2.f32 %v577_v44  ;;  %v649_v35 = vmul.f32 1.442695, %v528_v46 }
 0x155   :  { %v1229_v58 = vpop.eup %1228  ;;  %874 = vst [vmem:[%s1945_s3 + $0x98] sm:$0xff] %v1227_v7  ;;  %1248 = vpow2.f32 %v641_v42  ;;  %v332_v42 = vadd.f32 %v1332_v27, %v1746_v48  ;;  %v595_v52 = vmul.f32 1.442695, %v501_v4  ;;  %v659_v48 = vmul.f32 1.442695, %v533_v40 }
 0x156   :  { %v1231_v12 = vpop.eup %1230  ;;  %906 = vst [vmem:[%s1945_s3 + $0x198] sm:$0xff] %v1229_v58  ;;  %1250 = vpow2.f32 %v587_v54 }
 0x157   :  { %v1233_v62 = vpop.eup %1232  ;;  %872 = vst [vmem:[%s1945_s3 + $0x88] sm:$0xff] %v1231_v12  ;;  %1252 = vpow2.f32 %v651_v55  ;;  %v502_v55 = vsub.f32 0.0, %v340_v34 }
 0x158   :  { %v1235_v11 = vpop.eup %1234  ;;  %v712_v14 = vadd.f32 1.0, %v1233_v62  ;;  %1254 = vpow2.f32 %v583_v56  ;;  %v534_v56 = vsub.f32 0.0, %v468_v31  ;;  %v655_v62 = vmul.f32 1.442695, %v531_v10 }
 0x159   :  { %v1237_v1 = vpop.eup %1236  ;;  %v685_v15 = vadd.f32 1.0, %v1235_v11  ;;  %1256 = vpow2.f32 %v647_v61  ;;  %v500_v61 = vsub.f32 0.0, %v332_v42 }
 0x15a   :  { %v1239_v2 = vpop.eup %1238  ;;  %1258 = vrcp.f32 %v712_v14  ;;  %v717_v3 = vadd.f32 1.0, %v1237_v1  ;;  %v597_v14 = vmul.f32 1.442695, %v502_v55  ;;  %v661_v1 = vmul.f32 1.442695, %v534_v56 }
 0x15b   :  { %v1241_v6 = vpop.eup %1240  ;;  %1260 = vrcp.f32 %v685_v15  ;;  %v683_v16 = vadd.f32 1.0, %v1239_v2  ;;  %v593_v2 = vmul.f32 1.442695, %v500_v61 }
 0x15c   :  { %v1243_v9 = vpop.eup %1242  ;;  %1262 = vrcp.f32 %v717_v3  ;;  %v715_v19 = vadd.f32 1.0, %v1241_v6  ;;  %v657_v6 = vmul.f32 1.442695, %v532_v63 }
 0x15d   :  { %v1245_v13 = vpop.eup %1244  ;;  %1264 = vrcp.f32 %v683_v16  ;;  %v686_v18 = vadd.f32 1.0, %v1243_v9 }
 0x15e   :  { %v1247_v21 = vpop.eup %1246  ;;  %1266 = vrcp.f32 %v715_v19  ;;  %v718_v20 = vadd.f32 1.0, %v1245_v13 }
 0x15f   :  { %v1249_v24 = vpop.eup %1248  ;;  %1268 = vrcp.f32 %v686_v18  ;;  %v684_v22 = vadd.f32 1.0, %v1247_v21 }
 0x160   :  { %v1251_v25 = vpop.eup %1250  ;;  %1270 = vrcp.f32 %v718_v20  ;;  %v716_v38 = vadd.f32 1.0, %v1249_v24 }
 0x161   :  { %v1253_v29 = vpop.eup %1252  ;;  %1272 = vrcp.f32 %v684_v22  ;;  %v689_v39 = vadd.f32 1.0, %v1251_v25 }
 0x162   :  { %v1255_v37 = vpop.eup %1254  ;;  %1274 = vrcp.f32 %v716_v38  ;;  %v721_v45 = vadd.f32 1.0, %v1253_v29 }
 0x163   :  { %v1257_v43 = vpop.eup %1256  ;;  %1276 = vrcp.f32 %v689_v39  ;;  %v687_v28 = vadd.f32 1.0, %v1255_v37 }
 0x164   :  { %v1259_v50 = vpop.eup %1258  ;;  %1278 = vrcp.f32 %v721_v45  ;;  %v719_v44 = vadd.f32 1.0, %v1257_v43 }
 0x165   :  { %v1261_v59 = vpop.eup %1260  ;;  %904 = vst [vmem:[%s1945_s3 + $0x188] sm:$0xff] %v1259_v50  ;;  %1280 = vrcp.f32 %v687_v28 }
 0x166   :  { %v1263_v47 = vpop.eup %1262  ;;  %877 = vst [vmem:[%s1945_s3 + $0xb0] sm:$0xff] %v1261_v59  ;;  %1282 = vrcp.f32 %v719_v44 }
 0x167   :  { %v1265_v54 = vpop.eup %1264  ;;  %909 = vst [vmem:[%s1945_s3 + $0x1b0] sm:$0xff] %v1263_v47  ;;  %1284 = vpow2.f32 %v589_v23 }
 0x168   :  { %v1267_v7 = vpop.eup %1266  ;;  %875 = vst [vmem:[%s1945_s3 + $0xa0] sm:$0xff] %v1265_v54  ;;  %1286 = vpow2.f32 %v653_v36 }
 0x169   :  { %v1269_v58 = vpop.eup %1268  ;;  %907 = vst [vmem:[%s1945_s3 + $0x1a0] sm:$0xff] %v1267_v7  ;;  %1288 = vpow2.f32 %v585_v5 }
 0x16a   :  { %v1271_v12 = vpop.eup %1270  ;;  %878 = vst [vmem:[%s1945_s3 + $0xb8] sm:$0xff] %v1269_v58  ;;  %1290 = vpow2.f32 %v649_v35 }
 0x16b   :  { %v1273_v11 = vpop.eup %1272  ;;  %910 = vst [vmem:[%s1945_s3 + $0x1b8] sm:$0xff] %v1271_v12  ;;  %1292 = vpow2.f32 %v595_v52 }
 0x16c   :  { %v1275_v0 = vpop.eup %1274  ;;  %876 = vst [vmem:[%s1945_s3 + $0xa8] sm:$0xff] %v1273_v11  ;;  %1294 = vpow2.f32 %v659_v48 }
 0x16d   :  { %v1277_v15 = vpop.eup %1276  ;;  %908 = vst [vmem:[%s1945_s3 + $0x1a8] sm:$0xff] %v1275_v0  ;;  %1296 = vpow2.f32 %v591_v53 }
 0x16e   :  { %v1279_v3 = vpop.eup %1278  ;;  %881 = vst [vmem:[%s1945_s3 + $0xd0] sm:$0xff] %v1277_v15  ;;  %1298 = vpow2.f32 %v655_v62 }
 0x16f   :  { %v1281_v16 = vpop.eup %1280  ;;  %913 = vst [vmem:[%s1945_s3 + $0x1d0] sm:$0xff] %v1279_v3  ;;  %1300 = vpow2.f32 %v597_v14 }
 0x170   :  { %v1283_v8 = vpop.eup %1282  ;;  %879 = vst [vmem:[%s1945_s3 + $0xc0] sm:$0xff] %v1281_v16  ;;  %1302 = vpow2.f32 %v661_v1 }
 0x171   :  { %v1285_v9 = vpop.eup %1284  ;;  %911 = vst [vmem:[%s1945_s3 + $0x1c0] sm:$0xff] %v1283_v8  ;;  %1304 = vpow2.f32 %v593_v2 }
 0x172   :  { %v1287_v19 = vpop.eup %1286  ;;  %v690_v49 = vadd.f32 1.0, %v1285_v9  ;;  %1306 = vpow2.f32 %v657_v6 }
 0x173   :  { %v1289_v13 = vpop.eup %1288  ;;  %v722_v18 = vadd.f32 1.0, %v1287_v19 }
 0x174   :  { %v1291_v51 = vpop.eup %1290  ;;  %1308 = vrcp.f32 %v690_v49  ;;  %v688_v21 = vadd.f32 1.0, %v1289_v13 }
 0x175   :  { %v1293_v20 = vpop.eup %1292  ;;  %1310 = vrcp.f32 %v722_v18  ;;  %v720_v17 = vadd.f32 1.0, %v1291_v51 }
 0x176   :  { %v1295_v24 = vpop.eup %1294  ;;  %1312 = vrcp.f32 %v688_v21  ;;  %v693_v22 = vadd.f32 1.0, %v1293_v20 }
 0x177   :  { %v1297_v23 = vpop.eup %1296  ;;  %1314 = vrcp.f32 %v720_v17  ;;  %v725_v26 = vadd.f32 1.0, %v1295_v24 }
 0x178   :  { %v1299_v25 = vpop.eup %1298  ;;  %1316 = vrcp.f32 %v693_v22  ;;  %v691_v38 = vadd.f32 1.0, %v1297_v23 }
 0x179   :  { %v1301_v36 = vpop.eup %1300  ;;  %1318 = vrcp.f32 %v725_v26  ;;  %v723_v57 = vadd.f32 1.0, %v1299_v25 }
 0x17a   :  { %v1303_v29 = vpop.eup %1302  ;;  %1320 = vrcp.f32 %v691_v38  ;;  %v694_v39 = vadd.f32 1.0, %v1301_v36 }
 0x17b   :  { %v1305_v30 = vpop.eup %1304  ;;  %1322 = vrcp.f32 %v723_v57  ;;  %v726_v60 = vadd.f32 1.0, %v1303_v29 }
 0x17c   :  { %v1307_v37 = vpop.eup %1306  ;;  %1324 = vrcp.f32 %v694_v39  ;;  %v692_v45 = vadd.f32 1.0, %v1305_v30 }
 0x17d   :  { %1326 = vrcp.f32 %v726_v60  ;;  %v724_v46 = vadd.f32 1.0, %v1307_v37 }
 0x17e   :  { %v1309_v27 = vpop.eup %1308  ;;  %1328 = vrcp.f32 %v692_v45 }
 0x17f   :  { %v1311_v33 = vpop.eup %1310  ;;  %882 = vst [vmem:[%s1945_s3 + $0xd8] sm:$0xff] %v1309_v27  ;;  %1330 = vrcp.f32 %v724_v46 }
 0x180   :  { %v1313_v43 = vpop.eup %1312  ;;  %914 = vst [vmem:[%s1945_s3 + $0x1d8] sm:$0xff] %v1311_v33 }
 0x181   :  { %v1315_v28 = vpop.eup %1314  ;;  %880 = vst [vmem:[%s1945_s3 + $0xc8] sm:$0xff] %v1313_v43 }
 0x182   :  { %v1317_v4 = vpop.eup %1316  ;;  %912 = vst [vmem:[%s1945_s3 + $0x1c8] sm:$0xff] %v1315_v28 }
 0x183   :  { %v1319_v34 = vpop.eup %1318  ;;  %885 = vst [vmem:[%s1945_s3 + $0xf0] sm:$0xff] %v1317_v4 }
 0x184   :  { %v1321_v50 = vpop.eup %1320  ;;  %917 = vst [vmem:[%s1945_s3 + $0x1f0] sm:$0xff] %v1319_v34 }
 0x185   :  { %v1323_v44 = vpop.eup %1322  ;;  %883 = vst [vmem:[%s1945_s3 + $0xe0] sm:$0xff] %v1321_v50 }
 0x186   :  { %v1325_v40 = vpop.eup %1324  ;;  %915 = vst [vmem:[%s1945_s3 + $0x1e0] sm:$0xff] %v1323_v44 }
 0x187   :  { %v1327_v31 = vpop.eup %1326  ;;  %886 = vst [vmem:[%s1945_s3 + $0xf8] sm:$0xff] %v1325_v40 }
 0x188   :  { %v1329_v59 = vpop.eup %1328  ;;  %918 = vst [vmem:[%s1945_s3 + $0x1f8] sm:$0xff] %v1327_v31 }
 0x189   :  { %v1331_v5 = vpop.eup %1330  ;;  %884 = vst [vmem:[%s1945_s3 + $0xe8] sm:$0xff] %v1329_v59 }
 0x18a   :  { %916 = vst [vmem:[%s1945_s3 + $0x1e8] sm:$0xff] %v1331_v5 }

</bundles_post_ra>
